<compile_context>
chip_gen: v7x
topology: tpu7x:2x2x1
jax: 0.10.0
libtpu: 0.0.40
codegen_flags: <defaults>
</compile_context>

<pallas_src>
import jax
import jax.numpy as jnp
from jax.experimental import pallas as pl
from jax.experimental.pallas import tpu as pltpu

DIM = 32                                  # GIN hidden dim
EMBED_DIM = 128                           # embedding dim (= Conv1d "length")
SEQ_LEN = 1000                            # protein sequence length (= Conv1d in_channels)
N_FILTERS = 32                            # Conv1d out_channels
KSIZE = 8                                 # Conv1d kernel size
CONV_OUT_LEN = EMBED_DIM - KSIZE + 1      # 121
XT_FLAT = N_FILTERS * CONV_OUT_LEN        # 3872 (true torch .view width)
XT_FLAT_PAD = N_FILTERS * EMBED_DIM       # 4096 (lane-dense padded width)
OUTPUT_DIM = 128
NUM_FEATURES_XD = 320
VOCAB = 25 + 1                            # 26 embedding rows
VOCAB_PAD = 32                            # padded vocab (zero rows 26..31)


# ----------------------------------------------------------------------------
# Kernel A: protein branch
#   emb[c, t]  = embed_table[token[c], t]          (in-kernel one-hot matmul)
#   out[o, t]  = sum_{c,k} emb[c, t+k] * W[o,c,k] + bias[o]     for t < 121
#   stored lane-dense as [32, 128] with columns 121..127 zeroed.
# ----------------------------------------------------------------------------
def conv_xt_kernel(tok_ref, table_ref, w_ref, b_ref, o_ref):
    tok = tok_ref[0]                                              # [1000, 1] int32
    vocab_iota = jax.lax.broadcasted_iota(jnp.int32, (SEQ_LEN, VOCAB_PAD), 1)
    onehot = (tok == vocab_iota).astype(jnp.bfloat16)             # [1000, 32]
    # embedding gather as a matmul (exact: one-hot picks a single bf16 row)
    emb = jnp.dot(onehot, table_ref[...],
                  preferred_element_type=jnp.float32).astype(jnp.bfloat16)   # [1000, 128]
    # all 8 taps in one MXU matmul; row k*32+o of w_ref is W[o, :, k]
    res = jnp.dot(w_ref[...], emb, preferred_element_type=jnp.float32)       # [256, 128]
    # combine taps: tap-k contribution to out[:, t] is res[k*32:(k+1)*32, t+k]
    acc = res[0:N_FILTERS, :]
    for k in range(1, KSIZE):
        slab = res[k * N_FILTERS:(k + 1) * N_FILTERS, :]
        # roll by (128 - k)  ==  roll by -k  ==  out[:, t] = slab[:, t + k]
        acc = acc + pltpu.roll(slab, shift=EMBED_DIM - k, axis=1)
    acc = acc + b_ref[...]                                        # pre-broadcast bias [32,128]
    lane = jax.lax.broadcasted_iota(jnp.int32, (N_FILTERS, EMBED_DIM), 1)
    o_ref[0] = jnp.where(lane < CONV_OUT_LEN, acc, 0.0)           # zero padded lanes


def conv1d_xt(tokens, table_bf16, w_stacked_bf16, bias_bc):
    b = tokens.shape[0]
    tok3 = tokens.astype(jnp.int32)[:, :, None]                   # [B, 1000, 1]
    return pl.pallas_call(
        conv_xt_kernel,
        out_shape=jax.ShapeDtypeStruct((b, N_FILTERS, EMBED_DIM), jnp.float32),
        grid=(b,),
        in_specs=[
            pl.BlockSpec((1, SEQ_LEN, 1), lambda i: (i, 0, 0)),
            pl.BlockSpec((VOCAB_PAD, EMBED_DIM), lambda i: (0, 0)),
            pl.BlockSpec((KSIZE * N_FILTERS, SEQ_LEN), lambda i: (0, 0)),
            pl.BlockSpec((N_FILTERS, EMBED_DIM), lambda i: (0, 0)),
        ],
        out_specs=pl.BlockSpec((1, N_FILTERS, EMBED_DIM), lambda i: (i, 0, 0)),
        compiler_params=pltpu.CompilerParams(
            dimension_semantics=("parallel",)),
    )(tok3, table_bf16, w_stacked_bf16, bias_bc)


# ----------------------------------------------------------------------------
# Kernel B: fused graph branch (5 GIN layers) + head, single pallas_call.
#   per layer: h = BN( relu( MLP((A+I) @ h) ) ), MLP = Linear->ReLU->Linear,
#   BN folded to affine scale/shift (eval mode).
#   head: pooled = pool_mat @ h ; xg = relu(pooled @ Wxd + b) ;
#         xt = xt_flat_pad @ Wxt_pad + b ; fc1 split avoids the concat.
# ----------------------------------------------------------------------------
def gin_head_kernel(adj_ref, x_ref,
                    w1a_ref, b1a_ref, w2a_ref, b2a_ref, sca_ref, sha_ref,
                    w1s_ref, b1s_ref, w2s_ref, b2s_ref, scs_ref, shs_ref,
                    pool_ref, wxd_ref, bxd_ref,
                    xt_ref, wxt_ref, bxt_ref,
                    wf1g_ref, wf1t_ref, bf1_ref,
                    wf2_ref, bf2_ref, wo_ref, bo_ref,
                    o_ref):
    adj = adj_ref[...]

    def gin_layer(h_in, w1, b1, w2, b2, scale, shift):
        agg = jnp.dot(adj, h_in, preferred_element_type=jnp.float32)
        t = jnp.maximum(jnp.dot(agg, w1, preferred_element_type=jnp.float32) + b1, 0.0)
        t = jnp.dot(t, w2, preferred_element_type=jnp.float32) + b2
        t = jnp.maximum(t, 0.0)                    # outer F.relu
        return t * scale + shift                   # eval-mode BatchNorm (folded)

    h = gin_layer(x_ref[...], w1a_ref[...], b1a_ref[...], w2a_ref[...], b2a_ref[...],
                  sca_ref[...], sha_ref[...])
    for i in range(4):                             # layers 2..5, static unroll
        h = gin_layer(h, w1s_ref[i], b1s_ref[i], w2s_ref[i], b2s_ref[i],
                      scs_ref[i], shs_ref[i])

    # head
    pooled = jnp.dot(pool_ref[...], h, preferred_element_type=jnp.float32)   # global_add_pool
    xg = jnp.maximum(
        jnp.dot(pooled, wxd_ref[...], preferred_element_type=jnp.float32) + bxd_ref[...], 0.0)
    xt = jnp.dot(xt_ref[...].astype(jnp.bfloat16), wxt_ref[...],
                 preferred_element_type=jnp.float32) + bxt_ref[...]
    h1 = (jnp.dot(xg, wf1g_ref[...], preferred_element_type=jnp.float32)
          + jnp.dot(xt, wf1t_ref[...], preferred_element_type=jnp.float32)
          + bf1_ref[...])
    h1 = jnp.maximum(h1, 0.0)
    h2 = jnp.dot(h1, wf2_ref[...], preferred_element_type=jnp.float32) + bf2_ref[...]
    h2 = jnp.maximum(h2, 0.0)
    o_ref[...] = jnp.dot(h2, wo_ref[...], preferred_element_type=jnp.float32) + bo_ref[...]


def gin_head(adj_plus_i, x_nodes, pool_mat, xt_flat_pad, p):
    b = pool_mat.shape[0]
    n_out = p["b_out"].shape[1]
    g1 = p["gin1"]
    return pl.pallas_call(
        gin_head_kernel,
        out_shape=jax.ShapeDtypeStruct((b, n_out), jnp.float32),
    )(adj_plus_i, x_nodes,
      g1["w1"], g1["b1"], g1["w2"], g1["b2"], g1["scale"], g1["shift"],
      p["gin_w1s"], p["gin_b1s"], p["gin_w2s"], p["gin_b2s"],
      p["gin_scs"], p["gin_shs"],
      pool_mat, p["w_xd"], p["b_xd"],
      xt_flat_pad, p["w_xt_pad"], p["b_xt"],
      p["w_fc1_g"], p["w_fc1_t"], p["b_fc1"],
      p["w_fc2"], p["b_fc2"], p["w_out"], p["b_out"])


# ----------------------------------------------------------------------------
# Full forward: 2 pallas_calls total (conv/protein kernel, GIN+head kernel).
# ----------------------------------------------------------------------------
@jax.jit
def ginconvnet_forward(params, x_nodes, adj_plus_i, pool_mat, target_tokens):
    conv = conv1d_xt(target_tokens, params["embed_pad"],
                     params["conv_w_stacked"], params["conv_b_bc"])   # [B, 32, 128]
    xt_flat_pad = conv.reshape(conv.shape[0], XT_FLAT_PAD)            # free row-major reshape
    return gin_head(adj_plus_i, x_nodes, pool_mat, xt_flat_pad, params)


# ----------------------------------------------------------------------------
# Deterministic parameter init (eval-mode BN folded; layouts pre-arranged)
# ----------------------------------------------------------------------------
def make_params(key):
    keys = iter(jax.random.split(key, 64))

    def lin(fan_in, fan_out):
        w = jax.random.normal(next(keys), (fan_in, fan_out), jnp.float32) * 0.05
        b = jax.random.normal(next(keys), (1, fan_out), jnp.float32) * 0.05
        return w, b

    def fold_bn(gamma, beta, mean, var, eps=1e-5):
        scale = gamma * jax.lax.rsqrt(var + eps)
        return scale, beta - mean * scale

    # --- GIN layers (torch init: gamma=1, beta=0, running mean=0, var=1) ---
    gamma = jnp.ones((1, DIM), jnp.float32)
    beta = jnp.zeros((1, DIM), jnp.float32)
    mean = jnp.zeros((1, DIM), jnp.float32)
    var = jnp.ones((1, DIM), jnp.float32)
    bn_scale, bn_shift = fold_bn(gamma, beta, mean, var)

    w1_1, b1_1 = lin(NUM_FEATURES_XD, DIM)
    w2_1, b2_1 = lin(DIM, DIM)
    gin1 = dict(w1=w1_1, b1=b1_1, w2=w2_1, b2=b2_1, scale=bn_scale, shift=bn_shift)

    w1s, b1s, w2s, b2s, scs, shs = [], [], [], [], [], []
    for _ in range(4):
        w1, b1 = lin(DIM, DIM)
        w2, b2 = lin(DIM, DIM)
        w1s.append(w1); b1s.append(b1); w2s.append(w2); b2s.append(b2)
        scs.append(bn_scale); shs.append(bn_shift)

    w_xd, b_xd = lin(DIM, OUTPUT_DIM)

    # --- protein branch ---
    embed = jax.random.normal(next(keys), (VOCAB, EMBED_DIM), jnp.float32) * 0.05
    embed_pad = jnp.zeros((VOCAB_PAD, EMBED_DIM), jnp.float32).at[:VOCAB].set(embed)
    embed_pad = embed_pad.astype(jnp.bfloat16)

    # torch Conv1d weight [O=32, C=1000, K=8] -> stacked [K*O=256, C=1000] (row k*32+o)
    conv_w = jax.random.normal(next(keys), (N_FILTERS, SEQ_LEN, KSIZE), jnp.float32) * 0.02
    conv_w_stacked = jnp.transpose(conv_w, (2, 0, 1)).reshape(
        KSIZE * N_FILTERS, SEQ_LEN).astype(jnp.bfloat16)
    conv_b = jax.random.normal(next(keys), (N_FILTERS,), jnp.float32) * 0.02
    conv_b_bc = jnp.tile(conv_b[:, None], (1, EMBED_DIM))            # pre-broadcast bias

    # fc1_xt: true weight is [32*121, 128]; scatter into padded lane-dense layout
    # [32*128, 128] (rows for t in 121..127 are zero) and store bf16.
    w_xt, b_xt = lin(XT_FLAT, OUTPUT_DIM)
    w_xt_pad = jnp.zeros((N_FILTERS, EMBED_DIM, OUTPUT_DIM), jnp.float32)
    w_xt_pad = w_xt_pad.at[:, :CONV_OUT_LEN, :].set(
        w_xt.reshape(N_FILTERS, CONV_OUT_LEN, OUTPUT_DIM))
    w_xt_pad = w_xt_pad.reshape(XT_FLAT_PAD, OUTPUT_DIM).astype(jnp.bfloat16)

    # --- head ---
    w_fc1, b_fc1 = lin(2 * OUTPUT_DIM, 1024)
    w_fc2, b_fc2 = lin(1024, 256)
    w_out, b_out = lin(256, 1)

    return dict(
        gin1=gin1,
        gin_w1s=jnp.stack(w1s), gin_b1s=jnp.stack(b1s),
        gin_w2s=jnp.stack(w2s), gin_b2s=jnp.stack(b2s),
        gin_scs=jnp.stack(scs), gin_shs=jnp.stack(shs),
        w_xd=w_xd, b_xd=b_xd,
        embed_pad=embed_pad, conv_w_stacked=conv_w_stacked, conv_b_bc=conv_b_bc,
        w_xt_pad=w_xt_pad, b_xt=b_xt,
        w_fc1_g=w_fc1[:OUTPUT_DIM], w_fc1_t=w_fc1[OUTPUT_DIM:], b_fc1=b_fc1,
        w_fc2=w_fc2, b_fc2=b_fc2, w_out=w_out, b_out=b_out,
    )


if __name__ == "__main__":
    key = jax.random.PRNGKey(0)
    k_par, k_x, k_src, k_dst, k_tgt = jax.random.split(key, 5)

    params = make_params(k_par)

    # small graph: 2 graphs x 16 nodes, 80 directed edges
    N, E, B = 32, 80, 2
    x_nodes = jax.random.normal(k_x, (N, NUM_FEATURES_XD), jnp.float32)
    src = jax.random.randint(k_src, (E,), 0, N)
    dst = jax.random.randint(k_dst, (E,), 0, N)
    # (A + I): A[i, j] = #edges j -> i ; "+ I" realizes the (1+eps)*x_i term (eps=0)
    adj_plus_i = (jnp.zeros((N, N), jnp.float32).at[dst, src].add(1.0)
                  + jnp.eye(N, dtype=jnp.float32))
    batch_vec = jnp.concatenate([jnp.zeros(N // 2, jnp.int32),
                                 jnp.ones(N // 2, jnp.int32)])
    pool_mat = (batch_vec[None, :] == jnp.arange(B)[:, None]).astype(jnp.float32)

    # protein targets: [B, 1000] integer tokens in [0, 25]
    target = jax.random.randint(k_tgt, (B, SEQ_LEN), 0, VOCAB)

    out = ginconvnet_forward(params, x_nodes, adj_plus_i, pool_mat, target)
    out = jax.block_until_ready(out)
    assert out.shape == (B, 1) and out.dtype == jnp.float32
    print("KERNEL_OK")
</pallas_src>

<mosaic_0001>
module attributes {stable_mosaic.version = 11 : i64} {
  func.func @conv_xt_kernel(%arg0: i32, %arg1: memref<1x1000x1xi32, #tpu.memory_space<vmem>>, %arg2: memref<32x128xbf16, #tpu.memory_space<vmem>>, %arg3: memref<256x1000xbf16, #tpu.memory_space<vmem>>, %arg4: memref<32x128xf32, #tpu.memory_space<vmem>>, %arg5: memref<1x32x128xf32, #tpu.memory_space<vmem>>) attributes {dimension_semantics = [#tpu.dimension_semantics<parallel>], iteration_bounds = array<i64: 2>, scalar_prefetch = 0 : i64, scratch_operands = 0 : i64, tpu.core_type = #tpu.core_type<tc>, window_params = [{transform_indices = @transform_0, window_bounds = array<i64: 1, 1000, 1>}, {pipeline_mode = #tpu.pipeline_mode<synchronous>, transform_indices = @transform_1, window_bounds = array<i64: 32, 128>}, {pipeline_mode = #tpu.pipeline_mode<synchronous>, transform_indices = @transform_2, window_bounds = array<i64: 256, 1000>}, {pipeline_mode = #tpu.pipeline_mode<synchronous>, transform_indices = @transform_3, window_bounds = array<i64: 32, 128>}, {transform_indices = @transform_4, window_bounds = array<i64: 1, 32, 128>}]} {
    %c0 = arith.constant 0 : index
    %c0_0 = arith.constant 0 : index
    %c0_1 = arith.constant 0 : index
    %0 = vector.load %arg1[%c0, %c0_0, %c0_1] : memref<1x1000x1xi32, #tpu.memory_space<vmem>>, vector<1x1000x1xi32>
    %1 = vector.shape_cast %0 : vector<1x1000x1xi32> to vector<1000x1xi32>
    %2 = tpu.iota {dimensions = array<i32: 1>} : vector<1000x32xi32>
    %3 = vector.broadcast %1 : vector<1000x1xi32> to vector<1000x32xi32>
    %4 = arith.cmpi eq, %3, %2 : vector<1000x32xi32>
    %5 = arith.extui %4 : vector<1000x32xi1> to vector<1000x32xi32>
    %6 = arith.sitofp %5 : vector<1000x32xi32> to vector<1000x32xf32>
    %7 = arith.truncf %6 : vector<1000x32xf32> to vector<1000x32xbf16>
    %c0_2 = arith.constant 0 : index
    %c0_3 = arith.constant 0 : index
    %8 = vector.load %arg2[%c0_2, %c0_3] : memref<32x128xbf16, #tpu.memory_space<vmem>>, vector<32x128xbf16>
    %cst = arith.constant dense<0.000000e+00> : vector<1000x128xf32>
    %9 = tpu.matmul %7, %8, %cst {dimension_numbers = #tpu.dot_dimension_numbers<[1], [0], [0], [1], [0, 0, 1, 1], [], []>} : vector<1000x32xbf16>, vector<32x128xbf16>, vector<1000x128xf32> -> vector<1000x128xf32>
    %10 = arith.truncf %9 : vector<1000x128xf32> to vector<1000x128xbf16>
    %c0_4 = arith.constant 0 : index
    %c0_5 = arith.constant 0 : index
    %11 = vector.load %arg3[%c0_4, %c0_5] : memref<256x1000xbf16, #tpu.memory_space<vmem>>, vector<256x1000xbf16>
    %cst_6 = arith.constant dense<0.000000e+00> : vector<256x128xf32>
    %12 = tpu.matmul %11, %10, %cst_6 {dimension_numbers = #tpu.dot_dimension_numbers<[1], [0], [0], [1], [0, 0, 1, 1], [], []>} : vector<256x1000xbf16>, vector<1000x128xbf16>, vector<256x128xf32> -> vector<256x128xf32>
    %13 = vector.extract_strided_slice %12 {offsets = [0, 0], sizes = [32, 128], strides = [1, 1]} : vector<256x128xf32> to vector<32x128xf32>
    %14 = vector.extract_strided_slice %12 {offsets = [32, 0], sizes = [32, 128], strides = [1, 1]} : vector<256x128xf32> to vector<32x128xf32>
    %c127_i32 = arith.constant 127 : i32
    %15 = tpu.dynamic_rotate %14 by %c127_i32 dim 1 : vector<32x128xf32>, i32 -> vector<32x128xf32>
    %16 = arith.addf %13, %15 : vector<32x128xf32>
    %17 = vector.extract_strided_slice %12 {offsets = [64, 0], sizes = [32, 128], strides = [1, 1]} : vector<256x128xf32> to vector<32x128xf32>
    %c126_i32 = arith.constant 126 : i32
    %18 = tpu.dynamic_rotate %17 by %c126_i32 dim 1 : vector<32x128xf32>, i32 -> vector<32x128xf32>
    %19 = arith.addf %16, %18 : vector<32x128xf32>
    %20 = vector.extract_strided_slice %12 {offsets = [96, 0], sizes = [32, 128], strides = [1, 1]} : vector<256x128xf32> to vector<32x128xf32>
    %c125_i32 = arith.constant 125 : i32
    %21 = tpu.dynamic_rotate %20 by %c125_i32 dim 1 : vector<32x128xf32>, i32 -> vector<32x128xf32>
    %22 = arith.addf %19, %21 : vector<32x128xf32>
    %23 = vector.extract_strided_slice %12 {offsets = [128, 0], sizes = [32, 128], strides = [1, 1]} : vector<256x128xf32> to vector<32x128xf32>
    %c124_i32 = arith.constant 124 : i32
    %24 = tpu.dynamic_rotate %23 by %c124_i32 dim 1 : vector<32x128xf32>, i32 -> vector<32x128xf32>
    %25 = arith.addf %22, %24 : vector<32x128xf32>
    %26 = vector.extract_strided_slice %12 {offsets = [160, 0], sizes = [32, 128], strides = [1, 1]} : vector<256x128xf32> to vector<32x128xf32>
    %c123_i32 = arith.constant 123 : i32
    %27 = tpu.dynamic_rotate %26 by %c123_i32 dim 1 : vector<32x128xf32>, i32 -> vector<32x128xf32>
    %28 = arith.addf %25, %27 : vector<32x128xf32>
    %29 = vector.extract_strided_slice %12 {offsets = [192, 0], sizes = [32, 128], strides = [1, 1]} : vector<256x128xf32> to vector<32x128xf32>
    %c122_i32 = arith.constant 122 : i32
    %30 = tpu.dynamic_rotate %29 by %c122_i32 dim 1 : vector<32x128xf32>, i32 -> vector<32x128xf32>
    %31 = arith.addf %28, %30 : vector<32x128xf32>
    %32 = vector.extract_strided_slice %12 {offsets = [224, 0], sizes = [32, 128], strides = [1, 1]} : vector<256x128xf32> to vector<32x128xf32>
    %c121_i32 = arith.constant 121 : i32
    %33 = tpu.dynamic_rotate %32 by %c121_i32 dim 1 : vector<32x128xf32>, i32 -> vector<32x128xf32>
    %34 = arith.addf %31, %33 : vector<32x128xf32>
    %c0_7 = arith.constant 0 : index
    %c0_8 = arith.constant 0 : index
    %35 = vector.load %arg4[%c0_7, %c0_8] : memref<32x128xf32, #tpu.memory_space<vmem>>, vector<32x128xf32>
    %36 = arith.addf %34, %35 : vector<32x128xf32>
    %37 = tpu.iota {dimensions = array<i32: 1>} : vector<32x128xi32>
    %c121_i32_9 = arith.constant 121 : i32
    %38 = vector.broadcast %c121_i32_9 : i32 to vector<32x128xi32>
    %39 = arith.cmpi slt, %37, %38 : vector<32x128xi32>
    %cst_10 = arith.constant 0.000000e+00 : f32
    %40 = vector.broadcast %cst_10 : f32 to vector<32x128xf32>
    %41 = arith.select %39, %36, %40 : vector<32x128xi1>, vector<32x128xf32>
    %c0_11 = arith.constant 0 : index
    %c0_12 = arith.constant 0 : index
    %c0_13 = arith.constant 0 : index
    %42 = vector.load %arg5[%c0_11, %c0_12, %c0_13] : memref<1x32x128xf32, #tpu.memory_space<vmem>>, vector<1x32x128xf32>
    %43 = vector.shape_cast %42 : vector<1x32x128xf32> to vector<32x128xf32>
    %44 = vector.shape_cast %41 : vector<32x128xf32> to vector<1x32x128xf32>
    tpu.vector_store %arg5[%c0_11, %c0_12, %c0_13], %44 {strides = array<i32>} : memref<1x32x128xf32, #tpu.memory_space<vmem>>, vector<1x32x128xf32>,
    return
  }
  func.func @transform_0(%arg0: i32) -> (i32, i32, i32) {
    %c0_i32 = arith.constant 0 : i32
    %c0_i32_0 = arith.constant 0 : i32
    %c0_i32_1 = arith.constant 0 : i32
    return %arg0, %c0_i32, %c0_i32_0 : i32, i32, i32
  }
  func.func @transform_1(%arg0: i32) -> (i32, i32) {
    %c0_i32 = arith.constant 0 : i32
    %c0_i32_0 = arith.constant 0 : i32
    %c0_i32_1 = arith.constant 0 : i32
    return %c0_i32, %c0_i32_0 : i32, i32
  }
  func.func @transform_2(%arg0: i32) -> (i32, i32) {
    %c0_i32 = arith.constant 0 : i32
    %c0_i32_0 = arith.constant 0 : i32
    %c0_i32_1 = arith.constant 0 : i32
    return %c0_i32, %c0_i32_0 : i32, i32
  }
  func.func @transform_3(%arg0: i32) -> (i32, i32) {
    %c0_i32 = arith.constant 0 : i32
    %c0_i32_0 = arith.constant 0 : i32
    %c0_i32_1 = arith.constant 0 : i32
    return %c0_i32, %c0_i32_0 : i32, i32
  }
  func.func @transform_4(%arg0: i32) -> (i32, i32, i32) {
    %c0_i32 = arith.constant 0 : i32
    %c0_i32_0 = arith.constant 0 : i32
    %c0_i32_1 = arith.constant 0 : i32
    return %arg0, %c0_i32, %c0_i32_0 : i32, i32, i32
  }
}

module attributes {stable_mosaic.version = 11 : i64} {
  func.func @gin_head_kernel(%arg0: memref<32x32xf32, #tpu.memory_space<vmem>>, %arg1: memref<32x320xf32, #tpu.memory_space<vmem>>, %arg2: memref<320x32xf32, #tpu.memory_space<vmem>>, %arg3: memref<1x32xf32, #tpu.memory_space<vmem>>, %arg4: memref<32x32xf32, #tpu.memory_space<vmem>>, %arg5: memref<1x32xf32, #tpu.memory_space<vmem>>, %arg6: memref<1x32xf32, #tpu.memory_space<vmem>>, %arg7: memref<1x32xf32, #tpu.memory_space<vmem>>, %arg8: memref<4x32x32xf32, #tpu.memory_space<vmem>>, %arg9: memref<4x1x32xf32, #tpu.memory_space<vmem>>, %arg10: memref<4x32x32xf32, #tpu.memory_space<vmem>>, %arg11: memref<4x1x32xf32, #tpu.memory_space<vmem>>, %arg12: memref<4x1x32xf32, #tpu.memory_space<vmem>>, %arg13: memref<4x1x32xf32, #tpu.memory_space<vmem>>, %arg14: memref<2x32xf32, #tpu.memory_space<vmem>>, %arg15: memref<32x128xf32, #tpu.memory_space<vmem>>, %arg16: memref<1x128xf32, #tpu.memory_space<vmem>>, %arg17: memref<2x4096xf32, #tpu.memory_space<vmem>>, %arg18: memref<4096x128xbf16, #tpu.memory_space<vmem>>, %arg19: memref<1x128xf32, #tpu.memory_space<vmem>>, %arg20: memref<128x1024xf32, #tpu.memory_space<vmem>>, %arg21: memref<128x1024xf32, #tpu.memory_space<vmem>>, %arg22: memref<1x1024xf32, #tpu.memory_space<vmem>>, %arg23: memref<1024x256xf32, #tpu.memory_space<vmem>>, %arg24: memref<1x256xf32, #tpu.memory_space<vmem>>, %arg25: memref<256x1xf32, #tpu.memory_space<vmem>>, %arg26: memref<1x1xf32, #tpu.memory_space<vmem>>, %arg27: memref<2x1xf32, #tpu.memory_space<vmem>>) attributes {dimension_semantics = [], scalar_prefetch = 0 : i64, scratch_operands = 0 : i64, tpu.core_type = #tpu.core_type<tc>} {
    %c0 = arith.constant 0 : index
    %c0_0 = arith.constant 0 : index
    %0 = vector.load %arg0[%c0, %c0_0] : memref<32x32xf32, #tpu.memory_space<vmem>>, vector<32x32xf32>
    %c0_1 = arith.constant 0 : index
    %c0_2 = arith.constant 0 : index
    %1 = vector.load %arg1[%c0_1, %c0_2] : memref<32x320xf32, #tpu.memory_space<vmem>>, vector<32x320xf32>
    %c0_3 = arith.constant 0 : index
    %c0_4 = arith.constant 0 : index
    %2 = vector.load %arg2[%c0_3, %c0_4] : memref<320x32xf32, #tpu.memory_space<vmem>>, vector<320x32xf32>
    %c0_5 = arith.constant 0 : index
    %c0_6 = arith.constant 0 : index
    %3 = vector.load %arg3[%c0_5, %c0_6] : memref<1x32xf32, #tpu.memory_space<vmem>>, vector<1x32xf32>
    %c0_7 = arith.constant 0 : index
    %c0_8 = arith.constant 0 : index
    %4 = vector.load %arg4[%c0_7, %c0_8] : memref<32x32xf32, #tpu.memory_space<vmem>>, vector<32x32xf32>
    %c0_9 = arith.constant 0 : index
    %c0_10 = arith.constant 0 : index
    %5 = vector.load %arg5[%c0_9, %c0_10] : memref<1x32xf32, #tpu.memory_space<vmem>>, vector<1x32xf32>
    %c0_11 = arith.constant 0 : index
    %c0_12 = arith.constant 0 : index
    %6 = vector.load %arg6[%c0_11, %c0_12] : memref<1x32xf32, #tpu.memory_space<vmem>>, vector<1x32xf32>
    %c0_13 = arith.constant 0 : index
    %c0_14 = arith.constant 0 : index
    %7 = vector.load %arg7[%c0_13, %c0_14] : memref<1x32xf32, #tpu.memory_space<vmem>>, vector<1x32xf32>
    %cst = arith.constant dense<0.000000e+00> : vector<32x320xf32>
    %8 = tpu.matmul %0, %1, %cst {dimension_numbers = #tpu.dot_dimension_numbers<[1], [0], [0], [1], [0, 0, 1, 1], [], []>} : vector<32x32xf32>, vector<32x320xf32>, vector<32x320xf32> -> vector<32x320xf32>
    %cst_15 = arith.constant dense<0.000000e+00> : vector<32x32xf32>
    %9 = tpu.matmul %8, %2, %cst_15 {dimension_numbers = #tpu.dot_dimension_numbers<[1], [0], [0], [1], [0, 0, 1, 1], [], []>} : vector<32x320xf32>, vector<320x32xf32>, vector<32x32xf32> -> vector<32x32xf32>
    %10 = vector.broadcast %3 : vector<1x32xf32> to vector<32x32xf32>
    %11 = arith.addf %9, %10 : vector<32x32xf32>
    %cst_16 = arith.constant 0.000000e+00 : f32
    %12 = vector.broadcast %cst_16 : f32 to vector<32x32xf32>
    %13 = arith.maximumf %11, %12 : vector<32x32xf32>
    %cst_17 = arith.constant dense<0.000000e+00> : vector<32x32xf32>
    %14 = tpu.matmul %13, %4, %cst_17 {dimension_numbers = #tpu.dot_dimension_numbers<[1], [0], [0], [1], [0, 0, 1, 1], [], []>} : vector<32x32xf32>, vector<32x32xf32>, vector<32x32xf32> -> vector<32x32xf32>
    %15 = vector.broadcast %5 : vector<1x32xf32> to vector<32x32xf32>
    %16 = arith.addf %14, %15 : vector<32x32xf32>
    %cst_18 = arith.constant 0.000000e+00 : f32
    %17 = vector.broadcast %cst_18 : f32 to vector<32x32xf32>
    %18 = arith.maximumf %16, %17 : vector<32x32xf32>
    %19 = vector.broadcast %6 : vector<1x32xf32> to vector<32x32xf32>
    %20 = arith.mulf %18, %19 : vector<32x32xf32>
    %21 = vector.broadcast %7 : vector<1x32xf32> to vector<32x32xf32>
    %22 = arith.addf %20, %21 : vector<32x32xf32>
    %c0_19 = arith.constant 0 : index
    %c0_20 = arith.constant 0 : index
    %c0_21 = arith.constant 0 : index
    %23 = vector.load %arg8[%c0_19, %c0_20, %c0_21] : memref<4x32x32xf32, #tpu.memory_space<vmem>>, vector<1x32x32xf32>
    %24 = vector.shape_cast %23 : vector<1x32x32xf32> to vector<32x32xf32>
    %c0_22 = arith.constant 0 : index
    %c0_23 = arith.constant 0 : index
    %c0_24 = arith.constant 0 : index
    %25 = vector.load %arg9[%c0_22, %c0_23, %c0_24] : memref<4x1x32xf32, #tpu.memory_space<vmem>>, vector<1x1x32xf32>
    %26 = vector.shape_cast %25 : vector<1x1x32xf32> to vector<1x32xf32>
    %c0_25 = arith.constant 0 : index
    %c0_26 = arith.constant 0 : index
    %c0_27 = arith.constant 0 : index
    %27 = vector.load %arg10[%c0_25, %c0_26, %c0_27] : memref<4x32x32xf32, #tpu.memory_space<vmem>>, vector<1x32x32xf32>
    %28 = vector.shape_cast %27 : vector<1x32x32xf32> to vector<32x32xf32>
    %c0_28 = arith.constant 0 : index
    %c0_29 = arith.constant 0 : index
    %c0_30 = arith.constant 0 : index
    %29 = vector.load %arg11[%c0_28, %c0_29, %c0_30] : memref<4x1x32xf32, #tpu.memory_space<vmem>>, vector<1x1x32xf32>
    %30 = vector.shape_cast %29 : vector<1x1x32xf32> to vector<1x32xf32>
    %c0_31 = arith.constant 0 : index
    %c0_32 = arith.constant 0 : index
    %c0_33 = arith.constant 0 : index
    %31 = vector.load %arg12[%c0_31, %c0_32, %c0_33] : memref<4x1x32xf32, #tpu.memory_space<vmem>>, vector<1x1x32xf32>
    %32 = vector.shape_cast %31 : vector<1x1x32xf32> to vector<1x32xf32>
    %c0_34 = arith.constant 0 : index
    %c0_35 = arith.constant 0 : index
    %c0_36 = arith.constant 0 : index
    %33 = vector.load %arg13[%c0_34, %c0_35, %c0_36] : memref<4x1x32xf32, #tpu.memory_space<vmem>>, vector<1x1x32xf32>
    %34 = vector.shape_cast %33 : vector<1x1x32xf32> to vector<1x32xf32>
    %cst_37 = arith.constant dense<0.000000e+00> : vector<32x32xf32>
    %35 = tpu.matmul %0, %22, %cst_37 {dimension_numbers = #tpu.dot_dimension_numbers<[1], [0], [0], [1], [0, 0, 1, 1], [], []>} : vector<32x32xf32>, vector<32x32xf32>, vector<32x32xf32> -> vector<32x32xf32>
    %cst_38 = arith.constant dense<0.000000e+00> : vector<32x32xf32>
    %36 = tpu.matmul %35, %24, %cst_38 {dimension_numbers = #tpu.dot_dimension_numbers<[1], [0], [0], [1], [0, 0, 1, 1], [], []>} : vector<32x32xf32>, vector<32x32xf32>, vector<32x32xf32> -> vector<32x32xf32>
    %37 = vector.broadcast %26 : vector<1x32xf32> to vector<32x32xf32>
    %38 = arith.addf %36, %37 : vector<32x32xf32>
    %cst_39 = arith.constant 0.000000e+00 : f32
    %39 = vector.broadcast %cst_39 : f32 to vector<32x32xf32>
    %40 = arith.maximumf %38, %39 : vector<32x32xf32>
    %cst_40 = arith.constant dense<0.000000e+00> : vector<32x32xf32>
    %41 = tpu.matmul %40, %28, %cst_40 {dimension_numbers = #tpu.dot_dimension_numbers<[1], [0], [0], [1], [0, 0, 1, 1], [], []>} : vector<32x32xf32>, vector<32x32xf32>, vector<32x32xf32> -> vector<32x32xf32>
    %42 = vector.broadcast %30 : vector<1x32xf32> to vector<32x32xf32>
    %43 = arith.addf %41, %42 : vector<32x32xf32>
    %cst_41 = arith.constant 0.000000e+00 : f32
    %44 = vector.broadcast %cst_41 : f32 to vector<32x32xf32>
    %45 = arith.maximumf %43, %44 : vector<32x32xf32>
    %46 = vector.broadcast %32 : vector<1x32xf32> to vector<32x32xf32>
    %47 = arith.mulf %45, %46 : vector<32x32xf32>
    %48 = vector.broadcast %34 : vector<1x32xf32> to vector<32x32xf32>
    %49 = arith.addf %47, %48 : vector<32x32xf32>
    %c1 = arith.constant 1 : index
    %c0_42 = arith.constant 0 : index
    %c0_43 = arith.constant 0 : index
    %50 = vector.load %arg8[%c1, %c0_42, %c0_43] : memref<4x32x32xf32, #tpu.memory_space<vmem>>, vector<1x32x32xf32>
    %51 = vector.shape_cast %50 : vector<1x32x32xf32> to vector<32x32xf32>
    %c1_44 = arith.constant 1 : index
    %c0_45 = arith.constant 0 : index
    %c0_46 = arith.constant 0 : index
    %52 = vector.load %arg9[%c1_44, %c0_45, %c0_46] : memref<4x1x32xf32, #tpu.memory_space<vmem>>, vector<1x1x32xf32>
    %53 = vector.shape_cast %52 : vector<1x1x32xf32> to vector<1x32xf32>
    %c1_47 = arith.constant 1 : index
    %c0_48 = arith.constant 0 : index
    %c0_49 = arith.constant 0 : index
    %54 = vector.load %arg10[%c1_47, %c0_48, %c0_49] : memref<4x32x32xf32, #tpu.memory_space<vmem>>, vector<1x32x32xf32>
    %55 = vector.shape_cast %54 : vector<1x32x32xf32> to vector<32x32xf32>
    %c1_50 = arith.constant 1 : index
    %c0_51 = arith.constant 0 : index
    %c0_52 = arith.constant 0 : index
    %56 = vector.load %arg11[%c1_50, %c0_51, %c0_52] : memref<4x1x32xf32, #tpu.memory_space<vmem>>, vector<1x1x32xf32>
    %57 = vector.shape_cast %56 : vector<1x1x32xf32> to vector<1x32xf32>
    %c1_53 = arith.constant 1 : index
    %c0_54 = arith.constant 0 : index
    %c0_55 = arith.constant 0 : index
    %58 = vector.load %arg12[%c1_53, %c0_54, %c0_55] : memref<4x1x32xf32, #tpu.memory_space<vmem>>, vector<1x1x32xf32>
    %59 = vector.shape_cast %58 : vector<1x1x32xf32> to vector<1x32xf32>
    %c1_56 = arith.constant 1 : index
    %c0_57 = arith.constant 0 : index
    %c0_58 = arith.constant 0 : index
    %60 = vector.load %arg13[%c1_56, %c0_57, %c0_58] : memref<4x1x32xf32, #tpu.memory_space<vmem>>, vector<1x1x32xf32>
    %61 = vector.shape_cast %60 : vector<1x1x32xf32> to vector<1x32xf32>
    %cst_59 = arith.constant dense<0.000000e+00> : vector<32x32xf32>
    %62 = tpu.matmul %0, %49, %cst_59 {dimension_numbers = #tpu.dot_dimension_numbers<[1], [0], [0], [1], [0, 0, 1, 1], [], []>} : vector<32x32xf32>, vector<32x32xf32>, vector<32x32xf32> -> vector<32x32xf32>
    %cst_60 = arith.constant dense<0.000000e+00> : vector<32x32xf32>
    %63 = tpu.matmul %62, %51, %cst_60 {dimension_numbers = #tpu.dot_dimension_numbers<[1], [0], [0], [1], [0, 0, 1, 1], [], []>} : vector<32x32xf32>, vector<32x32xf32>, vector<32x32xf32> -> vector<32x32xf32>
    %64 = vector.broadcast %53 : vector<1x32xf32> to vector<32x32xf32>
    %65 = arith.addf %63, %64 : vector<32x32xf32>
    %cst_61 = arith.constant 0.000000e+00 : f32
    %66 = vector.broadcast %cst_61 : f32 to vector<32x32xf32>
    %67 = arith.maximumf %65, %66 : vector<32x32xf32>
    %cst_62 = arith.constant dense<0.000000e+00> : vector<32x32xf32>
    %68 = tpu.matmul %67, %55, %cst_62 {dimension_numbers = #tpu.dot_dimension_numbers<[1], [0], [0], [1], [0, 0, 1, 1], [], []>} : vector<32x32xf32>, vector<32x32xf32>, vector<32x32xf32> -> vector<32x32xf32>
    %69 = vector.broadcast %57 : vector<1x32xf32> to vector<32x32xf32>
    %70 = arith.addf %68, %69 : vector<32x32xf32>
    %cst_63 = arith.constant 0.000000e+00 : f32
    %71 = vector.broadcast %cst_63 : f32 to vector<32x32xf32>
    %72 = arith.maximumf %70, %71 : vector<32x32xf32>
    %73 = vector.broadcast %59 : vector<1x32xf32> to vector<32x32xf32>
    %74 = arith.mulf %72, %73 : vector<32x32xf32>
    %75 = vector.broadcast %61 : vector<1x32xf32> to vector<32x32xf32>
    %76 = arith.addf %74, %75 : vector<32x32xf32>
    %c2 = arith.constant 2 : index
    %c0_64 = arith.constant 0 : index
    %c0_65 = arith.constant 0 : index
    %77 = vector.load %arg8[%c2, %c0_64, %c0_65] : memref<4x32x32xf32, #tpu.memory_space<vmem>>, vector<1x32x32xf32>
    %78 = vector.shape_cast %77 : vector<1x32x32xf32> to vector<32x32xf32>
    %c2_66 = arith.constant 2 : index
    %c0_67 = arith.constant 0 : index
    %c0_68 = arith.constant 0 : index
    %79 = vector.load %arg9[%c2_66, %c0_67, %c0_68] : memref<4x1x32xf32, #tpu.memory_space<vmem>>, vector<1x1x32xf32>
    %80 = vector.shape_cast %79 : vector<1x1x32xf32> to vector<1x32xf32>
    %c2_69 = arith.constant 2 : index
    %c0_70 = arith.constant 0 : index
    %c0_71 = arith.constant 0 : index
    %81 = vector.load %arg10[%c2_69, %c0_70, %c0_71] : memref<4x32x32xf32, #tpu.memory_space<vmem>>, vector<1x32x32xf32>
    %82 = vector.shape_cast %81 : vector<1x32x32xf32> to vector<32x32xf32>
    %c2_72 = arith.constant 2 : index
    %c0_73 = arith.constant 0 : index
    %c0_74 = arith.constant 0 : index
    %83 = vector.load %arg11[%c2_72, %c0_73, %c0_74] : memref<4x1x32xf32, #tpu.memory_space<vmem>>, vector<1x1x32xf32>
    %84 = vector.shape_cast %83 : vector<1x1x32xf32> to vector<1x32xf32>
    %c2_75 = arith.constant 2 : index
    %c0_76 = arith.constant 0 : index
    %c0_77 = arith.constant 0 : index
    %85 = vector.load %arg12[%c2_75, %c0_76, %c0_77] : memref<4x1x32xf32, #tpu.memory_space<vmem>>, vector<1x1x32xf32>
    %86 = vector.shape_cast %85 : vector<1x1x32xf32> to vector<1x32xf32>
    %c2_78 = arith.constant 2 : index
    %c0_79 = arith.constant 0 : index
    %c0_80 = arith.constant 0 : index
    %87 = vector.load %arg13[%c2_78, %c0_79, %c0_80] : memref<4x1x32xf32, #tpu.memory_space<vmem>>, vector<1x1x32xf32>
    %88 = vector.shape_cast %87 : vector<1x1x32xf32> to vector<1x32xf32>
    %cst_81 = arith.constant dense<0.000000e+00> : vector<32x32xf32>
    %89 = tpu.matmul %0, %76, %cst_81 {dimension_numbers = #tpu.dot_dimension_numbers<[1], [0], [0], [1], [0, 0, 1, 1], [], []>} : vector<32x32xf32>, vector<32x32xf32>, vector<32x32xf32> -> vector<32x32xf32>
    %cst_82 = arith.constant dense<0.000000e+00> : vector<32x32xf32>
    %90 = tpu.matmul %89, %78, %cst_82 {dimension_numbers = #tpu.dot_dimension_numbers<[1], [0], [0], [1], [0, 0, 1, 1], [], []>} : vector<32x32xf32>, vector<32x32xf32>, vector<32x32xf32> -> vector<32x32xf32>
    %91 = vector.broadcast %80 : vector<1x32xf32> to vector<32x32xf32>
    %92 = arith.addf %90, %91 : vector<32x32xf32>
    %cst_83 = arith.constant 0.000000e+00 : f32
    %93 = vector.broadcast %cst_83 : f32 to vector<32x32xf32>
    %94 = arith.maximumf %92, %93 : vector<32x32xf32>
    %cst_84 = arith.constant dense<0.000000e+00> : vector<32x32xf32>
    %95 = tpu.matmul %94, %82, %cst_84 {dimension_numbers = #tpu.dot_dimension_numbers<[1], [0], [0], [1], [0, 0, 1, 1], [], []>} : vector<32x32xf32>, vector<32x32xf32>, vector<32x32xf32> -> vector<32x32xf32>
    %96 = vector.broadcast %84 : vector<1x32xf32> to vector<32x32xf32>
    %97 = arith.addf %95, %96 : vector<32x32xf32>
    %cst_85 = arith.constant 0.000000e+00 : f32
    %98 = vector.broadcast %cst_85 : f32 to vector<32x32xf32>
    %99 = arith.maximumf %97, %98 : vector<32x32xf32>
    %100 = vector.broadcast %86 : vector<1x32xf32> to vector<32x32xf32>
    %101 = arith.mulf %99, %100 : vector<32x32xf32>
    %102 = vector.broadcast %88 : vector<1x32xf32> to vector<32x32xf32>
    %103 = arith.addf %101, %102 : vector<32x32xf32>
    %c3 = arith.constant 3 : index
    %c0_86 = arith.constant 0 : index
    %c0_87 = arith.constant 0 : index
    %104 = vector.load %arg8[%c3, %c0_86, %c0_87] : memref<4x32x32xf32, #tpu.memory_space<vmem>>, vector<1x32x32xf32>
    %105 = vector.shape_cast %104 : vector<1x32x32xf32> to vector<32x32xf32>
    %c3_88 = arith.constant 3 : index
    %c0_89 = arith.constant 0 : index
    %c0_90 = arith.constant 0 : index
    %106 = vector.load %arg9[%c3_88, %c0_89, %c0_90] : memref<4x1x32xf32, #tpu.memory_space<vmem>>, vector<1x1x32xf32>
    %107 = vector.shape_cast %106 : vector<1x1x32xf32> to vector<1x32xf32>
    %c3_91 = arith.constant 3 : index
    %c0_92 = arith.constant 0 : index
    %c0_93 = arith.constant 0 : index
    %108 = vector.load %arg10[%c3_91, %c0_92, %c0_93] : memref<4x32x32xf32, #tpu.memory_space<vmem>>, vector<1x32x32xf32>
    %109 = vector.shape_cast %108 : vector<1x32x32xf32> to vector<32x32xf32>
    %c3_94 = arith.constant 3 : index
    %c0_95 = arith.constant 0 : index
    %c0_96 = arith.constant 0 : index
    %110 = vector.load %arg11[%c3_94, %c0_95, %c0_96] : memref<4x1x32xf32, #tpu.memory_space<vmem>>, vector<1x1x32xf32>
    %111 = vector.shape_cast %110 : vector<1x1x32xf32> to vector<1x32xf32>
    %c3_97 = arith.constant 3 : index
    %c0_98 = arith.constant 0 : index
    %c0_99 = arith.constant 0 : index
    %112 = vector.load %arg12[%c3_97, %c0_98, %c0_99] : memref<4x1x32xf32, #tpu.memory_space<vmem>>, vector<1x1x32xf32>
    %113 = vector.shape_cast %112 : vector<1x1x32xf32> to vector<1x32xf32>
    %c3_100 = arith.constant 3 : index
    %c0_101 = arith.constant 0 : index
    %c0_102 = arith.constant 0 : index
    %114 = vector.load %arg13[%c3_100, %c0_101, %c0_102] : memref<4x1x32xf32, #tpu.memory_space<vmem>>, vector<1x1x32xf32>
    %115 = vector.shape_cast %114 : vector<1x1x32xf32> to vector<1x32xf32>
    %cst_103 = arith.constant dense<0.000000e+00> : vector<32x32xf32>
    %116 = tpu.matmul %0, %103, %cst_103 {dimension_numbers = #tpu.dot_dimension_numbers<[1], [0], [0], [1], [0, 0, 1, 1], [], []>} : vector<32x32xf32>, vector<32x32xf32>, vector<32x32xf32> -> vector<32x32xf32>
    %cst_104 = arith.constant dense<0.000000e+00> : vector<32x32xf32>
    %117 = tpu.matmul %116, %105, %cst_104 {dimension_numbers = #tpu.dot_dimension_numbers<[1], [0], [0], [1], [0, 0, 1, 1], [], []>} : vector<32x32xf32>, vector<32x32xf32>, vector<32x32xf32> -> vector<32x32xf32>
    %118 = vector.broadcast %107 : vector<1x32xf32> to vector<32x32xf32>
    %119 = arith.addf %117, %118 : vector<32x32xf32>
    %cst_105 = arith.constant 0.000000e+00 : f32
    %120 = vector.broadcast %cst_105 : f32 to vector<32x32xf32>
    %121 = arith.maximumf %119, %120 : vector<32x32xf32>
    %cst_106 = arith.constant dense<0.000000e+00> : vector<32x32xf32>
    %122 = tpu.matmul %121, %109, %cst_106 {dimension_numbers = #tpu.dot_dimension_numbers<[1], [0], [0], [1], [0, 0, 1, 1], [], []>} : vector<32x32xf32>, vector<32x32xf32>, vector<32x32xf32> -> vector<32x32xf32>
    %123 = vector.broadcast %111 : vector<1x32xf32> to vector<32x32xf32>
    %124 = arith.addf %122, %123 : vector<32x32xf32>
    %cst_107 = arith.constant 0.000000e+00 : f32
    %125 = vector.broadcast %cst_107 : f32 to vector<32x32xf32>
    %126 = arith.maximumf %124, %125 : vector<32x32xf32>
    %127 = vector.broadcast %113 : vector<1x32xf32> to vector<32x32xf32>
    %128 = arith.mulf %126, %127 : vector<32x32xf32>
    %129 = vector.broadcast %115 : vector<1x32xf32> to vector<32x32xf32>
    %130 = arith.addf %128, %129 : vector<32x32xf32>
    %c0_108 = arith.constant 0 : index
    %c0_109 = arith.constant 0 : index
    %131 = vector.load %arg14[%c0_108, %c0_109] : memref<2x32xf32, #tpu.memory_space<vmem>>, vector<2x32xf32>
    %cst_110 = arith.constant dense<0.000000e+00> : vector<2x32xf32>
    %132 = tpu.matmul %131, %130, %cst_110 {dimension_numbers = #tpu.dot_dimension_numbers<[1], [0], [0], [1], [0, 0, 1, 1], [], []>} : vector<2x32xf32>, vector<32x32xf32>, vector<2x32xf32> -> vector<2x32xf32>
    %c0_111 = arith.constant 0 : index
    %c0_112 = arith.constant 0 : index
    %133 = vector.load %arg15[%c0_111, %c0_112] : memref<32x128xf32, #tpu.memory_space<vmem>>, vector<32x128xf32>
    %cst_113 = arith.constant dense<0.000000e+00> : vector<2x128xf32>
    %134 = tpu.matmul %132, %133, %cst_113 {dimension_numbers = #tpu.dot_dimension_numbers<[1], [0], [0], [1], [0, 0, 1, 1], [], []>} : vector<2x32xf32>, vector<32x128xf32>, vector<2x128xf32> -> vector<2x128xf32>
    %c0_114 = arith.constant 0 : index
    %c0_115 = arith.constant 0 : index
    %135 = vector.load %arg16[%c0_114, %c0_115] : memref<1x128xf32, #tpu.memory_space<vmem>>, vector<1x128xf32>
    %136 = vector.broadcast %135 : vector<1x128xf32> to vector<2x128xf32>
    %137 = arith.addf %134, %136 : vector<2x128xf32>
    %cst_116 = arith.constant 0.000000e+00 : f32
    %138 = vector.broadcast %cst_116 : f32 to vector<2x128xf32>
    %139 = arith.maximumf %137, %138 : vector<2x128xf32>
    %c0_117 = arith.constant 0 : index
    %c0_118 = arith.constant 0 : index
    %140 = vector.load %arg17[%c0_117, %c0_118] : memref<2x4096xf32, #tpu.memory_space<vmem>>, vector<2x4096xf32>
    %141 = arith.truncf %140 : vector<2x4096xf32> to vector<2x4096xbf16>
    %c0_119 = arith.constant 0 : index
    %c0_120 = arith.constant 0 : index
    %142 = vector.load %arg18[%c0_119, %c0_120] : memref<4096x128xbf16, #tpu.memory_space<vmem>>, vector<4096x128xbf16>
    %cst_121 = arith.constant dense<0.000000e+00> : vector<2x128xf32>
    %143 = tpu.matmul %141, %142, %cst_121 {dimension_numbers = #tpu.dot_dimension_numbers<[1], [0], [0], [1], [0, 0, 1, 1], [], []>} : vector<2x4096xbf16>, vector<4096x128xbf16>, vector<2x128xf32> -> vector<2x128xf32>
    %c0_122 = arith.constant 0 : index
    %c0_123 = arith.constant 0 : index
    %144 = vector.load %arg19[%c0_122, %c0_123] : memref<1x128xf32, #tpu.memory_space<vmem>>, vector<1x128xf32>
    %145 = vector.broadcast %144 : vector<1x128xf32> to vector<2x128xf32>
    %146 = arith.addf %143, %145 : vector<2x128xf32>
    %c0_124 = arith.constant 0 : index
    %c0_125 = arith.constant 0 : index
    %147 = vector.load %arg20[%c0_124, %c0_125] : memref<128x1024xf32, #tpu.memory_space<vmem>>, vector<128x1024xf32>
    %cst_126 = arith.constant dense<0.000000e+00> : vector<2x1024xf32>
    %148 = tpu.matmul %139, %147, %cst_126 {dimension_numbers = #tpu.dot_dimension_numbers<[1], [0], [0], [1], [0, 0, 1, 1], [], []>} : vector<2x128xf32>, vector<128x1024xf32>, vector<2x1024xf32> -> vector<2x1024xf32>
    %c0_127 = arith.constant 0 : index
    %c0_128 = arith.constant 0 : index
    %149 = vector.load %arg21[%c0_127, %c0_128] : memref<128x1024xf32, #tpu.memory_space<vmem>>, vector<128x1024xf32>
    %cst_129 = arith.constant dense<0.000000e+00> : vector<2x1024xf32>
    %150 = tpu.matmul %146, %149, %cst_129 {dimension_numbers = #tpu.dot_dimension_numbers<[1], [0], [0], [1], [0, 0, 1, 1], [], []>} : vector<2x128xf32>, vector<128x1024xf32>, vector<2x1024xf32> -> vector<2x1024xf32>
    %151 = arith.addf %148, %150 : vector<2x1024xf32>
    %c0_130 = arith.constant 0 : index
    %c0_131 = arith.constant 0 : index
    %152 = vector.load %arg22[%c0_130, %c0_131] : memref<1x1024xf32, #tpu.memory_space<vmem>>, vector<1x1024xf32>
    %153 = vector.broadcast %152 : vector<1x1024xf32> to vector<2x1024xf32>
    %154 = arith.addf %151, %153 : vector<2x1024xf32>
    %cst_132 = arith.constant 0.000000e+00 : f32
    %155 = vector.broadcast %cst_132 : f32 to vector<2x1024xf32>
    %156 = arith.maximumf %154, %155 : vector<2x1024xf32>
    %c0_133 = arith.constant 0 : index
    %c0_134 = arith.constant 0 : index
    %157 = vector.load %arg23[%c0_133, %c0_134] : memref<1024x256xf32, #tpu.memory_space<vmem>>, vector<1024x256xf32>
    %cst_135 = arith.constant dense<0.000000e+00> : vector<2x256xf32>
    %158 = tpu.matmul %156, %157, %cst_135 {dimension_numbers = #tpu.dot_dimension_numbers<[1], [0], [0], [1], [0, 0, 1, 1], [], []>} : vector<2x1024xf32>, vector<1024x256xf32>, vector<2x256xf32> -> vector<2x256xf32>
    %c0_136 = arith.constant 0 : index
    %c0_137 = arith.constant 0 : index
    %159 = vector.load %arg24[%c0_136, %c0_137] : memref<1x256xf32, #tpu.memory_space<vmem>>, vector<1x256xf32>
    %160 = vector.broadcast %159 : vector<1x256xf32> to vector<2x256xf32>
    %161 = arith.addf %158, %160 : vector<2x256xf32>
    %cst_138 = arith.constant 0.000000e+00 : f32
    %162 = vector.broadcast %cst_138 : f32 to vector<2x256xf32>
    %163 = arith.maximumf %161, %162 : vector<2x256xf32>
    %c0_139 = arith.constant 0 : index
    %c0_140 = arith.constant 0 : index
    %164 = vector.load %arg25[%c0_139, %c0_140] : memref<256x1xf32, #tpu.memory_space<vmem>>, vector<256x1xf32>
    %cst_141 = arith.constant dense<0.000000e+00> : vector<2x1xf32>
    %165 = tpu.matmul %163, %164, %cst_141 {dimension_numbers = #tpu.dot_dimension_numbers<[1], [0], [0], [1], [0, 0, 1, 1], [], []>} : vector<2x256xf32>, vector<256x1xf32>, vector<2x1xf32> -> vector<2x1xf32>
    %c0_142 = arith.constant 0 : index
    %c0_143 = arith.constant 0 : index
    %166 = vector.load %arg26[%c0_142, %c0_143] : memref<1x1xf32, #tpu.memory_space<vmem>>, vector<1x1xf32>
    %167 = vector.broadcast %166 : vector<1x1xf32> to vector<2x1xf32>
    %168 = arith.addf %165, %167 : vector<2x1xf32>
    %c0_144 = arith.constant 0 : index
    %c0_145 = arith.constant 0 : index
    %169 = vector.load %arg27[%c0_144, %c0_145] : memref<2x1xf32, #tpu.memory_space<vmem>>, vector<2x1xf32>
    tpu.vector_store %arg27[%c0_144, %c0_145], %168 {strides = array<i32>} : memref<2x1xf32, #tpu.memory_space<vmem>>, vector<2x1xf32>,
    return
  }
}

</mosaic_0001>

<bundles_post_ra>
// kernel: ginconvnet_forward.2
= control target key start
LH: loop header
LB: loop body
LE: loop exit
PB: predicated region body
PF: predicated region fallthrough
CT: control target
= control target key end

     0   :  { %s4633_s15 = smov 0   ;;  %s6163_s0 = inlined_call_operand.vmem [shape: s32[2,1000,1], index: 0, kind: input, shape index: {}]   ;;  %s6164_s1 = inlined_call_operand.vmem [shape: bf16[32,128], index: 1, kind: input, shape index: {}]   ;;  %s6165_s2 = inlined_call_operand.vmem [shape: bf16[256,1000], index: 2, kind: input, shape index: {}]   ;;  %s6166_s3 = inlined_call_operand.vmem [shape: f32[32,128], index: 3, kind: input, shape index: {}]   ;;  %s6167_s4 = inlined_call_operand.vmem [shape: f32[2,32,128], index: 4, kind: output, shape index: {}]  }
   0x1 LB: > { %s3549_s16 = sadd.s32 4294967295, %s4596_s15   ;;  %p3553_p0 = scmp.ge.s32.totalorder %s4596_s15, 1  ;;  %s4596_s15 = sphi %s4633_s15, %s14_s15  }
   0x2   : > { %p162_p1 = scmp.lt.s32.totalorder %s4596_s15, 3 }
   0x4   : > { %p163_p2 = pnand %p3553_p0, %p162_p1 }
   0x5   : > { %p188_p3 = scmp.lt.s32.totalorder (!%p163_p2), %s3549_s16, 1  ;;  %v4598_v0 = vmov (!%p163_p2), 0   ;;  %v4599_v1 = vmov (!%p163_p2), 0.0   ;;  %vm4600_vm0 = vmmov (!%p163_p2), 0   ;;  %v4588_v16 = vld [vmem:[%s6164_s1] sm:$0xff] (!%p163_p2)   ;;  %v4589_v17 = vld [vmem:[%s6164_s1 + $0x8] sm:$0xff] (!%p163_p2)  }
   0x6   : > { %166 = sbr.rel (%p163_p2) target bundleno = 1336 (0x538), region = 36  ;;  %4587 = vset.pattern.permute.xlu1 (!%p163_p2), %v4598_v0  ;;  %4586 = vset.pattern.permute.xlu0 (!%p163_p2), %v4598_v0  ;;  %vm1155_vm3 = vcmask (!%p163_p2), 261120   ;;  %s4602_s18 = smov (!%p163_p2), 126  }
   0x7   : > { %4295 = vmatprep.subr.bf16.mxu0 (!%p163_p2), %v4599_v1  ;;  %4299 = vmatprep.mubr.msk.bf16.mxu0 (!%p163_p2), %vm4600_vm0, %v4599_v1  ;;  %s4603_s19 = smov (!%p163_p2), 125   ;;  %s4605_s21 = smov (!%p163_p2), 123  }
   0x8   : > { %4296 = vmatpush3.bf16.msra.mxu0 (!%p163_p2), %v4588_v16  ;;  %s4606_s22 = smov (!%p163_p2), 122   ;;  %s4607_s23 = smov (!%p163_p2), 121  }
   0x9   : > { %4297 = vmatprep.subr.bf16.mxu0 (!%p163_p2), %v4599_v1 }
   0xc   : > { %4298 = vmatpush3.bf16.msra.mxu0 (!%p163_p2), %v4589_v17 }
   0xd   : > { %s6169_s16 = smov (!%p188_p3, %s3549_s16), 1 }
   0xe   : > { %s4567_s17 = smul.u32 1000, %s6169_s16  ;;  %s3893_s24 = sshll.u32 %s6169_s16, 5 }
   0xf   : > { %s197_s30 = scalar_lea.vmem %s6167_s4, %s3893_s24 }
  0x10   : > { %s4650_s20 = scalar_lea.vmem %s6163_s0, %s4567_s17  ;;  %s4601_s17 = smov 127  }
  0x11   : > { %v201_v2 = vld [vmem:[%s4650_s20 + $0x10] sm:$0xff]  ;;  %v199_v3 = vld [vmem:[%s4650_s20] sm:$0xff]  ;;  %v202_v4 = vld [vmem:[%s4650_s20 + $0x18] sm:$0xff] }
  0x12   : > { %333 = vperm.xlu1 %4587, %v201_v2   ;;  %327 = vperm.xlu0 %4586, %v199_v3   ;;  %v200_v5 = vld [vmem:[%s4650_s20 + $0x8] sm:$0xff]  ;;  %v203_v7 = vld [vmem:[%s4650_s20 + $0x20] sm:$0xff]  ;;  %v206_v8 = vld [vmem:[%s4650_s20 + $0x38] sm:$0xff] }
  0x13   : > { %v204_v6 = vld [vmem:[%s4650_s20 + $0x28] sm:$0xff]  ;;  %v205_v9 = vld [vmem:[%s4650_s20 + $0x30] sm:$0xff]  ;;  %v207_v11 = vld [vmem:[%s4650_s20 + $0x40] sm:$0xff] }
  0x14   : > { %v208_v10 = vld [vmem:[%s4650_s20 + $0x48] sm:$0xff]  ;;  %v210_v12 = vld [vmem:[%s4650_s20 + $0x58] sm:$0xff]  ;;  %v209_v13 = vld [vmem:[%s4650_s20 + $0x50] sm:$0xff] }
  0x15   : > { %v212_v14 = vld [vmem:[%s4650_s20 + $0x68] sm:$0xff]  ;;  %v211_v15 = vld [vmem:[%s4650_s20 + $0x60] sm:$0xff]  ;;  %v214_v18 = vld [vmem:[%s4650_s20 + $0x78] sm:$0xff] }
  0x16   : > { %336 = vperm.xlu1 %4587, %v202_v4   ;;  %330 = vperm.xlu0 %4586, %v200_v5   ;;  %v213_v19 = vld [vmem:[%s4650_s20 + $0x70] sm:$0xff]  ;;  %v216_v20 = vld [vmem:[%s4650_s20 + $0x88] sm:$0xff]  ;;  %v215_v21 = vld [vmem:[%s4650_s20 + $0x80] sm:$0xff] }
  0x17   : > { %v218_v22 = vld [vmem:[%s4650_s20 + $0x98] sm:$0xff]  ;;  %v217_v23 = vld [vmem:[%s4650_s20 + $0x90] sm:$0xff]  ;;  %v220_v24 = vld [vmem:[%s4650_s20 + $0xa8] sm:$0xff] }
  0x18   : > { %v219_v25 = vld [vmem:[%s4650_s20 + $0xa0] sm:$0xff]  ;;  %v222_v26 = vld [vmem:[%s4650_s20 + $0xb8] sm:$0xff]  ;;  %v221_v27 = vld [vmem:[%s4650_s20 + $0xb0] sm:$0xff] }
  0x19   : > { %v224_v28 = vld [vmem:[%s4650_s20 + $0xc8] sm:$0xff]  ;;  %v223_v29 = vld [vmem:[%s4650_s20 + $0xc0] sm:$0xff]  ;;  %v226_v30 = vld [vmem:[%s4650_s20 + $0xd8] sm:$0xff] }
  0x1a   : > { %342 = vperm.xlu1 %4587, %v204_v6   ;;  %339 = vperm.xlu0 %4586, %v203_v7   ;;  %v225_v31 = vld [vmem:[%s4650_s20 + $0xd0] sm:$0xff]  ;;  %v228_v32 = vld [vmem:[%s4650_s20 + $0xe8] sm:$0xff]  ;;  %v227_v33 = vld [vmem:[%s4650_s20 + $0xe0] sm:$0xff]  ;;  %v324_v6 = vlaneseq }
  0x1b   : > { %v230_v34 = vld [vmem:[%s4650_s20 + $0xf8] sm:$0xff]  ;;  %v229_v35 = vld [vmem:[%s4650_s20 + $0xf0] sm:$0xff]  ;;  %v232_v36 = vld [vmem:[%s4650_s20 + $0x108] sm:$0xff] }
  0x1c   : > { %v231_v37 = vld [vmem:[%s4650_s20 + $0x100] sm:$0xff]  ;;  %v234_v38 = vld [vmem:[%s4650_s20 + $0x118] sm:$0xff]  ;;  %v233_v39 = vld [vmem:[%s4650_s20 + $0x110] sm:$0xff] }
  0x1d   : > { %v236_v40 = vld [vmem:[%s4650_s20 + $0x128] sm:$0xff]  ;;  %v235_v41 = vld [vmem:[%s4650_s20 + $0x120] sm:$0xff]  ;;  %v238_v42 = vld [vmem:[%s4650_s20 + $0x138] sm:$0xff] }
  0x1e   : > { %348 = vperm.xlu1 %4587, %v206_v8   ;;  %345 = vperm.xlu0 %4586, %v205_v9   ;;  %v237_v43 = vld [vmem:[%s4650_s20 + $0x130] sm:$0xff]  ;;  %v240_v44 = vld [vmem:[%s4650_s20 + $0x148] sm:$0xff]  ;;  %v239_v45 = vld [vmem:[%s4650_s20 + $0x140] sm:$0xff]  ;;  %v4727_v9 = vand.u32 127, %v324_v6 }
  0x1f   : > { %v242_v46 = vld [vmem:[%s4650_s20 + $0x158] sm:$0xff]  ;;  %v241_v47 = vld [vmem:[%s4650_s20 + $0x150] sm:$0xff]  ;;  %v244_v48 = vld [vmem:[%s4650_s20 + $0x168] sm:$0xff] }
  0x20   : > { %v243_v49 = vld [vmem:[%s4650_s20 + $0x160] sm:$0xff]  ;;  %v246_v50 = vld [vmem:[%s4650_s20 + $0x178] sm:$0xff]  ;;  %v245_v51 = vld [vmem:[%s4650_s20 + $0x170] sm:$0xff] }
  0x21   : > { %v248_v52 = vld [vmem:[%s4650_s20 + $0x188] sm:$0xff]  ;;  %v247_v53 = vld [vmem:[%s4650_s20 + $0x180] sm:$0xff]  ;;  %v250_v54 = vld [vmem:[%s4650_s20 + $0x198] sm:$0xff] }
  0x22   : > { %354 = vperm.xlu1 %4587, %v208_v10   ;;  %351 = vperm.xlu0 %4586, %v207_v11   ;;  %v249_v55 = vld [vmem:[%s4650_s20 + $0x190] sm:$0xff]  ;;  %v252_v56 = vld [vmem:[%s4650_s20 + $0x1a8] sm:$0xff]  ;;  %v251_v57 = vld [vmem:[%s4650_s20 + $0x1a0] sm:$0xff] }
  0x23   : > { %v254_v58 = vld [vmem:[%s4650_s20 + $0x1b8] sm:$0xff]  ;;  %v253_v59 = vld [vmem:[%s4650_s20 + $0x1b0] sm:$0xff]  ;;  %v256_v60 = vld [vmem:[%s4650_s20 + $0x1c8] sm:$0xff] }
  0x24   : > { %v255_v61 = vld [vmem:[%s4650_s20 + $0x1c0] sm:$0xff]  ;;  %v258_v62 = vld [vmem:[%s4650_s20 + $0x1d8] sm:$0xff]  ;;  %v257_v63 = vld [vmem:[%s4650_s20 + $0x1d0] sm:$0xff] }
  0x25   : > { %v260_v2 = vld [vmem:[%s4650_s20 + $0x1e8] sm:$0xff]  ;;  %v259_v3 = vld [vmem:[%s4650_s20 + $0x1e0] sm:$0xff]  ;;  %v262_v4 = vld [vmem:[%s4650_s20 + $0x1f8] sm:$0xff] }
  0x26   : > { %360 = vperm.xlu1 %4587, %v210_v12   ;;  %357 = vperm.xlu0 %4586, %v209_v13   ;;  %v261_v5 = vld [vmem:[%s4650_s20 + $0x1f0] sm:$0xff]  ;;  %v264_v7 = vld [vmem:[%s4650_s20 + $0x208] sm:$0xff]  ;;  %v263_v8 = vld [vmem:[%s4650_s20 + $0x200] sm:$0xff] }
  0x27   : > { %v266_v11 = vld [vmem:[%s4650_s20 + $0x218] sm:$0xff]  ;;  %v265_v12 = vld [vmem:[%s4650_s20 + $0x210] sm:$0xff]  ;;  %v268_v17 = vld [vmem:[%s4650_s20 + $0x228] sm:$0xff] }
  0x2a   : > { %366 = vperm.xlu1 %4587, %v212_v14   ;;  %363 = vperm.xlu0 %4586, %v211_v15  }
  0x2e   : > { %372 = vperm.xlu1 %4587, %v214_v18   ;;  %369 = vperm.xlu0 %4586, %v213_v19   ;;  %v267_v18 = vld [vmem:[%s4650_s20 + $0x220] sm:$0xff] }
  0x32   : > { %378 = vperm.xlu1 %4587, %v216_v20   ;;  %375 = vperm.xlu0 %4586, %v215_v21   ;;  %v270_v21 = vld [vmem:[%s4650_s20 + $0x238] sm:$0xff] }
  0x36   : > { %384 = vperm.xlu1 %4587, %v218_v22   ;;  %381 = vperm.xlu0 %4586, %v217_v23   ;;  %v269_v22 = vld [vmem:[%s4650_s20 + $0x230] sm:$0xff] }
  0x3a   : > { %390 = vperm.xlu1 %4587, %v220_v24   ;;  %387 = vperm.xlu0 %4586, %v219_v25   ;;  %v272_v25 = vld [vmem:[%s4650_s20 + $0x248] sm:$0xff] }
  0x3e   : > { %396 = vperm.xlu1 %4587, %v222_v26   ;;  %393 = vperm.xlu0 %4586, %v221_v27   ;;  %v271_v26 = vld [vmem:[%s4650_s20 + $0x240] sm:$0xff] }
  0x42   : > { %402 = vperm.xlu1 %4587, %v224_v28   ;;  %399 = vperm.xlu0 %4586, %v223_v29  }
  0x46   : > { %408 = vperm.xlu1 %4587, %v226_v30   ;;  %405 = vperm.xlu0 %4586, %v225_v31   ;;  %v274_v30 = vld [vmem:[%s4650_s20 + $0x258] sm:$0xff]  ;;  %v273_v31 = vld [vmem:[%s4650_s20 + $0x250] sm:$0xff] }
  0x4a   : > { %414 = vperm.xlu1 %4587, %v228_v32   ;;  %411 = vperm.xlu0 %4586, %v227_v33  }
  0x4e   : > { %420 = vperm.xlu1 %4587, %v230_v34   ;;  %417 = vperm.xlu0 %4586, %v229_v35   ;;  %v276_v34 = vld [vmem:[%s4650_s20 + $0x268] sm:$0xff]  ;;  %v275_v35 = vld [vmem:[%s4650_s20 + $0x260] sm:$0xff] }
  0x52   : > { %426 = vperm.xlu1 %4587, %v232_v36   ;;  %423 = vperm.xlu0 %4586, %v231_v37  }
  0x56   : > { %432 = vperm.xlu1 %4587, %v234_v38   ;;  %429 = vperm.xlu0 %4586, %v233_v39   ;;  %v278_v39 = vld [vmem:[%s4650_s20 + $0x278] sm:$0xff] }
  0x5a   : > { %438 = vperm.xlu1 %4587, %v236_v40   ;;  %435 = vperm.xlu0 %4586, %v235_v41   ;;  %v277_v40 = vld [vmem:[%s4650_s20 + $0x270] sm:$0xff] }
  0x5e   : > { %444 = vperm.xlu1 %4587, %v238_v42   ;;  %441 = vperm.xlu0 %4586, %v237_v43   ;;  %v280_v43 = vld [vmem:[%s4650_s20 + $0x288] sm:$0xff] }
  0x62   : > { %450 = vperm.xlu1 %4587, %v240_v44   ;;  %447 = vperm.xlu0 %4586, %v239_v45   ;;  %v279_v44 = vld [vmem:[%s4650_s20 + $0x280] sm:$0xff] }
  0x66   : > { %456 = vperm.xlu1 %4587, %v242_v46   ;;  %453 = vperm.xlu0 %4586, %v241_v47  }
  0x6a   : > { %462 = vperm.xlu1 %4587, %v244_v48   ;;  %459 = vperm.xlu0 %4586, %v243_v49   ;;  %v282_v48 = vld [vmem:[%s4650_s20 + $0x298] sm:$0xff]  ;;  %v281_v49 = vld [vmem:[%s4650_s20 + $0x290] sm:$0xff] }
  0x6e   : > { %468 = vperm.xlu1 %4587, %v246_v50   ;;  %465 = vperm.xlu0 %4586, %v245_v51  }
  0x72   : > { %474 = vperm.xlu1 %4587, %v248_v52   ;;  %471 = vperm.xlu0 %4586, %v247_v53   ;;  %v284_v52 = vld [vmem:[%s4650_s20 + $0x2a8] sm:$0xff]  ;;  %v283_v53 = vld [vmem:[%s4650_s20 + $0x2a0] sm:$0xff] }
  0x76   : > { %480 = vperm.xlu1 %4587, %v250_v54   ;;  %477 = vperm.xlu0 %4586, %v249_v55  }
  0x7a   : > { %486 = vperm.xlu1 %4587, %v252_v56   ;;  %483 = vperm.xlu0 %4586, %v251_v57   ;;  %v286_v57 = vld [vmem:[%s4650_s20 + $0x2b8] sm:$0xff] }
  0x7e   : > { %492 = vperm.xlu1 %4587, %v254_v58   ;;  %489 = vperm.xlu0 %4586, %v253_v59   ;;  %v285_v58 = vld [vmem:[%s4650_s20 + $0x2b0] sm:$0xff] }
  0x82   : > { %498 = vperm.xlu1 %4587, %v256_v60   ;;  %495 = vperm.xlu0 %4586, %v255_v61   ;;  %v288_v61 = vld [vmem:[%s4650_s20 + $0x2c8] sm:$0xff] }
  0x86   : > { %504 = vperm.xlu1 %4587, %v258_v62   ;;  %501 = vperm.xlu0 %4586, %v257_v63   ;;  %v287_v62 = vld [vmem:[%s4650_s20 + $0x2c0] sm:$0xff] }
  0x8a   : > { %510 = vperm.xlu1 %4587, %v260_v2   ;;  %507 = vperm.xlu0 %4586, %v259_v3  }
  0x8e   : > { %516 = vperm.xlu1 %4587, %v262_v4   ;;  %513 = vperm.xlu0 %4586, %v261_v5   ;;  %v290_v4 = vld [vmem:[%s4650_s20 + $0x2d8] sm:$0xff]  ;;  %v289_v5 = vld [vmem:[%s4650_s20 + $0x2d0] sm:$0xff] }
  0x91   : > { %v328_v10 = vpop.permute.xlu0 %327  ;;  %v334_v13 = vpop.permute.xlu1 %333 }
  0x92   : > { %522 = vperm.xlu1 %4587, %v264_v7   ;;  %519 = vperm.xlu0 %4586, %v263_v8   ;;  %vm701_vm1 = vcmp.eq.s32.totalorder %v328_v10, %v4727_v9  ;;  %vm703_vm4 = vcmp.eq.s32.totalorder %v334_v13, %v4727_v9  ;;  %v292_v8 = vld [vmem:[%s4650_s20 + $0x2e8] sm:$0xff]  ;;  %v291_v10 = vld [vmem:[%s4650_s20 + $0x2e0] sm:$0xff] }
  0x93   : > { %v3557_v15 = vsel %vm701_vm1, 1.0, %v4599_v1  ;;  %v3559_v23 = vsel %vm703_vm4, 1.0, %v4599_v1 }
  0x95   : > { %v331_v14 = vpop.permute.xlu0 %330  ;;  %v337_v20 = vpop.permute.xlu1 %336 }
  0x96   : > { %vm702_vm2 = vcmp.eq.s32.totalorder %v331_v14, %v4727_v9  ;;  %528 = vperm.xlu1 %4587, %v266_v11   ;;  %525 = vperm.xlu0 %4586, %v265_v12   ;;  %vm704_vm5 = vcmp.eq.s32.totalorder %v337_v20, %v4727_v9  ;;  %v294_v14 = vld [vmem:[%s4650_s20 + $0x2f8] sm:$0xff] }
  0x97   : > { %v3558_v16 = vsel %vm702_vm2, 1.0, %v4599_v1  ;;  %v3560_v24 = vsel %vm704_vm5, 1.0, %v4599_v1 }
  0x98   : > { %v1076_v19 = vpack.c.bf16 %v3558_v16, %v3557_v15  ;;  %v1077_v29 = vpack.c.bf16 %v3560_v24, %v3559_v23  ;;  %v293_v15 = vld [vmem:[%s4650_s20 + $0x2f0] sm:$0xff]  ;;  %v298_v23 = vld [vmem:[%s4650_s20 + $0x318] sm:$0xff] }
  0x99   : > { %v343_v27 = vpop.permute.xlu1 %342  ;;  %v340_v28 = vpop.permute.xlu0 %339  ;;  %v297_v24 = vld [vmem:[%s4650_s20 + $0x310] sm:$0xff] }
  0x9a   : > { %534 = vperm.xlu1 %4587, %v268_v17   ;;  %531 = vperm.xlu0 %4586, %v267_v18   ;;  %vm706_vm6 = vcmp.eq.s32.totalorder %v343_v27, %v4727_v9  ;;  %vm705_vm7 = vcmp.eq.s32.totalorder %v340_v28, %v4727_v9  ;;  %v296_v18 = vld [vmem:[%s4650_s20 + $0x308] sm:$0xff]  ;;  %v299_v28 = vld [vmem:[%s4650_s20 + $0x320] sm:$0xff] }
  0x9b   : > { %4300 = vmatmul.mubr.msk.bf16.vlgmr.msra.gmra.mrb[0].mxu0 %vm1155_vm3, %v1076_v19  ;;  %v3562_v32 = vsel %vm706_vm6, 1.0, %v4599_v1  ;;  %v3561_v33 = vsel %vm705_vm7, 1.0, %v4599_v1  ;;  %v295_v19 = vld [vmem:[%s4650_s20 + $0x300] sm:$0xff]  ;;  %v300_v27 = vld [vmem:[%s4650_s20 + $0x328] sm:$0xff] }
  0x9c   : > { %4303 = vmatprep.mubr.msk.bf16.mxu0 %vm4600_vm0, %v4599_v1  ;;  %v1078_v38 = vpack.c.bf16 %v3562_v32, %v3561_v33  ;;  %v302_v32 = vld [vmem:[%s4650_s20 + $0x338] sm:$0xff]  ;;  %v301_v33 = vld [vmem:[%s4650_s20 + $0x330] sm:$0xff] }
  0x9d   : > { %v349_v36 = vpop.permute.xlu1 %348  ;;  %v346_v37 = vpop.permute.xlu0 %345 }
  0x9e   : > { %540 = vperm.xlu1 %4587, %v270_v21   ;;  %537 = vperm.xlu0 %4586, %v269_v22   ;;  %vm708_vm8 = vcmp.eq.s32.totalorder %v349_v36, %v4727_v9  ;;  %vm707_vm9 = vcmp.eq.s32.totalorder %v346_v37, %v4727_v9  ;;  %v304_v36 = vld [vmem:[%s4650_s20 + $0x348] sm:$0xff]  ;;  %v303_v37 = vld [vmem:[%s4650_s20 + $0x340] sm:$0xff] }
  0x9f   : > { %v3564_v41 = vsel %vm708_vm8, 1.0, %v4599_v1  ;;  %v3563_v42 = vsel %vm707_vm9, 1.0, %v4599_v1 }
  0xa0   : > { %v1079_v47 = vpack.c.bf16 %v3564_v41, %v3563_v42  ;;  %v306_v41 = vld [vmem:[%s4650_s20 + $0x358] sm:$0xff]  ;;  %v305_v42 = vld [vmem:[%s4650_s20 + $0x350] sm:$0xff] }
  0xa1   : > { %v355_v45 = vpop.permute.xlu1 %354  ;;  %v352_v46 = vpop.permute.xlu0 %351 }
  0xa2   : > { %546 = vperm.xlu1 %4587, %v272_v25   ;;  %543 = vperm.xlu0 %4586, %v271_v26   ;;  %vm710_vm10 = vcmp.eq.s32.totalorder %v355_v45, %v4727_v9  ;;  %vm709_vm11 = vcmp.eq.s32.totalorder %v352_v46, %v4727_v9  ;;  %v308_v45 = vld [vmem:[%s4650_s20 + $0x368] sm:$0xff]  ;;  %v307_v46 = vld [vmem:[%s4650_s20 + $0x360] sm:$0xff] }
  0xa3   : > { %4304 = vmatmul.mubr.msk.bf16.gmra.mrb[4].mxu0 %vm1155_vm3, %v1077_v29  ;;  %v3566_v50 = vsel %vm710_vm10, 1.0, %v4599_v1  ;;  %v3565_v51 = vsel %vm709_vm11, 1.0, %v4599_v1 }
  0xa4   : > { %4307 = vmatprep.mubr.msk.bf16.mxu0 %vm4600_vm0, %v4599_v1  ;;  %v1080_v56 = vpack.c.bf16 %v3566_v50, %v3565_v51  ;;  %v310_v50 = vld [vmem:[%s4650_s20 + $0x378] sm:$0xff]  ;;  %v309_v51 = vld [vmem:[%s4650_s20 + $0x370] sm:$0xff] }
  0xa5   : > { %v361_v54 = vpop.permute.xlu1 %360  ;;  %v358_v55 = vpop.permute.xlu0 %357 }
  0xa6   : > { %552 = vperm.xlu1 %4587, %v274_v30   ;;  %549 = vperm.xlu0 %4586, %v273_v31   ;;  %vm712_vm12 = vcmp.eq.s32.totalorder %v361_v54, %v4727_v9  ;;  %vm711_vm13 = vcmp.eq.s32.totalorder %v358_v55, %v4727_v9  ;;  %v312_v54 = vld [vmem:[%s4650_s20 + $0x388] sm:$0xff]  ;;  %v311_v55 = vld [vmem:[%s4650_s20 + $0x380] sm:$0xff] }
  0xa7   : > { %v3568_v59 = vsel %vm712_vm12, 1.0, %v4599_v1  ;;  %v3567_v60 = vsel %vm711_vm13, 1.0, %v4599_v1 }
  0xa8   : > { %v1081_v3 = vpack.c.bf16 %v3568_v59, %v3567_v60  ;;  %v314_v59 = vld [vmem:[%s4650_s20 + $0x398] sm:$0xff]  ;;  %v313_v60 = vld [vmem:[%s4650_s20 + $0x390] sm:$0xff] }
  0xa9   : > { %v367_v63 = vpop.permute.xlu1 %366  ;;  %v364_v2 = vpop.permute.xlu0 %363 }
  0xaa   : > { %558 = vperm.xlu1 %4587, %v276_v34   ;;  %555 = vperm.xlu0 %4586, %v275_v35   ;;  %vm714_vm14 = vcmp.eq.s32.totalorder %v367_v63, %v4727_v9  ;;  %vm713_vm15 = vcmp.eq.s32.totalorder %v364_v2, %v4727_v9  ;;  %v316_v63 = vld [vmem:[%s4650_s20 + $0x3a8] sm:$0xff]  ;;  %v315_v2 = vld [vmem:[%s4650_s20 + $0x3a0] sm:$0xff] }
  0xab   : > { %4308 = vmatmul.mubr.msk.bf16.gmra.mrb[8].mxu0 %vm1155_vm3, %v1078_v38  ;;  %v3570_v6 = vsel %vm714_vm14, 1.0, %v4599_v1  ;;  %v3569_v7 = vsel %vm713_vm15, 1.0, %v4599_v1 }
  0xac   : > { %4311 = vmatprep.mubr.msk.bf16.mxu0 %vm4600_vm0, %v4599_v1  ;;  %v1082_v13 = vpack.c.bf16 %v3570_v6, %v3569_v7  ;;  %v318_v6 = vld [vmem:[%s4650_s20 + $0x3b8] sm:$0xff]  ;;  %v317_v7 = vld [vmem:[%s4650_s20 + $0x3b0] sm:$0xff] }
  0xad   : > { %v373_v11 = vpop.permute.xlu1 %372  ;;  %v370_v12 = vpop.permute.xlu0 %369 }
  0xae   : > { %564 = vperm.xlu1 %4587, %v278_v39   ;;  %561 = vperm.xlu0 %4586, %v277_v40   ;;  %vm716_vm1 = vcmp.eq.s32.totalorder %v373_v11, %v4727_v9  ;;  %vm715_vm2 = vcmp.eq.s32.totalorder %v370_v12, %v4727_v9  ;;  %v320_v11 = vld [vmem:[%s4650_s20 + $0x3c8] sm:$0xff]  ;;  %v319_v12 = vld [vmem:[%s4650_s20 + $0x3c0] sm:$0xff] }
  0xaf   : > { %v3572_v16 = vsel %vm716_vm1, 1.0, %v4599_v1  ;;  %v3571_v17 = vsel %vm715_vm2, 1.0, %v4599_v1 }
  0xb0   : > { %v1083_v22 = vpack.c.bf16 %v3572_v16, %v3571_v17  ;;  %v322_v16 = vld [vmem:[%s4650_s20 + $0x3d8] sm:$0xff]  ;;  %v321_v17 = vld [vmem:[%s4650_s20 + $0x3d0] sm:$0xff] }
  0xb1   : > { %v379_v20 = vpop.permute.xlu1 %378  ;;  %v376_v21 = vpop.permute.xlu0 %375 }
  0xb2   : > { %570 = vperm.xlu1 %4587, %v280_v43   ;;  %567 = vperm.xlu0 %4586, %v279_v44   ;;  %vm718_vm4 = vcmp.eq.s32.totalorder %v379_v20, %v4727_v9  ;;  %vm717_vm5 = vcmp.eq.s32.totalorder %v376_v21, %v4727_v9  ;;  %v323_v20 = vld [vmem:[%s4650_s20 + $0x3e0] sm:$0xff]  ;;  %s4604_s20 = smov 124  }
  0xb3   : > { %4312 = vmatmul.mubr.msk.bf16.gmra.mrb[12].mxu0 %vm1155_vm3, %v1079_v47  ;;  %v3574_v25 = vsel %vm718_vm4, 1.0, %v4599_v1  ;;  %v3573_v26 = vsel %vm717_vm5, 1.0, %v4599_v1 }
  0xb4   : > { %4315 = vmatprep.mubr.msk.bf16.mxu0 %vm4600_vm0, %v4599_v1  ;;  %v1084_v31 = vpack.c.bf16 %v3574_v25, %v3573_v26 }
  0xb5   : > { %v385_v29 = vpop.permute.xlu1 %384  ;;  %v382_v30 = vpop.permute.xlu0 %381 }
  0xb6   : > { %576 = vperm.xlu1 %4587, %v282_v48   ;;  %573 = vperm.xlu0 %4586, %v281_v49   ;;  %vm720_vm6 = vcmp.eq.s32.totalorder %v385_v29, %v4727_v9  ;;  %vm719_vm7 = vcmp.eq.s32.totalorder %v382_v30, %v4727_v9 }
  0xb7   : > { %v3576_v34 = vsel %vm720_vm6, 1.0, %v4599_v1  ;;  %v3575_v35 = vsel %vm719_vm7, 1.0, %v4599_v1 }
  0xb8   : > { %v1085_v40 = vpack.c.bf16 %v3576_v34, %v3575_v35 }
  0xb9   : > { %v391_v38 = vpop.permute.xlu1 %390  ;;  %v388_v39 = vpop.permute.xlu0 %387 }
  0xba   : > { %582 = vperm.xlu1 %4587, %v284_v52   ;;  %579 = vperm.xlu0 %4586, %v283_v53   ;;  %vm722_vm8 = vcmp.eq.s32.totalorder %v391_v38, %v4727_v9  ;;  %vm721_vm9 = vcmp.eq.s32.totalorder %v388_v39, %v4727_v9 }
  0xbb   : > { %4316 = vmatmul.mubr.msk.bf16.gmra.mrb[16].mxu0 %vm1155_vm3, %v1080_v56  ;;  %v3578_v43 = vsel %vm722_vm8, 1.0, %v4599_v1  ;;  %v3577_v44 = vsel %vm721_vm9, 1.0, %v4599_v1 }
  0xbc   : > { %4319 = vmatprep.mubr.msk.bf16.mxu0 %vm4600_vm0, %v4599_v1  ;;  %v1086_v49 = vpack.c.bf16 %v3578_v43, %v3577_v44 }
  0xbd   : > { %v397_v47 = vpop.permute.xlu1 %396  ;;  %v394_v48 = vpop.permute.xlu0 %393 }
  0xbe   : > { %588 = vperm.xlu1 %4587, %v286_v57   ;;  %585 = vperm.xlu0 %4586, %v285_v58   ;;  %vm724_vm10 = vcmp.eq.s32.totalorder %v397_v47, %v4727_v9  ;;  %vm723_vm11 = vcmp.eq.s32.totalorder %v394_v48, %v4727_v9 }
  0xbf   : > { %v3580_v52 = vsel %vm724_vm10, 1.0, %v4599_v1  ;;  %v3579_v53 = vsel %vm723_vm11, 1.0, %v4599_v1 }
  0xc0   : > { %v1087_v58 = vpack.c.bf16 %v3580_v52, %v3579_v53 }
  0xc1   : > { %v403_v56 = vpop.permute.xlu1 %402  ;;  %v400_v57 = vpop.permute.xlu0 %399 }
  0xc2   : > { %594 = vperm.xlu1 %4587, %v288_v61   ;;  %591 = vperm.xlu0 %4586, %v287_v62   ;;  %vm726_vm12 = vcmp.eq.s32.totalorder %v403_v56, %v4727_v9  ;;  %vm725_vm13 = vcmp.eq.s32.totalorder %v400_v57, %v4727_v9 }
  0xc3   : > { %4320 = vmatmul.mubr.msk.bf16.gmra.mrb[20].mxu0 %vm1155_vm3, %v1081_v3  ;;  %v3582_v61 = vsel %vm726_vm12, 1.0, %v4599_v1  ;;  %v3581_v62 = vsel %vm725_vm13, 1.0, %v4599_v1 }
  0xc4   : > { %4323 = vmatprep.mubr.msk.bf16.mxu0 %vm4600_vm0, %v4599_v1 }
  0xc5   : > { %v409_v3 = vpop.permute.xlu1 %408 }
  0xc6   : > { %600 = vperm.xlu1 %4587, %v290_v4   ;;  %597 = vperm.xlu0 %4586, %v289_v5   ;;  %v406_v4 = vpop.permute.xlu0 %405  ;;  %v1088_v5 = vpack.c.bf16 %v3582_v61, %v3581_v62  ;;  %vm728_vm14 = vcmp.eq.s32.totalorder %v409_v3, %v4727_v9 }
  0xc7   : > { %vm727_vm15 = vcmp.eq.s32.totalorder %v406_v4, %v4727_v9 }
  0xca   : > { %606 = vperm.xlu1 %4587, %v292_v8   ;;  %603 = vperm.xlu0 %4586, %v291_v10   ;;  %v3584_v8 = vsel %vm728_vm14, 1.0, %v4599_v1  ;;  %v3583_v10 = vsel %vm727_vm15, 1.0, %v4599_v1 }
  0xcb   : > { %4324 = vmatmul.mubr.msk.bf16.gmra.mrb[24].mxu0 %vm1155_vm3, %v1082_v13  ;;  %v415_v13 = vpop.permute.xlu1 %414 }
  0xcc   : > { %4327 = vmatprep.mubr.msk.bf16.mxu0 %vm4600_vm0, %v4599_v1  ;;  %vm730_vm1 = vcmp.eq.s32.totalorder %v415_v13, %v4727_v9 }
  0xce   : > { %612 = vperm.xlu1 %4587, %v294_v14   ;;  %609 = vperm.xlu0 %4586, %v293_v15   ;;  %v412_v14 = vpop.permute.xlu0 %411  ;;  %v1089_v15 = vpack.c.bf16 %v3584_v8, %v3583_v10 }
  0xcf   : > { %vm729_vm2 = vcmp.eq.s32.totalorder %v412_v14, %v4727_v9  ;;  %v421_v21 = vpop.permute.xlu1 %420 }
  0xd0   : > { %vm732_vm4 = vcmp.eq.s32.totalorder %v421_v21, %v4727_v9 }
  0xd2   : > { %618 = vperm.xlu1 %4587, %v296_v18   ;;  %615 = vperm.xlu0 %4586, %v295_v19   ;;  %v3586_v18 = vsel %vm730_vm1, 1.0, %v4599_v1  ;;  %v3585_v19 = vsel %vm729_vm2, 1.0, %v4599_v1 }
  0xd3   : > { %4328 = vmatmul.mubr.msk.bf16.gmra.mrb[28].mxu0 %vm1155_vm3, %v1083_v22  ;;  %v418_v22 = vpop.permute.xlu0 %417  ;;  %v427_v26 = vpop.permute.xlu1 %426 }
  0xd4   : > { %4331 = vmatprep.mubr.msk.bf16.mxu0 %vm4600_vm0, %v4599_v1  ;;  %vm731_vm5 = vcmp.eq.s32.totalorder %v418_v22, %v4727_v9  ;;  %vm734_vm6 = vcmp.eq.s32.totalorder %v427_v26, %v4727_v9 }
  0xd5   : > { %v3587_v25 = vsel %vm731_vm5, 1.0, %v4599_v1  ;;  %v3590_v29 = vsel %vm734_vm6, 1.0, %v4599_v1 }
  0xd6   : > { %624 = vperm.xlu1 %4587, %v298_v23   ;;  %621 = vperm.xlu0 %4586, %v297_v24   ;;  %v1090_v23 = vpack.c.bf16 %v3586_v18, %v3585_v19  ;;  %v3588_v24 = vsel %vm732_vm4, 1.0, %v4599_v1 }
  0xda   : > { %630 = vperm.xlu1 %4587, %v300_v27   ;;  %627 = vperm.xlu0 %4586, %v299_v28   ;;  %v424_v27 = vpop.permute.xlu0 %423  ;;  %v1091_v28 = vpack.c.bf16 %v3588_v24, %v3587_v25 }
  0xdb   : > { %4332 = vmatmul.mubr.msk.bf16.gmra.mrb[32].mxu0 %vm1155_vm3, %v1084_v31  ;;  %vm733_vm7 = vcmp.eq.s32.totalorder %v424_v27, %v4727_v9  ;;  %v433_v31 = vpop.permute.xlu1 %432 }
  0xdc   : > { %4335 = vmatprep.mubr.msk.bf16.mxu0 %vm4600_vm0, %v4599_v1  ;;  %v3589_v30 = vsel %vm733_vm7, 1.0, %v4599_v1  ;;  %vm736_vm8 = vcmp.eq.s32.totalorder %v433_v31, %v4727_v9 }
  0xdd   : > { %v3592_v34 = vsel %vm736_vm8, 1.0, %v4599_v1 }
  0xde   : > { %636 = vperm.xlu1 %4587, %v302_v32   ;;  %633 = vperm.xlu0 %4586, %v301_v33   ;;  %v430_v32 = vpop.permute.xlu0 %429  ;;  %v1092_v33 = vpack.c.bf16 %v3590_v29, %v3589_v30 }
  0xdf   : > { %vm735_vm9 = vcmp.eq.s32.totalorder %v430_v32, %v4727_v9 }
  0xe0   : > { %v3591_v35 = vsel %vm735_vm9, 1.0, %v4599_v1 }
  0xe1   : > { %v1093_v38 = vpack.c.bf16 %v3592_v34, %v3591_v35 }
  0xe2   : > { %642 = vperm.xlu1 %4587, %v304_v36   ;;  %639 = vperm.xlu0 %4586, %v303_v37   ;;  %v439_v36 = vpop.permute.xlu1 %438  ;;  %v436_v37 = vpop.permute.xlu0 %435 }
  0xe3   : > { %4336 = vmatmul.mubr.msk.bf16.gmra.mrb[36].mxu0 %vm1155_vm3, %v1085_v40  ;;  %vm738_vm10 = vcmp.eq.s32.totalorder %v439_v36, %v4727_v9  ;;  %vm737_vm11 = vcmp.eq.s32.totalorder %v436_v37, %v4727_v9 }
  0xe4   : > { %4339 = vmatprep.mubr.msk.bf16.mxu0 %vm4600_vm0, %v4599_v1  ;;  %v3594_v39 = vsel %vm738_vm10, 1.0, %v4599_v1  ;;  %v3593_v40 = vsel %vm737_vm11, 1.0, %v4599_v1 }
  0xe5   : > { %v1094_v43 = vpack.c.bf16 %v3594_v39, %v3593_v40 }
  0xe6   : > { %648 = vperm.xlu1 %4587, %v306_v41   ;;  %645 = vperm.xlu0 %4586, %v305_v42   ;;  %v445_v41 = vpop.permute.xlu1 %444  ;;  %v442_v42 = vpop.permute.xlu0 %441 }
  0xe7   : > { %vm740_vm12 = vcmp.eq.s32.totalorder %v445_v41, %v4727_v9  ;;  %vm739_vm13 = vcmp.eq.s32.totalorder %v442_v42, %v4727_v9 }
  0xe8   : > { %v3596_v44 = vsel %vm740_vm12, 1.0, %v4599_v1 }
  0xea   : > { %654 = vperm.xlu1 %4587, %v308_v45   ;;  %651 = vperm.xlu0 %4586, %v307_v46   ;;  %v3595_v45 = vsel %vm739_vm13, 1.0, %v4599_v1  ;;  %v451_v46 = vpop.permute.xlu1 %450  ;;  %v448_v47 = vpop.permute.xlu0 %447 }
  0xeb   : > { %4340 = vmatmul.mubr.msk.bf16.gmra.mrb[40].mxu0 %vm1155_vm3, %v1086_v49  ;;  %v1095_v48 = vpack.c.bf16 %v3596_v44, %v3595_v45  ;;  %vm742_vm14 = vcmp.eq.s32.totalorder %v451_v46, %v4727_v9  ;;  %vm741_vm15 = vcmp.eq.s32.totalorder %v448_v47, %v4727_v9  ;;  %v5000_v44 = vld [vmem:[%s6165_s2 + $0xa0] sm:$0xff] }
  0xec   : > { %4343 = vmatprep.mubr.msk.bf16.mxu0 %vm4600_vm0, %v4599_v1  ;;  %v3598_v49 = vsel %vm742_vm14, 1.0, %v4599_v1 }
  0xee   : > { %660 = vperm.xlu1 %4587, %v310_v50   ;;  %657 = vperm.xlu0 %4586, %v309_v51   ;;  %v3597_v50 = vsel %vm741_vm15, 1.0, %v4599_v1  ;;  %v457_v51 = vpop.permute.xlu1 %456  ;;  %v454_v52 = vpop.permute.xlu0 %453 }
  0xef   : > { %v1096_v53 = vpack.c.bf16 %v3598_v49, %v3597_v50  ;;  %vm744_vm1 = vcmp.eq.s32.totalorder %v457_v51, %v4727_v9  ;;  %vm743_vm2 = vcmp.eq.s32.totalorder %v454_v52, %v4727_v9 }
  0xf2   : > { %666 = vperm.xlu1 %4587, %v312_v54   ;;  %663 = vperm.xlu0 %4586, %v311_v55   ;;  %v3600_v54 = vsel %vm744_vm1, 1.0, %v4599_v1  ;;  %v3599_v55 = vsel %vm743_vm2, 1.0, %v4599_v1  ;;  %v463_v56 = vpop.permute.xlu1 %462  ;;  %v460_v57 = vpop.permute.xlu0 %459 }
  0xf3   : > { %4344 = vmatmul.mubr.msk.bf16.gmra.mrb[44].mxu0 %vm1155_vm3, %v1087_v58  ;;  %v1097_v58 = vpack.c.bf16 %v3600_v54, %v3599_v55  ;;  %vm746_vm4 = vcmp.eq.s32.totalorder %v463_v56, %v4727_v9  ;;  %vm745_vm5 = vcmp.eq.s32.totalorder %v460_v57, %v4727_v9 }
  0xf4   : > { %4347 = vmatprep.mubr.msk.bf16.mxu0 %vm4600_vm0, %v4599_v1 }
  0xf6   : > { %672 = vperm.xlu1 %4587, %v314_v59   ;;  %669 = vperm.xlu0 %4586, %v313_v60   ;;  %v3602_v59 = vsel %vm746_vm4, 1.0, %v4599_v1  ;;  %v3601_v60 = vsel %vm745_vm5, 1.0, %v4599_v1  ;;  %v469_v61 = vpop.permute.xlu1 %468  ;;  %v466_v62 = vpop.permute.xlu0 %465 }
  0xf7   : > { %vm748_vm6 = vcmp.eq.s32.totalorder %v469_v61, %v4727_v9  ;;  %vm747_vm7 = vcmp.eq.s32.totalorder %v466_v62, %v4727_v9 }
  0xf8   : > { %v3603_v3 = vsel %vm747_vm7, 1.0, %v4599_v1 }
  0xfa   : > { %678 = vperm.xlu1 %4587, %v316_v63   ;;  %675 = vperm.xlu0 %4586, %v315_v2   ;;  %v1098_v63 = vpack.c.bf16 %v3602_v59, %v3601_v60  ;;  %v3604_v2 = vsel %vm748_vm6, 1.0, %v4599_v1  ;;  %v475_v4 = vpop.permute.xlu1 %474 }
  0xfb   : > { %4348 = vmatmul.mubr.msk.bf16.gmra.mrb[48].mxu0 %vm1155_vm3, %v1088_v5  ;;  %v472_v5 = vpop.permute.xlu0 %471  ;;  %vm750_vm8 = vcmp.eq.s32.totalorder %v475_v4, %v4727_v9 }
  0xfc   : > { %4351 = vmatprep.mubr.msk.bf16.mxu0 %vm4600_vm0, %v4599_v1  ;;  %vm749_vm9 = vcmp.eq.s32.totalorder %v472_v5, %v4727_v9 }
  0xfd   : > { %v3605_v8 = vsel %vm749_vm9, 1.0, %v4599_v1 }
  0xfe   : > { %684 = vperm.xlu1 %4587, %v318_v6   ;;  %681 = vperm.xlu0 %4586, %v317_v7   ;;  %v1099_v6 = vpack.c.bf16 %v3604_v2, %v3603_v3  ;;  %v3606_v7 = vsel %vm750_vm8, 1.0, %v4599_v1  ;;  %v481_v10 = vpop.permute.xlu1 %480 }
  0xff   : > { %vm752_vm10 = vcmp.eq.s32.totalorder %v481_v10, %v4727_v9 }
 0x100   : > { %v3608_v13 = vsel %vm752_vm10, 1.0, %v4599_v1 }
 0x102   : > { %690 = vperm.xlu1 %4587, %v320_v11   ;;  %687 = vperm.xlu0 %4586, %v319_v12   ;;  %v478_v11 = vpop.permute.xlu0 %477  ;;  %v1100_v12 = vpack.c.bf16 %v3606_v7, %v3605_v8 }
 0x103   : > { %4352 = vmatmul.mubr.msk.bf16.gmra.mrb[52].mxu0 %vm1155_vm3, %v1089_v15  ;;  %vm751_vm11 = vcmp.eq.s32.totalorder %v478_v11, %v4727_v9  ;;  %v487_v15 = vpop.permute.xlu1 %486 }
 0x104   : > { %4355 = vmatprep.mubr.msk.bf16.mxu0 %vm4600_vm0, %v4599_v1  ;;  %v3607_v14 = vsel %vm751_vm11, 1.0, %v4599_v1  ;;  %vm754_vm12 = vcmp.eq.s32.totalorder %v487_v15, %v4727_v9 }
 0x105   : > { %v3610_v18 = vsel %vm754_vm12, 1.0, %v4599_v1 }
 0x106   : > { %696 = vperm.xlu1 %4587, %v322_v16   ;;  %693 = vperm.xlu0 %4586, %v321_v17   ;;  %v484_v16 = vpop.permute.xlu0 %483  ;;  %v1101_v17 = vpack.c.bf16 %v3608_v13, %v3607_v14 }
 0x107   : > { %vm753_vm13 = vcmp.eq.s32.totalorder %v484_v16, %v4727_v9 }
 0x108   : > { %v3609_v19 = vsel %vm753_vm13, 1.0, %v4599_v1 }
 0x109   : > { %v1102_v22 = vpack.c.bf16 %v3610_v18, %v3609_v19 }
 0x10a   : > { %699 = vperm.xlu0 %4586, %v323_v20   ;;  %v493_v20 = vpop.permute.xlu1 %492  ;;  %v490_v21 = vpop.permute.xlu0 %489 }
 0x10b   : > { %4356 = vmatmul.mubr.msk.bf16.gmra.mrb[56].mxu0 %vm1155_vm3, %v1090_v23  ;;  %vm756_vm14 = vcmp.eq.s32.totalorder %v493_v20, %v4727_v9  ;;  %vm755_vm15 = vcmp.eq.s32.totalorder %v490_v21, %v4727_v9 }
 0x10c   : > { %4359 = vmatprep.mubr.msk.bf16.mxu0 %vm4600_vm0, %v4599_v1  ;;  %v3612_v23 = vsel %vm756_vm14, 1.0, %v4599_v1  ;;  %v3611_v24 = vsel %vm755_vm15, 1.0, %v4599_v1 }
 0x10d   : > { %v1103_v30 = vpack.c.bf16 %v3612_v23, %v3611_v24 }
 0x10e   : > { %v499_v26 = vpop.permute.xlu1 %498 }
 0x10f   : > { %vm758_vm1 = vcmp.eq.s32.totalorder %v499_v26, %v4727_v9 }
 0x112   : > { %v505_v36 = vpop.permute.xlu1 %504 }
 0x113   : > { %4360 = vmatmul.mubr.msk.bf16.gmra.mrb[60].mxu0 %vm1155_vm3, %v1091_v28  ;;  %v496_v28 = vpop.permute.xlu0 %495  ;;  %vm760_vm4 = vcmp.eq.s32.totalorder %v505_v36, %v4727_v9 }
 0x114   : > { %4363 = vmatprep.mubr.msk.bf16.mxu0 %vm4600_vm0, %v4599_v1  ;;  %vm757_vm2 = vcmp.eq.s32.totalorder %v496_v28, %v4727_v9  ;;  %v3616_v47 = vsel %vm760_vm4, 1.0, %v4599_v1 }
 0x115   : > { %v3613_v34 = vsel %vm757_vm2, 1.0, %v4599_v1 }
 0x116   : > { %v511_v50 = vpop.permute.xlu1 %510 }
 0x117   : > { %vm762_vm6 = vcmp.eq.s32.totalorder %v511_v50, %v4727_v9 }
 0x118   : > { %v3618_v57 = vsel %vm762_vm6, 1.0, %v4599_v1 }
 0x11a   : > { %v517_v60 = vpop.permute.xlu1 %516 }
 0x11b   : > { %4364 = vmatmul.mubr.msk.bf16.gmra.mrb[64].mxu0 %vm1155_vm3, %v1092_v33  ;;  %v3614_v33 = vsel %vm758_vm1, 1.0, %v4599_v1  ;;  %vm764_vm8 = vcmp.eq.s32.totalorder %v517_v60, %v4727_v9 }
 0x11c   : > { %4367 = vmatprep.mubr.msk.bf16.mxu0 %vm4600_vm0, %v4599_v1  ;;  %v1104_v40 = vpack.c.bf16 %v3614_v33, %v3613_v34  ;;  %v3620_v5 = vsel %vm764_vm8, 1.0, %v4599_v1 }
 0x11e   : > { %v523_v8 = vpop.permute.xlu1 %522 }
 0x11f   : > { %vm766_vm10 = vcmp.eq.s32.totalorder %v523_v8, %v4727_v9 }
 0x120   : > { %v3622_v16 = vsel %vm766_vm10, 1.0, %v4599_v1 }
 0x122   : > { %v529_v19 = vpop.permute.xlu1 %528 }
 0x123   : > { %4368 = vmatmul.mubr.msk.bf16.gmra.mrb[68].mxu0 %vm1155_vm3, %v1093_v38  ;;  %v502_v38 = vpop.permute.xlu0 %501  ;;  %vm768_vm12 = vcmp.eq.s32.totalorder %v529_v19, %v4727_v9 }
 0x124   : > { %4371 = vmatprep.mubr.msk.bf16.mxu0 %vm4600_vm0, %v4599_v1  ;;  %vm759_vm5 = vcmp.eq.s32.totalorder %v502_v38, %v4727_v9  ;;  %v3624_v26 = vsel %vm768_vm12, 1.0, %v4599_v1 }
 0x127   : > { %v508_v52 = vpop.permute.xlu0 %507 }
 0x128   : > { %vm761_vm7 = vcmp.eq.s32.totalorder %v508_v52, %v4727_v9 }
 0x12b   : > { %4372 = vmatmul.mubr.msk.bf16.gmra.mrb[72].mxu0 %vm1155_vm3, %v1094_v43  ;;  %v4995_v43 = vld [vmem:[%s6165_s2 + $0x80] sm:$0xff]  ;;  %v514_v62 = vpop.permute.xlu0 %513 }
 0x12c   : > { %4375 = vmatprep.mubr.msk.bf16.mxu0 %vm4600_vm0, %v4599_v1  ;;  %v3764_v45 = vcombine.high %v4995_v43, %v5000_v44  ;;  %v3763_v46 = vcombine.low %v4995_v43, %v5000_v44  ;;  %vm763_vm9 = vcmp.eq.s32.totalorder %v514_v62, %v4727_v9 }
 0x12e   : > { %2797 = vmatprep.mubr.bf16.mxu1 %v3764_v45 }
 0x12f   : > { %v520_v11 = vpop.permute.xlu0 %519 }
 0x130   : > { %vm765_vm11 = vcmp.eq.s32.totalorder %v520_v11, %v4727_v9 }
 0x133   : > { %4376 = vmatmul.mubr.msk.bf16.gmra.mrb[76].mxu0 %vm1155_vm3, %v1095_v48  ;;  %v3615_v48 = vsel %vm759_vm5, 1.0, %v4599_v1  ;;  %v526_v21 = vpop.permute.xlu0 %525 }
 0x134   : > { %4379 = vmatprep.mubr.msk.bf16.mxu0 %vm4600_vm0, %v4599_v1  ;;  %v1105_v54 = vpack.c.bf16 %v3616_v47, %v3615_v48  ;;  %vm767_vm13 = vcmp.eq.s32.totalorder %v526_v21, %v4727_v9 }
 0x13b   : > { %4380 = vmatmul.mubr.msk.bf16.gmra.mrb[80].mxu0 %vm1155_vm3, %v1096_v53 }
 0x13c   : > { %4383 = vmatprep.mubr.msk.bf16.mxu0 %vm4600_vm0, %v4599_v1 }
 0x143   : > { %4384 = vmatmul.mubr.msk.bf16.gmra.mrb[84].mxu0 %vm1155_vm3, %v1097_v58  ;;  %v3617_v58 = vsel %vm761_vm7, 1.0, %v4599_v1 }
 0x144   : > { %4387 = vmatprep.mubr.msk.bf16.mxu0 %vm4600_vm0, %v4599_v1  ;;  %v1106_v2 = vpack.c.bf16 %v3618_v57, %v3617_v58 }
 0x14b   : > { %4388 = vmatmul.mubr.msk.bf16.gmra.mrb[88].mxu0 %vm1155_vm3, %v1098_v63 }
 0x14c   : > { %4391 = vmatprep.mubr.msk.bf16.mxu0 %vm4600_vm0, %v4599_v1 }
 0x153   : > { %4392 = vmatmul.mubr.msk.bf16.gmra.mrb[92].mxu0 %vm1155_vm3, %v1099_v6  ;;  %v3619_v6 = vsel %vm763_vm9, 1.0, %v4599_v1 }
 0x154   : > { %4395 = vmatprep.mubr.msk.bf16.mxu0 %vm4600_vm0, %v4599_v1  ;;  %v1107_v13 = vpack.c.bf16 %v3620_v5, %v3619_v6 }
 0x15b   : > { %4396 = vmatmul.mubr.msk.bf16.gmra.mrb[96].mxu0 %vm1155_vm3, %v1100_v12 }
 0x15c   : > { %4399 = vmatprep.mubr.msk.bf16.mxu0 %vm4600_vm0, %v4599_v1 }
 0x163   : > { %4400 = vmatmul.mubr.msk.bf16.gmra.mrb[100].mxu0 %vm1155_vm3, %v1101_v17  ;;  %v3621_v17 = vsel %vm765_vm11, 1.0, %v4599_v1 }
 0x164   : > { %4403 = vmatprep.mubr.msk.bf16.mxu0 %vm4600_vm0, %v4599_v1  ;;  %v1108_v23 = vpack.c.bf16 %v3622_v16, %v3621_v17 }
 0x16b   : > { %4404 = vmatmul.mubr.msk.bf16.gmra.mrb[104].mxu0 %vm1155_vm3, %v1102_v22 }
 0x16c   : > { %4407 = vmatprep.mubr.msk.bf16.mxu0 %vm4600_vm0, %v4599_v1 }
 0x16e   : > { %v1379_v25 = vpop.f32.mrb[0].mxu0 }
 0x16f   : > { %v4301_v27 = vpop.f32.mrb[1].mxu0 }
 0x170   : > { %v1382_v29 = vpop.f32.mrb[2].mxu0  ;;  %v3623_v27 = vsel %vm767_vm13, 1.0, %v4599_v1 }
 0x171   : > { %v4981_v31 = vpack.c.bf16 %v1382_v29, %v1379_v25  ;;  %v4302_v32 = vpop.f32.mrb[3].mxu0  ;;  %v535_v29 = vpop.permute.xlu1 %534  ;;  %v1109_v34 = vpack.c.bf16 %v3624_v26, %v3623_v27 }
 0x172   : > { %v532_v32 = vpop.permute.xlu0 %531  ;;  %vm770_vm14 = vcmp.eq.s32.totalorder %v535_v29, %v4727_v9 }
 0x173   : > { %4408 = vmatmul.mubr.msk.bf16.gmra.mrb[108].mxu0 %vm1155_vm3, %v1103_v30  ;;  %vm769_vm15 = vcmp.eq.s32.totalorder %v532_v32, %v4727_v9 }
 0x174   : > { %4411 = vmatprep.mubr.msk.bf16.mxu0 %vm4600_vm0, %v4599_v1  ;;  %v3625_v38 = vsel %vm769_vm15, 1.0, %v4599_v1 }
 0x176   : > { %v1387_v35 = vpop.f32.mrb[4].mxu0  ;;  %v538_v45 = vpop.permute.xlu0 %537 }
 0x177   : > { %v4305_v37 = vpop.f32.mrb[5].mxu0  ;;  %vm771_vm2 = vcmp.eq.s32.totalorder %v538_v45, %v4727_v9 }
 0x178   : > { %v1390_v39 = vpop.f32.mrb[6].mxu0  ;;  %v3626_v37 = vsel %vm770_vm14, 1.0, %v4599_v1  ;;  %v3627_v52 = vsel %vm771_vm2, 1.0, %v4599_v1 }
 0x179   : > { %v4990_v41 = vpack.c.bf16 %v1390_v39, %v1387_v35  ;;  %v4306_v42 = vpop.f32.mrb[7].mxu0  ;;  %v1110_v48 = vpack.c.bf16 %v3626_v37, %v3625_v38 }
 0x17a   : > { %v544_v57 = vpop.permute.xlu0 %543 }
 0x17b   : > { %4412 = vmatmul.mubr.msk.bf16.gmra.mrb[112].mxu0 %vm1155_vm3, %v1104_v40  ;;  %v541_v40 = vpop.permute.xlu1 %540  ;;  %vm773_vm5 = vcmp.eq.s32.totalorder %v544_v57, %v4727_v9 }
 0x17c   : > { %4415 = vmatprep.mubr.msk.bf16.mxu0 %vm4600_vm0, %v4599_v1  ;;  %vm772_vm1 = vcmp.eq.s32.totalorder %v541_v40, %v4727_v9 }
 0x17e   : > { %v1395_v49 = vpop.f32.mrb[8].mxu0  ;;  %v550_v6 = vpop.permute.xlu0 %549 }
 0x17f   : > { %v4309_v51 = vpop.f32.mrb[9].mxu0  ;;  %vm775_vm7 = vcmp.eq.s32.totalorder %v550_v6, %v4727_v9 }
 0x180   : > { %v1398_v53 = vpop.f32.mrb[10].mxu0  ;;  %v3628_v51 = vsel %vm772_vm1, 1.0, %v4599_v1 }
 0x181   : > { %v5013_v55 = vpack.c.bf16 %v1398_v53, %v1395_v49  ;;  %v4310_v56 = vpop.f32.mrb[11].mxu0 }
 0x182   : > { %v556_v17 = vpop.permute.xlu0 %555 }
 0x183   : > { %4416 = vmatmul.mubr.msk.bf16.gmra.mrb[116].mxu0 %vm1155_vm3, %v1105_v54  ;;  %v547_v54 = vpop.permute.xlu1 %546  ;;  %vm777_vm9 = vcmp.eq.s32.totalorder %v556_v17, %v4727_v9 }
 0x184   : > { %4419 = vmatprep.mubr.msk.bf16.mxu0 %vm4600_vm0, %v4599_v1  ;;  %vm774_vm4 = vcmp.eq.s32.totalorder %v547_v54, %v4727_v9 }
 0x185   : > { %v3630_v62 = vsel %vm774_vm4, 1.0, %v4599_v1 }
 0x186   : > { %v1403_v59 = vpop.f32.mrb[12].mxu0  ;;  %v562_v27 = vpop.permute.xlu0 %561 }
 0x187   : > { %v4313_v61 = vpop.f32.mrb[13].mxu0  ;;  %vm779_vm11 = vcmp.eq.s32.totalorder %v562_v27, %v4727_v9  ;;  %v1976_v27 = vld [vmem:[%s6165_s2 + $0x100] sm:$0xff] }
 0x188   : > { %v1406_v63 = vpop.f32.mrb[14].mxu0 }
 0x189   : > { %v5022_v3 = vpack.c.bf16 %v1406_v63, %v1403_v59  ;;  %v4314_v4 = vpop.f32.mrb[15].mxu0  ;;  %v1111_v59 = vpack.c.bf16 %v3628_v51, %v3627_v52  ;;  %v3629_v63 = vsel %vm773_vm5, 1.0, %v4599_v1 }
 0x18a   : > { %v553_v4 = vpop.permute.xlu1 %552  ;;  %v1112_v8 = vpack.c.bf16 %v3630_v62, %v3629_v63  ;;  %v568_v38 = vpop.permute.xlu0 %567 }
 0x18b   : > { %4420 = vmatmul.mubr.msk.bf16.gmra.mrb[120].mxu0 %vm1155_vm3, %v1106_v2  ;;  %vm776_vm6 = vcmp.eq.s32.totalorder %v553_v4, %v4727_v9  ;;  %vm781_vm13 = vcmp.eq.s32.totalorder %v568_v38, %v4727_v9 }
 0x18c   : > { %4423 = vmatprep.mubr.msk.bf16.mxu0 %vm4600_vm0, %v4599_v1 }
 0x18e   : > { %v1411_v7 = vpop.f32.mrb[16].mxu0  ;;  %v574_v52 = vpop.permute.xlu0 %573 }
 0x18f   : > { %v4317_v10 = vpop.f32.mrb[17].mxu0  ;;  %vm783_vm15 = vcmp.eq.s32.totalorder %v574_v52, %v4727_v9 }
 0x190   : > { %v1414_v12 = vpop.f32.mrb[18].mxu0 }
 0x191   : > { %v5031_v14 = vpack.c.bf16 %v1414_v12, %v1411_v7  ;;  %v4318_v15 = vpop.f32.mrb[19].mxu0  ;;  %v3631_v12 = vsel %vm775_vm7, 1.0, %v4599_v1 }
 0x192   : > { %v559_v15 = vpop.permute.xlu1 %558  ;;  %v580_v62 = vpop.permute.xlu0 %579 }
 0x193   : > { %4424 = vmatmul.mubr.msk.bf16.gmra.mrb[124].mxu0 %vm1155_vm3, %v1107_v13  ;;  %vm778_vm8 = vcmp.eq.s32.totalorder %v559_v15, %v4727_v9  ;;  %vm785_vm2 = vcmp.eq.s32.totalorder %v580_v62, %v4727_v9 }
 0x194   : > { %4427 = vmatprep.mubr.msk.bf16.mxu0 %vm4600_vm0, %v4599_v1  ;;  %v3641_v6 = vsel %vm785_vm2, 1.0, %v4599_v1 }
 0x196   : > { %v1419_v18 = vpop.f32.mrb[20].mxu0 }
 0x197   : > { %v4321_v20 = vpop.f32.mrb[21].mxu0 }
 0x198   : > { %v1422_v22 = vpop.f32.mrb[22].mxu0 }
 0x199   : > { %v5040_v24 = vpack.c.bf16 %v1422_v22, %v1419_v18  ;;  %v4322_v25 = vpop.f32.mrb[23].mxu0  ;;  %v3633_v22 = vsel %vm777_vm9, 1.0, %v4599_v1 }
 0x19a   : > { %v565_v25 = vpop.permute.xlu1 %564 }
 0x19b   : > { %4428 = vmatmul.mubr.msk.bf16.gmra.mrb[128].mxu0 %vm1155_vm3, %v1108_v23  ;;  %vm780_vm10 = vcmp.eq.s32.totalorder %v565_v25, %v4727_v9 }
 0x19c   : > { %4431 = vmatprep.mubr.msk.bf16.mxu0 %vm4600_vm0, %v4599_v1 }
 0x19e   : > { %v1427_v28 = vpop.f32.mrb[24].mxu0 }
 0x19f   : > { %v4325_v30 = vpop.f32.mrb[25].mxu0 }
 0x1a0   : > { %v1430_v33 = vpop.f32.mrb[26].mxu0 }
 0x1a1   : > { %v5049_v35 = vpack.c.bf16 %v1430_v33, %v1427_v28  ;;  %v4326_v36 = vpop.f32.mrb[27].mxu0  ;;  %v3635_v33 = vsel %vm779_vm11, 1.0, %v4599_v1 }
 0x1a2   : > { %v571_v36 = vpop.permute.xlu1 %570 }
 0x1a3   : > { %4432 = vmatmul.mubr.msk.bf16.gmra.mrb[132].mxu0 %vm1155_vm3, %v1109_v34  ;;  %vm782_vm12 = vcmp.eq.s32.totalorder %v571_v36, %v4727_v9 }
 0x1a4   : > { %4435 = vmatprep.mubr.msk.bf16.mxu0 %vm4600_vm0, %v4599_v1 }
 0x1a6   : > { %v1435_v39 = vpop.f32.mrb[28].mxu0 }
 0x1a7   : > { %v4329_v42 = vpop.f32.mrb[29].mxu0 }
 0x1a8   : > { %v1438_v47 = vpop.f32.mrb[30].mxu0 }
 0x1a9   : > { %v5058_v49 = vpack.c.bf16 %v1438_v47, %v1435_v39  ;;  %v4330_v50 = vpop.f32.mrb[31].mxu0  ;;  %v3637_v47 = vsel %vm781_vm13, 1.0, %v4599_v1 }
 0x1aa   : > { %v577_v50 = vpop.permute.xlu1 %576 }
 0x1ab   : > { %4436 = vmatmul.mubr.msk.bf16.gmra.mrb[136].mxu0 %vm1155_vm3, %v1110_v48  ;;  %vm784_vm14 = vcmp.eq.s32.totalorder %v577_v50, %v4727_v9 }
 0x1ac   : > { %4439 = vmatprep.mubr.msk.bf16.mxu0 %vm4600_vm0, %v4599_v1 }
 0x1ae   : > { %v1443_v53 = vpop.f32.mrb[32].mxu0 }
 0x1af   : > { %v4333_v56 = vpop.f32.mrb[33].mxu0 }
 0x1b0   : > { %v1446_v58 = vpop.f32.mrb[34].mxu0 }
 0x1b1   : > { %v1889_v60 = vpack.c.bf16 %v1446_v58, %v1443_v53  ;;  %v4334_v61 = vpop.f32.mrb[35].mxu0  ;;  %v3639_v58 = vsel %vm783_vm15, 1.0, %v4599_v1 }
 0x1b3   : > { %4440 = vmatmul.mubr.msk.bf16.gmra.mrb[140].mxu0 %vm1155_vm3, %v1111_v59  ;;  %3959 = vmatprep.subr.bf16.mxu0 %v1889_v60 }
 0x1b4   : > { %4551 = vmatprep.subr.bf16.mxu1 %v1889_v60  ;;  %3960 = vmatpush3.bf16.msra.mxu0 %v4981_v31  ;;  %v583_v60 = vpop.permute.xlu1 %582 }
 0x1b5   : > { %4559 = vmatpush3.bf16.msra.mxu1 %v4981_v31  ;;  %4443 = vmatprep.mubr.msk.bf16.mxu0 %vm4600_vm0, %v4599_v1  ;;  %v3632_v31 = vsel %vm776_vm6, 1.0, %v4599_v1  ;;  %vm786_vm1 = vcmp.eq.s32.totalorder %v583_v60, %v4727_v9 }
 0x1b6   : > { %v1451_v2 = vpop.f32.mrb[36].mxu0  ;;  %v1113_v19 = vpack.c.bf16 %v3632_v31, %v3631_v12 }
 0x1b7   : > { %v4337_v5 = vpop.f32.mrb[37].mxu0 }
 0x1b8   : > { %v1454_v7 = vpop.f32.mrb[38].mxu0 }
 0x1b9   : > { %v1890_v10 = vpack.c.bf16 %v1454_v7, %v1451_v2  ;;  %v4338_v11 = vpop.f32.mrb[39].mxu0 }
 0x1ba   : > { %v586_v11 = vpop.permute.xlu0 %585 }
 0x1bb   : > { %4444 = vmatmul.mubr.msk.bf16.gmra.mrb[144].mxu0 %vm1155_vm3, %v1112_v8  ;;  %3961 = vmatprep.subr.bf16.mxu0 %v1890_v10  ;;  %v589_v8 = vpop.permute.xlu1 %588  ;;  %vm787_vm5 = vcmp.eq.s32.totalorder %v586_v11, %v4727_v9  ;;  %v2004_v11 = vld [vmem:[%s6165_s2 + $0x1e0] sm:$0xff] }
 0x1bc   : > { %4552 = vmatprep.subr.bf16.mxu1 %v1890_v10  ;;  %3962 = vmatpush3.bf16.msra.mxu0 %v4990_v41  ;;  %vm788_vm4 = vcmp.eq.s32.totalorder %v589_v8, %v4727_v9 }
 0x1bd   : > { %4560 = vmatpush3.bf16.msra.mxu1 %v4990_v41  ;;  %4447 = vmatprep.mubr.msk.bf16.mxu0 %vm4600_vm0, %v4599_v1  ;;  %v3634_v41 = vsel %vm778_vm8, 1.0, %v4599_v1 }
 0x1be   : > { %v1459_v13 = vpop.f32.mrb[40].mxu0  ;;  %v1114_v29 = vpack.c.bf16 %v3634_v41, %v3633_v22  ;;  %v592_v22 = vpop.permute.xlu0 %591 }
 0x1bf   : > { %v4341_v16 = vpop.f32.mrb[41].mxu0  ;;  %vm789_vm7 = vcmp.eq.s32.totalorder %v592_v22, %v4727_v9 }
 0x1c0   : > { %v1462_v18 = vpop.f32.mrb[42].mxu0  ;;  %v1968_v16 = vld [vmem:[%s6165_s2 + $0xc0] sm:$0xff] }
 0x1c1   : > { %v1891_v20 = vpack.c.bf16 %v1462_v18, %v1459_v13  ;;  %v4342_v21 = vpop.f32.mrb[43].mxu0  ;;  %v3644_v18 = vsel %vm788_vm4, 1.0, %v4599_v1 }
 0x1c2   : > { %v595_v21 = vpop.permute.xlu1 %594 }
 0x1c3   : > { %4448 = vmatmul.mubr.msk.bf16.gmra.mrb[148].mxu0 %vm1155_vm3, %v1113_v19  ;;  %3963 = vmatprep.subr.bf16.mxu0 %v1891_v20  ;;  %v3643_v19 = vsel %vm787_vm5, 1.0, %v4599_v1  ;;  %vm790_vm6 = vcmp.eq.s32.totalorder %v595_v21, %v4727_v9 }
 0x1c4   : > { %4553 = vmatprep.subr.bf16.mxu1 %v1891_v20  ;;  %3964 = vmatpush3.bf16.msra.mxu0 %v5013_v55 }
 0x1c5   : > { %4561 = vmatpush3.bf16.msra.mxu1 %v5013_v55  ;;  %4451 = vmatprep.mubr.msk.bf16.mxu0 %vm4600_vm0, %v4599_v1  ;;  %v3636_v55 = vsel %vm780_vm10, 1.0, %v4599_v1 }
 0x1c6   : > { %v1467_v23 = vpop.f32.mrb[44].mxu0  ;;  %v1115_v40 = vpack.c.bf16 %v3636_v55, %v3635_v33  ;;  %v598_v33 = vpop.permute.xlu0 %597 }
 0x1c7   : > { %v4345_v26 = vpop.f32.mrb[45].mxu0  ;;  %vm791_vm9 = vcmp.eq.s32.totalorder %v598_v33, %v4727_v9 }
 0x1c8   : > { %v1470_v28 = vpop.f32.mrb[46].mxu0 }
 0x1c9   : > { %v1892_v30 = vpack.c.bf16 %v1470_v28, %v1467_v23  ;;  %v4346_v32 = vpop.f32.mrb[47].mxu0  ;;  %v1980_v28 = vld [vmem:[%s6165_s2 + $0x120] sm:$0xff] }
 0x1ca   : > { %v3780_v44 = vcombine.high %v1976_v27, %v1980_v28  ;;  %v601_v32 = vpop.permute.xlu1 %600  ;;  %v604_v52 = vpop.permute.xlu0 %603 }
 0x1cb   : > { %4452 = vmatmul.mubr.msk.bf16.gmra.mrb[152].mxu0 %vm1155_vm3, %v1114_v29  ;;  %3965 = vmatprep.subr.bf16.mxu0 %v1892_v30  ;;  %v3645_v29 = vsel %vm789_vm7, 1.0, %v4599_v1  ;;  %vm792_vm8 = vcmp.eq.s32.totalorder %v601_v32, %v4727_v9  ;;  %vm793_vm11 = vcmp.eq.s32.totalorder %v604_v52, %v4727_v9 }
 0x1cc   : > { %4554 = vmatprep.subr.bf16.mxu1 %v1892_v30  ;;  %3966 = vmatpush3.bf16.msra.mxu0 %v5022_v3  ;;  %v3649_v62 = vsel %vm793_vm11, 1.0, %v4599_v1 }
 0x1cd   : > { %4562 = vmatpush3.bf16.msra.mxu1 %v5022_v3  ;;  %4455 = vmatprep.mubr.msk.bf16.mxu0 %vm4600_vm0, %v4599_v1  ;;  %v3638_v3 = vsel %vm782_vm12, 1.0, %v4599_v1 }
 0x1ce   : > { %v1475_v34 = vpop.f32.mrb[48].mxu0  ;;  %v1116_v54 = vpack.c.bf16 %v3638_v3, %v3637_v47  ;;  %v3648_v3 = vsel %vm792_vm8, 1.0, %v4599_v1  ;;  %v3647_v47 = vsel %vm791_vm9, 1.0, %v4599_v1  ;;  %v607_v50 = vpop.permute.xlu1 %606 }
 0x1cf   : > { %v4349_v37 = vpop.f32.mrb[49].mxu0  ;;  %vm794_vm10 = vcmp.eq.s32.totalorder %v607_v50, %v4727_v9 }
 0x1d0   : > { %v1478_v39 = vpop.f32.mrb[50].mxu0 }
 0x1d1   : > { %v1893_v42 = vpack.c.bf16 %v1478_v39, %v1475_v34  ;;  %v4350_v45 = vpop.f32.mrb[51].mxu0  ;;  %v1984_v39 = vld [vmem:[%s6165_s2 + $0x140] sm:$0xff] }
 0x1d3   : > { %4456 = vmatmul.mubr.msk.bf16.gmra.mrb[156].mxu0 %vm1155_vm3, %v1115_v40  ;;  %3967 = vmatprep.subr.bf16.mxu0 %v1893_v42  ;;  %v1988_v40 = vld [vmem:[%s6165_s2 + $0x160] sm:$0xff] }
 0x1d4   : > { %4555 = vmatprep.subr.bf16.mxu1 %v1893_v42  ;;  %3968 = vmatpush3.bf16.msra.mxu0 %v5031_v14  ;;  %v3779_v42 = vcombine.low %v1976_v27, %v1980_v28  ;;  %v3788_v45 = vcombine.high %v1984_v39, %v1988_v40 }
 0x1d5   : > { %4563 = vmatpush3.bf16.msra.mxu1 %v5031_v14  ;;  %4459 = vmatprep.mubr.msk.bf16.mxu0 %vm4600_vm0, %v4599_v1  ;;  %v3640_v14 = vsel %vm784_vm14, 1.0, %v4599_v1 }
 0x1d6   : > { %v1483_v48 = vpop.f32.mrb[52].mxu0  ;;  %v1117_v2 = vpack.c.bf16 %v3640_v14, %v3639_v58  ;;  %v1992_v14 = vld [vmem:[%s6165_s2 + $0x180] sm:$0xff] }
 0x1d7   : > { %v4353_v51 = vpop.f32.mrb[53].mxu0  ;;  %v1996_v58 = vld [vmem:[%s6165_s2 + $0x1a0] sm:$0xff] }
 0x1d8   : > { %v1486_v53 = vpop.f32.mrb[54].mxu0  ;;  %v3796_v60 = vcombine.high %v1992_v14, %v1996_v58 }
 0x1d9   : > { %v1894_v56 = vpack.c.bf16 %v1486_v53, %v1483_v48  ;;  %v4354_v57 = vpop.f32.mrb[55].mxu0 }
 0x1db   : > { %4460 = vmatmul.mubr.msk.bf16.gmra.mrb[160].mxu0 %vm1155_vm3, %v1116_v54  ;;  %3969 = vmatprep.subr.bf16.mxu0 %v1894_v56  ;;  %v1121_v54 = vpack.c.bf16 %v3648_v3, %v3647_v47 }
 0x1dc   : > { %4556 = vmatprep.subr.bf16.mxu1 %v1894_v56  ;;  %3970 = vmatpush3.bf16.msra.mxu0 %v5040_v24 }
 0x1dd   : > { %4564 = vmatpush3.bf16.msra.mxu1 %v5040_v24  ;;  %4463 = vmatprep.mubr.msk.bf16.mxu0 %vm4600_vm0, %v4599_v1  ;;  %v3642_v24 = vsel %vm786_vm1, 1.0, %v4599_v1 }
 0x1de   : > { %v1491_v59 = vpop.f32.mrb[56].mxu0  ;;  %v1118_v12 = vpack.c.bf16 %v3642_v24, %v3641_v6 }
 0x1df   : > { %v4357_v61 = vpop.f32.mrb[57].mxu0 }
 0x1e0   : > { %v1494_v63 = vpop.f32.mrb[58].mxu0  ;;  %v3650_v61 = vsel %vm794_vm10, 1.0, %v4599_v1 }
 0x1e1   : > { %v1895_v4 = vpack.c.bf16 %v1494_v63, %v1491_v59  ;;  %v4358_v5 = vpop.f32.mrb[59].mxu0  ;;  %v3787_v59 = vcombine.low %v1984_v39, %v1988_v40  ;;  %v1122_v6 = vpack.c.bf16 %v3650_v61, %v3649_v62  ;;  %v2016_v40 = vld [vmem:[%s6165_s2 + $0x240] sm:$0xff] }
 0x1e2   : > { %v610_v5 = vpop.permute.xlu0 %609  ;;  %v2024_v61 = vld [vmem:[%s6165_s2 + $0x280] sm:$0xff] }
 0x1e3   : > { %4464 = vmatmul.mubr.msk.bf16.gmra.mrb[164].mxu0 %vm1155_vm3, %v1117_v2  ;;  %3971 = vmatprep.subr.bf16.mxu0 %v1895_v4  ;;  %v613_v2 = vpop.permute.xlu1 %612  ;;  %vm795_vm13 = vcmp.eq.s32.totalorder %v610_v5, %v4727_v9  ;;  %v2028_v62 = vld [vmem:[%s6165_s2 + $0x2a0] sm:$0xff] }
 0x1e4   : > { %4557 = vmatprep.subr.bf16.mxu1 %v1895_v4  ;;  %3972 = vmatpush3.bf16.msra.mxu0 %v5049_v35  ;;  %vm796_vm12 = vcmp.eq.s32.totalorder %v613_v2, %v4727_v9 }
 0x1e5   : > { %4565 = vmatpush3.bf16.msra.mxu1 %v5049_v35  ;;  %4467 = vmatprep.mubr.msk.bf16.mxu0 %vm4600_vm0, %v4599_v1  ;;  %v1972_v35 = vld [vmem:[%s6165_s2 + $0xe0] sm:$0xff] }
 0x1e6   : > { %v1499_v7 = vpop.f32.mrb[60].mxu0  ;;  %v3772_v17 = vcombine.high %v1968_v16, %v1972_v35  ;;  %v3771_v43 = vcombine.low %v1968_v16, %v1972_v35 }
 0x1e7   : > { %v4361_v10 = vpop.f32.mrb[61].mxu0  ;;  %v619_v35 = vpop.permute.xlu1 %618 }
 0x1e8   : > { %v1502_v31 = vpop.f32.mrb[62].mxu0  ;;  %v2000_v10 = vld [vmem:[%s6165_s2 + $0x1c0] sm:$0xff]  ;;  %vm798_vm14 = vcmp.eq.s32.totalorder %v619_v35, %v4727_v9 }
 0x1e9   : > { %v1896_v13 = vpack.c.bf16 %v1502_v31, %v1499_v7  ;;  %v4362_v15 = vpop.f32.mrb[63].mxu0  ;;  %v3795_v31 = vcombine.low %v1992_v14, %v1996_v58  ;;  %v3803_v27 = vcombine.low %v2000_v10, %v2004_v11 }
 0x1ea   : > { %v3651_v15 = vsel %vm795_vm13, 1.0, %v4599_v1 }
 0x1eb   : > { %4468 = vmatmul.mubr.msk.bf16.gmra.mrb[168].mxu0 %vm1155_vm3, %v1118_v12  ;;  %3973 = vmatprep.subr.bf16.mxu0 %v1896_v13  ;;  %v3804_v12 = vcombine.high %v2000_v10, %v2004_v11 }
 0x1ec   : > { %4558 = vmatprep.subr.bf16.mxu1 %v1896_v13  ;;  %3974 = vmatpush3.bf16.msra.mxu0 %v5058_v49  ;;  %v3652_v13 = vsel %vm796_vm12, 1.0, %v4599_v1 }
 0x1ed   : > { %4566 = vmatpush3.bf16.msra.mxu1 %v5058_v49  ;;  %4471 = vmatprep.mubr.msk.bf16.mxu0 %vm4600_vm0, %v4599_v1  ;;  %v1119_v49 = vpack.c.bf16 %v3644_v18, %v3643_v19  ;;  %v616_v18 = vpop.permute.xlu0 %615  ;;  %v1123_v21 = vpack.c.bf16 %v3652_v13, %v3651_v15 }
 0x1ee   : > { %v5145_v20 = vpop.f32.mrb[64].mxu0  ;;  %vm797_vm15 = vcmp.eq.s32.totalorder %v616_v18, %v4727_v9  ;;  %v2036_v18 = vld [vmem:[%s6165_s2 + $0x2e0] sm:$0xff] }
 0x1ef   : > { %v4365_v41 = vpop.f32.mrb[65].mxu0 }
 0x1f0   : > { %v5147_v23 = vpop.f32.mrb[66].mxu0  ;;  %2798 = vmatmul.mubr.bf16.vlgmr.msra.gmra.mrb[0].mxu1 %v3763_v46  ;;  %v3646_v46 = vsel %vm790_vm6, 1.0, %v4599_v1 }
 0x1f1   : > { %v1897_v25 = vpack.c.bf16 %v5147_v23, %v5145_v20  ;;  %v4366_v26 = vpop.f32.mrb[67].mxu0  ;;  %2805 = vmatprep.mubr.bf16.mxu1 %v3772_v17  ;;  %v1120_v36 = vpack.c.bf16 %v3646_v46, %v3645_v29  ;;  %v625_v29 = vpop.permute.xlu1 %624  ;;  %v2048_v20 = vld [vmem:[%s6165_s2 + $0x340] sm:$0xff] }
 0x1f2   : > { %v2012_v26 = vld [vmem:[%s6165_s2 + $0x220] sm:$0xff]  ;;  %vm800_vm1 = vcmp.eq.s32.totalorder %v625_v29, %v4727_v9 }
 0x1f3   : > { %4472 = vmatmul.mubr.msk.bf16.gmra.mrb[172].mxu0 %vm1155_vm3, %v1119_v49  ;;  %v2008_v49 = vld [vmem:[%s6165_s2 + $0x200] sm:$0xff]  ;;  %v3656_v47 = vsel %vm800_vm1, 1.0, %v4599_v1 }
 0x1f4   : > { %4475 = vmatprep.mubr.msk.bf16.mxu0 %vm4600_vm0, %v4599_v1  ;;  %v3812_v28 = vcombine.high %v2008_v49, %v2012_v26  ;;  %v2052_v23 = vld [vmem:[%s6165_s2 + $0x360] sm:$0xff] }
 0x1f5   : > { %v631_v52 = vpop.permute.xlu1 %630 }
 0x1f6   : > { %v5167_v30 = vpop.f32.mrb[68].mxu0  ;;  %vm802_vm4 = vcmp.eq.s32.totalorder %v631_v52, %v4727_v9 }
 0x1f7   : > { %v4369_v55 = vpop.f32.mrb[69].mxu0  ;;  %v3658_v5 = vsel %vm802_vm4, 1.0, %v4599_v1 }
 0x1f8   : > { %v5169_v34 = vpop.f32.mrb[70].mxu0  ;;  %2806 = vmatmul.mubr.bf16.gmra.mrb[4].mxu1 %v3771_v43  ;;  %v3654_v43 = vsel %vm798_vm14, 1.0, %v4599_v1  ;;  %v622_v55 = vpop.permute.xlu0 %621 }
 0x1f9   : > { %v1898_v37 = vpack.c.bf16 %v5169_v34, %v5167_v30  ;;  %v4370_v38 = vpop.f32.mrb[71].mxu0  ;;  %2813 = vmatprep.mubr.bf16.mxu1 %v3780_v44  ;;  %v3653_v44 = vsel %vm797_vm15, 1.0, %v4599_v1  ;;  %vm799_vm2 = vcmp.eq.s32.totalorder %v622_v55, %v4727_v9  ;;  %v637_v10 = vpop.permute.xlu1 %636  ;;  %v2056_v30 = vld [vmem:[%s6165_s2 + $0x380] sm:$0xff] }
 0x1fa   : > { %v3655_v50 = vsel %vm799_vm2, 1.0, %v4599_v1  ;;  %vm804_vm6 = vcmp.eq.s32.totalorder %v637_v10, %v4727_v9  ;;  %v2060_v34 = vld [vmem:[%s6165_s2 + $0x3a0] sm:$0xff] }
 0x1fb   : > { %4476 = vmatmul.mubr.msk.bf16.gmra.mrb[176].mxu0 %vm1155_vm3, %v1120_v36  ;;  %v1124_v36 = vpack.c.bf16 %v3654_v43, %v3653_v44  ;;  %v1125_v58 = vpack.c.bf16 %v3656_v47, %v3655_v50 }
 0x1fc   : > { %4479 = vmatprep.mubr.msk.bf16.mxu0 %vm4600_vm0, %v4599_v1 }
 0x1fe   : > { %v5186_v48 = vpop.f32.mrb[72].mxu0 }
 0x1ff   : > { %v4373_v51 = vpop.f32.mrb[73].mxu0 }
 0x200   : > { %v5188_v53 = vpop.f32.mrb[74].mxu0  ;;  %2814 = vmatmul.mubr.bf16.gmra.mrb[8].mxu1 %v3779_v42  ;;  %v2020_v42 = vld [vmem:[%s6165_s2 + $0x260] sm:$0xff] }
 0x201   : > { %v1899_v56 = vpack.c.bf16 %v5188_v53, %v5186_v48  ;;  %v4374_v57 = vpop.f32.mrb[75].mxu0  ;;  %2821 = vmatprep.mubr.bf16.mxu1 %v3788_v45  ;;  %v3811_v45 = vcombine.low %v2008_v49, %v2012_v26  ;;  %v3820_v3 = vcombine.high %v2016_v40, %v2020_v42  ;;  %v3819_v2 = vcombine.low %v2016_v40, %v2020_v42  ;;  %v2044_v40 = vld [vmem:[%s6165_s2 + $0x320] sm:$0xff] }
 0x202   : > { %v628_v57 = vpop.permute.xlu0 %627  ;;  %v3660_v49 = vsel %vm804_vm6, 1.0, %v4599_v1  ;;  %v2064_v48 = vld [vmem:[%s6165_s2 + $0x3c0] sm:$0xff] }
 0x203   : > { %4480 = vmatmul.mubr.msk.bf16.gmra.mrb[180].mxu0 %vm1155_vm3, %v1121_v54  ;;  %vm801_vm5 = vcmp.eq.s32.totalorder %v628_v57, %v4727_v9  ;;  %v2068_v53 = vld [vmem:[%s6165_s2 + $0x3e0] sm:$0xff] }
 0x204   : > { %4483 = vmatprep.mubr.msk.bf16.mxu0 %vm4600_vm0, %v4599_v1 }
 0x206   : > { %v5205_v63 = vpop.f32.mrb[76].mxu0 }
 0x207   : > { %v4377_v4 = vpop.f32.mrb[77].mxu0 }
 0x208   : > { %v5207_v24 = vpop.f32.mrb[78].mxu0  ;;  %2822 = vmatmul.mubr.bf16.gmra.mrb[12].mxu1 %v3787_v59  ;;  %v3828_v4 = vcombine.high %v2024_v61, %v2028_v62 }
 0x209   : > { %v1900_v7 = vpack.c.bf16 %v5207_v24, %v5205_v63  ;;  %v4378_v8 = vpop.f32.mrb[79].mxu0  ;;  %2829 = vmatprep.mubr.bf16.mxu1 %v3796_v60  ;;  %v5367_v63 = vld [vmem:[%s6165_s2 + $0x8] sm:$0xff] }
 0x20a   : > { %v5372_v24 = vld [vmem:[%s6165_s2 + $0x28] sm:$0xff] }
 0x20b   : > { %4484 = vmatmul.mubr.msk.bf16.gmra.mrb[184].mxu0 %vm1155_vm3, %v1122_v6  ;;  %v3657_v6 = vsel %vm801_vm5, 1.0, %v4599_v1 }
 0x20c   : > { %4487 = vmatprep.mubr.msk.bf16.mxu0 %vm4600_vm0, %v4599_v1  ;;  %v1126_v13 = vpack.c.bf16 %v3658_v5, %v3657_v6 }
 0x20e   : > { %v5224_v16 = vpop.f32.mrb[80].mxu0 }
 0x20f   : > { %v4381_v17 = vpop.f32.mrb[81].mxu0 }
 0x210   : > { %v5226_v19 = vpop.f32.mrb[82].mxu0  ;;  %2830 = vmatmul.mubr.bf16.gmra.mrb[16].mxu1 %v3795_v31  ;;  %v634_v31 = vpop.permute.xlu0 %633  ;;  %v2032_v17 = vld [vmem:[%s6165_s2 + $0x2c0] sm:$0xff] }
 0x211   : > { %v1901_v41 = vpack.c.bf16 %v5226_v19, %v5224_v16  ;;  %v4382_v22 = vpop.f32.mrb[83].mxu0  ;;  %2837 = vmatprep.mubr.bf16.mxu1 %v3804_v12  ;;  %vm803_vm7 = vcmp.eq.s32.totalorder %v634_v31, %v4727_v9  ;;  %v3835_v42 = vcombine.low %v2032_v17, %v2036_v18 }
 0x212   : > { %v3836_v22 = vcombine.high %v2032_v17, %v2036_v18  ;;  %v3659_v26 = vsel %vm803_vm7, 1.0, %v4599_v1 }
 0x213   : > { %4488 = vmatmul.mubr.msk.bf16.gmra.mrb[188].mxu0 %vm1155_vm3, %v1123_v21  ;;  %v3827_v21 = vcombine.low %v2024_v61, %v2028_v62 }
 0x214   : > { %4491 = vmatprep.mubr.msk.bf16.mxu0 %vm4600_vm0, %v4599_v1  ;;  %v640_v44 = vpop.permute.xlu0 %639 }
 0x215   : > { %vm805_vm9 = vcmp.eq.s32.totalorder %v640_v44, %v4727_v9 }
 0x216   : > { %v5243_v46 = vpop.f32.mrb[84].mxu0  ;;  %v3661_v47 = vsel %vm805_vm9, 1.0, %v4599_v1 }
 0x217   : > { %v4385_v32 = vpop.f32.mrb[85].mxu0 }
 0x218   : > { %v5245_v33 = vpop.f32.mrb[86].mxu0  ;;  %2838 = vmatmul.mubr.bf16.gmra.mrb[20].mxu1 %v3803_v27  ;;  %v1127_v32 = vpack.c.bf16 %v3660_v49, %v3659_v26  ;;  %v646_v57 = vpop.permute.xlu0 %645 }
 0x219   : > { %v1902_v38 = vpack.c.bf16 %v5245_v33, %v5243_v46  ;;  %v4386_v39 = vpop.f32.mrb[87].mxu0  ;;  %2845 = vmatprep.mubr.bf16.mxu1 %v3812_v28  ;;  %v643_v28 = vpop.permute.xlu1 %642  ;;  %vm807_vm11 = vcmp.eq.s32.totalorder %v646_v57, %v4727_v9 }
 0x21a   : > { %v2040_v39 = vld [vmem:[%s6165_s2 + $0x300] sm:$0xff]  ;;  %vm806_vm8 = vcmp.eq.s32.totalorder %v643_v28, %v4727_v9  ;;  %v3663_v5 = vsel %vm807_vm11, 1.0, %v4599_v1 }
 0x21b   : > { %4492 = vmatmul.mubr.msk.bf16.gmra.mrb[192].mxu0 %vm1155_vm3, %v1124_v36 }
 0x21c   : > { %4495 = vmatprep.mubr.msk.bf16.mxu0 %vm4600_vm0, %v4599_v1  ;;  %v652_v31 = vpop.permute.xlu0 %651 }
 0x21d   : > { %v649_v52 = vpop.permute.xlu1 %648  ;;  %vm809_vm13 = vcmp.eq.s32.totalorder %v652_v31, %v4727_v9 }
 0x21e   : > { %v5262_v51 = vpop.f32.mrb[88].mxu0  ;;  %vm808_vm10 = vcmp.eq.s32.totalorder %v649_v52, %v4727_v9  ;;  %v3665_v49 = vsel %vm809_vm13, 1.0, %v4599_v1 }
 0x21f   : > { %v4389_v54 = vpop.f32.mrb[89].mxu0 }
 0x220   : > { %v5264_v14 = vpop.f32.mrb[90].mxu0  ;;  %2846 = vmatmul.mubr.bf16.gmra.mrb[24].mxu1 %v3811_v45  ;;  %v3844_v45 = vcombine.high %v2040_v39, %v2044_v40 }
 0x221   : > { %v1903_v59 = vpack.c.bf16 %v5264_v14, %v5262_v51  ;;  %v4390_v60 = vpop.f32.mrb[91].mxu0  ;;  %2853 = vmatprep.mubr.bf16.mxu1 %v3820_v3  ;;  %v3662_v3 = vsel %vm806_vm8, 1.0, %v4599_v1  ;;  %v655_v10 = vpop.permute.xlu1 %654  ;;  %v1953_v51 = vld [vmem:[%s6165_s2 + $0x48] sm:$0xff] }
 0x222   : > { %v1128_v60 = vpack.c.bf16 %v3662_v3, %v3661_v47  ;;  %vm810_vm12 = vcmp.eq.s32.totalorder %v655_v10, %v4727_v9  ;;  %v1957_v14 = vld [vmem:[%s6165_s2 + $0x68] sm:$0xff] }
 0x223   : > { %4496 = vmatmul.mubr.msk.bf16.gmra.mrb[196].mxu0 %vm1155_vm3, %v1125_v58 }
 0x224   : > { %4499 = vmatprep.mubr.msk.bf16.mxu0 %vm4600_vm0, %v4599_v1 }
 0x226   : > { %v5281_v8 = vpop.f32.mrb[92].mxu0 }
 0x227   : > { %v4393_v11 = vpop.f32.mrb[93].mxu0 }
 0x228   : > { %v5283_v12 = vpop.f32.mrb[94].mxu0  ;;  %2854 = vmatmul.mubr.bf16.gmra.mrb[28].mxu1 %v3819_v2  ;;  %v3852_v2 = vcombine.high %v2048_v20, %v2052_v23 }
 0x229   : > { %v1904_v15 = vpack.c.bf16 %v5283_v12, %v5281_v8  ;;  %v4394_v35 = vpop.f32.mrb[95].mxu0  ;;  %2861 = vmatprep.mubr.bf16.mxu1 %v3828_v4  ;;  %v3664_v4 = vsel %vm808_vm10, 1.0, %v4599_v1 }
 0x22a   : > { %v1129_v35 = vpack.c.bf16 %v3664_v4, %v3663_v5 }
 0x22b   : > { %4500 = vmatmul.mubr.msk.bf16.gmra.mrb[200].mxu0 %vm1155_vm3, %v1126_v13 }
 0x22c   : > { %4503 = vmatprep.mubr.msk.bf16.mxu0 %vm4600_vm0, %v4599_v1 }
 0x22e   : > { %v1571_v27 = vpop.f32.mrb[96].mxu0 }
 0x22f   : > { %v4397_v43 = vpop.f32.mrb[97].mxu0 }
 0x230   : > { %v1574_v29 = vpop.f32.mrb[98].mxu0  ;;  %2862 = vmatmul.mubr.bf16.gmra.mrb[32].mxu1 %v3827_v21  ;;  %v3860_v21 = vcombine.high %v2056_v30, %v2060_v34  ;;  %v658_v43 = vpop.permute.xlu0 %657 }
 0x231   : > { %v1905_v55 = vpack.c.bf16 %v1574_v29, %v1571_v27  ;;  %v4398_v36 = vpop.f32.mrb[99].mxu0  ;;  %2869 = vmatprep.mubr.bf16.mxu1 %v3836_v22  ;;  %v3666_v22 = vsel %vm810_vm12, 1.0, %v4599_v1  ;;  %v661_v27 = vpop.permute.xlu1 %660  ;;  %vm811_vm15 = vcmp.eq.s32.totalorder %v658_v43, %v4727_v9 }
 0x232   : > { %v1130_v29 = vpack.c.bf16 %v3666_v22, %v3665_v49  ;;  %vm812_vm14 = vcmp.eq.s32.totalorder %v661_v27, %v4727_v9  ;;  %v3868_v36 = vcombine.high %v2064_v48, %v2068_v53  ;;  %v3758_v27 = vcombine.high %v1953_v51, %v1957_v14 }
 0x233   : > { %4504 = vmatmul.mubr.msk.bf16.gmra.mrb[204].mxu0 %vm1155_vm3, %v1127_v32  ;;  %4071 = vmatprep.subr.bf16.mxu1 %v1905_v55 }
 0x234   : > { %4072 = vmatpush3.bf16.msra.mxu1 %v1897_v25  ;;  %4507 = vmatprep.mubr.msk.bf16.mxu0 %vm4600_vm0, %v4599_v1  ;;  %v3843_v25 = vcombine.low %v2040_v39, %v2044_v40  ;;  %v3668_v39 = vsel %vm812_vm14, 1.0, %v4599_v1  ;;  %v3667_v40 = vsel %vm811_vm15, 1.0, %v4599_v1  ;;  %v664_v47 = vpop.permute.xlu0 %663  ;;  %vm3485_vm15 = vcmp.lt.s32.totalorder %v4727_v9, 121 }
 0x235   : > { %v1131_v52 = vpack.c.bf16 %v3668_v39, %v3667_v40  ;;  %vm813_vm2 = vcmp.eq.s32.totalorder %v664_v47, %v4727_v9 }
 0x236   : > { %v1579_v50 = vpop.f32.mrb[100].mxu0 }
 0x237   : > { %v4401_v54 = vpop.f32.mrb[101].mxu0 }
 0x238   : > { %v1582_v58 = vpop.f32.mrb[102].mxu0  ;;  %2870 = vmatmul.mubr.bf16.gmra.mrb[36].mxu1 %v3835_v42 }
 0x239   : > { %v1906_v61 = vpack.c.bf16 %v1582_v58, %v1579_v50  ;;  %v4402_v62 = vpop.f32.mrb[103].mxu0  ;;  %2877 = vmatprep.mubr.bf16.mxu1 %v3844_v45  ;;  %v667_v45 = vpop.permute.xlu1 %666  ;;  %v3750_v58 = vcombine.high %v5367_v63, %v5372_v24 }
 0x23a   : > { %vm814_vm1 = vcmp.eq.s32.totalorder %v667_v45, %v4727_v9 }
 0x23b   : > { %4508 = vmatmul.mubr.msk.bf16.gmra.mrb[208].mxu0 %vm1155_vm3, %v1128_v60  ;;  %4073 = vmatprep.subr.bf16.mxu1 %v1906_v61  ;;  %v3670_v60 = vsel %vm814_vm1, 1.0, %v4599_v1  ;;  %v3669_v61 = vsel %vm813_vm2, 1.0, %v4599_v1 }
 0x23c   : > { %4074 = vmatpush3.bf16.msra.mxu1 %v1898_v37  ;;  %4511 = vmatprep.mubr.msk.bf16.mxu0 %vm4600_vm0, %v4599_v1  ;;  %v3851_v37 = vcombine.low %v2048_v20, %v2052_v23  ;;  %v1132_v4 = vpack.c.bf16 %v3670_v60, %v3669_v61 }
 0x23d   : > { %v673_v20 = vpop.permute.xlu1 %672 }
 0x23e   : > { %v1587_v6 = vpop.f32.mrb[104].mxu0  ;;  %vm816_vm4 = vcmp.eq.s32.totalorder %v673_v20, %v4727_v9 }
 0x23f   : > { %v4405_v11 = vpop.f32.mrb[105].mxu0 }
 0x240   : > { %v1590_v13 = vpop.f32.mrb[106].mxu0  ;;  %2878 = vmatmul.mubr.bf16.gmra.mrb[40].mxu1 %v3843_v25  ;;  %v670_v25 = vpop.permute.xlu0 %669 }
 0x241   : > { %v1907_v17 = vpack.c.bf16 %v1590_v13, %v1587_v6  ;;  %v4406_v18 = vpop.f32.mrb[107].mxu0  ;;  %2885 = vmatprep.mubr.bf16.mxu1 %v3852_v2  ;;  %vm815_vm5 = vcmp.eq.s32.totalorder %v670_v25, %v4727_v9  ;;  %v679_v10 = vpop.permute.xlu1 %678 }
 0x242   : > { %v3671_v5 = vsel %vm815_vm5, 1.0, %v4599_v1  ;;  %vm818_vm6 = vcmp.eq.s32.totalorder %v679_v10, %v4727_v9 }
 0x243   : > { %4512 = vmatmul.mubr.msk.bf16.gmra.mrb[212].mxu0 %vm1155_vm3, %v1129_v35  ;;  %4075 = vmatprep.subr.bf16.mxu1 %v1907_v17  ;;  %v3674_v46 = vsel %vm818_vm6, 1.0, %v4599_v1 }
 0x244   : > { %4076 = vmatpush3.bf16.msra.mxu1 %v1899_v56  ;;  %4515 = vmatprep.mubr.msk.bf16.mxu0 %vm4600_vm0, %v4599_v1  ;;  %v3859_v56 = vcombine.low %v2056_v30, %v2060_v34  ;;  %v676_v31 = vpop.permute.xlu0 %675 }
 0x245   : > { %vm817_vm7 = vcmp.eq.s32.totalorder %v676_v31, %v4727_v9  ;;  %v685_v30 = vpop.permute.xlu1 %684  ;;  %v1948_v31 = vld [vmem:[%s6165_s2 + $0x20] sm:$0xff] }
 0x246   : > { %v1595_v26 = vpop.f32.mrb[108].mxu0  ;;  %v3673_v33 = vsel %vm817_vm7, 1.0, %v4599_v1  ;;  %vm820_vm8 = vcmp.eq.s32.totalorder %v685_v30, %v4727_v9 }
 0x247   : > { %v4409_v28 = vpop.f32.mrb[109].mxu0  ;;  %v1134_v22 = vpack.c.bf16 %v3674_v46, %v3673_v33 }
 0x248   : > { %v1598_v44 = vpop.f32.mrb[110].mxu0  ;;  %2886 = vmatmul.mubr.bf16.gmra.mrb[44].mxu1 %v3851_v37  ;;  %v682_v37 = vpop.permute.xlu0 %681  ;;  %v3676_v28 = vsel %vm820_vm8, 1.0, %v4599_v1 }
 0x249   : > { %v1908_v32 = vpack.c.bf16 %v1598_v44, %v1595_v26  ;;  %v4410_v55 = vpop.f32.mrb[111].mxu0  ;;  %2893 = vmatprep.mubr.bf16.mxu1 %v3860_v21  ;;  %vm819_vm9 = vcmp.eq.s32.totalorder %v682_v37, %v4727_v9 }
 0x24a   : > { %v3675_v43 = vsel %vm819_vm9, 1.0, %v4599_v1 }
 0x24b   : > { %4516 = vmatmul.mubr.msk.bf16.gmra.mrb[216].mxu0 %vm1155_vm3, %v1130_v29  ;;  %4077 = vmatprep.subr.bf16.mxu1 %v1908_v32  ;;  %v691_v29 = vpop.permute.xlu1 %690 }
 0x24c   : > { %4078 = vmatpush3.bf16.msra.mxu1 %v1900_v7  ;;  %4519 = vmatprep.mubr.msk.bf16.mxu0 %vm4600_vm0, %v4599_v1  ;;  %v3867_v7 = vcombine.low %v2064_v48, %v2068_v53  ;;  %v688_v55 = vpop.permute.xlu0 %687  ;;  %v1135_v53 = vpack.c.bf16 %v3676_v28, %v3675_v43  ;;  %vm822_vm10 = vcmp.eq.s32.totalorder %v691_v29, %v4727_v9  ;;  %v1993_v29 = vld [vmem:[%s6165_s2 + $0x188] sm:$0xff] }
 0x24d   : > { %vm821_vm11 = vcmp.eq.s32.totalorder %v688_v55, %v4727_v9  ;;  %v3678_v40 = vsel %vm822_vm10, 1.0, %v4599_v1 }
 0x24e   : > { %v1603_v42 = vpop.f32.mrb[112].mxu0 }
 0x24f   : > { %v4413_v3 = vpop.f32.mrb[113].mxu0 }
 0x250   : > { %v1606_v50 = vpop.f32.mrb[114].mxu0  ;;  %2894 = vmatmul.mubr.bf16.gmra.mrb[48].mxu1 %v3859_v56  ;;  %v1965_v56 = vld [vmem:[%s6165_s2 + $0xa8] sm:$0xff]  ;;  %v697_v3 = vpop.permute.xlu1 %696 }
 0x251   : > { %v1909_v54 = vpack.c.bf16 %v1606_v50, %v1603_v42  ;;  %v4414_v57 = vpop.f32.mrb[115].mxu0  ;;  %2901 = vmatprep.mubr.bf16.mxu1 %v3868_v36  ;;  %v3757_v36 = vcombine.low %v1953_v51, %v1957_v14  ;;  %v3677_v42 = vsel %vm821_vm11, 1.0, %v4599_v1  ;;  %v694_v50 = vpop.permute.xlu0 %693  ;;  %vm824_vm12 = vcmp.eq.s32.totalorder %v697_v3, %v4727_v9  ;;  %v2005_v3 = vld [vmem:[%s6165_s2 + $0x1e8] sm:$0xff] }
 0x252   : > { %vm823_vm13 = vcmp.eq.s32.totalorder %v694_v50, %v4727_v9  ;;  %v3680_v61 = vsel %vm824_vm12, 1.0, %v4599_v1 }
 0x253   : > { %4520 = vmatmul.mubr.msk.bf16.gmra.mrb[220].mxu0 %vm1155_vm3, %v1131_v52  ;;  %4079 = vmatprep.subr.bf16.mxu1 %v1909_v54  ;;  %v1136_v54 = vpack.c.bf16 %v3678_v40, %v3677_v42  ;;  %v2001_v42 = vld [vmem:[%s6165_s2 + $0x1c8] sm:$0xff] }
 0x254   : > { %4080 = vmatpush3.bf16.msra.mxu1 %v1901_v41  ;;  %4523 = vmatprep.mubr.msk.bf16.mxu0 %vm4600_vm0, %v4599_v1  ;;  %v3672_v41 = vsel %vm816_vm4, 1.0, %v4599_v1  ;;  %v3806_v50 = vcombine.high %v2001_v42, %v2005_v3 }
 0x255   : > { %v1133_v35 = vpack.c.bf16 %v3672_v41, %v3671_v5  ;;  %v700_v25 = vpop.permute.xlu0 %699  ;;  %v1977_v41 = vld [vmem:[%s6165_s2 + $0x108] sm:$0xff] }
 0x256   : > { %v1611_v62 = vpop.f32.mrb[116].mxu0  ;;  %v1981_v5 = vld [vmem:[%s6165_s2 + $0x128] sm:$0xff]  ;;  %vm825_vm14 = vcmp.eq.s32.totalorder %v700_v25, %v4727_v9 }
 0x257   : > { %v4417_v23 = vpop.f32.mrb[117].mxu0  ;;  %v3782_v10 = vcombine.high %v1977_v41, %v1981_v5  ;;  %v3781_v37 = vcombine.low %v1977_v41, %v1981_v5 }
 0x258   : > { %v1614_v2 = vpop.f32.mrb[118].mxu0  ;;  %2902 = vmatmul.mubr.bf16.gmra.mrb[52].mxu1 %v3867_v7  ;;  %v1973_v7 = vld [vmem:[%s6165_s2 + $0xe8] sm:$0xff] }
 0x259   : > { %v1910_v16 = vpack.c.bf16 %v1614_v2, %v1611_v62  ;;  %v4418_v19 = vpop.f32.mrb[119].mxu0  ;;  %2942 = vmatprep.mubr.bf16.mxu1 %v3750_v58  ;;  %v3679_v62 = vsel %vm823_vm13, 1.0, %v4599_v1 }
 0x25b   : > { %4524 = vmatmul.mubr.msk.bf16.gmra.mrb[224].mxu0 %vm1155_vm3, %v1132_v4  ;;  %4081 = vmatprep.subr.bf16.mxu1 %v1910_v16  ;;  %v1137_v4 = vpack.c.bf16 %v3680_v61, %v3679_v62  ;;  %v2013_v61 = vld [vmem:[%s6165_s2 + $0x228] sm:$0xff]  ;;  %v3805_v62 = vcombine.low %v2001_v42, %v2005_v3 }
 0x25c   : > { %4082 = vmatpush3.bf16.msra.mxu1 %v1902_v38  ;;  %4527 = vmatprep.mubr.msk.bf16.mxu0 %vm4600_vm0, %v4599_v1 }
 0x25e   : > { %v1619_v6 = vpop.f32.mrb[120].mxu0 }
 0x25f   : > { %v4421_v11 = vpop.f32.mrb[121].mxu0 }
 0x260   : > { %v1622_v13 = vpop.f32.mrb[122].mxu0  ;;  %v1944_v11 = vld [vmem:[%s6165_s2] sm:$0xff] }
 0x261   : > { %v1911_v17 = vpack.c.bf16 %v1622_v13, %v1619_v6  ;;  %v4422_v18 = vpop.f32.mrb[123].mxu0  ;;  %v3681_v13 = vsel %vm825_vm14, 1.0, %v4599_v1  ;;  %v3748_v46 = vcombine.high %v1944_v11, %v1948_v31  ;;  %v3747_v14 = vcombine.low %v1944_v11, %v1948_v31 }
 0x262   : > { %v1138_v33 = vpack.c.bf16 %v3681_v13, %v3681_v13 }
 0x263   : > { %4528 = vmatmul.mubr.msk.bf16.gmra.mrb[228].mxu0 %vm1155_vm3, %v1133_v35  ;;  %4083 = vmatprep.subr.bf16.mxu1 %v1911_v17 }
 0x264   : > { %4084 = vmatpush3.bf16.msra.mxu1 %v1903_v59  ;;  %4531 = vmatprep.mubr.msk.bf16.mxu0 %vm4600_vm0, %v4599_v1  ;;  %v3749_v59 = vcombine.low %v5367_v63, %v5372_v24  ;;  %v1969_v24 = vld [vmem:[%s6165_s2 + $0xc8] sm:$0xff] }
 0x265   : > { %v3774_v60 = vcombine.high %v1969_v24, %v1973_v7  ;;  %v3773_v6 = vcombine.low %v1969_v24, %v1973_v7 }
 0x266   : > { %v1627_v38 = vpop.f32.mrb[124].mxu0 }
 0x267   : > { %v4425_v34 = vpop.f32.mrb[125].mxu0 }
 0x268   : > { %v1630_v21 = vpop.f32.mrb[126].mxu0  ;;  %v1985_v34 = vld [vmem:[%s6165_s2 + $0x148] sm:$0xff] }
 0x269   : > { %v1912_v49 = vpack.c.bf16 %v1630_v21, %v1627_v38  ;;  %v4426_v26 = vpop.f32.mrb[127].mxu0 }
 0x26b   : > { %4532 = vmatmul.mubr.msk.bf16.gmra.mrb[232].mxu0 %vm1155_vm3, %v1134_v22  ;;  %4085 = vmatprep.subr.bf16.mxu1 %v1912_v49  ;;  %v1952_v22 = vld [vmem:[%s6165_s2 + $0x40] sm:$0xff] }
 0x26c   : > { %4086 = vmatpush3.bf16.msra.mxu1 %v1904_v15  ;;  %4535 = vmatprep.mubr.msk.bf16.mxu0 %vm4600_vm0, %v4599_v1  ;;  %v1961_v15 = vld [vmem:[%s6165_s2 + $0x88] sm:$0xff]  ;;  %v1956_v49 = vld [vmem:[%s6165_s2 + $0x60] sm:$0xff] }
 0x26d   : > { %v3766_v39 = vcombine.high %v1961_v15, %v1965_v56  ;;  %v3765_v58 = vcombine.low %v1961_v15, %v1965_v56  ;;  %v3755_v56 = vcombine.low %v1952_v22, %v1956_v49 }
 0x26e   : > { %v5424_v44 = vpop.f32.mrb[128].mxu0 }
 0x26f   : > { %v4429_v32 = vpop.f32.mrb[129].mxu0  ;;  %2943 = vmatmul.mubr.bf16.vlgmr.msra.gmra.mrb[56].mxu1 %v3749_v59 }
 0x270   : > { %v5426_v48 = vpop.f32.mrb[130].mxu0  ;;  %2950 = vmatprep.mubr.bf16.mxu1 %v3758_v27  ;;  %v3756_v27 = vcombine.high %v1952_v22, %v1956_v49  ;;  %v1997_v32 = vld [vmem:[%s6165_s2 + $0x1a8] sm:$0xff] }
 0x271   : > { %v1913_v8 = vpack.c.bf16 %v5426_v48, %v5424_v44  ;;  %v4430_v12 = vpop.f32.mrb[131].mxu0 }
 0x273   : > { %4536 = vmatmul.mubr.msk.bf16.gmra.mrb[236].mxu0 %vm1155_vm3, %v1135_v53  ;;  %v3798_v53 = vcombine.high %v1993_v29, %v1997_v32 }
 0x274   : > { %4539 = vmatprep.mubr.msk.bf16.mxu0 %vm4600_vm0, %v4599_v1 }
 0x276   : > { %v5443_v45 = vpop.f32.mrb[132].mxu0 }
 0x277   : > { %v4433_v47 = vpop.f32.mrb[133].mxu0  ;;  %2951 = vmatmul.mubr.bf16.gmra.mrb[60].mxu1 %v3757_v36 }
 0x278   : > { %v5445_v52 = vpop.f32.mrb[134].mxu0  ;;  %2958 = vmatprep.mubr.bf16.mxu1 %v3766_v39  ;;  %v3797_v47 = vcombine.low %v1993_v29, %v1997_v32  ;;  %v2037_v29 = vld [vmem:[%s6165_s2 + $0x2e8] sm:$0xff] }
 0x279   : > { %v1914_v57 = vpack.c.bf16 %v5445_v52, %v5443_v45  ;;  %v4434_v63 = vpop.f32.mrb[135].mxu0 }
 0x27b   : > { %4540 = vmatmul.mubr.msk.bf16.gmra.mrb[240].mxu0 %vm1155_vm3, %v1136_v54 }
 0x27c   : > { %4543 = vmatprep.mubr.msk.bf16.mxu0 %vm4600_vm0, %v4599_v1 }
 0x27e   : > { %v5462_v20 = vpop.f32.mrb[136].mxu0 }
 0x27f   : > { %v4437_v23 = vpop.f32.mrb[137].mxu0  ;;  %2959 = vmatmul.mubr.bf16.gmra.mrb[64].mxu1 %v3765_v58 }
 0x280   : > { %v5464_v2 = vpop.f32.mrb[138].mxu0  ;;  %2966 = vmatprep.mubr.bf16.mxu1 %v3774_v60  ;;  %v2009_v60 = vld [vmem:[%s6165_s2 + $0x208] sm:$0xff] }
 0x281   : > { %v1915_v16 = vpack.c.bf16 %v5464_v2, %v5462_v20  ;;  %v4438_v19 = vpop.f32.mrb[139].mxu0  ;;  %v3814_v23 = vcombine.high %v2009_v60, %v2013_v61  ;;  %v3813_v11 = vcombine.low %v2009_v60, %v2013_v61  ;;  %v2049_v20 = vld [vmem:[%s6165_s2 + $0x348] sm:$0xff] }
 0x282   : > { %v2053_v2 = vld [vmem:[%s6165_s2 + $0x368] sm:$0xff] }
 0x283   : > { %4544 = vmatmul.mubr.msk.bf16.gmra.mrb[244].mxu0 %vm1155_vm3, %v1137_v4 }
 0x284   : > { %4547 = vmatprep.mubr.msk.bf16.mxu0 %vm4600_vm0, %v4599_v1  ;;  %v1989_v1 = vld [vmem:[%s6165_s2 + $0x168] sm:$0xff]  ;;  %vm2745_vm0 = vcmask 1043456  }
 0x285   : > { %v3790_v21 = vcombine.high %v1985_v34, %v1989_v1  ;;  %v3789_v55 = vcombine.low %v1985_v34, %v1989_v1  ;;  %v2025_v34 = vld [vmem:[%s6165_s2 + $0x288] sm:$0xff] }
 0x286   : > { %v5485_v35 = vpop.f32.mrb[140].mxu0  ;;  %v2029_v1 = vld [vmem:[%s6165_s2 + $0x2a8] sm:$0xff] }
 0x287   : > { %v4441_v17 = vpop.f32.mrb[141].mxu0  ;;  %2967 = vmatmul.mubr.bf16.gmra.mrb[68].mxu1 %v3773_v6  ;;  %v2017_v6 = vld [vmem:[%s6165_s2 + $0x248] sm:$0xff]  ;;  %v3829_v32 = vcombine.low %v2025_v34, %v2029_v1 }
 0x288   : > { %v5487_v18 = vpop.f32.mrb[142].mxu0  ;;  %2974 = vmatprep.mubr.bf16.mxu1 %v3782_v10  ;;  %v2021_v10 = vld [vmem:[%s6165_s2 + $0x268] sm:$0xff] }
 0x289   : > { %v1916_v38 = vpack.c.bf16 %v5487_v18, %v5485_v35  ;;  %v4442_v30 = vpop.f32.mrb[143].mxu0  ;;  %v3822_v31 = vcombine.high %v2017_v6, %v2021_v10  ;;  %v2057_v35 = vld [vmem:[%s6165_s2 + $0x388] sm:$0xff] }
 0x28a   : > { %v2061_v18 = vld [vmem:[%s6165_s2 + $0x3a8] sm:$0xff] }
 0x28b   : > { %4548 = vmatmul.mubr.msk.bf16.gmra.mrb[248].mxu0 %vm1155_vm3, %v1138_v33  ;;  %vm2696_vm3 = vcmask 850944  }
 0x28c   : > { %2781 = vmatprep.mubr.bf16.mxu0 %v3748_v46 }
 0x28e   : > { %v5504_v26 = vpop.f32.mrb[144].mxu0 }
 0x28f   : > { %v4445_v51 = vpop.f32.mrb[145].mxu0  ;;  %2975 = vmatmul.mubr.bf16.gmra.mrb[72].mxu1 %v3781_v37  ;;  %v3821_v37 = vcombine.low %v2017_v6, %v2021_v10 }
 0x290   : > { %v5506_v59 = vpop.f32.mrb[146].mxu0  ;;  %2982 = vmatprep.mubr.bf16.mxu1 %v3790_v21  ;;  %v3830_v21 = vcombine.high %v2025_v34, %v2029_v1 }
 0x291   : > { %v1917_v28 = vpack.c.bf16 %v5506_v59, %v5504_v26  ;;  %v4446_v43 = vpop.f32.mrb[147].mxu0  ;;  %v2065_v26 = vld [vmem:[%s6165_s2 + $0x3c8] sm:$0xff] }
 0x292   : > { %v2033_v43 = vld [vmem:[%s6165_s2 + $0x2c8] sm:$0xff] }
 0x293   : > { %2782 = vmatmul.mubr.bf16.vlgmr.msra.gmra.mrb[252].mxu0 %v3747_v14  ;;  %v3838_v44 = vcombine.high %v2033_v43, %v2037_v29  ;;  %v3837_v42 = vcombine.low %v2033_v43, %v2037_v29  ;;  %v2069_v59 = vld [vmem:[%s6165_s2 + $0x3e8] sm:$0xff] }
 0x294   : > { %2789 = vmatprep.mubr.bf16.mxu0 %v3756_v27 }
 0x296   : > { %v5516_v12 = vpop.f32.mrb[148].mxu0 }
 0x297   : > { %v4449_v15 = vpop.f32.mrb[149].mxu0  ;;  %2983 = vmatmul.mubr.bf16.gmra.mrb[76].mxu1 %v3789_v55 }
 0x298   : > { %v5518_v36 = vpop.f32.mrb[150].mxu0  ;;  %2990 = vmatprep.mubr.bf16.mxu1 %v3798_v53 }
 0x299   : > { %v1918_v39 = vpack.c.bf16 %v5518_v36, %v5516_v12  ;;  %v4450_v40 = vpop.f32.mrb[151].mxu0  ;;  %v1946_v12 = vld [vmem:[%s6165_s2 + $0x10] sm:$0xff] }
 0x29a   : > { %v2045_v40 = vld [vmem:[%s6165_s2 + $0x328] sm:$0xff]  ;;  %v1950_v36 = vld [vmem:[%s6165_s2 + $0x30] sm:$0xff] }
 0x29b   : > { %2790 = vmatmul.mubr.bf16.gmra.mrb[0].mxu0 %v3755_v56  ;;  %v2041_v56 = vld [vmem:[%s6165_s2 + $0x308] sm:$0xff] }
 0x29c   : > { %v3846_v52 = vcombine.high %v2041_v56, %v2045_v40 }
 0x29e   : > { %v5528_v54 = vpop.f32.mrb[152].mxu0 }
 0x29f   : > { %v4453_v63 = vpop.f32.mrb[153].mxu0  ;;  %2991 = vmatmul.mubr.bf16.gmra.mrb[80].mxu1 %v3797_v47 }
 0x2a0   : > { %v5530_v24 = vpop.f32.mrb[154].mxu0  ;;  %2998 = vmatprep.mubr.bf16.mxu1 %v3806_v50 }
 0x2a1   : > { %v1919_v7 = vpack.c.bf16 %v5530_v24, %v5528_v54  ;;  %v4454_v58 = vpop.f32.mrb[155].mxu0  ;;  %v1954_v54 = vld [vmem:[%s6165_s2 + $0x50] sm:$0xff] }
 0x2a2   : > { %v1958_v24 = vld [vmem:[%s6165_s2 + $0x70] sm:$0xff] }
 0x2a6   : > { %v5540_v25 = vpop.f32.mrb[156].mxu0 }
 0x2a7   : > { %v4457_v4 = vpop.f32.mrb[157].mxu0  ;;  %2999 = vmatmul.mubr.bf16.gmra.mrb[84].mxu1 %v3805_v62 }
 0x2a8   : > { %v5542_v19 = vpop.f32.mrb[158].mxu0  ;;  %3006 = vmatprep.mubr.bf16.mxu1 %v3814_v23 }
 0x2a9   : > { %v1920_v41 = vpack.c.bf16 %v5542_v19, %v5540_v25  ;;  %v4458_v5 = vpop.f32.mrb[159].mxu0  ;;  %v1962_v25 = vld [vmem:[%s6165_s2 + $0x90] sm:$0xff] }
 0x2aa   : > { %v3854_v5 = vcombine.high %v2049_v20, %v2053_v2  ;;  %v1966_v19 = vld [vmem:[%s6165_s2 + $0xb0] sm:$0xff] }
 0x2ae   : > { %v1699_v13 = vpop.f32.mrb[160].mxu0 }
 0x2af   : > { %v4461_v17 = vpop.f32.mrb[161].mxu0  ;;  %3007 = vmatmul.mubr.bf16.gmra.mrb[88].mxu1 %v3813_v11 }
 0x2b0   : > { %v1702_v46 = vpop.f32.mrb[162].mxu0  ;;  %3014 = vmatprep.mubr.bf16.mxu1 %v3822_v31 }
 0x2b1   : > { %v1921_v33 = vpack.c.bf16 %v1702_v46, %v1699_v13  ;;  %v4462_v30 = vpop.f32.mrb[163].mxu0 }
 0x2b3   : > { %4183 = vmatprep.subr.bf16.mxu1 %v1921_v33 }
 0x2b4   : > { %4184 = vmatpush3.bf16.msra.mxu1 %v1913_v8 }
 0x2b6   : > { %v1707_v22 = vpop.f32.mrb[164].mxu0 }
 0x2b7   : > { %v4465_v49 = vpop.f32.mrb[165].mxu0  ;;  %3015 = vmatmul.mubr.bf16.gmra.mrb[92].mxu1 %v3821_v37  ;;  %v3862_v37 = vcombine.high %v2057_v35, %v2061_v18 }
 0x2b8   : > { %v1710_v51 = vpop.f32.mrb[166].mxu0  ;;  %3022 = vmatprep.mubr.bf16.mxu1 %v3830_v21 }
 0x2b9   : > { %v1922_v14 = vpack.c.bf16 %v1710_v51, %v1707_v22  ;;  %v4466_v27 = vpop.f32.mrb[167].mxu0 }
 0x2bb   : > { %4185 = vmatprep.subr.bf16.mxu1 %v1922_v14 }
 0x2bc   : > { %4186 = vmatpush3.bf16.msra.mxu1 %v1914_v57 }
 0x2be   : > { %v1715_v48 = vpop.f32.mrb[168].mxu0 }
 0x2bf   : > { %v4469_v8 = vpop.f32.mrb[169].mxu0  ;;  %3023 = vmatmul.mubr.bf16.gmra.mrb[96].mxu1 %v3829_v32 }
 0x2c0   : > { %v1718_v55 = vpop.f32.mrb[170].mxu0  ;;  %3030 = vmatprep.mubr.bf16.mxu1 %v3838_v44  ;;  %v3870_v8 = vcombine.high %v2065_v26, %v2069_v59 }
 0x2c1   : > { %v1923_v53 = vpack.c.bf16 %v1718_v55, %v1715_v48  ;;  %v4470_v15 = vpop.f32.mrb[171].mxu0 }
 0x2c3   : > { %4187 = vmatprep.subr.bf16.mxu1 %v1923_v53  ;;  %v3987_v45 = vpop.f32.mrb[0].mxu1 }
 0x2c4   : > { %4188 = vmatpush3.bf16.msra.mxu1 %v1915_v16  ;;  %v3988_v57 = vpop.f32.mrb[1].mxu1  ;;  %v3845_v16 = vcombine.low %v2041_v56, %v2045_v40 }
 0x2c5   : > { %v5579_v3 = vadd.f32 %v3988_v57, %v3987_v45  ;;  %v3990_v47 = vpop.f32.mrb[2].mxu1 }
 0x2c6   : > { %v1723_v50 = vpop.f32.mrb[172].mxu0  ;;  %v3991_v63 = vpop.f32.mrb[3].mxu1 }
 0x2c7   : > { %v4473_v58 = vpop.f32.mrb[173].mxu0  ;;  %3031 = vmatmul.mubr.bf16.gmra.mrb[100].mxu1 %v3837_v42  ;;  %v5581_v60 = vadd.f32 %v3991_v63, %v3990_v47  ;;  %v3752_v63 = vcombine.high %v1946_v12, %v1950_v36 }
 0x2c8   : > { %v1726_v61 = vpop.f32.mrb[174].mxu0  ;;  %3038 = vmatprep.mubr.bf16.mxu1 %v3846_v52 }
 0x2c9   : > { %v1924_v62 = vpack.c.bf16 %v1726_v61, %v1723_v50  ;;  %v4474_v23 = vpop.f32.mrb[175].mxu0 }
 0x2cb   : > { %4189 = vmatprep.subr.bf16.mxu1 %v1924_v62  ;;  %v3993_v4 = vpop.f32.mrb[4].mxu1 }
 0x2cc   : > { %4190 = vmatpush3.bf16.msra.mxu1 %v1916_v38  ;;  %v3994_v6 = vpop.f32.mrb[5].mxu1  ;;  %v3853_v38 = vcombine.low %v2049_v20, %v2053_v2 }
 0x2cd   : > { %v5592_v10 = vadd.f32 %v3994_v6, %v3993_v4  ;;  %v3996_v11 = vpop.f32.mrb[6].mxu1 }
 0x2ce   : > { %v1731_v31 = vpop.f32.mrb[176].mxu0  ;;  %v3997_v13 = vpop.f32.mrb[7].mxu1 }
 0x2cf   : > { %v4477_v17 = vpop.f32.mrb[177].mxu0  ;;  %3039 = vmatmul.mubr.bf16.gmra.mrb[104].mxu1 %v3845_v16  ;;  %v5594_v46 = vadd.f32 %v3997_v13, %v3996_v11 }
 0x2d0   : > { %v1734_v33 = vpop.f32.mrb[178].mxu0  ;;  %3046 = vmatprep.mubr.bf16.mxu1 %v3854_v5 }
 0x2d1   : > { %v1925_v30 = vpack.c.bf16 %v1734_v33, %v1731_v31  ;;  %v4478_v34 = vpop.f32.mrb[179].mxu0  ;;  %v3760_v31 = vcombine.high %v1954_v54, %v1958_v24 }
 0x2d3   : > { %4191 = vmatprep.subr.bf16.mxu1 %v1925_v30  ;;  %v3999_v1 = vpop.f32.mrb[8].mxu1 }
 0x2d4   : > { %4192 = vmatpush3.bf16.msra.mxu1 %v1917_v28  ;;  %v4000_v21 = vpop.f32.mrb[9].mxu1  ;;  %v3861_v28 = vcombine.low %v2057_v35, %v2061_v18 }
 0x2d5   : > { %v5605_v22 = vadd.f32 %v4000_v21, %v3999_v1  ;;  %v4002_v49 = vpop.f32.mrb[10].mxu1 }
 0x2d6   : > { %v1739_v51 = vpop.f32.mrb[180].mxu0  ;;  %v4003_v14 = vpop.f32.mrb[11].mxu1 }
 0x2d7   : > { %v4481_v27 = vpop.f32.mrb[181].mxu0  ;;  %3047 = vmatmul.mubr.bf16.gmra.mrb[108].mxu1 %v3853_v38  ;;  %v5607_v43 = vadd.f32 %v4003_v14, %v4002_v49  ;;  %v3768_v49 = vcombine.high %v1962_v25, %v1966_v19 }
 0x2d8   : > { %v1742_v29 = vpop.f32.mrb[182].mxu0  ;;  %3054 = vmatprep.mubr.bf16.mxu1 %v3862_v37 }
 0x2d9   : > { %v1926_v32 = vpack.c.bf16 %v1742_v29, %v1739_v51  ;;  %v4482_v44 = vpop.f32.mrb[183].mxu0 }
 0x2db   : > { %4193 = vmatprep.subr.bf16.mxu1 %v1926_v32  ;;  %v4005_v48 = vpop.f32.mrb[12].mxu1 }
 0x2dc   : > { %4194 = vmatpush3.bf16.msra.mxu1 %v1918_v39  ;;  %v4006_v55 = vpop.f32.mrb[13].mxu1  ;;  %v3869_v39 = vcombine.low %v2065_v26, %v2069_v59 }
 0x2dd   : > { %v5618_v53 = vadd.f32 %v4006_v55, %v4005_v48  ;;  %v4008_v15 = vpop.f32.mrb[14].mxu1  ;;  %v1974_v55 = vld [vmem:[%s6165_s2 + $0xf0] sm:$0xff] }
 0x2de   : > { %v1747_v56 = vpop.f32.mrb[184].mxu0  ;;  %v4009_v40 = vpop.f32.mrb[15].mxu1 }
 0x2df   : > { %v4485_v42 = vpop.f32.mrb[185].mxu0  ;;  %3055 = vmatmul.mubr.bf16.gmra.mrb[112].mxu1 %v3861_v28  ;;  %v5620_v45 = vadd.f32 %v4009_v40, %v4008_v15  ;;  %v3767_v15 = vcombine.low %v1962_v25, %v1966_v19 }
 0x2e0   : > { %v1750_v52 = vpop.f32.mrb[186].mxu0  ;;  %3062 = vmatprep.mubr.bf16.mxu1 %v3870_v8  ;;  %v1970_v8 = vld [vmem:[%s6165_s2 + $0xd0] sm:$0xff] }
 0x2e1   : > { %v1927_v57 = vpack.c.bf16 %v1750_v52, %v1747_v56  ;;  %v4486_v47 = vpop.f32.mrb[187].mxu0  ;;  %v3776_v40 = vcombine.high %v1970_v8, %v1974_v55 }
 0x2e3   : > { %4195 = vmatprep.subr.bf16.mxu1 %v1927_v57  ;;  %v4011_v50 = vpop.f32.mrb[16].mxu1 }
 0x2e4   : > { %4196 = vmatpush3.bf16.msra.mxu1 %v1919_v7  ;;  %v4012_v58 = vpop.f32.mrb[17].mxu1  ;;  %v3751_v7 = vcombine.low %v1946_v12, %v1950_v36 }
 0x2e5   : > { %v5631_v61 = vadd.f32 %v4012_v58, %v4011_v50  ;;  %v4014_v62 = vpop.f32.mrb[18].mxu1 }
 0x2e6   : > { %v1755_v23 = vpop.f32.mrb[188].mxu0  ;;  %v4015_v20 = vpop.f32.mrb[19].mxu1 }
 0x2e7   : > { %v4489_v2 = vpop.f32.mrb[189].mxu0  ;;  %3063 = vmatmul.mubr.bf16.gmra.mrb[116].mxu1 %v3869_v39  ;;  %v5633_v16 = vadd.f32 %v4015_v20, %v4014_v62  ;;  %v1978_v62 = vld [vmem:[%s6165_s2 + $0x110] sm:$0xff]  ;;  %v3775_v20 = vcombine.low %v1970_v8, %v1974_v55 }
 0x2e8   : > { %v1758_v4 = vpop.f32.mrb[190].mxu0  ;;  %3103 = vmatprep.mubr.bf16.mxu1 %v3752_v63 }
 0x2e9   : > { %v1928_v5 = vpack.c.bf16 %v1758_v4, %v1755_v23  ;;  %v4490_v6 = vpop.f32.mrb[191].mxu0  ;;  %v1982_v23 = vld [vmem:[%s6165_s2 + $0x130] sm:$0xff] }
 0x2ea   : > { %v3784_v4 = vcombine.high %v1978_v62, %v1982_v23 }
 0x2eb   : > { %4197 = vmatprep.subr.bf16.mxu1 %v1928_v5  ;;  %v4017_v11 = vpop.f32.mrb[20].mxu1 }
 0x2ec   : > { %4198 = vmatpush3.bf16.msra.mxu1 %v1920_v41  ;;  %v4018_v13 = vpop.f32.mrb[21].mxu1  ;;  %v3759_v41 = vcombine.low %v1954_v54, %v1958_v24 }
 0x2ed   : > { %3232 = vmatprep.subr.bf16.mxu1 %v4598_v0  ;;  %v5645_v17 = vadd.f32 %v4018_v13, %v4017_v11  ;;  %v4020_v33 = vpop.f32.mrb[22].mxu1 }
 0x2ee   : > { %v1763_v30 = vpop.f32.mrb[192].mxu0  ;;  %v4021_v34 = vpop.f32.mrb[23].mxu1 }
 0x2ef   : > { %v4493_v35 = vpop.f32.mrb[193].mxu0  ;;  %3104 = vmatmul.mubr.bf16.vlgmr.msra.gmra.mrb[120].mxu1 %v3751_v7  ;;  %v5647_v18 = vadd.f32 %v4021_v34, %v4020_v33  ;;  %v1986_v34 = vld [vmem:[%s6165_s2 + $0x150] sm:$0xff] }
 0x2f0   : > { %v1766_v38 = vpop.f32.mrb[194].mxu0  ;;  %3111 = vmatprep.mubr.bf16.mxu1 %v3760_v31  ;;  %v1990_v35 = vld [vmem:[%s6165_s2 + $0x170] sm:$0xff] }
 0x2f1   : > { %v1929_v1 = vpack.c.bf16 %v1766_v38, %v1763_v30  ;;  %v4494_v37 = vpop.f32.mrb[195].mxu0  ;;  %v3783_v38 = vcombine.low %v1978_v62, %v1982_v23  ;;  %v2006_v62 = vld [vmem:[%s6165_s2 + $0x1f0] sm:$0xff] }
 0x2f2   : > { %v3792_v37 = vcombine.high %v1986_v34, %v1990_v35 }
 0x2f3   : > { %3233 = vmatpush1.bf16.msra.mxu1 %v1929_v1  ;;  %v4023_v21 = vpop.f32.mrb[24].mxu1 }
 0x2f4   : > { %3234 = vmatprep.subr.bf16.mxu1 %v4598_v0  ;;  %v4024_v51 = vpop.f32.mrb[25].mxu1 }
 0x2f5   : > { %v5656_v14 = vadd.f32 %v4024_v51, %v4023_v21  ;;  %v4026_v27 = vpop.f32.mrb[26].mxu1 }
 0x2f6   : > { %v1771_v29 = vpop.f32.mrb[196].mxu0  ;;  %v4027_v32 = vpop.f32.mrb[27].mxu1 }
 0x2f7   : > { %v4497_v44 = vpop.f32.mrb[197].mxu0  ;;  %3112 = vmatmul.mubr.bf16.gmra.mrb[124].mxu1 %v3759_v41  ;;  %v5658_v26 = vadd.f32 %v4027_v32, %v4026_v27 }
 0x2f8   : > { %v1774_v59 = vpop.f32.mrb[198].mxu0  ;;  %3119 = vmatprep.mubr.bf16.mxu1 %v3768_v49 }
 0x2f9   : > { %v1930_v28 = vpack.c.bf16 %v1774_v59, %v1771_v29  ;;  %v4498_v48 = vpop.f32.mrb[199].mxu0  ;;  %v1994_v59 = vld [vmem:[%s6165_s2 + $0x190] sm:$0xff] }
 0x2fa   : > { %v3791_v48 = vcombine.low %v1986_v34, %v1990_v35  ;;  %v2010_v35 = vld [vmem:[%s6165_s2 + $0x210] sm:$0xff] }
 0x2fb   : > { %3235 = vmatpush1.bf16.msra.mxu1 %v1930_v28  ;;  %v4029_v56 = vpop.f32.mrb[28].mxu1  ;;  %v1998_v28 = vld [vmem:[%s6165_s2 + $0x1b0] sm:$0xff] }
 0x2fc   : > { %3236 = vmatprep.subr.bf16.mxu1 %v4598_v0  ;;  %v4030_v42 = vpop.f32.mrb[29].mxu1  ;;  %v3800_v55 = vcombine.high %v1994_v59, %v1998_v28  ;;  %v3799_v23 = vcombine.low %v1994_v59, %v1998_v28 }
 0x2fd   : > { %v5667_v52 = vadd.f32 %v4030_v42, %v4029_v56  ;;  %v4032_v57 = vpop.f32.mrb[30].mxu1 }
 0x2fe   : > { %v1779_v47 = vpop.f32.mrb[200].mxu0  ;;  %v4033_v12 = vpop.f32.mrb[31].mxu1 }
 0x2ff   : > { %v4501_v36 = vpop.f32.mrb[201].mxu0  ;;  %3120 = vmatmul.mubr.bf16.gmra.mrb[128].mxu1 %v3767_v15  ;;  %v5669_v39 = vadd.f32 %v4033_v12, %v4032_v57 }
 0x300   : > { %v1782_v50 = vpop.f32.mrb[202].mxu0  ;;  %3127 = vmatprep.mubr.bf16.mxu1 %v3776_v40 }
 0x301   : > { %v1931_v63 = vpack.c.bf16 %v1782_v50, %v1779_v47  ;;  %v4502_v58 = vpop.f32.mrb[203].mxu0 }
 0x302   : > { %v2002_v58 = vld [vmem:[%s6165_s2 + $0x1d0] sm:$0xff] }
 0x303   : > { %3237 = vmatpush1.bf16.msra.mxu1 %v1931_v63  ;;  %v4035_v2 = vpop.f32.mrb[32].mxu1 }
 0x304   : > { %3238 = vmatprep.subr.bf16.mxu1 %v4598_v0  ;;  %v4036_v5 = vpop.f32.mrb[33].mxu1 }
 0x305   : > { %v5678_v6 = vadd.f32 %v4036_v5, %v4035_v2  ;;  %v4038_v54 = vpop.f32.mrb[34].mxu1  ;;  %v3808_v2 = vcombine.high %v2002_v58, %v2006_v62 }
 0x306   : > { %v1787_v24 = vpop.f32.mrb[204].mxu0  ;;  %v4039_v7 = vpop.f32.mrb[35].mxu1 }
 0x307   : > { %v4505_v11 = vpop.f32.mrb[205].mxu0  ;;  %3128 = vmatmul.mubr.bf16.gmra.mrb[132].mxu1 %v3775_v20  ;;  %v5680_v31 = vadd.f32 %v4039_v7, %v4038_v54 }
 0x308   : > { %v1790_v13 = vpop.f32.mrb[206].mxu0  ;;  %3135 = vmatprep.mubr.bf16.mxu1 %v3784_v4 }
 0x309   : > { %v1932_v33 = vpack.c.bf16 %v1790_v13, %v1787_v24  ;;  %v4506_v30 = vpop.f32.mrb[207].mxu0 }
 0x30b   : > { %3239 = vmatpush1.bf16.msra.mxu1 %v1932_v33  ;;  %v4041_v1 = vpop.f32.mrb[36].mxu1 }
 0x30c   : > { %3240 = vmatprep.subr.bf16.mxu1 %v4598_v0  ;;  %v4042_v25 = vpop.f32.mrb[37].mxu1 }
 0x30d   : > { %v5689_v19 = vadd.f32 %v4042_v25, %v4041_v1  ;;  %v4044_v41 = vpop.f32.mrb[38].mxu1  ;;  %v3807_v1 = vcombine.low %v2002_v58, %v2006_v62 }
 0x30e   : > { %v1795_v21 = vpop.f32.mrb[208].mxu0  ;;  %v4045_v49 = vpop.f32.mrb[39].mxu1 }
 0x30f   : > { %v4509_v51 = vpop.f32.mrb[209].mxu0  ;;  %3136 = vmatmul.mubr.bf16.gmra.mrb[136].mxu1 %v3783_v38  ;;  %v5691_v27 = vadd.f32 %v4045_v49, %v4044_v41  ;;  %v2014_v38 = vld [vmem:[%s6165_s2 + $0x230] sm:$0xff] }
 0x310   : > { %v1798_v29 = vpop.f32.mrb[210].mxu0  ;;  %3143 = vmatprep.mubr.bf16.mxu1 %v3792_v37  ;;  %v3816_v25 = vcombine.high %v2010_v35, %v2014_v38 }
 0x311   : > { %v1933_v32 = vpack.c.bf16 %v1798_v29, %v1795_v21  ;;  %v4510_v44 = vpop.f32.mrb[211].mxu0 }
 0x313   : > { %3241 = vmatpush1.bf16.msra.mxu1 %v1933_v32  ;;  %v4047_v8 = vpop.f32.mrb[40].mxu1 }
 0x314   : > { %3242 = vmatprep.subr.bf16.mxu1 %v4598_v0  ;;  %v4048_v15 = vpop.f32.mrb[41].mxu1 }
 0x315   : > { %v5700_v56 = vadd.f32 %v4048_v15, %v4047_v8  ;;  %v4050_v40 = vpop.f32.mrb[42].mxu1  ;;  %v2018_v8 = vld [vmem:[%s6165_s2 + $0x250] sm:$0xff]  ;;  %v3815_v15 = vcombine.low %v2010_v35, %v2014_v38 }
 0x316   : > { %v1803_v42 = vpop.f32.mrb[212].mxu0  ;;  %v4051_v57 = vpop.f32.mrb[43].mxu1  ;;  %v2034_v38 = vld [vmem:[%s6165_s2 + $0x2d0] sm:$0xff] }
 0x317   : > { %v4513_v47 = vpop.f32.mrb[213].mxu0  ;;  %3144 = vmatmul.mubr.bf16.gmra.mrb[140].mxu1 %v3791_v48  ;;  %v5702_v12 = vadd.f32 %v4051_v57, %v4050_v40 }
 0x318   : > { %v1806_v36 = vpop.f32.mrb[214].mxu0  ;;  %3151 = vmatprep.mubr.bf16.mxu1 %v3800_v55  ;;  %v2022_v55 = vld [vmem:[%s6165_s2 + $0x270] sm:$0xff] }
 0x319   : > { %v1934_v50 = vpack.c.bf16 %v1806_v36, %v1803_v42  ;;  %v4514_v63 = vpop.f32.mrb[215].mxu0  ;;  %v3824_v42 = vcombine.high %v2018_v8, %v2022_v55 }
 0x31b   : > { %3243 = vmatpush1.bf16.msra.mxu1 %v1934_v50  ;;  %v4053_v20 = vpop.f32.mrb[44].mxu1 }
 0x31c   : > { %3244 = vmatprep.subr.bf16.mxu1 %v4598_v0  ;;  %v4054_v4 = vpop.f32.mrb[45].mxu1 }
 0x31d   : > { %v5711_v5 = vadd.f32 %v4054_v4, %v4053_v20  ;;  %v4056_v54 = vpop.f32.mrb[46].mxu1  ;;  %v2026_v4 = vld [vmem:[%s6165_s2 + $0x290] sm:$0xff] }
 0x31e   : > { %v1811_v24 = vpop.f32.mrb[216].mxu0  ;;  %v4057_v7 = vpop.f32.mrb[47].mxu1 }
 0x31f   : > { %v4517_v11 = vpop.f32.mrb[217].mxu0  ;;  %3152 = vmatmul.mubr.bf16.gmra.mrb[144].mxu1 %v3799_v23  ;;  %v5713_v13 = vadd.f32 %v4057_v7, %v4056_v54  ;;  %v2030_v54 = vld [vmem:[%s6165_s2 + $0x2b0] sm:$0xff] }
 0x320   : > { %v1814_v33 = vpop.f32.mrb[218].mxu0  ;;  %3159 = vmatprep.mubr.bf16.mxu1 %v3808_v2  ;;  %v3832_v7 = vcombine.high %v2026_v4, %v2030_v54 }
 0x321   : > { %v1935_v30 = vpack.c.bf16 %v1814_v33, %v1811_v24  ;;  %v4518_v34 = vpop.f32.mrb[219].mxu0  ;;  %v3823_v24 = vcombine.low %v2018_v8, %v2022_v55 }
 0x323   : > { %3245 = vmatpush1.bf16.msra.mxu1 %v1935_v30  ;;  %v4059_v37 = vpop.f32.mrb[48].mxu1 }
 0x324   : > { %3246 = vmatprep.subr.bf16.mxu1 %v4598_v0  ;;  %v4060_v41 = vpop.f32.mrb[49].mxu1 }
 0x325   : > { %v5722_v21 = vadd.f32 %v4060_v41, %v4059_v37  ;;  %v4062_v49 = vpop.f32.mrb[50].mxu1  ;;  %v3831_v37 = vcombine.low %v2026_v4, %v2030_v54  ;;  %v2054_v4 = vld [vmem:[%s6165_s2 + $0x370] sm:$0xff] }
 0x326   : > { %v1819_v51 = vpop.f32.mrb[220].mxu0  ;;  %v4063_v29 = vpop.f32.mrb[51].mxu1 }
 0x327   : > { %v4521_v32 = vpop.f32.mrb[221].mxu0  ;;  %3160 = vmatmul.mubr.bf16.gmra.mrb[148].mxu1 %v3807_v1  ;;  %v5724_v44 = vadd.f32 %v4063_v29, %v4062_v49  ;;  %v2038_v1 = vld [vmem:[%s6165_s2 + $0x2f0] sm:$0xff] }
 0x328   : > { %v1822_v59 = vpop.f32.mrb[222].mxu0  ;;  %3167 = vmatprep.mubr.bf16.mxu1 %v3816_v25  ;;  %v3840_v25 = vcombine.high %v2034_v38, %v2038_v1  ;;  %v3839_v8 = vcombine.low %v2034_v38, %v2038_v1 }
 0x329   : > { %v1936_v28 = vpack.c.bf16 %v1822_v59, %v1819_v51  ;;  %v4522_v48 = vpop.f32.mrb[223].mxu0  ;;  %v2042_v59 = vld [vmem:[%s6165_s2 + $0x310] sm:$0xff] }
 0x32b   : > { %3247 = vmatpush1.bf16.msra.mxu1 %v1936_v28  ;;  %v4065_v40 = vpop.f32.mrb[52].mxu1  ;;  %v2046_v28 = vld [vmem:[%s6165_s2 + $0x330] sm:$0xff] }
 0x32c   : > { %3248 = vmatprep.subr.bf16.mxu1 %v4598_v0  ;;  %v4066_v57 = vpop.f32.mrb[53].mxu1 }
 0x32d   : > { %v5733_v47 = vadd.f32 %v4066_v57, %v4065_v40  ;;  %v4068_v36 = vpop.f32.mrb[54].mxu1 }
 0x32e   : > { %v1827_v50 = vpop.f32.mrb[224].mxu0  ;;  %v4069_v63 = vpop.f32.mrb[55].mxu1 }
 0x32f   : > { %v4525_v58 = vpop.f32.mrb[225].mxu0  ;;  %3168 = vmatmul.mubr.bf16.gmra.mrb[152].mxu1 %v3815_v15  ;;  %v5735_v62 = vadd.f32 %v4069_v63, %v4068_v36 }
 0x330   : > { %v1830_v23 = vpop.f32.mrb[226].mxu0  ;;  %3175 = vmatprep.mubr.bf16.mxu1 %v3824_v42  ;;  %v3848_v42 = vcombine.high %v2042_v59, %v2046_v28 }
 0x331   : > { %v1937_v20 = vpack.c.bf16 %v1830_v23, %v1827_v50  ;;  %v4526_v2 = vpop.f32.mrb[227].mxu0 }
 0x332   : > { %v2050_v2 = vld [vmem:[%s6165_s2 + $0x350] sm:$0xff] }
 0x333   : > { %3249 = vmatpush1.bf16.msra.mxu1 %v1937_v20 }
 0x334   : > { %3250 = vmatprep.subr.bf16.mxu1 %v4598_v0 }
 0x336   : > { %v1835_v11 = vpop.f32.mrb[228].mxu0 }
 0x337   : > { %v4529_v33 = vpop.f32.mrb[229].mxu0  ;;  %3176 = vmatmul.mubr.bf16.gmra.mrb[156].mxu1 %v3823_v24 }
 0x338   : > { %v1838_v30 = vpop.f32.mrb[230].mxu0  ;;  %3183 = vmatprep.mubr.bf16.mxu1 %v3832_v7  ;;  %v3847_v7 = vcombine.low %v2042_v59, %v2046_v28  ;;  %v3855_v59 = vcombine.low %v2050_v2, %v2054_v4 }
 0x339   : > { %v1938_v34 = vpack.c.bf16 %v1838_v30, %v1835_v11  ;;  %v4530_v35 = vpop.f32.mrb[231].mxu0  ;;  %v3856_v30 = vcombine.high %v2050_v2, %v2054_v4  ;;  %v2066_v2 = vld [vmem:[%s6165_s2 + $0x3d0] sm:$0xff] }
 0x33b   : > { %3251 = vmatpush1.bf16.msra.mxu1 %v1938_v34 }
 0x33c   : > { %3252 = vmatprep.subr.bf16.mxu1 %v4598_v0 }
 0x33e   : > { %v1843_v41 = vpop.f32.mrb[232].mxu0 }
 0x33f   : > { %v4533_v49 = vpop.f32.mrb[233].mxu0  ;;  %3184 = vmatmul.mubr.bf16.gmra.mrb[160].mxu1 %v3831_v37 }
 0x340   : > { %v1846_v51 = vpop.f32.mrb[234].mxu0  ;;  %3191 = vmatprep.mubr.bf16.mxu1 %v3840_v25  ;;  %v2058_v49 = vld [vmem:[%s6165_s2 + $0x390] sm:$0xff] }
 0x341   : > { %v1939_v29 = vpack.c.bf16 %v1846_v51, %v1843_v41  ;;  %v4534_v32 = vpop.f32.mrb[235].mxu0  ;;  %v2062_v51 = vld [vmem:[%s6165_s2 + $0x3b0] sm:$0xff] }
 0x342   : > { %v4087_v48 = vpop.f32.mrb[56].mxu1 }
 0x343   : > { %3253 = vmatpush1.bf16.msra.mxu1 %v1939_v29  ;;  %v4088_v55 = vpop.f32.mrb[57].mxu1 }
 0x344   : > { %3254 = vmatprep.subr.bf16.mxu1 %v4598_v0  ;;  %v5758_v15 = vadd.f32 %v4088_v55, %v4087_v48  ;;  %v4090_v40 = vpop.f32.mrb[58].mxu1 }
 0x345   : > { %v4091_v57 = vpop.f32.mrb[59].mxu1 }
 0x346   : > { %v1851_v36 = vpop.f32.mrb[236].mxu0  ;;  %v5760_v50 = vadd.f32 %v4091_v57, %v4090_v40 }
 0x347   : > { %v4537_v63 = vpop.f32.mrb[237].mxu0  ;;  %3192 = vmatmul.mubr.bf16.gmra.mrb[164].mxu1 %v3839_v8  ;;  %v3864_v8 = vcombine.high %v2058_v49, %v2062_v51 }
 0x348   : > { %v1854_v58 = vpop.f32.mrb[238].mxu0  ;;  %3199 = vmatprep.mubr.bf16.mxu1 %v3848_v42 }
 0x349   : > { %v1940_v23 = vpack.c.bf16 %v1854_v58, %v1851_v36  ;;  %v4538_v20 = vpop.f32.mrb[239].mxu0 }
 0x34a   : > { %v4093_v54 = vpop.f32.mrb[60].mxu1 }
 0x34b   : > { %3255 = vmatpush1.bf16.msra.mxu1 %v1940_v23  ;;  %v4094_v24 = vpop.f32.mrb[61].mxu1 }
 0x34c   : > { %v5768_v11 = vadd.f32 %v4094_v24, %v4093_v54  ;;  %v4096_v33 = vpop.f32.mrb[62].mxu1  ;;  %3256 = vmatprep.subr.bf16.mxu1 %v4598_v0  ;;  %v3863_v24 = vcombine.low %v2058_v49, %v2062_v51 }
 0x34d   : > { %v4097_v34 = vpop.f32.mrb[63].mxu1 }
 0x34e   : > { %v1859_v35 = vpop.f32.mrb[240].mxu0  ;;  %v5771_v38 = vadd.f32 %v4097_v34, %v4096_v33 }
 0x34f   : > { %v4541_v1 = vpop.f32.mrb[241].mxu0  ;;  %3200 = vmatmul.mubr.bf16.gmra.mrb[168].mxu1 %v3847_v7 }
 0x350   : > { %v1862_v37 = vpop.f32.mrb[242].mxu0  ;;  %3207 = vmatprep.mubr.bf16.mxu1 %v3856_v30 }
 0x351   : > { %v1941_v25 = vpack.c.bf16 %v1862_v37, %v1859_v35  ;;  %v4542_v41 = vpop.f32.mrb[243].mxu0 }
 0x352   : > { %v4099_v29 = vpop.f32.mrb[64].mxu1 }
 0x353   : > { %v4100_v32 = vpop.f32.mrb[65].mxu1  ;;  %3257 = vmatpush1.bf16.msra.mxu1 %v1941_v25 }
 0x354   : > { %v4101_v28 = vadd.f32 %v4100_v32, %v4099_v29  ;;  %v4102_v48 = vpop.f32.mrb[66].mxu1  ;;  %3258 = vmatprep.subr.bf16.mxu1 %v4598_v0 }
 0x355   : > { %v4103_v55 = vpop.f32.mrb[67].mxu1 }
 0x356   : > { %v5781_v40 = vadd.f32 %v4101_v28, %v5579_v3  ;;  %v4104_v42 = vadd.f32 %v4103_v55, %v4102_v48  ;;  %v1867_v57 = vpop.f32.mrb[244].mxu0  ;;  %v2070_v3 = vld [vmem:[%s6165_s2 + $0x3f0] sm:$0xff] }
 0x357   : > { %v4545_v36 = vpop.f32.mrb[245].mxu0  ;;  %3208 = vmatmul.mubr.bf16.gmra.mrb[172].mxu1 %v3855_v59  ;;  %v3871_v28 = vcombine.low %v2066_v2, %v2070_v3 }
 0x358   : > { %v5784_v63 = vadd.f32 %v4104_v42, %v5581_v60  ;;  %v1870_v58 = vpop.f32.mrb[246].mxu0  ;;  %3215 = vmatprep.mubr.bf16.mxu1 %v3864_v8  ;;  %v3872_v60 = vcombine.high %v2066_v2, %v2070_v3  ;;  %v1955_v2 = vld [vmem:[%s6165_s2 + $0x58] sm:$0xff] }
 0x359   : > { %v1942_v23 = vpack.c.bf16 %v1870_v58, %v1867_v57  ;;  %v4546_v20 = vpop.f32.mrb[247].mxu0 }
 0x35a   : > { %v4105_v4 = vpop.f32.mrb[68].mxu1 }
 0x35b   : > { %v4106_v54 = vpop.f32.mrb[69].mxu1  ;;  %3259 = vmatpush1.bf16.msra.mxu1 %v1942_v23 }
 0x35c   : > { %v4107_v7 = vadd.f32 %v4106_v54, %v4105_v4  ;;  %v4108_v33 = vpop.f32.mrb[70].mxu1  ;;  %3260 = vmatprep.subr.bf16.mxu1 %v4598_v0  ;;  %v1947_v0 = vld [vmem:[%s6165_s2 + $0x18] sm:$0xff] }
 0x35d   : > { %v4109_v30 = vpop.f32.mrb[71].mxu1 }
 0x35e   : > { %v5794_v34 = vadd.f32 %v4107_v7, %v5592_v10  ;;  %v4110_v35 = vadd.f32 %v4109_v30, %v4108_v33  ;;  %v1875_v1 = vpop.f32.mrb[248].mxu0  ;;  %v1951_v10 = vld [vmem:[%s6165_s2 + $0x38] sm:$0xff] }
 0x35f   : > { %v1943_v37 = vpack.c.bf16 %v1875_v1, %v1875_v1  ;;  %v4549_v25 = vpop.f32.mrb[249].mxu0  ;;  %3216 = vmatmul.mubr.bf16.gmra.mrb[176].mxu1 %v3863_v24  ;;  %v3753_v33 = vcombine.low %v1947_v0, %v1951_v10 }
 0x360   : > { %v5797_v41 = vadd.f32 %v4110_v35, %v5594_v46  ;;  %v1878_v29 = vpop.f32.mrb[250].mxu0  ;;  %3223 = vmatprep.mubr.bf16.mxu1 %v3872_v60  ;;  %v3754_v46 = vcombine.high %v1947_v0, %v1951_v10 }
 0x361   : > { %v2747_v49 = vsel %vm2745_vm0, %v1943_v37, 0  ;;  %v4550_v51 = vpop.f32.mrb[251].mxu0 }
 0x362   : > { %v4111_v32 = vpop.f32.mrb[72].mxu1  ;;  %3261 = vmatpush1.bf16.msra.mxu1 %v2747_v49 }
 0x363   : > { %v4112_v59 = vpop.f32.mrb[73].mxu1 }
 0x364   : > { %v4113_v48 = vadd.f32 %v4112_v59, %v4111_v32  ;;  %v4114_v8 = vpop.f32.mrb[74].mxu1 }
 0x365   : > { %v4115_v55 = vpop.f32.mrb[75].mxu1 }
 0x366   : > { %v5806_v42 = vadd.f32 %v4113_v48, %v5605_v22  ;;  %v4116_v57 = vadd.f32 %v4115_v55, %v4114_v8  ;;  %v3975_v36 = vpop.f32.mrb[252].mxu0  ;;  %v1959_v22 = vld [vmem:[%s6165_s2 + $0x78] sm:$0xff] }
 0x367   : > { %3224 = vmatmul.mubr.bf16.gmra.mrb[180].mxu1 %v3871_v28  ;;  %v3976_v58 = vpop.f32.mrb[253].mxu0  ;;  %v3762_v35 = vcombine.high %v1955_v2, %v1959_v22  ;;  %v3761_v8 = vcombine.low %v1955_v2, %v1959_v22 }
 0x368   : > { %v5809_v23 = vadd.f32 %v4116_v57, %v5607_v43  ;;  %3875 = vmatprep.mubr.msk.bf16.mxu1 %vm2696_vm3, %v3754_v46  ;;  %v3977_v20 = vadd.f32 %v3976_v58, %v3975_v36  ;;  %v3978_v4 = vpop.f32.mrb[254].mxu0 }
 0x369   : > { %v3979_v3 = vpop.f32.mrb[255].mxu0 }
 0x36a   : > { %v4117_v54 = vpop.f32.mrb[76].mxu1  ;;  %v5819_v24 = vadd.f32 %v5758_v15, %v3977_v20  ;;  %v3980_v7 = vadd.f32 %v3979_v3, %v3978_v4 }
 0x36b   : > { %v4118_v43 = vpop.f32.mrb[77].mxu1 }
 0x36c   : > { %v4119_v60 = vadd.f32 %v4118_v43, %v4117_v54  ;;  %v4120_v30 = vpop.f32.mrb[78].mxu1  ;;  %v5822_v1 = vadd.f32 %v5760_v50, %v3980_v7  ;;  %v1963_v50 = vld [vmem:[%s6165_s2 + $0x98] sm:$0xff] }
 0x36d   : > { %v4121_v37 = vpop.f32.mrb[79].mxu1 }
 0x36e   : > { %v5825_v25 = vadd.f32 %v4119_v60, %v5618_v53  ;;  %v4122_v29 = vadd.f32 %v4121_v37, %v4120_v30  ;;  %v3981_v49 = vpop.f32.mrb[0].mxu0  ;;  %v1967_v53 = vld [vmem:[%s6165_s2 + $0xb8] sm:$0xff] }
 0x36f   : > { %3265 = vmatmul.mubr.bf16.vlgmr.msra.gmra.mrb[184].mxu1 %v3753_v33  ;;  %v3982_v51 = vpop.f32.mrb[1].mxu0  ;;  %v3770_v57 = vcombine.high %v1963_v50, %v1967_v53  ;;  %v3769_v54 = vcombine.low %v1963_v50, %v1967_v53  ;;  %v1983_v37 = vld [vmem:[%s6165_s2 + $0x138] sm:$0xff] }
 0x370   : > { %v5828_v15 = vadd.f32 %v4122_v29, %v5620_v45  ;;  %3876 = vmatprep.mubr.msk.bf16.mxu1 %vm2696_vm3, %v3762_v35  ;;  %v3983_v0 = vadd.f32 %v3982_v51, %v3981_v49  ;;  %v3984_v10 = vpop.f32.mrb[2].mxu0  ;;  %v1979_v35 = vld [vmem:[%s6165_s2 + $0x118] sm:$0xff] }
 0x371   : > { %v3985_v32 = vpop.f32.mrb[3].mxu0 }
 0x372   : > { %v4123_v59 = vpop.f32.mrb[80].mxu1  ;;  %v5838_v28 = vadd.f32 %v5768_v11, %v3983_v0  ;;  %v3986_v48 = vadd.f32 %v3985_v32, %v3984_v10  ;;  %v1971_v11 = vld [vmem:[%s6165_s2 + $0xd8] sm:$0xff]  ;;  %v3786_v10 = vcombine.high %v1979_v35, %v1983_v37 }
 0x373   : > { %v4124_v45 = vpop.f32.mrb[81].mxu1 }
 0x374   : > { %v4125_v46 = vadd.f32 %v4124_v45, %v4123_v59  ;;  %v4126_v55 = vpop.f32.mrb[82].mxu1  ;;  %v5841_v36 = vadd.f32 %v5771_v38, %v3986_v48  ;;  %v1975_v38 = vld [vmem:[%s6165_s2 + $0xf8] sm:$0xff] }
 0x375   : > { %v4127_v58 = vpop.f32.mrb[83].mxu1  ;;  %v3778_v43 = vcombine.high %v1971_v11, %v1975_v38  ;;  %v3777_v51 = vcombine.low %v1971_v11, %v1975_v38  ;;  %v1987_v59 = vld [vmem:[%s6165_s2 + $0x158] sm:$0xff] }
 0x376   : > { %v5844_v20 = vadd.f32 %v4125_v46, %v5631_v61  ;;  %v4128_v4 = vadd.f32 %v4127_v58, %v4126_v55  ;;  %v1991_v48 = vld [vmem:[%s6165_s2 + $0x178] sm:$0xff]  ;;  %v3785_v46 = vcombine.low %v1979_v35, %v1983_v37 }
 0x377   : > { %3273 = vmatmul.mubr.bf16.gmra.mrb[188].mxu1 %v3761_v8  ;;  %v1995_v38 = vld [vmem:[%s6165_s2 + $0x198] sm:$0xff] }
 0x378   : > { %v5847_v3 = vadd.f32 %v4128_v4, %v5633_v16  ;;  %3877 = vmatprep.mubr.msk.bf16.mxu1 %vm2696_vm3, %v3770_v57  ;;  %v3794_v57 = vcombine.high %v1987_v59, %v1991_v48  ;;  %v2003_v37 = vld [vmem:[%s6165_s2 + $0x1d8] sm:$0xff] }
 0x37a   : > { %v4129_v2 = vpop.f32.mrb[84].mxu1 }
 0x37b   : > { %v4130_v22 = vpop.f32.mrb[85].mxu1 }
 0x37c   : > { %v4131_v61 = vadd.f32 %v4130_v22, %v4129_v2  ;;  %v4132_v7 = vpop.f32.mrb[86].mxu1  ;;  %v1999_v2 = vld [vmem:[%s6165_s2 + $0x1b8] sm:$0xff] }
 0x37d   : > { %v4133_v33 = vpop.f32.mrb[87].mxu1 }
 0x37e   : > { %v5857_v16 = vadd.f32 %v4131_v61, %v5645_v17  ;;  %v4134_v60 = vadd.f32 %v4133_v33, %v4132_v7  ;;  %v3793_v61 = vcombine.low %v1987_v59, %v1991_v48  ;;  %v2011_v48 = vld [vmem:[%s6165_s2 + $0x218] sm:$0xff] }
 0x37f   : > { %3281 = vmatmul.mubr.bf16.gmra.mrb[192].mxu1 %v3769_v54 }
 0x380   : > { %v5860_v30 = vadd.f32 %v4134_v60, %v5647_v18  ;;  %3878 = vmatprep.mubr.msk.bf16.mxu1 %vm2696_vm3, %v3778_v43  ;;  %v3802_v43 = vcombine.high %v1995_v38, %v1999_v2 }
 0x382   : > { %v4135_v29 = vpop.f32.mrb[88].mxu1 }
 0x383   : > { %v4136_v49 = vpop.f32.mrb[89].mxu1 }
 0x384   : > { %v4137_v17 = vadd.f32 %v4136_v49, %v4135_v29  ;;  %v4138_v0 = vpop.f32.mrb[90].mxu1  ;;  %v2007_v29 = vld [vmem:[%s6165_s2 + $0x1f8] sm:$0xff] }
 0x385   : > { %v4139_v50 = vpop.f32.mrb[91].mxu1 }
 0x386   : > { %v5870_v18 = vadd.f32 %v4137_v17, %v5656_v14  ;;  %v4140_v53 = vadd.f32 %v4139_v50, %v4138_v0  ;;  %v3801_v17 = vcombine.low %v1995_v38, %v1999_v2  ;;  %v2019_v2 = vld [vmem:[%s6165_s2 + $0x258] sm:$0xff] }
 0x387   : > { %3289 = vmatmul.mubr.bf16.gmra.mrb[196].mxu1 %v3777_v51 }
 0x388   : > { %v5873_v32 = vadd.f32 %v4140_v53, %v5658_v26  ;;  %3879 = vmatprep.mubr.msk.bf16.mxu1 %vm2696_vm3, %v3786_v10  ;;  %v3810_v10 = vcombine.high %v2003_v37, %v2007_v29 }
 0x38a   : > { %v4141_v45 = vpop.f32.mrb[92].mxu1 }
 0x38b   : > { %v4142_v8 = vpop.f32.mrb[93].mxu1 }
 0x38c   : > { %v4143_v14 = vadd.f32 %v4142_v8, %v4141_v45  ;;  %v4144_v55 = vpop.f32.mrb[94].mxu1  ;;  %v2015_v45 = vld [vmem:[%s6165_s2 + $0x238] sm:$0xff] }
 0x38d   : > { %v4145_v58 = vpop.f32.mrb[95].mxu1 }
 0x38e   : > { %v5883_v26 = vadd.f32 %v4143_v14, %v5667_v52  ;;  %v4146_v4 = vadd.f32 %v4145_v58, %v4144_v55  ;;  %v3809_v14 = vcombine.low %v2003_v37, %v2007_v29  ;;  %v2027_v29 = vld [vmem:[%s6165_s2 + $0x298] sm:$0xff] }
 0x38f   : > { %3297 = vmatmul.mubr.bf16.gmra.mrb[200].mxu1 %v3785_v46 }
 0x390   : > { %v5886_v11 = vadd.f32 %v4146_v4, %v5669_v39  ;;  %3880 = vmatprep.mubr.msk.bf16.mxu1 %vm2696_vm3, %v3794_v57  ;;  %v3818_v57 = vcombine.high %v2011_v48, %v2015_v45 }
 0x392   : > { %v4147_v22 = vpop.f32.mrb[96].mxu1 }
 0x393   : > { %v4148_v54 = vpop.f32.mrb[97].mxu1 }
 0x394   : > { %v4149_v52 = vadd.f32 %v4148_v54, %v4147_v22  ;;  %v4150_v7 = vpop.f32.mrb[98].mxu1  ;;  %v2023_v22 = vld [vmem:[%s6165_s2 + $0x278] sm:$0xff] }
 0x395   : > { %v4151_v33 = vpop.f32.mrb[99].mxu1 }
 0x396   : > { %v5896_v39 = vadd.f32 %v4149_v52, %v5678_v6  ;;  %v4152_v60 = vadd.f32 %v4151_v33, %v4150_v7  ;;  %v3817_v52 = vcombine.low %v2011_v48, %v2015_v45  ;;  %v2035_v45 = vld [vmem:[%s6165_s2 + $0x2d8] sm:$0xff] }
 0x397   : > { %3305 = vmatmul.mubr.bf16.gmra.mrb[204].mxu1 %v3793_v61 }
 0x398   : > { %v5899_v35 = vadd.f32 %v4152_v60, %v5680_v31  ;;  %3881 = vmatprep.mubr.msk.bf16.mxu1 %vm2696_vm3, %v3802_v43  ;;  %v3826_v43 = vcombine.high %v2019_v2, %v2023_v22 }
 0x39a   : > { %v4153_v49 = vpop.f32.mrb[100].mxu1 }
 0x39b   : > { %v4154_v51 = vpop.f32.mrb[101].mxu1 }
 0x39c   : > { %v4155_v6 = vadd.f32 %v4154_v51, %v4153_v49  ;;  %v4156_v0 = vpop.f32.mrb[102].mxu1  ;;  %v2031_v49 = vld [vmem:[%s6165_s2 + $0x2b8] sm:$0xff] }
 0x39d   : > { %v4157_v50 = vpop.f32.mrb[103].mxu1 }
 0x39e   : > { %v5909_v31 = vadd.f32 %v4155_v6, %v5689_v19  ;;  %v4158_v53 = vadd.f32 %v4157_v50, %v4156_v0  ;;  %v3825_v6 = vcombine.low %v2019_v2, %v2023_v22  ;;  %v2043_v22 = vld [vmem:[%s6165_s2 + $0x318] sm:$0xff] }
 0x39f   : > { %3313 = vmatmul.mubr.bf16.gmra.mrb[208].mxu1 %v3801_v17 }
 0x3a0   : > { %v5912_v59 = vadd.f32 %v4158_v53, %v5691_v27  ;;  %3882 = vmatprep.mubr.msk.bf16.mxu1 %vm2696_vm3, %v3810_v10  ;;  %v3834_v10 = vcombine.high %v2027_v29, %v2031_v49 }
 0x3a2   : > { %v4159_v8 = vpop.f32.mrb[104].mxu1 }
 0x3a3   : > { %v4160_v46 = vpop.f32.mrb[105].mxu1 }
 0x3a4   : > { %v4161_v19 = vadd.f32 %v4160_v46, %v4159_v8  ;;  %v4162_v55 = vpop.f32.mrb[106].mxu1  ;;  %v2039_v8 = vld [vmem:[%s6165_s2 + $0x2f8] sm:$0xff] }
 0x3a5   : > { %v4163_v58 = vpop.f32.mrb[107].mxu1 }
 0x3a6   : > { %v5922_v27 = vadd.f32 %v4161_v19, %v5700_v56  ;;  %v4164_v4 = vadd.f32 %v4163_v58, %v4162_v55  ;;  %v3833_v19 = vcombine.low %v2027_v29, %v2031_v49  ;;  %v2051_v49 = vld [vmem:[%s6165_s2 + $0x358] sm:$0xff] }
 0x3a7   : > { %3321 = vmatmul.mubr.bf16.gmra.mrb[212].mxu1 %v3809_v14 }
 0x3a8   : > { %v5925_v38 = vadd.f32 %v4164_v4, %v5702_v12  ;;  %3883 = vmatprep.mubr.msk.bf16.mxu1 %vm2696_vm3, %v3818_v57  ;;  %v3842_v57 = vcombine.high %v2035_v45, %v2039_v8 }
 0x3aa   : > { %v4165_v54 = vpop.f32.mrb[108].mxu1 }
 0x3ab   : > { %v4166_v61 = vpop.f32.mrb[109].mxu1 }
 0x3ac   : > { %v4167_v56 = vadd.f32 %v4166_v61, %v4165_v54  ;;  %v4168_v7 = vpop.f32.mrb[110].mxu1  ;;  %v2047_v54 = vld [vmem:[%s6165_s2 + $0x338] sm:$0xff] }
 0x3ad   : > { %v4169_v33 = vpop.f32.mrb[111].mxu1 }
 0x3ae   : > { %v5935_v12 = vadd.f32 %v4167_v56, %v5711_v5  ;;  %v4170_v60 = vadd.f32 %v4169_v33, %v4168_v7  ;;  %v3841_v56 = vcombine.low %v2035_v45, %v2039_v8  ;;  %v2059_v8 = vld [vmem:[%s6165_s2 + $0x398] sm:$0xff] }
 0x3af   : > { %3329 = vmatmul.mubr.bf16.gmra.mrb[216].mxu1 %v3817_v52 }
 0x3b0   : > { %v5938_v37 = vadd.f32 %v4170_v60, %v5713_v13  ;;  %3884 = vmatprep.mubr.msk.bf16.mxu1 %vm2696_vm3, %v3826_v43  ;;  %v3850_v43 = vcombine.high %v2043_v22, %v2047_v54 }
 0x3b2   : > { %v4171_v51 = vpop.f32.mrb[112].mxu1 }
 0x3b3   : > { %v4172_v17 = vpop.f32.mrb[113].mxu1 }
 0x3b4   : > { %v4173_v5 = vadd.f32 %v4172_v17, %v4171_v51  ;;  %v4174_v0 = vpop.f32.mrb[114].mxu1  ;;  %v2055_v51 = vld [vmem:[%s6165_s2 + $0x378] sm:$0xff] }
 0x3b5   : > { %v4175_v50 = vpop.f32.mrb[115].mxu1 }
 0x3b6   : > { %v5948_v13 = vadd.f32 %v4173_v5, %v5722_v21  ;;  %v4176_v53 = vadd.f32 %v4175_v50, %v4174_v0  ;;  %v3849_v5 = vcombine.low %v2043_v22, %v2047_v54  ;;  %v2067_v54 = vld [vmem:[%s6165_s2 + $0x3d8] sm:$0xff] }
 0x3b7   : > { %3337 = vmatmul.mubr.bf16.gmra.mrb[220].mxu1 %v3825_v6 }
 0x3b8   : > { %v5951_v48 = vadd.f32 %v4176_v53, %v5724_v44  ;;  %3885 = vmatprep.mubr.msk.bf16.mxu1 %vm2696_vm3, %v3834_v10  ;;  %v3858_v10 = vcombine.high %v2051_v49, %v2055_v51 }
 0x3ba   : > { %v4177_v46 = vpop.f32.mrb[116].mxu1 }
 0x3bb   : > { %v4178_v14 = vpop.f32.mrb[117].mxu1 }
 0x3bc   : > { %v4179_v21 = vadd.f32 %v4178_v14, %v4177_v46  ;;  %v4180_v55 = vpop.f32.mrb[118].mxu1  ;;  %v2063_v46 = vld [vmem:[%s6165_s2 + $0x3b8] sm:$0xff] }
 0x3bd   : > { %v4181_v58 = vpop.f32.mrb[119].mxu1 }
 0x3be   : > { %v5961_v44 = vadd.f32 %v4179_v21, %v5733_v47  ;;  %v4182_v4 = vadd.f32 %v4181_v58, %v4180_v55  ;;  %v3857_v21 = vcombine.low %v2051_v49, %v2055_v51 }
 0x3bf   : > { %3345 = vmatmul.mubr.bf16.gmra.mrb[224].mxu1 %v3833_v19 }
 0x3c0   : > { %v5964_v2 = vadd.f32 %v4182_v4, %v5735_v62  ;;  %3886 = vmatprep.mubr.msk.bf16.mxu1 %vm2696_vm3, %v3842_v57  ;;  %v3866_v57 = vcombine.high %v2059_v8, %v2063_v46 }
 0x3c2   : > { %v4199_v61 = vpop.f32.mrb[120].mxu1 }
 0x3c3   : > { %v4200_v52 = vpop.f32.mrb[121].mxu1 }
 0x3c4   : > { %v4201_v47 = vadd.f32 %v4200_v52, %v4199_v61  ;;  %v4202_v7 = vpop.f32.mrb[122].mxu1  ;;  %v2071_v61 = vld [vmem:[%s6165_s2 + $0x3f8] sm:$0xff] }
 0x3c5   : > { %v4203_v33 = vpop.f32.mrb[123].mxu1 }
 0x3c6   : > { %v4204_v60 = vadd.f32 %v4203_v33, %v4202_v7  ;;  %v5974_v62 = vadd.f32 %v4201_v47, %v5819_v24  ;;  %v3865_v47 = vcombine.low %v2059_v8, %v2063_v46 }
 0x3c7   : > { %3353 = vmatmul.mubr.bf16.gmra.mrb[228].mxu1 %v3841_v56 }
 0x3c8   : > { %3887 = vmatprep.mubr.msk.bf16.mxu1 %vm2696_vm3, %v3850_v43  ;;  %v5978_v29 = vadd.f32 %v4204_v60, %v5822_v1  ;;  %v3874_v43 = vcombine.high %v2067_v54, %v2071_v61 }
 0x3ca   : > { %v4205_v17 = vpop.f32.mrb[124].mxu1 }
 0x3cb   : > { %v4206_v6 = vpop.f32.mrb[125].mxu1 }
 0x3cc   : > { %v4207_v0 = vadd.f32 %v4206_v6, %v4205_v17  ;;  %v4208_v24 = vpop.f32.mrb[126].mxu1  ;;  %v3873_v6 = vcombine.low %v2067_v54, %v2071_v61 }
 0x3cd   : > { %v4209_v50 = vpop.f32.mrb[127].mxu1 }
 0x3ce   : > { %v4210_v53 = vadd.f32 %v4209_v50, %v4208_v24  ;;  %v5987_v45 = vadd.f32 %v4207_v0, %v5838_v28 }
 0x3cf   : > { %3361 = vmatmul.mubr.bf16.gmra.mrb[232].mxu1 %v3849_v5 }
 0x3d0   : > { %3888 = vmatprep.mubr.msk.bf16.mxu1 %vm2696_vm3, %v3858_v10  ;;  %v5991_v1 = vadd.f32 %v4210_v53, %v5841_v36 }
 0x3d2   : > { %v4211_v14 = vpop.f32.mrb[128].mxu1 }
 0x3d3   : > { %v4212_v19 = vpop.f32.mrb[129].mxu1 }
 0x3d4   : > { %v4213_v55 = vadd.f32 %v4212_v19, %v4211_v14  ;;  %v4214_v28 = vpop.f32.mrb[130].mxu1 }
 0x3d5   : > { %v4215_v58 = vpop.f32.mrb[131].mxu1 }
 0x3d6   : > { %v4216_v4 = vadd.f32 %v4215_v58, %v4214_v28  ;;  %v6000_v22 = vadd.f32 %v4213_v55, %v5781_v40 }
 0x3d7   : > { %3369 = vmatmul.mubr.bf16.gmra.mrb[236].mxu1 %v3857_v21 }
 0x3d8   : > { %3889 = vmatprep.mubr.msk.bf16.mxu1 %vm2696_vm3, %v3866_v57  ;;  %v6004_v36 = vadd.f32 %v4216_v4, %v5784_v63 }
 0x3da   : > { %v4217_v52 = vpop.f32.mrb[132].mxu1 }
 0x3db   : > { %v4218_v56 = vpop.f32.mrb[133].mxu1 }
 0x3dc   : > { %v4219_v7 = vadd.f32 %v4218_v56, %v4217_v52  ;;  %v4220_v40 = vpop.f32.mrb[134].mxu1 }
 0x3dd   : > { %v4221_v33 = vpop.f32.mrb[135].mxu1 }
 0x3de   : > { %v4222_v60 = vadd.f32 %v4221_v33, %v4220_v40  ;;  %v6013_v49 = vadd.f32 %v4219_v7, %v5794_v34 }
 0x3df   : > { %3377 = vmatmul.mubr.bf16.gmra.mrb[240].mxu1 %v3865_v47 }
 0x3e0   : > { %3890 = vmatprep.mubr.msk.bf16.mxu1 %vm2696_vm3, %v3874_v43  ;;  %v6017_v63 = vadd.f32 %v4222_v60, %v5797_v41 }
 0x3e2   : > { %v4223_v51 = vpop.f32.mrb[136].mxu1 }
 0x3e3   : > { %v4224_v17 = vpop.f32.mrb[137].mxu1 }
 0x3e4   : > { %v4225_v5 = vadd.f32 %v4224_v17, %v4223_v51  ;;  %v4226_v0 = vpop.f32.mrb[138].mxu1 }
 0x3e5   : > { %v4227_v24 = vpop.f32.mrb[139].mxu1 }
 0x3e6   : > { %v4228_v10 = vadd.f32 %v4227_v24, %v4226_v0  ;;  %v6020_v50 = vadd.f32 %v4225_v5, %v5806_v42 }
 0x3e7   : > { %3385 = vmatmul.mubr.bf16.gmra.mrb[244].mxu1 %v3873_v6 }
 0x3e8   : > { %v6023_v34 = vadd.f32 %v4228_v10, %v5809_v23 }
 0x3ea   : > { %v4229_v53 = vpop.f32.mrb[140].mxu1 }
 0x3eb   : > { %v4230_v8 = vpop.f32.mrb[141].mxu1 }
 0x3ec   : > { %v4231_v46 = vadd.f32 %v4230_v8, %v4229_v53  ;;  %v4232_v14 = vpop.f32.mrb[142].mxu1 }
 0x3ed   : > { %v4233_v41 = vpop.f32.mrb[143].mxu1 }
 0x3ee   : > { %v4234_v19 = vadd.f32 %v4233_v41, %v4232_v14  ;;  %v6026_v21 = vadd.f32 %v4231_v46, %v5825_v25 }
 0x3f0   : > { %v6029_v55 = vadd.f32 %v4234_v19, %v5828_v15 }
 0x3f2   : > { %v4235_v28 = vpop.f32.mrb[144].mxu1 }
 0x3f3   : > { %v4236_v57 = vpop.f32.mrb[145].mxu1 }
 0x3f4   : > { %v4237_v42 = vadd.f32 %v4236_v57, %v4235_v28  ;;  %v4238_v58 = vpop.f32.mrb[146].mxu1 }
 0x3f5   : > { %v4239_v4 = vpop.f32.mrb[147].mxu1 }
 0x3f6   : > { %v4240_v54 = vadd.f32 %v4239_v4, %v4238_v58  ;;  %v6032_v23 = vadd.f32 %v4237_v42, %v5844_v20 }
 0x3f8   : > { %v6035_v61 = vadd.f32 %v4240_v54, %v5847_v3 }
 0x3fa   : > { %v4241_v52 = vpop.f32.mrb[148].mxu1 }
 0x3fb   : > { %v4242_v56 = vpop.f32.mrb[149].mxu1 }
 0x3fc   : > { %v4243_v47 = vadd.f32 %v4242_v56, %v4241_v52  ;;  %v4244_v25 = vpop.f32.mrb[150].mxu1 }
 0x3fd   : > { %v4245_v7 = vpop.f32.mrb[151].mxu1 }
 0x3fe   : > { %v4246_v40 = vadd.f32 %v4245_v7, %v4244_v25  ;;  %v6038_v15 = vadd.f32 %v4243_v47, %v5857_v16 }
 0x400   : > { %v6041_v43 = vadd.f32 %v4246_v40, %v5860_v30 }
 0x402   : > { %v4247_v33 = vpop.f32.mrb[152].mxu1 }
 0x403   : > { %v4248_v60 = vpop.f32.mrb[153].mxu1 }
 0x404   : > { %v4249_v51 = vadd.f32 %v4248_v60, %v4247_v33  ;;  %v4250_v20 = vpop.f32.mrb[154].mxu1 }
 0x405   : > { %v4251_v17 = vpop.f32.mrb[155].mxu1 }
 0x406   : > { %v4252_v6 = vadd.f32 %v4251_v17, %v4250_v20  ;;  %v6044_v3 = vadd.f32 %v4249_v51, %v5870_v18 }
 0x408   : > { %v6047_v5 = vadd.f32 %v4252_v6, %v5873_v32 }
 0x40a   : > { %v4253_v0 = vpop.f32.mrb[156].mxu1 }
 0x40b   : > { %v4254_v24 = vpop.f32.mrb[157].mxu1 }
 0x40c   : > { %v4255_v10 = vadd.f32 %v4254_v24, %v4253_v0  ;;  %v4256_v16 = vpop.f32.mrb[158].mxu1 }
 0x40d   : > { %v4257_v53 = vpop.f32.mrb[159].mxu1 }
 0x40e   : > { %v4258_v8 = vadd.f32 %v4257_v53, %v4256_v16  ;;  %v6050_v30 = vadd.f32 %v4255_v10, %v5883_v26 }
 0x410   : > { %v6053_v46 = vadd.f32 %v4258_v8, %v5886_v11 }
 0x412   : > { %v4259_v14 = vpop.f32.mrb[160].mxu1 }
 0x413   : > { %v4260_v41 = vpop.f32.mrb[161].mxu1 }
 0x414   : > { %v4261_v19 = vadd.f32 %v4260_v41, %v4259_v14  ;;  %v4262_v18 = vpop.f32.mrb[162].mxu1 }
 0x415   : > { %v4263_v28 = vpop.f32.mrb[163].mxu1 }
 0x416   : > { %v4264_v57 = vadd.f32 %v4263_v28, %v4262_v18  ;;  %v6056_v32 = vadd.f32 %v4261_v19, %v5896_v39 }
 0x418   : > { %v6059_v42 = vadd.f32 %v4264_v57, %v5899_v35 }
 0x41a   : > { %v4265_v58 = vpop.f32.mrb[164].mxu1 }
 0x41b   : > { %v4266_v4 = vpop.f32.mrb[165].mxu1 }
 0x41c   : > { %v4267_v54 = vadd.f32 %v4266_v4, %v4265_v58  ;;  %v4268_v26 = vpop.f32.mrb[166].mxu1 }
 0x41d   : > { %v4269_v52 = vpop.f32.mrb[167].mxu1 }
 0x41e   : > { %v4270_v56 = vadd.f32 %v4269_v52, %v4268_v26  ;;  %v6062_v11 = vadd.f32 %v4267_v54, %v5909_v31 }
 0x420   : > { %v6065_v47 = vadd.f32 %v4270_v56, %v5912_v59 }
 0x422   : > { %v4271_v25 = vpop.f32.mrb[168].mxu1 }
 0x423   : > { %v4272_v7 = vpop.f32.mrb[169].mxu1 }
 0x424   : > { %v4273_v40 = vadd.f32 %v4272_v7, %v4271_v25  ;;  %v4274_v39 = vpop.f32.mrb[170].mxu1 }
 0x425   : > { %v4275_v33 = vpop.f32.mrb[171].mxu1 }
 0x426   : > { %v4276_v60 = vadd.f32 %v4275_v33, %v4274_v39  ;;  %v6068_v35 = vadd.f32 %v4273_v40, %v5922_v27 }
 0x428   : > { %v6071_v51 = vadd.f32 %v4276_v60, %v5925_v38 }
 0x42a   : > { %v4277_v20 = vpop.f32.mrb[172].mxu1 }
 0x42b   : > { %v4278_v17 = vpop.f32.mrb[173].mxu1 }
 0x42c   : > { %v4279_v6 = vadd.f32 %v4278_v17, %v4277_v20  ;;  %v4280_v31 = vpop.f32.mrb[174].mxu1 }
 0x42d   : > { %v4281_v0 = vpop.f32.mrb[175].mxu1 }
 0x42e   : > { %v4282_v24 = vadd.f32 %v4281_v0, %v4280_v31  ;;  %v6074_v59 = vadd.f32 %v4279_v6, %v5935_v12 }
 0x430   : > { %v6077_v10 = vadd.f32 %v4282_v24, %v5938_v37 }
 0x432   : > { %v4283_v16 = vpop.f32.mrb[176].mxu1 }
 0x433   : > { %v4284_v53 = vpop.f32.mrb[177].mxu1 }
 0x434   : > { %v4285_v8 = vadd.f32 %v4284_v53, %v4283_v16  ;;  %v4286_v27 = vpop.f32.mrb[178].mxu1 }
 0x435   : > { %v4287_v14 = vpop.f32.mrb[179].mxu1 }
 0x436   : > { %v4288_v41 = vadd.f32 %v4287_v14, %v4286_v27  ;;  %v6080_v38 = vadd.f32 %v4285_v8, %v5948_v13 }
 0x438   : > { %v6083_v19 = vadd.f32 %v4288_v41, %v5951_v48 }
 0x43a   : > { %v4289_v18 = vpop.f32.mrb[180].mxu1 }
 0x43b   : > { %v4290_v28 = vpop.f32.mrb[181].mxu1 }
 0x43c   : > { %v4291_v57 = vadd.f32 %v4290_v28, %v4289_v18  ;;  %v4292_v12 = vpop.f32.mrb[182].mxu1 }
 0x43d   : > { %v4293_v58 = vpop.f32.mrb[183].mxu1 }
 0x43e   : > { %v4294_v4 = vadd.f32 %v4293_v58, %v4292_v12  ;;  %v6086_v37 = vadd.f32 %v4291_v57, %v5961_v44 }
 0x440   : > { %v6089_v54 = vadd.f32 %v4294_v4, %v5964_v2 }
 0x442   : > { %v3266_v26 = vpop.f32.mrb[184].mxu1 }
 0x443   : > { %v6092_v52 = vadd.f32 %v3266_v26, %v5974_v62  ;;  %v3268_v13 = vpop.f32.mrb[185].mxu1 }
 0x444   : > { %v3269_v56 = vpop.f32.mrb[186].mxu1 }
 0x445   : > { %v6095_v48 = vadd.f32 %v3269_v56, %v5978_v29  ;;  %v3271_v25 = vpop.f32.mrb[187].mxu1 }
 0x44a   : > { %v3274_v7 = vpop.f32.mrb[188].mxu1 }
 0x44b   : > { %v6098_v40 = vadd.f32 %v3274_v7, %v5987_v45  ;;  %v3276_v39 = vpop.f32.mrb[189].mxu1 }
 0x44c   : > { %v3277_v44 = vpop.f32.mrb[190].mxu1 }
 0x44d   : > { %v6101_v33 = vadd.f32 %v3277_v44, %v5991_v1  ;;  %v3279_v2 = vpop.f32.mrb[191].mxu1 }
 0x452   : > { %v3282_v60 = vpop.f32.mrb[192].mxu1 }
 0x453   : > { %v3283_v62 = vadd.f32 %v3282_v60, %v6000_v22  ;;  %v3284_v20 = vpop.f32.mrb[193].mxu1 }
 0x454   : > { %v3285_v17 = vpop.f32.mrb[194].mxu1 }
 0x455   : > { %v3286_v6 = vadd.f32 %v3285_v17, %v6004_v36  ;;  %3393 = vrot.lane.b32.xlu1 %v3283_v62, %s4601_s17  ;;  %v3287_v29 = vpop.f32.mrb[195].mxu1 }
 0x457   : > { %3395 = vrot.lane.b32.xlu0 %v3286_v6, %s4601_s17 }
 0x45a   : > { %v3290_v31 = vpop.f32.mrb[196].mxu1 }
 0x45b   : > { %v3291_v45 = vadd.f32 %v3290_v31, %v6013_v49  ;;  %v3292_v0 = vpop.f32.mrb[197].mxu1 }
 0x45c   : > { %v3293_v24 = vpop.f32.mrb[198].mxu1 }
 0x45d   : > { %v3294_v1 = vadd.f32 %v3293_v24, %v6017_v63  ;;  %3397 = vrot.lane.b32.xlu1 %v3291_v45, %s4601_s17  ;;  %v3295_v16 = vpop.f32.mrb[199].mxu1 }
 0x45f   : > { %3399 = vrot.lane.b32.xlu0 %v3294_v1, %s4601_s17 }
 0x462   : > { %v3298_v53 = vpop.f32.mrb[200].mxu1 }
 0x463   : > { %v3299_v22 = vadd.f32 %v3298_v53, %v6020_v50  ;;  %v3300_v8 = vpop.f32.mrb[201].mxu1 }
 0x464   : > { %v3301_v27 = vpop.f32.mrb[202].mxu1 }
 0x465   : > { %v3302_v36 = vadd.f32 %v3301_v27, %v6023_v34  ;;  %3405 = vrot.lane.b32.xlu1 %v3299_v22, %s4602_s18  ;;  %v3303_v14 = vpop.f32.mrb[203].mxu1 }
 0x467   : > { %3407 = vrot.lane.b32.xlu0 %v3302_v36, %s4602_s18 }
 0x46a   : > { %v3306_v41 = vpop.f32.mrb[204].mxu1 }
 0x46b   : > { %v3307_v49 = vadd.f32 %v3306_v41, %v6026_v21  ;;  %v3308_v18 = vpop.f32.mrb[205].mxu1 }
 0x46c   : > { %v3309_v28 = vpop.f32.mrb[206].mxu1 }
 0x46d   : > { %v3310_v63 = vadd.f32 %v3309_v28, %v6029_v55  ;;  %3409 = vrot.lane.b32.xlu1 %v3307_v49, %s4602_s18  ;;  %v3311_v57 = vpop.f32.mrb[207].mxu1 }
 0x46f   : > { %3411 = vrot.lane.b32.xlu0 %v3310_v63, %s4602_s18 }
 0x472   : > { %v3314_v12 = vpop.f32.mrb[208].mxu1 }
 0x473   : > { %v3315_v50 = vadd.f32 %v3314_v12, %v6032_v23  ;;  %v3316_v58 = vpop.f32.mrb[209].mxu1 }
 0x474   : > { %v3317_v4 = vpop.f32.mrb[210].mxu1 }
 0x475   : > { %v3318_v34 = vadd.f32 %v3317_v4, %v6035_v61  ;;  %3417 = vrot.lane.b32.xlu1 %v3315_v50, %s4603_s19  ;;  %v3319_v26 = vpop.f32.mrb[211].mxu1 }
 0x477   : > { %3419 = vrot.lane.b32.xlu0 %v3318_v34, %s4603_s19 }
 0x47a   : > { %v3322_v13 = vpop.f32.mrb[212].mxu1 }
 0x47b   : > { %v3323_v21 = vadd.f32 %v3322_v13, %v6038_v15  ;;  %v3324_v56 = vpop.f32.mrb[213].mxu1 }
 0x47c   : > { %v3325_v25 = vpop.f32.mrb[214].mxu1 }
 0x47d   : > { %v3326_v55 = vadd.f32 %v3325_v25, %v6041_v43  ;;  %3421 = vrot.lane.b32.xlu1 %v3323_v21, %s4603_s19  ;;  %v3327_v7 = vpop.f32.mrb[215].mxu1 }
 0x47f   : > { %3423 = vrot.lane.b32.xlu0 %v3326_v55, %s4603_s19 }
 0x482   : > { %v3330_v39 = vpop.f32.mrb[216].mxu1 }
 0x483   : > { %v3331_v23 = vadd.f32 %v3330_v39, %v6044_v3  ;;  %v3332_v44 = vpop.f32.mrb[217].mxu1 }
 0x484   : > { %v3333_v2 = vpop.f32.mrb[218].mxu1 }
 0x485   : > { %v3334_v61 = vadd.f32 %v3333_v2, %v6047_v5  ;;  %3429 = vrot.lane.b32.xlu1 %v3331_v23, %s4604_s20  ;;  %v3335_v60 = vpop.f32.mrb[219].mxu1 }
 0x487   : > { %3431 = vrot.lane.b32.xlu0 %v3334_v61, %s4604_s20 }
 0x48a   : > { %v3338_v62 = vpop.f32.mrb[220].mxu1 }
 0x48b   : > { %v3339_v15 = vadd.f32 %v3338_v62, %v6050_v30  ;;  %v3340_v20 = vpop.f32.mrb[221].mxu1 }
 0x48c   : > { %v3341_v17 = vpop.f32.mrb[222].mxu1 }
 0x48d   : > { %v3342_v43 = vadd.f32 %v3341_v17, %v6053_v46  ;;  %3433 = vrot.lane.b32.xlu1 %v3339_v15, %s4604_s20  ;;  %v3343_v6 = vpop.f32.mrb[223].mxu1 }
 0x48f   : > { %3435 = vrot.lane.b32.xlu0 %v3342_v43, %s4604_s20 }
 0x492   : > { %v3346_v29 = vpop.f32.mrb[224].mxu1 }
 0x493   : > { %v3347_v3 = vadd.f32 %v3346_v29, %v6056_v32  ;;  %v3348_v31 = vpop.f32.mrb[225].mxu1 }
 0x494   : > { %v3349_v45 = vpop.f32.mrb[226].mxu1 }
 0x495   : > { %v3350_v5 = vadd.f32 %v3349_v45, %v6059_v42  ;;  %3441 = vrot.lane.b32.xlu1 %v3347_v3, %s4605_s21  ;;  %v3351_v0 = vpop.f32.mrb[227].mxu1 }
 0x497   : > { %3443 = vrot.lane.b32.xlu0 %v3350_v5, %s4605_s21 }
 0x49a   : > { %v3354_v24 = vpop.f32.mrb[228].mxu1 }
 0x49b   : > { %v3355_v30 = vadd.f32 %v3354_v24, %v6062_v11  ;;  %v3356_v1 = vpop.f32.mrb[229].mxu1 }
 0x49c   : > { %v3357_v16 = vpop.f32.mrb[230].mxu1 }
 0x49d   : > { %v3358_v46 = vadd.f32 %v3357_v16, %v6065_v47  ;;  %3445 = vrot.lane.b32.xlu1 %v3355_v30, %s4605_s21  ;;  %v3359_v53 = vpop.f32.mrb[231].mxu1 }
 0x49f   : > { %3447 = vrot.lane.b32.xlu0 %v3358_v46, %s4605_s21 }
 0x4a2   : > { %v3362_v22 = vpop.f32.mrb[232].mxu1 }
 0x4a3   : > { %v3363_v32 = vadd.f32 %v3362_v22, %v6068_v35  ;;  %v3364_v8 = vpop.f32.mrb[233].mxu1 }
 0x4a4   : > { %v3365_v27 = vpop.f32.mrb[234].mxu1 }
 0x4a5   : > { %v3366_v42 = vadd.f32 %v3365_v27, %v6071_v51  ;;  %3453 = vrot.lane.b32.xlu1 %v3363_v32, %s4606_s22  ;;  %v3367_v36 = vpop.f32.mrb[235].mxu1 }
 0x4a7   : > { %3455 = vrot.lane.b32.xlu0 %v3366_v42, %s4606_s22 }
 0x4aa   : > { %v3370_v14 = vpop.f32.mrb[236].mxu1 }
 0x4ab   : > { %v3371_v11 = vadd.f32 %v3370_v14, %v6074_v59  ;;  %v3372_v41 = vpop.f32.mrb[237].mxu1 }
 0x4ac   : > { %v3373_v49 = vpop.f32.mrb[238].mxu1 }
 0x4ad   : > { %v3374_v47 = vadd.f32 %v3373_v49, %v6077_v10  ;;  %3457 = vrot.lane.b32.xlu1 %v3371_v11, %s4606_s22  ;;  %v3375_v18 = vpop.f32.mrb[239].mxu1 }
 0x4af   : > { %3459 = vrot.lane.b32.xlu0 %v3374_v47, %s4606_s22 }
 0x4b2   : > { %v3378_v28 = vpop.f32.mrb[240].mxu1 }
 0x4b3   : > { %v3379_v35 = vadd.f32 %v3378_v28, %v6080_v38  ;;  %v3380_v63 = vpop.f32.mrb[241].mxu1 }
 0x4b4   : > { %v3381_v57 = vpop.f32.mrb[242].mxu1 }
 0x4b5   : > { %v3382_v51 = vadd.f32 %v3381_v57, %v6083_v19  ;;  %3465 = vrot.lane.b32.xlu1 %v3379_v35, %s4607_s23  ;;  %v3383_v12 = vpop.f32.mrb[243].mxu1 }
 0x4b7   : > { %3467 = vrot.lane.b32.xlu0 %v3382_v51, %s4607_s23 }
 0x4ba   : > { %v3386_v50 = vpop.f32.mrb[244].mxu1 }
 0x4bb   : > { %v3387_v59 = vadd.f32 %v3386_v50, %v6086_v37  ;;  %v3388_v58 = vpop.f32.mrb[245].mxu1  ;;  %v3479_v50 = vld [vmem:[%s6166_s3 + $0x10] sm:$0xff] }
 0x4bc   : > { %v3389_v4 = vpop.f32.mrb[246].mxu1 }
 0x4bd   : > { %v3390_v10 = vadd.f32 %v3389_v4, %v6089_v54  ;;  %3469 = vrot.lane.b32.xlu1 %v3387_v59, %s4607_s23  ;;  %v3391_v34 = vpop.f32.mrb[247].mxu1 }
 0x4bf   : > { %3471 = vrot.lane.b32.xlu0 %v3390_v10, %s4607_s23  ;;  %v3480_v10 = vld [vmem:[%s6166_s3 + $0x18] sm:$0xff] }
 0x4c7   : > { %v3394_v26 = vpop.permute.xlu1 %3393 }
 0x4c8   : > { %v3401_v20 = vadd.f32 %v3394_v26, %v6092_v52 }
 0x4c9   : > { %v3396_v38 = vpop.permute.xlu0 %3395 }
 0x4ca   : > { %v3402_v43 = vadd.f32 %v3396_v38, %v6095_v48  ;;  %v3477_v48 = vld [vmem:[%s6166_s3] sm:$0xff] }
 0x4cf   : > { %v3398_v13 = vpop.permute.xlu1 %3397 }
 0x4d0   : > { %v3403_v30 = vadd.f32 %v3398_v13, %v6098_v40  ;;  %v3478_v40 = vld [vmem:[%s6166_s3 + $0x8] sm:$0xff] }
 0x4d1   : > { %v3400_v21 = vpop.permute.xlu0 %3399 }
 0x4d2   : > { %v3404_v53 = vadd.f32 %v3400_v21, %v6101_v33 }
 0x4d7   : > { %v3406_v56 = vpop.permute.xlu1 %3405 }
 0x4d8   : > { %v3413_v6 = vadd.f32 %v3406_v56, %v3401_v20 }
 0x4d9   : > { %v3408_v19 = vpop.permute.xlu0 %3407 }
 0x4da   : > { %v3414_v3 = vadd.f32 %v3408_v19, %v3402_v43 }
 0x4df   : > { %v3410_v25 = vpop.permute.xlu1 %3409 }
 0x4e0   : > { %v3415_v52 = vadd.f32 %v3410_v25, %v3403_v30 }
 0x4e1   : > { %v3412_v55 = vpop.permute.xlu0 %3411 }
 0x4e2   : > { %v3416_v27 = vadd.f32 %v3412_v55, %v3404_v53 }
 0x4e7   : > { %v3418_v7 = vpop.permute.xlu1 %3417 }
 0x4e8   : > { %v3425_v31 = vadd.f32 %v3418_v7, %v3413_v6 }
 0x4e9   : > { %v3420_v39 = vpop.permute.xlu0 %3419 }
 0x4ea   : > { %v3426_v5 = vadd.f32 %v3420_v39, %v3414_v3 }
 0x4ef   : > { %v3422_v23 = vpop.permute.xlu1 %3421 }
 0x4f0   : > { %v3427_v42 = vadd.f32 %v3422_v23, %v3415_v52 }
 0x4f1   : > { %v3424_v44 = vpop.permute.xlu0 %3423 }
 0x4f2   : > { %v3428_v11 = vadd.f32 %v3424_v44, %v3416_v27 }
 0x4f7   : > { %v3430_v37 = vpop.permute.xlu1 %3429 }
 0x4f8   : > { %v3437_v0 = vadd.f32 %v3430_v37, %v3425_v31 }
 0x4f9   : > { %v3432_v2 = vpop.permute.xlu0 %3431 }
 0x4fa   : > { %v3438_v1 = vadd.f32 %v3432_v2, %v3426_v5 }
 0x4ff   : > { %v3434_v61 = vpop.permute.xlu1 %3433 }
 0x500   : > { %v3439_v41 = vadd.f32 %v3434_v61, %v3427_v42 }
 0x501   : > { %v3436_v60 = vpop.permute.xlu0 %3435 }
 0x502   : > { %v3440_v18 = vadd.f32 %v3436_v60, %v3428_v11 }
 0x507   : > { %v3442_v54 = vpop.permute.xlu1 %3441 }
 0x508   : > { %v3449_v16 = vadd.f32 %v3442_v54, %v3437_v0 }
 0x509   : > { %v3444_v62 = vpop.permute.xlu0 %3443 }
 0x50a   : > { %v3450_v22 = vadd.f32 %v3444_v62, %v3438_v1 }
 0x50f   : > { %v3446_v15 = vpop.permute.xlu1 %3445 }
 0x510   : > { %v3451_v28 = vadd.f32 %v3446_v15, %v3439_v41 }
 0x511   : > { %v3448_v17 = vpop.permute.xlu0 %3447 }
 0x512   : > { %v3452_v57 = vadd.f32 %v3448_v17, %v3440_v18 }
 0x517   : > { %v3454_v29 = vpop.permute.xlu1 %3453 }
 0x518   : > { %v3461_v32 = vadd.f32 %v3454_v29, %v3449_v16 }
 0x519   : > { %v3456_v45 = vpop.permute.xlu0 %3455 }
 0x51a   : > { %v3462_v36 = vadd.f32 %v3456_v45, %v3450_v22 }
 0x51f   : > { %v3458_v24 = vpop.permute.xlu1 %3457 }
 0x520   : > { %v3463_v51 = vadd.f32 %v3458_v24, %v3451_v28 }
 0x521   : > { %v3460_v46 = vpop.permute.xlu0 %3459 }
 0x522   : > { %v3464_v58 = vadd.f32 %v3460_v46, %v3452_v57 }
 0x527   : > { %v3466_v8 = vpop.permute.xlu1 %3465 }
 0x528   : > { %v3473_v14 = vadd.f32 %v3466_v8, %v3461_v32 }
 0x529   : > { %v3468_v33 = vpop.permute.xlu0 %3467 }
 0x52a   : > { %v3481_v49 = vadd.f32 %v3477_v48, %v3473_v14  ;;  %v3474_v47 = vadd.f32 %v3468_v33, %v3462_v36 }
 0x52c   : > { %v3486_v35 = vsel %vm3485_vm15, %v3481_v49, 0.0  ;;  %v3482_v63 = vadd.f32 %v3478_v40, %v3474_v47 }
 0x52d   : > { %3490 = vst [vmem:[%s197_s30] sm:$0xff] %v3486_v35 }
 0x52e   : > { %v3487_v12 = vsel %vm3485_vm15, %v3482_v63, 0.0 }
 0x52f   : > { %3491 = vst [vmem:[%s197_s30 + $0x8] sm:$0xff] %v3487_v12  ;;  %v3470_v59 = vpop.permute.xlu1 %3469 }
 0x530   : > { %v3475_v4 = vadd.f32 %v3470_v59, %v3463_v51 }
 0x531   : > { %v3472_v34 = vpop.permute.xlu0 %3471 }
 0x532   : > { %v3483_v26 = vadd.f32 %v3479_v50, %v3475_v4  ;;  %v3476_v38 = vadd.f32 %v3472_v34, %v3464_v58 }
 0x534   : > { %v3488_v13 = vsel %vm3485_vm15, %v3483_v26, 0.0  ;;  %v3484_v21 = vadd.f32 %v3480_v10, %v3476_v38 }
 0x535   : > { %3492 = vst [vmem:[%s197_s30 + $0x10] sm:$0xff] %v3488_v13 }
 0x536   : > { %v3489_v56 = vsel %vm3485_vm15, %v3484_v21, 0.0 }
 0x537   : > { %3493 = vst [vmem:[%s197_s30 + $0x18] sm:$0xff] %v3489_v56 }
 0x538 PF: > { %s14_s15 = sadd.s32 1, %s4596_s15  }
 0x539   : > { %p11_p4 = scmp.ge.s32.totalorder %s14_s15, 4  }
 0x53b   :  { %13 = sbr.rel (!%p11_p4) target bundleno = 1 (0x1), region = 66 }

// kernel: ginconvnet_forward.3
= control target key start
LH: loop header
LB: loop body
LE: loop exit
PB: predicated region body
PF: predicated region fallthrough
CT: control target
= control target key end

     0   :  { %v8817_v3 = vmov 0.0   ;;  %vm153_vm0 = vcmask 261120   ;;  %vm346_vm1 = vcmask 523264   ;;  %vm8819_vm2 = vmmov 0   ;;  %s12048_s1 = inlined_call_operand.vmem [shape: f32[32,320], index: 1, kind: input, shape index: {}]   ;;  %s12049_s0 = inlined_call_operand.vmem [shape: f32[32,32], index: 0, kind: input, shape index: {}]   ;;  %s12050_s2 = inlined_call_operand.vmem [shape: f32[320,32], index: 2, kind: input, shape index: {}]   ;;  %s12051_s4 = inlined_call_operand.vmem [shape: f32[32,32], index: 4, kind: input, shape index: {}]   ;;  %s12052_s3 = inlined_call_operand.vmem [shape: f32[1,32], index: 3, kind: input, shape index: {}]   ;;  %s12053_s5 = inlined_call_operand.vmem [shape: f32[1,32], index: 5, kind: input, shape index: {}]   ;;  %s12054_s6 = inlined_call_operand.vmem [shape: f32[1,32], index: 6, kind: input, shape index: {}]   ;;  %s12055_s7 = inlined_call_operand.vmem [shape: f32[1,32], index: 7, kind: input, shape index: {}]   ;;  %s12056_s8 = inlined_call_operand.vmem [shape: f32[4,32,32], index: 8, kind: input, shape index: {}]   ;;  %s12057_s10 = inlined_call_operand.vmem [shape: f32[4,32,32], index: 10, kind: input, shape index: {}]   ;;  %s12058_s9 = inlined_call_operand.vmem [shape: f32[4,1,32], index: 9, kind: input, shape index: {}]   ;;  %s12059_s11 = inlined_call_operand.vmem [shape: f32[4,1,32], index: 11, kind: input, shape index: {}]   ;;  %s12060_s12 = inlined_call_operand.vmem [shape: f32[4,1,32], index: 12, kind: input, shape index: {}]   ;;  %s12061_s13 = inlined_call_operand.vmem [shape: f32[4,1,32], index: 13, kind: input, shape index: {}]   ;;  %s12062_s18 = inlined_call_operand.vmem [shape: bf16[4096,128], index: 18, kind: input, shape index: {}]   ;;  %s12063_s15 = inlined_call_operand.vmem [shape: f32[32,128], index: 15, kind: input, shape index: {}]   ;;  %s12064_s14 = inlined_call_operand.vmem [shape: f32[2,32], index: 14, kind: input, shape index: {}]   ;;  %s12065_s17 = inlined_call_operand.vmem [shape: f32[2,4096], index: 17, kind: input, shape index: {}]   ;;  %s12066_s19 = inlined_call_operand.vmem [shape: f32[1,128], index: 19, kind: input, shape index: {}]   ;;  %s12067_s21 = inlined_call_operand.vmem [shape: f32[128,1024], index: 21, kind: input, shape index: {}]   ;;  %s12068_s20 = inlined_call_operand.vmem [shape: f32[128,1024], index: 20, kind: input, shape index: {}]   ;;  %s12069_s16 = inlined_call_operand.vmem [shape: f32[1,128], index: 16, kind: input, shape index: {}]   ;;  %s12070_s23 = inlined_call_operand.vmem [shape: f32[1024,256], index: 23, kind: input, shape index: {}]   ;;  %s12071_s22 = inlined_call_operand.vmem [shape: f32[1,1024], index: 22, kind: input, shape index: {}]   ;;  %s12072_s25 = inlined_call_operand.vmem [shape: f32[256,1], index: 25, kind: input, shape index: {}]   ;;  %s12073_s24 = inlined_call_operand.vmem [shape: f32[1,256], index: 24, kind: input, shape index: {}]   ;;  %s12074_s26 = inlined_call_operand.<no memory space> [shape: f32[1,1], index: 26, kind: input, shape index: {}]   ;;  %s12075_s27 = inlined_call_operand.vmem [shape: f32[2,1], index: 27, kind: output, shape index: {}]  }
   0x1   :  { %12084 = sst [smem:[#allocation3_spill]] %s12048_s1  ;;  %230 = vmatprep.mubr.f32.mxu1 %v8817_v3  ;;  %vm6617_vm3 = vcmask 1024  }
   0x2   :  { %12085 = sst [smem:[#allocation4_spill]] %s12049_s0 }
   0x3   :  { %12086 = sst [smem:[#allocation5_spill]] %s12050_s2  ;;  %s12097_s2 = sld [smem:[#allocation4_spill]] }
   0x4   :  { %12087 = sst [smem:[#allocation6_spill]] %s12051_s4 }
   0x5   :  { %12088 = sst [smem:[#allocation7_spill]] %s12052_s3  ;;  %s12098_s3 = sld [smem:[#allocation5_spill]] }
   0x6   :  { %12089 = sst [smem:[#allocation8_spill]] %s12053_s5 }
   0x7   :  { %12090 = sst [smem:[#allocation9_spill]] %s12054_s6  ;;  %s12101_s30 = sld [smem:[#allocation8_spill]] }
   0x8   :  { %12091 = sst [smem:[#allocation10_spill]] %s12055_s7 }
   0x9   :  { %12092 = sst [smem:[#allocation11_spill]] %s12056_s8  ;;  %v9001_v18 = vld [vmem:[%s12097_s2] sm:$0xff]  ;;  %v9015_v22 = vld [vmem:[%s12097_s2 + $0x8] sm:$0xff]  ;;  %v9023_v24 = vld [vmem:[%s12097_s2 + $0x10] sm:$0xff]  ;;  %s12103_s28 = sld [smem:[#allocation10_spill]] }
   0xa   :  { %12093 = sst [smem:[#allocation12_spill]] %s12057_s10  ;;  %s12096_s8 = sld [smem:[#allocation3_spill]]  ;;  %v9031_v25 = vld [vmem:[%s12097_s2 + $0x18] sm:$0xff] }
   0xb   :  { %12094 = sst [smem:[#allocation13_spill]] %s12058_s9  ;;  %v121_v20 = vld [vmem:[%s12098_s3 + $0x80] sm:$0xff]  ;;  %v122_v21 = vld [vmem:[%s12098_s3 + $0x88] sm:$0xff]  ;;  %v123_v28 = vld [vmem:[%s12098_s3 + $0x90] sm:$0xff]  ;;  %s12104_s29 = sld [smem:[#allocation11_spill]] }
   0xc   :  { %12095 = sst [smem:[#allocation14_spill]] %s12059_s11  ;;  %v7825_v23 = vpack.c.bf16 %v122_v21, %v121_v20  ;;  %v105_v26 = vld [vmem:[%s12098_s3] sm:$0xff]  ;;  %v106_v27 = vld [vmem:[%s12098_s3 + $0x8] sm:$0xff]  ;;  %v124_v29 = vld [vmem:[%s12098_s3 + $0x98] sm:$0xff]  ;;  %s12100_s11 = sld [smem:[#allocation7_spill]] }
   0xd   :  { %v7827_v30 = vpack.c.bf16 %v106_v27, %v105_v26  ;;  %v7829_v31 = vpack.c.bf16 %v124_v29, %v123_v28  ;;  %v107_v32 = vld [vmem:[%s12098_s3 + $0x10] sm:$0xff]  ;;  %v108_v33 = vld [vmem:[%s12098_s3 + $0x18] sm:$0xff]  ;;  %v125_v34 = vld [vmem:[%s12098_s3 + $0xa0] sm:$0xff]  ;;  %s12106_s4 = sld [smem:[#allocation13_spill]]  ;;  %s12107_s6 = sld [smem:[#allocation14_spill]] }
   0xe   :  { %v126_v35 = vld [vmem:[%s12098_s3 + $0xa8] sm:$0xff]  ;;  %v7831_v36 = vpack.c.bf16 %v108_v33, %v107_v32  ;;  %v109_v38 = vld [vmem:[%s12098_s3 + $0x20] sm:$0xff]  ;;  %v127_v40 = vld [vmem:[%s12098_s3 + $0xb0] sm:$0xff] }
   0xf   :  { %v7833_v37 = vpack.c.bf16 %v126_v35, %v125_v34  ;;  %v110_v39 = vld [vmem:[%s12098_s3 + $0x28] sm:$0xff]  ;;  %v128_v41 = vld [vmem:[%s12098_s3 + $0xb8] sm:$0xff]  ;;  %v111_v44 = vld [vmem:[%s12098_s3 + $0x30] sm:$0xff] }
  0x10   :  { %v94_v0 = vld [vmem:[%s12096_s8 + $0x8] sm:$0xff]  ;;  %v97_v1 = vld [vmem:[%s12096_s8 + $0x20] sm:$0xff]  ;;  %v96_v5 = vld [vmem:[%s12096_s8 + $0x18] sm:$0xff]  ;;  %v7835_v42 = vpack.c.bf16 %v110_v39, %v109_v38  ;;  %v7837_v43 = vpack.c.bf16 %v128_v41, %v127_v40 }
  0x11   :  { %v93_v2 = vld [vmem:[%s12096_s8] sm:$0xff]  ;;  %v7809_v4 = vpack.c.bf16 %v97_v1, %v94_v0  ;;  %v100_v6 = vld [vmem:[%s12096_s8 + $0x38] sm:$0xff]  ;;  %v103_v7 = vld [vmem:[%s12096_s8 + $0x50] sm:$0xff] }
  0x12   :  { %v7811_v8 = vpack.c.bf16 %v96_v5, %v93_v2  ;;  %v7813_v9 = vpack.c.bf16 %v103_v7, %v100_v6  ;;  %v99_v10 = vld [vmem:[%s12096_s8 + $0x30] sm:$0xff]  ;;  %v102_v11 = vld [vmem:[%s12096_s8 + $0x48] sm:$0xff]  ;;  %v101_v16 = vld [vmem:[%s12096_s8 + $0x40] sm:$0xff] }
  0x13   :  { %7810 = vmatprep.subr.bf16.mxu1 %v7809_v4  ;;  %v95_v12 = vld [vmem:[%s12096_s8 + $0x10] sm:$0xff]  ;;  %v98_v13 = vld [vmem:[%s12096_s8 + $0x28] sm:$0xff]  ;;  %v7815_v14 = vpack.c.bf16 %v102_v11, %v99_v10  ;;  %v104_v17 = vld [vmem:[%s12096_s8 + $0x58] sm:$0xff]  ;;  %s12099_s8 = sld [smem:[#allocation6_spill]] }
  0x14   :  { %7812 = vmatpush1.bf16.msra.mxu1 %v7811_v8  ;;  %v7817_v15 = vpack.c.bf16 %v98_v13, %v95_v12  ;;  %v7821_v19 = vpack.c.bf16 %v104_v17, %v101_v16  ;;  %v112_v45 = vld [vmem:[%s12098_s3 + $0x38] sm:$0xff]  ;;  %v129_v46 = vld [vmem:[%s12098_s3 + $0xc0] sm:$0xff]  ;;  %v130_v47 = vld [vmem:[%s12098_s3 + $0xc8] sm:$0xff] }
  0x15   :  { %7814 = vmatprep.subr.bf16.mxu1 %v7813_v9  ;;  %v7839_v48 = vpack.c.bf16 %v112_v45, %v111_v44  ;;  %v7841_v49 = vpack.c.bf16 %v130_v47, %v129_v46  ;;  %v113_v50 = vld [vmem:[%s12098_s3 + $0x40] sm:$0xff]  ;;  %v114_v51 = vld [vmem:[%s12098_s3 + $0x48] sm:$0xff]  ;;  %v131_v52 = vld [vmem:[%s12098_s3 + $0xd0] sm:$0xff] }
  0x16   :  { %v132_v53 = vld [vmem:[%s12098_s3 + $0xd8] sm:$0xff]  ;;  %v7843_v54 = vpack.c.bf16 %v114_v51, %v113_v50  ;;  %v115_v56 = vld [vmem:[%s12098_s3 + $0x50] sm:$0xff]  ;;  %v133_v58 = vld [vmem:[%s12098_s3 + $0xe0] sm:$0xff] }
  0x17   :  { %v7845_v55 = vpack.c.bf16 %v132_v53, %v131_v52  ;;  %v116_v57 = vld [vmem:[%s12098_s3 + $0x58] sm:$0xff]  ;;  %v134_v59 = vld [vmem:[%s12098_s3 + $0xe8] sm:$0xff]  ;;  %v117_v62 = vld [vmem:[%s12098_s3 + $0x60] sm:$0xff] }
  0x18   :  { %7816 = vmatpush1.bf16.msra.mxu1 %v7815_v14  ;;  %v7847_v60 = vpack.c.bf16 %v116_v57, %v115_v56  ;;  %v7849_v61 = vpack.c.bf16 %v134_v59, %v133_v58  ;;  %v118_v63 = vld [vmem:[%s12098_s3 + $0x68] sm:$0xff]  ;;  %v135_v0 = vld [vmem:[%s12098_s3 + $0xf0] sm:$0xff]  ;;  %v136_v1 = vld [vmem:[%s12098_s3 + $0xf8] sm:$0xff] }
  0x19   :  { %7818 = vmatprep.subr.bf16.mxu1 %v7817_v15  ;;  %v7851_v2 = vpack.c.bf16 %v118_v63, %v117_v62  ;;  %v7853_v4 = vpack.c.bf16 %v136_v1, %v135_v0  ;;  %v119_v5 = vld [vmem:[%s12098_s3 + $0x70] sm:$0xff]  ;;  %v120_v6 = vld [vmem:[%s12098_s3 + $0x78] sm:$0xff]  ;;  %v137_v8 = vld [vmem:[%s12098_s3 + $0x100] sm:$0xff] }
  0x1a   :  { %v7855_v7 = vpack.c.bf16 %v120_v6, %v119_v5  ;;  %v138_v9 = vld [vmem:[%s12098_s3 + $0x108] sm:$0xff]  ;;  %v139_v11 = vld [vmem:[%s12098_s3 + $0x110] sm:$0xff]  ;;  %v140_v12 = vld [vmem:[%s12098_s3 + $0x118] sm:$0xff] }
  0x1b   :  { %6623 = vmatmul.mubr.msk.f32.vlgmr.msra.gmra.mrb[0].mxu1 %vm153_vm0, %v9001_v18  ;;  %v7857_v10 = vpack.c.bf16 %v138_v9, %v137_v8  ;;  %v141_v16 = vld [vmem:[%s12098_s3 + $0x120] sm:$0xff]  ;;  %v142_v17 = vld [vmem:[%s12098_s3 + $0x128] sm:$0xff]  ;;  %v144_v26 = vld [vmem:[%s12098_s3 + $0x138] sm:$0xff] }
  0x1c   :  { %7820 = vmatpush3.bf16.msra.mxu1 %v7817_v15  ;;  %236 = vmatprep.mubr.f32.mxu1 %v8817_v3  ;;  %v7861_v15 = vpack.c.bf16 %v140_v12, %v139_v11  ;;  %v7865_v21 = vpack.c.bf16 %v142_v17, %v141_v16  ;;  %v148_v39 = vld [vmem:[%s12099_s8 + $0x10] sm:$0xff]  ;;  %v149_v40 = vld [vmem:[%s12099_s8 + $0x18] sm:$0xff]  ;;  %v6631_v53 = vld [vmem:[%s12100_s11] ss:$0 sm:$0xff] }
  0x1d   :  { %7822 = vmatprep.subr.bf16.mxu1 %v7821_v19  ;;  %v7877_v41 = vpack.c.bf16 %v149_v40, %v148_v39  ;;  %v6636_v8 = vld [vmem:[%s12101_s30] ss:$0 sm:$0xff]  ;;  %v662_v40 = vld [vmem:[%s12104_s29 + $0x10] sm:$0xff] }
  0x1f   :  { %6624 = vmatmul.mubr.msk.f32.gmra.mrb[2].mxu1 %vm153_vm0, %v9015_v22 }
  0x20   :  { %242 = vmatprep.mubr.f32.mxu1 %v8817_v3  ;;  %7824 = vmatpush3.bf16.msra.mxu1 %v7821_v19 }
  0x21   :  { %7826 = vmatprep.subr.bf16.mxu1 %v7825_v23  ;;  %v143_v23 = vld [vmem:[%s12098_s3 + $0x130] sm:$0xff] }
  0x22   :  { %v7869_v29 = vpack.c.bf16 %v144_v26, %v143_v23 }
  0x23   :  { %6625 = vmatmul.mubr.msk.f32.gmra.mrb[4].mxu1 %vm153_vm0, %v9023_v24 }
  0x24   :  { %248 = vmatprep.mubr.f32.mxu1 %v8817_v3 }
  0x27   :  { %6626 = vmatmul.mubr.msk.f32.gmra.mrb[6].mxu1 %vm153_vm0, %v9031_v25 }
  0x28   :  { %7577 = vmatprep.mubr.msk.f32.mxu1 %vm153_vm0, %v9001_v18 }
  0x2b   :  { %7578 = vmatmul.mubr.msk.f32.vlgmr.msra.gmra.mrb[8].mxu1 %vm153_vm0, %v9015_v22 }
  0x2c   :  { %7580 = vmatprep.mubr.msk.f32.mxu1 %vm153_vm0, %v9023_v24  ;;  %7828 = vmatpush3.bf16.msra.mxu1 %v7827_v30 }
  0x2d   :  { %7830 = vmatprep.subr.bf16.mxu1 %v7829_v31 }
  0x2f   :  { %7581 = vmatmul.mubr.msk.f32.gmra.mrb[10].mxu1 %vm153_vm0, %v9031_v25 }
  0x30   :  { %7832 = vmatpush3.bf16.msra.mxu1 %v7831_v36  ;;  %v146_v36 = vld [vmem:[%s12099_s8] sm:$0xff] }
  0x31   :  { %7834 = vmatprep.subr.bf16.mxu1 %v7833_v37  ;;  %v147_v37 = vld [vmem:[%s12099_s8 + $0x8] sm:$0xff]  ;;  %s12102_s8 = sld [smem:[#allocation9_spill]] }
  0x32   :  { %v7873_v38 = vpack.c.bf16 %v147_v37, %v146_v36  ;;  %v661_v36 = vld [vmem:[%s12104_s29 + $0x8] sm:$0xff] }
  0x34   :  { %7836 = vmatpush3.bf16.msra.mxu1 %v7835_v42 }
  0x35   :  { %7838 = vmatprep.subr.bf16.mxu1 %v7837_v43 }
  0x37   :  { %v6641_v12 = vld [vmem:[%s12102_s8] ss:$0 sm:$0xff]  ;;  %s12105_s8 = sld [smem:[#allocation12_spill]] }
  0x38   :  { %7840 = vmatpush3.bf16.msra.mxu1 %v7839_v48 }
  0x39   :  { %7842 = vmatprep.subr.bf16.mxu1 %v7841_v49 }
  0x3c   :  { %7844 = vmatpush3.bf16.msra.mxu1 %v7843_v54 }
  0x3d   :  { %7846 = vmatprep.subr.bf16.mxu1 %v7845_v55 }
  0x40   :  { %7848 = vmatpush3.bf16.msra.mxu1 %v7847_v60 }
  0x41   :  { %7850 = vmatprep.subr.bf16.mxu1 %v7849_v61 }
  0x44   :  { %7852 = vmatpush3.bf16.msra.mxu1 %v7851_v2 }
  0x45   :  { %7854 = vmatprep.subr.bf16.mxu1 %v7853_v4 }
  0x48   :  { %7856 = vmatpush3.bf16.msra.mxu1 %v7855_v7 }
  0x49   :  { %7858 = vmatprep.subr.bf16.mxu1 %v7857_v10 }
  0xee   :  { %v232_v13 = vpop.f32.mrb[0].mxu1 }
  0xef   :  { %v234_v14 = vpop.f32.mrb[1].mxu1 }
  0xf0   :  { %423 = vmatprep.mubr.f32.mxu1 %v234_v14 }
  0xf1   :  { %424 = vmatmul.mubr.f32.vlgmr.msra.gmra.mrb[12].mxu1 %v232_v13 }
  0xf2   :  { %v238_v19 = vpop.f32.mrb[2].mxu1  ;;  %7860 = vmatpush3.bf16.msra.mxu1 %v7857_v10 }
  0xf3   :  { %v240_v20 = vpop.f32.mrb[3].mxu1  ;;  %7862 = vmatprep.subr.bf16.mxu1 %v7861_v15 }
  0xf4   :  { %428 = vmatprep.mubr.f32.mxu1 %v240_v20 }
  0xf5   :  { %429 = vmatmul.mubr.f32.gmra.mrb[14].mxu1 %v238_v19 }
  0xf6   :  { %v244_v27 = vpop.f32.mrb[4].mxu1  ;;  %7864 = vmatpush3.bf16.msra.mxu1 %v7861_v15  ;;  %v6642_v15 = vld [vmem:[%s12103_s28] ss:$0 sm:$0xff] }
  0xf7   :  { %v246_v28 = vpop.f32.mrb[5].mxu1  ;;  %7866 = vmatprep.subr.bf16.mxu1 %v7865_v21 }
  0xf8   :  { %433 = vmatprep.mubr.f32.mxu1 %v246_v28 }
  0xf9   :  { %434 = vmatmul.mubr.f32.gmra.mrb[16].mxu1 %v244_v27 }
  0xfa   :  { %v250_v30 = vpop.f32.mrb[6].mxu1  ;;  %7868 = vmatpush3.bf16.msra.mxu1 %v7865_v21 }
  0xfb   :  { %v252_v31 = vpop.f32.mrb[7].mxu1  ;;  %7870 = vmatprep.subr.bf16.mxu1 %v7869_v29 }
  0xfc   :  { %438 = vmatprep.mubr.f32.mxu1 %v252_v31 }
  0xfd   :  { %439 = vmatmul.mubr.f32.gmra.mrb[18].mxu1 %v250_v30 }
  0xfe   :  { %v7579_v32 = vpop.f32.mrb[8].mxu1  ;;  %7872 = vmatpush3.bf16.msra.mxu1 %v7869_v29 }
  0xff   :  { %v321_v33 = vpop.f32.mrb[9].mxu1  ;;  %7874 = vmatprep.subr.bf16.mxu1 %v7873_v38 }
 0x100   :  { %7599 = vmatprep.mubr.msk.f32.mxu1 %vm346_vm1, %v321_v33 }
 0x101   :  { %7600 = vmatmul.mubr.msk.f32.vlgmr.msra.gmra.mrb[20].mxu1 %vm346_vm1, %v7579_v32 }
 0x102   :  { %v7582_v34 = vpop.f32.mrb[10].mxu1  ;;  %7876 = vmatpush3.bf16.msra.mxu1 %v7873_v38 }
 0x103   :  { %v331_v35 = vpop.f32.mrb[11].mxu1  ;;  %7878 = vmatprep.subr.bf16.mxu1 %v7877_v41 }
 0x104   :  { %7602 = vmatprep.mubr.msk.f32.mxu1 %vm346_vm1, %v331_v35  ;;  %v660_v35 = vld [vmem:[%s12104_s29] sm:$0xff] }
 0x105   :  { %7603 = vmatmul.mubr.msk.f32.gmra.mrb[22].mxu1 %vm346_vm1, %v7582_v34  ;;  %v7889_v39 = vpack.c.bf16 %v661_v36, %v660_v35 }
 0x106   :  { %7880 = vmatpush3.bf16.msra.mxu1 %v7877_v41  ;;  %v663_v41 = vld [vmem:[%s12104_s29 + $0x18] sm:$0xff] }
 0x1c4   :  { %v7044_v42 = vpop.f32.mrb[12].mxu1 }
 0x1c5   :  { %v7045_v43 = vpop.f32.mrb[13].mxu1 }
 0x1c6   :  { %v7046_v44 = vadd.f32 %v7045_v43, %v7044_v42  ;;  %v7893_v42 = vpack.c.bf16 %v663_v41, %v662_v40  ;;  %v665_v43 = vld [vmem:[%s12105_s8] sm:$0xff] }
 0x1c8   :  { %v7047_v45 = vpop.f32.mrb[14].mxu1  ;;  %v426_v57 = vadd.f32 %v7046_v44, %v6631_v53  ;;  %v666_v44 = vld [vmem:[%s12105_s8 + $0x8] sm:$0xff] }
 0x1c9   :  { %v7048_v46 = vpop.f32.mrb[15].mxu1 }
 0x1ca   :  { %v7049_v47 = vadd.f32 %v7048_v46, %v7047_v45  ;;  %v7897_v45 = vpack.c.bf16 %v666_v44, %v665_v43 }
 0x1cc   :  { %v7050_v48 = vpop.f32.mrb[16].mxu1  ;;  %v431_v55 = vadd.f32 %v7049_v47, %v6631_v53  ;;  %7898 = vmatprep.subr.bf16.mxu0 %v7897_v45 }
 0x1cd   :  { %v7051_v49 = vpop.f32.mrb[17].mxu1  ;;  %7900 = vmatpush3.bf16.msra.mxu0 %v7897_v45  ;;  %v6666_v45 = vld [vmem:[%s12105_s8 + $0x30] sm:$0xff] }
 0x1ce   :  { %v7052_v50 = vadd.f32 %v7051_v49, %v7050_v48 }
 0x1d0   :  { %v7053_v51 = vpop.f32.mrb[18].mxu1  ;;  %v436_v0 = vadd.f32 %v7052_v50, %v6631_v53  ;;  %v667_v50 = vld [vmem:[%s12105_s8 + $0x10] sm:$0xff] }
 0x1d1   :  { %v7054_v52 = vpop.f32.mrb[19].mxu1 }
 0x1d2   :  { %v7055_v54 = vadd.f32 %v7054_v52, %v7053_v51  ;;  %v668_v51 = vld [vmem:[%s12105_s8 + $0x18] sm:$0xff] }
 0x1d3   :  { %v7901_v52 = vpack.c.bf16 %v668_v51, %v667_v50 }
 0x1d4   :  { %v7601_v56 = vpop.f32.mrb[20].mxu1  ;;  %v441_v61 = vadd.f32 %v7055_v54, %v6631_v53  ;;  %v6647_v53 = vld [vmem:[%s12106_s4] ss:$0 sm:$0xff] }
 0x1d5   :  { %v516_v58 = vadd.f32 %v7601_v56, %v431_v55  ;;  %v510_v59 = vpop.f32.mrb[21].mxu1  ;;  %7902 = vmatprep.subr.bf16.mxu0 %v7901_v52 }
 0x1d6   :  { %v511_v60 = vadd.f32 %v510_v59, %v426_v57  ;;  %7904 = vmatpush3.bf16.msra.mxu0 %v7901_v52 }
 0x1d7   :  { %v530_v1 = vmax.f32 %v516_v58, 0.0 }
 0x1d8   :  { %v529_v62 = vmax.f32 %v511_v60, 0.0  ;;  %v7604_v63 = vpop.f32.mrb[22].mxu1 }
 0x1d9   :  { %v526_v2 = vadd.f32 %v7604_v63, %v441_v61  ;;  %v520_v4 = vpop.f32.mrb[23].mxu1 }
 0x1da   :  { %v521_v5 = vadd.f32 %v520_v4, %v436_v0  ;;  %7613 = vmatprep.mubr.msk.f32.mxu1 %vm153_vm0, %v529_v62  ;;  %v6660_v4 = vld [vmem:[%s12104_s29 + $0x28] sm:$0xff] }
 0x1db   :  { %7614 = vmatmul.mubr.msk.f32.vlgmr.msra.gmra.mrb[24].mxu1 %vm153_vm0, %v530_v1  ;;  %v532_v7 = vmax.f32 %v526_v2, 0.0  ;;  %v6659_v2 = vld [vmem:[%s12104_s29 + $0x20] sm:$0xff] }
 0x1dc   :  { %v531_v6 = vmax.f32 %v521_v5, 0.0  ;;  %v6661_v5 = vld [vmem:[%s12104_s29 + $0x30] sm:$0xff] }
 0x1de   :  { %7616 = vmatprep.mubr.msk.f32.mxu1 %vm153_vm0, %v531_v6  ;;  %v7913_v6 = vpack.c.bf16 %v6660_v4, %v6659_v2  ;;  %v6680_v4 = vld [vmem:[%s12107_s6 + $0x1] ss:$0 sm:$0xff] }
 0x1df   :  { %7617 = vmatmul.mubr.msk.f32.gmra.mrb[26].mxu1 %vm153_vm0, %v532_v7  ;;  %v6662_v7 = vld [vmem:[%s12104_s29 + $0x38] sm:$0xff] }
 0x1e0   :  { %7627 = vmatprep.mubr.msk.f32.mxu1 %vm153_vm0, %v9001_v18  ;;  %7914 = vmatprep.subr.bf16.mxu0 %v7913_v6 }
 0x2ae   :  { %v7615_v9 = vpop.f32.mrb[24].mxu1 }
 0x2af   :  { %v623_v10 = vadd.f32 %v7615_v9, %v6636_v8  ;;  %v617_v11 = vpop.f32.mrb[25].mxu1  ;;  %v6652_v9 = vld [vmem:[%s12107_s6] ss:$0 sm:$0xff] }
 0x2b0   :  { %v618_v13 = vadd.f32 %v6636_v8, %v617_v11 }
 0x2b1   :  { %v637_v14 = vmax.f32 %v623_v10, 0.0 }
 0x2b2   :  { %v636_v16 = vmax.f32 %v618_v13, 0.0  ;;  %v7618_v17 = vpop.f32.mrb[26].mxu1  ;;  %v6657_v13 = vld [vmem:[%s12060_s12] ss:$0 sm:$0xff] }
 0x2b3   :  { %v647_v19 = vmul.f32 %v6641_v12, %v637_v14  ;;  %v633_v20 = vadd.f32 %v7618_v17, %v6636_v8  ;;  %v627_v21 = vpop.f32.mrb[27].mxu1 }
 0x2b4   :  { %v646_v23 = vmul.f32 %v6641_v12, %v636_v16  ;;  %v628_v26 = vadd.f32 %v6636_v8, %v627_v21  ;;  %v7917_v8 = vpack.c.bf16 %v6662_v7, %v6661_v5  ;;  %v6658_v16 = vld [vmem:[%s12061_s13] ss:$0 sm:$0xff] }
 0x2b5   :  { %v657_v27 = vadd.f32 %v6642_v15, %v647_v19  ;;  %v639_v28 = vmax.f32 %v633_v20, 0.0 }
 0x2b6   :  { %v656_v29 = vadd.f32 %v6642_v15, %v646_v23  ;;  %v638_v30 = vmax.f32 %v628_v26, 0.0 }
 0x2b7   :  { %v649_v31 = vmul.f32 %v6641_v12, %v639_v28 }
 0x2b8   :  { %v648_v32 = vmul.f32 %v6641_v12, %v638_v30  ;;  %v7881_v33 = vpack.c.bf16 %v657_v27, %v656_v29 }
 0x2b9   :  { %v659_v34 = vadd.f32 %v6642_v15, %v649_v31 }
 0x2ba   :  { %v658_v37 = vadd.f32 %v6642_v15, %v648_v32  ;;  %7882 = vmatprep.subr.bf16.mxu1 %v7881_v33 }
 0x2bb   :  { %7884 = vmatpush3.bf16.msra.mxu1 %v7881_v33 }
 0x2bc   :  { %v7885_v38 = vpack.c.bf16 %v659_v34, %v658_v37 }
 0x2be   :  { %7886 = vmatprep.subr.bf16.mxu1 %v7885_v38 }
 0x2bf   :  { %7888 = vmatpush3.bf16.msra.mxu1 %v7885_v38  ;;  %v6664_v38 = vld [vmem:[%s12105_s8 + $0x20] sm:$0xff] }
 0x2c0   :  { %7890 = vmatprep.subr.bf16.mxu1 %v7889_v39 }
 0x2c2   :  { %7628 = vmatmul.mubr.msk.f32.vlgmr.msra.gmra.mrb[28].mxu1 %vm153_vm0, %v9015_v22 }
 0x2c3   :  { %7630 = vmatprep.mubr.msk.f32.mxu1 %vm153_vm0, %v9023_v24  ;;  %7892 = vmatpush3.bf16.msra.mxu1 %v7889_v39  ;;  %v6665_v39 = vld [vmem:[%s12105_s8 + $0x28] sm:$0xff] }
 0x2c4   :  { %7894 = vmatprep.subr.bf16.mxu1 %v7893_v42  ;;  %v7921_v40 = vpack.c.bf16 %v6665_v39, %v6664_v38 }
 0x2c6   :  { %7631 = vmatmul.mubr.msk.f32.gmra.mrb[30].mxu1 %vm153_vm0, %v9031_v25 }
 0x2c7   :  { %7896 = vmatpush3.bf16.msra.mxu1 %v7893_v42 }
 0x395   :  { %v7629_v46 = vpop.f32.mrb[28].mxu1 }
 0x396   :  { %v738_v47 = vpop.f32.mrb[29].mxu1 }
 0x397   :  { %7641 = vmatprep.mubr.msk.f32.mxu1 %vm153_vm0, %v738_v47 }
 0x398   :  { %7642 = vmatmul.mubr.msk.f32.vlgmr.msra.gmra.mrb[32].mxu1 %vm153_vm0, %v7629_v46  ;;  %v6667_v46 = vld [vmem:[%s12105_s8 + $0x38] sm:$0xff] }
 0x399   :  { %v7632_v48 = vpop.f32.mrb[30].mxu1  ;;  %v7925_v47 = vpack.c.bf16 %v6667_v46, %v6666_v45 }
 0x39a   :  { %v748_v49 = vpop.f32.mrb[31].mxu1 }
 0x39b   :  { %7644 = vmatprep.mubr.msk.f32.mxu1 %vm153_vm0, %v748_v49 }
 0x39c   :  { %7645 = vmatmul.mubr.msk.f32.gmra.mrb[34].mxu1 %vm153_vm0, %v7632_v48  ;;  %v6675_v48 = vld [vmem:[%s12106_s4 + $0x1] ss:$0 sm:$0xff] }
 0x39d   :  { %7669 = vmatprep.mubr.msk.f32.mxu1 %vm153_vm0, %v9001_v18 }
 0x46b   :  { %v7643_v54 = vpop.f32.mrb[32].mxu1 }
 0x46c   :  { %v847_v55 = vadd.f32 %v7643_v54, %v6647_v53  ;;  %v841_v56 = vpop.f32.mrb[33].mxu1 }
 0x46d   :  { %v842_v57 = vadd.f32 %v6647_v53, %v841_v56 }
 0x46e   :  { %v861_v60 = vmax.f32 %v847_v55, 0.0 }
 0x46f   :  { %v860_v58 = vmax.f32 %v842_v57, 0.0  ;;  %v7646_v59 = vpop.f32.mrb[34].mxu1 }
 0x470   :  { %v857_v61 = vadd.f32 %v7646_v59, %v6647_v53  ;;  %v851_v62 = vpop.f32.mrb[35].mxu1 }
 0x471   :  { %v852_v63 = vadd.f32 %v6647_v53, %v851_v62  ;;  %7655 = vmatprep.mubr.msk.f32.mxu0 %vm153_vm0, %v860_v58  ;;  %v6688_v62 = vld [vmem:[%s12104_s29 + $0x48] sm:$0xff] }
 0x472   :  { %7656 = vmatmul.mubr.msk.f32.vlgmr.msra.gmra.mrb[0].mxu0 %vm153_vm0, %v861_v60  ;;  %v863_v1 = vmax.f32 %v857_v61, 0.0  ;;  %v6687_v61 = vld [vmem:[%s12104_s29 + $0x40] sm:$0xff] }
 0x473   :  { %v862_v0 = vmax.f32 %v852_v63, 0.0  ;;  %7916 = vmatpush3.bf16.msra.mxu0 %v7913_v6  ;;  %v6689_v63 = vld [vmem:[%s12104_s29 + $0x50] sm:$0xff] }
 0x474   :  { %7918 = vmatprep.subr.bf16.mxu0 %v7917_v8 }
 0x475   :  { %7658 = vmatprep.mubr.msk.f32.mxu0 %vm153_vm0, %v862_v0  ;;  %v7937_v0 = vpack.c.bf16 %v6688_v62, %v6687_v61  ;;  %v6708_v61 = vld [vmem:[%s12107_s6 + $0x2] ss:$0 sm:$0xff] }
 0x476   :  { %7659 = vmatmul.mubr.msk.f32.gmra.mrb[2].mxu0 %vm153_vm0, %v863_v1  ;;  %v6690_v1 = vld [vmem:[%s12104_s29 + $0x58] sm:$0xff] }
 0x477   :  { %7920 = vmatpush3.bf16.msra.mxu0 %v7917_v8  ;;  %v7941_v2 = vpack.c.bf16 %v6690_v1, %v6689_v63  ;;  %v6685_v8 = vld [vmem:[%s12060_s12 + $0x1] ss:$0 sm:$0xff]  ;;  %v6713_v1 = vld [vmem:[%s12060_s12 + $0x2] ss:$0 sm:$0xff] }
 0x545   :  { %v7657_v10 = vpop.f32.mrb[0].mxu0 }
 0x546   :  { %v954_v11 = vadd.f32 %v7657_v10, %v6652_v9  ;;  %v948_v12 = vpop.f32.mrb[1].mxu0 }
 0x547   :  { %v949_v14 = vadd.f32 %v6652_v9, %v948_v12 }
 0x548   :  { %v968_v15 = vmax.f32 %v954_v11, 0.0  ;;  %v6686_v11 = vld [vmem:[%s12061_s13 + $0x1] ss:$0 sm:$0xff] }
 0x549   :  { %v967_v17 = vmax.f32 %v949_v14, 0.0  ;;  %v7660_v19 = vpop.f32.mrb[2].mxu0 }
 0x54a   :  { %v978_v20 = vmul.f32 %v6657_v13, %v968_v15  ;;  %v964_v21 = vadd.f32 %v7660_v19, %v6652_v9  ;;  %v958_v23 = vpop.f32.mrb[3].mxu0 }
 0x54b   :  { %v977_v26 = vmul.f32 %v6657_v13, %v967_v17  ;;  %v959_v27 = vadd.f32 %v6652_v9, %v958_v23 }
 0x54c   :  { %v988_v28 = vadd.f32 %v6658_v16, %v978_v20  ;;  %v970_v29 = vmax.f32 %v964_v21, 0.0 }
 0x54d   :  { %v987_v30 = vadd.f32 %v6658_v16, %v977_v26  ;;  %v969_v31 = vmax.f32 %v959_v27, 0.0 }
 0x54e   :  { %v980_v32 = vmul.f32 %v6657_v13, %v970_v29 }
 0x54f   :  { %v979_v33 = vmul.f32 %v6657_v13, %v969_v31  ;;  %v7905_v34 = vpack.c.bf16 %v988_v28, %v987_v30 }
 0x550   :  { %v990_v35 = vadd.f32 %v6658_v16, %v980_v32 }
 0x551   :  { %v989_v36 = vadd.f32 %v6658_v16, %v979_v33  ;;  %7906 = vmatprep.subr.bf16.mxu1 %v7905_v34  ;;  %v6692_v33 = vld [vmem:[%s12105_s8 + $0x40] sm:$0xff] }
 0x552   :  { %7908 = vmatpush3.bf16.msra.mxu1 %v7905_v34  ;;  %v6693_v34 = vld [vmem:[%s12105_s8 + $0x48] sm:$0xff] }
 0x553   :  { %v7909_v37 = vpack.c.bf16 %v990_v35, %v989_v36  ;;  %v7945_v35 = vpack.c.bf16 %v6693_v34, %v6692_v33  ;;  %v6731_v34 = vld [vmem:[%s12106_s4 + $0x3] ss:$0 sm:$0xff] }
 0x555   :  { %7910 = vmatprep.subr.bf16.mxu1 %v7909_v37 }
 0x556   :  { %7912 = vmatpush3.bf16.msra.mxu1 %v7909_v37 }
 0x557   :  { %7922 = vmatprep.subr.bf16.mxu1 %v7921_v40 }
 0x559   :  { %7670 = vmatmul.mubr.msk.f32.vlgmr.msra.gmra.mrb[36].mxu1 %vm153_vm0, %v9015_v22 }
 0x55a   :  { %7672 = vmatprep.mubr.msk.f32.mxu1 %vm153_vm0, %v9023_v24  ;;  %7924 = vmatpush3.bf16.msra.mxu1 %v7921_v40  ;;  %v6694_v40 = vld [vmem:[%s12105_s8 + $0x50] sm:$0xff] }
 0x55b   :  { %7926 = vmatprep.subr.bf16.mxu1 %v7925_v47 }
 0x55d   :  { %7673 = vmatmul.mubr.msk.f32.gmra.mrb[38].mxu1 %vm153_vm0, %v9031_v25 }
 0x55e   :  { %7928 = vmatpush3.bf16.msra.mxu1 %v7925_v47 }
 0x55f   :  { %7938 = vmatprep.subr.bf16.mxu1 %v7937_v0 }
 0x62c   :  { %v7671_v41 = vpop.f32.mrb[36].mxu1 }
 0x62d   :  { %v1075_v42 = vpop.f32.mrb[37].mxu1 }
 0x62e   :  { %7683 = vmatprep.mubr.msk.f32.mxu0 %vm153_vm0, %v1075_v42 }
 0x62f   :  { %7684 = vmatmul.mubr.msk.f32.vlgmr.msra.gmra.mrb[4].mxu0 %vm153_vm0, %v7671_v41  ;;  %v6695_v41 = vld [vmem:[%s12105_s8 + $0x58] sm:$0xff] }
 0x630   :  { %v7674_v43 = vpop.f32.mrb[38].mxu1  ;;  %v7949_v42 = vpack.c.bf16 %v6695_v41, %v6694_v40 }
 0x631   :  { %v1085_v44 = vpop.f32.mrb[39].mxu1 }
 0x632   :  { %7686 = vmatprep.mubr.msk.f32.mxu0 %vm153_vm0, %v1085_v44 }
 0x633   :  { %7687 = vmatmul.mubr.msk.f32.gmra.mrb[6].mxu0 %vm153_vm0, %v7674_v43  ;;  %v6703_v43 = vld [vmem:[%s12106_s4 + $0x2] ss:$0 sm:$0xff] }
 0x634   :  { %7711 = vmatprep.mubr.msk.f32.mxu0 %vm153_vm0, %v9001_v18 }
 0x702   :  { %v7685_v49 = vpop.f32.mrb[4].mxu0 }
 0x703   :  { %v1184_v50 = vadd.f32 %v7685_v49, %v6675_v48  ;;  %v1178_v51 = vpop.f32.mrb[5].mxu0 }
 0x704   :  { %v1179_v52 = vadd.f32 %v6675_v48, %v1178_v51 }
 0x705   :  { %v1198_v55 = vmax.f32 %v1184_v50, 0.0 }
 0x706   :  { %v1197_v53 = vmax.f32 %v1179_v52, 0.0  ;;  %v7688_v54 = vpop.f32.mrb[6].mxu0 }
 0x707   :  { %v1194_v56 = vadd.f32 %v7688_v54, %v6675_v48  ;;  %v1188_v57 = vpop.f32.mrb[7].mxu0 }
 0x708   :  { %v1189_v58 = vadd.f32 %v6675_v48, %v1188_v57  ;;  %7697 = vmatprep.mubr.msk.f32.mxu1 %vm153_vm0, %v1197_v53  ;;  %v6717_v57 = vld [vmem:[%s12104_s29 + $0x70] sm:$0xff] }
 0x709   :  { %7698 = vmatmul.mubr.msk.f32.vlgmr.msra.gmra.mrb[40].mxu1 %vm153_vm0, %v1198_v55  ;;  %v1200_v60 = vmax.f32 %v1194_v56, 0.0  ;;  %v6715_v55 = vld [vmem:[%s12104_s29 + $0x60] sm:$0xff]  ;;  %v6716_v56 = vld [vmem:[%s12104_s29 + $0x68] sm:$0xff] }
 0x70a   :  { %v1199_v59 = vmax.f32 %v1189_v58, 0.0  ;;  %7940 = vmatpush3.bf16.msra.mxu1 %v7937_v0  ;;  %v7961_v58 = vpack.c.bf16 %v6716_v56, %v6715_v55 }
 0x70b   :  { %7942 = vmatprep.subr.bf16.mxu1 %v7941_v2 }
 0x70c   :  { %7700 = vmatprep.mubr.msk.f32.mxu1 %vm153_vm0, %v1199_v59  ;;  %v6718_v59 = vld [vmem:[%s12104_s29 + $0x78] sm:$0xff] }
 0x70d   :  { %7701 = vmatmul.mubr.msk.f32.gmra.mrb[42].mxu1 %vm153_vm0, %v1200_v60  ;;  %v7965_v60 = vpack.c.bf16 %v6718_v59, %v6717_v57 }
 0x70e   :  { %7944 = vmatpush3.bf16.msra.mxu1 %v7941_v2 }
 0x7dc   :  { %v7699_v5 = vpop.f32.mrb[40].mxu1 }
 0x7dd   :  { %v1291_v6 = vadd.f32 %v7699_v5, %v6680_v4  ;;  %v1285_v7 = vpop.f32.mrb[41].mxu1  ;;  %v6714_v5 = vld [vmem:[%s12061_s13 + $0x2] ss:$0 sm:$0xff] }
 0x7de   :  { %v1286_v9 = vadd.f32 %v6680_v4, %v1285_v7 }
 0x7df   :  { %v1305_v10 = vmax.f32 %v1291_v6, 0.0 }
 0x7e0   :  { %v1304_v12 = vmax.f32 %v1286_v9, 0.0  ;;  %v7702_v13 = vpop.f32.mrb[42].mxu1 }
 0x7e1   :  { %v1315_v14 = vmul.f32 %v6685_v8, %v1305_v10  ;;  %v1301_v15 = vadd.f32 %v7702_v13, %v6680_v4  ;;  %v1295_v16 = vpop.f32.mrb[43].mxu1 }
 0x7e2   :  { %v1314_v17 = vmul.f32 %v6685_v8, %v1304_v12  ;;  %v1296_v19 = vadd.f32 %v6680_v4, %v1295_v16 }
 0x7e3   :  { %v1325_v20 = vadd.f32 %v6686_v11, %v1315_v14  ;;  %v1307_v21 = vmax.f32 %v1301_v15, 0.0 }
 0x7e4   :  { %v1324_v23 = vadd.f32 %v6686_v11, %v1314_v17  ;;  %v1306_v26 = vmax.f32 %v1296_v19, 0.0 }
 0x7e5   :  { %v1317_v27 = vmul.f32 %v6685_v8, %v1307_v21 }
 0x7e6   :  { %v1316_v28 = vmul.f32 %v6685_v8, %v1306_v26  ;;  %v7929_v29 = vpack.c.bf16 %v1325_v20, %v1324_v23 }
 0x7e7   :  { %v1327_v30 = vadd.f32 %v6686_v11, %v1317_v27  ;;  %v6720_v27 = vld [vmem:[%s12105_s8 + $0x60] sm:$0xff] }
 0x7e8   :  { %v1326_v31 = vadd.f32 %v6686_v11, %v1316_v28  ;;  %7930 = vmatprep.subr.bf16.mxu0 %v7929_v29  ;;  %v6721_v28 = vld [vmem:[%s12105_s8 + $0x68] sm:$0xff] }
 0x7e9   :  { %7932 = vmatpush3.bf16.msra.mxu0 %v7929_v29  ;;  %v7969_v29 = vpack.c.bf16 %v6721_v28, %v6720_v27  ;;  %v8560_v27 = vld [vmem:[%s12062_s18 + $0x18] sm:$0xff]   ;;  %v8561_v28 = vld [vmem:[%s12062_s18 + $0x60] sm:$0xff]  }
 0x7ea   :  { %v7933_v32 = vpack.c.bf16 %v1327_v30, %v1326_v31 }
 0x7ec   :  { %7934 = vmatprep.subr.bf16.mxu0 %v7933_v32 }
 0x7ed   :  { %7936 = vmatpush3.bf16.msra.mxu0 %v7933_v32  ;;  %v6723_v32 = vld [vmem:[%s12105_s8 + $0x78] sm:$0xff] }
 0x7ee   :  { %7946 = vmatprep.subr.bf16.mxu0 %v7945_v35 }
 0x7f0   :  { %7712 = vmatmul.mubr.msk.f32.vlgmr.msra.gmra.mrb[8].mxu0 %vm153_vm0, %v9015_v22 }
 0x7f1   :  { %7714 = vmatprep.mubr.msk.f32.mxu0 %vm153_vm0, %v9023_v24  ;;  %7948 = vmatpush3.bf16.msra.mxu0 %v7945_v35 }
 0x7f2   :  { %7950 = vmatprep.subr.bf16.mxu0 %v7949_v42 }
 0x7f4   :  { %7715 = vmatmul.mubr.msk.f32.gmra.mrb[10].mxu0 %vm153_vm0, %v9031_v25 }
 0x7f5   :  { %7952 = vmatpush3.bf16.msra.mxu0 %v7949_v42 }
 0x7f6   :  { %7962 = vmatprep.subr.bf16.mxu0 %v7961_v58 }
 0x8c3   :  { %v7713_v36 = vpop.f32.mrb[8].mxu0 }
 0x8c4   :  { %v1412_v37 = vpop.f32.mrb[9].mxu0 }
 0x8c5   :  { %7725 = vmatprep.mubr.msk.f32.mxu1 %vm153_vm0, %v1412_v37 }
 0x8c6   :  { %7726 = vmatmul.mubr.msk.f32.vlgmr.msra.gmra.mrb[44].mxu1 %vm153_vm0, %v7713_v36 }
 0x8c7   :  { %v7716_v38 = vpop.f32.mrb[10].mxu0 }
 0x8c8   :  { %v1422_v39 = vpop.f32.mrb[11].mxu0 }
 0x8c9   :  { %7728 = vmatprep.mubr.msk.f32.mxu1 %vm153_vm0, %v1422_v39 }
 0x8ca   :  { %7729 = vmatmul.mubr.msk.f32.gmra.mrb[46].mxu1 %vm153_vm0, %v7716_v38 }
 0x8cb   :  { %7753 = vmatprep.mubr.msk.f32.mxu1 %vm153_vm0, %v9001_v18 }
 0x999   :  { %v7727_v44 = vpop.f32.mrb[44].mxu1 }
 0x99a   :  { %v1521_v45 = vadd.f32 %v7727_v44, %v6703_v43  ;;  %v1515_v46 = vpop.f32.mrb[45].mxu1 }
 0x99b   :  { %v1516_v47 = vadd.f32 %v6703_v43, %v1515_v46 }
 0x99c   :  { %v1535_v49 = vmax.f32 %v1521_v45, 0.0 }
 0x99d   :  { %v1534_v18 = vmax.f32 %v1516_v47, 0.0  ;;  %v7730_v48 = vpop.f32.mrb[46].mxu1  ;;  %v8818_v47 = vmov 0.0|0.0  }
 0x99e   :  { %v1531_v50 = vadd.f32 %v7730_v48, %v6703_v43  ;;  %v1525_v51 = vpop.f32.mrb[47].mxu1  ;;  %v2077_v48 = vld [vmem:[%s12063_s15 + $0x8] sm:$0xff] }
 0x99f   :  { %v1526_v52 = vadd.f32 %v6703_v43, %v1525_v51  ;;  %7739 = vmatprep.mubr.msk.f32.mxu0 %vm153_vm0, %v1534_v18  ;;  %v2076_v18 = vld [vmem:[%s12063_s15] sm:$0xff]  ;;  %v2079_v51 = vld [vmem:[%s12063_s15 + $0x18] sm:$0xff] }
 0x9a0   :  { %7740 = vmatmul.mubr.msk.f32.vlgmr.msra.gmra.mrb[12].mxu0 %vm153_vm0, %v1535_v49  ;;  %v1537_v54 = vmax.f32 %v1531_v50, 0.0  ;;  %v7984_v49 = vpack.c.bf16 %v2077_v48, %v2076_v18  ;;  %v2078_v50 = vld [vmem:[%s12063_s15 + $0x10] sm:$0xff]  ;;  %v8576_v18 = vld [vmem:[%s12062_s18 + $0x108] sm:$0xff]  }
 0x9a1   :  { %v1536_v53 = vmax.f32 %v1526_v52, 0.0  ;;  %7964 = vmatpush3.bf16.msra.mxu0 %v7961_v58  ;;  %v7987_v52 = vpack.c.bf16 %v2079_v51, %v2078_v50  ;;  %v6742_v58 = vld [vmem:[%s12061_s13 + $0x3] ss:$0 sm:$0xff]  ;;  %v8579_v48 = vld [vmem:[%s12062_s18 + $0x150] sm:$0xff]   ;;  %v8583_v50 = vld [vmem:[%s12062_s18 + $0x158] sm:$0xff]  }
 0x9a2   :  { %7966 = vmatprep.subr.bf16.mxu0 %v7965_v60  ;;  %v8584_v51 = vld [vmem:[%s12062_s18 + $0x118] sm:$0xff]  }
 0x9a3   :  { %7742 = vmatprep.mubr.msk.f32.mxu0 %vm153_vm0, %v1536_v53  ;;  %v6736_v53 = vld [vmem:[%s12107_s6 + $0x3] ss:$0 sm:$0xff] }
 0x9a4   :  { %7743 = vmatmul.mubr.msk.f32.gmra.mrb[14].mxu0 %vm153_vm0, %v1537_v54  ;;  %v6741_v54 = vld [vmem:[%s12060_s12 + $0x3] ss:$0 sm:$0xff] }
 0x9a5   :  { %7968 = vmatpush3.bf16.msra.mxu0 %v7965_v60 }
 0x9a6   :  { %7977 = vmatprep.subr.bf16.mxu0 %v8818_v47 }
 0xa73   :  { %v7741_v62 = vpop.f32.mrb[12].mxu0 }
 0xa74   :  { %v1628_v63 = vadd.f32 %v7741_v62, %v6708_v61  ;;  %v1622_v0 = vpop.f32.mrb[13].mxu0 }
 0xa75   :  { %v1623_v2 = vadd.f32 %v6708_v61, %v1622_v0 }
 0xa76   :  { %v1642_v4 = vmax.f32 %v1628_v63, 0.0 }
 0xa77   :  { %v1641_v6 = vmax.f32 %v1623_v2, 0.0  ;;  %v7744_v7 = vpop.f32.mrb[14].mxu0 }
 0xa78   :  { %v1652_v8 = vmul.f32 %v6713_v1, %v1642_v4  ;;  %v1638_v9 = vadd.f32 %v7744_v7, %v6708_v61  ;;  %v1632_v10 = vpop.f32.mrb[15].mxu0 }
 0xa79   :  { %v1651_v11 = vmul.f32 %v6713_v1, %v1641_v6  ;;  %v1633_v12 = vadd.f32 %v6708_v61, %v1632_v10 }
 0xa7a   :  { %v1662_v13 = vadd.f32 %v6714_v5, %v1652_v8  ;;  %v1644_v14 = vmax.f32 %v1638_v9, 0.0 }
 0xa7b   :  { %v1661_v15 = vadd.f32 %v6714_v5, %v1651_v11  ;;  %v1643_v16 = vmax.f32 %v1633_v12, 0.0 }
 0xa7c   :  { %v1654_v17 = vmul.f32 %v6713_v1, %v1644_v14 }
 0xa7d   :  { %v1653_v19 = vmul.f32 %v6713_v1, %v1643_v16  ;;  %v7953_v20 = vpack.c.bf16 %v1662_v13, %v1661_v15  ;;  %v8553_v13 = vld [vmem:[%s12062_s18 + $0x40] sm:$0xff]  }
 0xa7e   :  { %v1664_v21 = vadd.f32 %v6714_v5, %v1654_v17  ;;  %v2002_v16 = vld [vmem:[%s12064_s14] sm:$0x3] }
 0xa7f   :  { %v1663_v23 = vadd.f32 %v6714_v5, %v1653_v19  ;;  %7954 = vmatprep.subr.bf16.mxu1 %v7953_v20  ;;  %v8554_v17 = vld [vmem:[%s12062_s18] sm:$0xff]   ;;  %v8555_v19 = vld [vmem:[%s12062_s18 + $0x48] sm:$0xff]  }
 0xa80   :  { %7956 = vmatpush3.bf16.msra.mxu1 %v7953_v20  ;;  %v8556_v20 = vld [vmem:[%s12062_s18 + $0x8] sm:$0xff]  }
 0xa81   :  { %v7957_v26 = vpack.c.bf16 %v1664_v21, %v1663_v23  ;;  %v8557_v21 = vld [vmem:[%s12062_s18 + $0x50] sm:$0xff]  }
 0xa82   :  { %v8558_v23 = vld [vmem:[%s12062_s18 + $0x10] sm:$0xff]  }
 0xa83   :  { %7958 = vmatprep.subr.bf16.mxu1 %v7957_v26 }
 0xa84   :  { %7960 = vmatpush3.bf16.msra.mxu1 %v7957_v26  ;;  %v8559_v26 = vld [vmem:[%s12062_s18 + $0x58] sm:$0xff]  }
 0xa85   :  { %7970 = vmatprep.subr.bf16.mxu1 %v7969_v29 }
 0xa87   :  { %7754 = vmatmul.mubr.msk.f32.vlgmr.msra.gmra.mrb[48].mxu1 %vm153_vm0, %v9015_v22 }
 0xa88   :  { %7756 = vmatprep.mubr.msk.f32.mxu1 %vm153_vm0, %v9023_v24  ;;  %7972 = vmatpush3.bf16.msra.mxu1 %v7969_v29  ;;  %v8562_v29 = vld [vmem:[%s12062_s18 + $0x20] sm:$0xff]  }
 0xa8b   :  { %7757 = vmatmul.mubr.msk.f32.gmra.mrb[50].mxu1 %vm153_vm0, %v9031_v25  ;;  %v6722_v25 = vld [vmem:[%s12105_s8 + $0x70] sm:$0xff] }
 0xa8c   :  { %v7973_v33 = vpack.c.bf16 %v6723_v32, %v6722_v25  ;;  %v8567_v25 = vld [vmem:[%s12062_s18 + $0x78] sm:$0xff]  }
 0xa8d   :  { %v8568_v32 = vld [vmem:[%s12062_s18 + $0x38] sm:$0xff]  }
 0xa8e   :  { %7974 = vmatprep.subr.bf16.mxu1 %v7973_v33 }
 0xa8f   :  { %7976 = vmatpush3.bf16.msra.mxu1 %v7973_v33  ;;  %v8820_v33 = vmov 1983009808  }
 0xa90   :  { %7983 = vmatprep.subr.bf16.mxu1 %v8818_v47 }
 0xb5a   :  { %v7755_v30 = vpop.f32.mrb[48].mxu1 }
 0xb5b   :  { %v1749_v31 = vpop.f32.mrb[49].mxu1 }
 0xb5c   :  { %7767 = vmatprep.mubr.msk.f32.mxu0 %vm153_vm0, %v1749_v31  ;;  %v8564_v31 = vld [vmem:[%s12062_s18 + $0x28] sm:$0xff]  }
 0xb5d   :  { %7768 = vmatmul.mubr.msk.f32.vlgmr.msra.gmra.mrb[16].mxu0 %vm153_vm0, %v7755_v30  ;;  %v8563_v30 = vld [vmem:[%s12062_s18 + $0x68] sm:$0xff]  }
 0xb5e   :  { %v7758_v22 = vpop.f32.mrb[50].mxu1 }
 0xb5f   :  { %v1759_v24 = vpop.f32.mrb[51].mxu1 }
 0xb60   :  { %7770 = vmatprep.mubr.msk.f32.mxu0 %vm153_vm0, %v1759_v24  ;;  %v8566_v24 = vld [vmem:[%s12062_s18 + $0x30] sm:$0xff]  }
 0xb61   :  { %7771 = vmatmul.mubr.msk.f32.gmra.mrb[18].mxu0 %vm153_vm0, %v7758_v22  ;;  %v8565_v22 = vld [vmem:[%s12062_s18 + $0x70] sm:$0xff]  }
 0xb62   :  { %7795 = vmatprep.mubr.msk.f32.mxu0 %vm8819_vm2, %v8817_v3 }
 0xc30   :  { %v7769_v35 = vpop.f32.mrb[16].mxu0 }
 0xc31   :  { %v1858_v36 = vadd.f32 %v7769_v35, %v6731_v34  ;;  %v1852_v37 = vpop.f32.mrb[17].mxu0  ;;  %v2181_v35 = vlaneseq }
 0xc32   :  { %v1853_v38 = vadd.f32 %v6731_v34, %v1852_v37 }
 0xc33   :  { %v1872_v41 = vmax.f32 %v1858_v36, 0.0  ;;  %v9459_v37 = vshrl.u32 %v2181_v35, 7  ;;  %v8658_v35 = vld [vmem:[%s12062_s18 + $0x328] sm:$0xff]  }
 0xc34   :  { %v1871_v39 = vmax.f32 %v1853_v38, 0.0  ;;  %v7772_v40 = vpop.f32.mrb[18].mxu0 }
 0xc35   :  { %v1868_v42 = vadd.f32 %v7772_v40, %v6731_v34  ;;  %v1862_v43 = vpop.f32.mrb[19].mxu0 }
 0xc36   :  { %v1863_v44 = vadd.f32 %v6731_v34, %v1862_v43  ;;  %7781 = vmatprep.mubr.msk.f32.mxu1 %vm153_vm0, %v1871_v39  ;;  %v2179_v34 = vunpack.c.l.s4 %v8820_v33  ;;  %v9467_v39 = vld [vmem:[%s12065_s17] sm:$0xff] }
 0xc37   :  { %7782 = vmatmul.mubr.msk.f32.vlgmr.msra.gmra.mrb[52].mxu1 %vm153_vm0, %v1872_v41  ;;  %v1874_v46 = vmax.f32 %v1868_v42, 0.0  ;;  %v8569_v41 = vld [vmem:[%s12062_s18 + $0xc0] sm:$0xff]  }
 0xc38   :  { %v1873_v45 = vmax.f32 %v1863_v44, 0.0  ;;  %7985 = vmatpush3.bf16.msra.mxu1 %v7984_v49  ;;  %v2180_v36 = vunpack.c.0.s8 %v2179_v34  ;;  %v8571_v44 = vld [vmem:[%s12062_s18 + $0x140] sm:$0xff]   ;;  %v8580_v49 = vld [vmem:[%s12062_s18 + $0x110] sm:$0xff]   ;;  %v8657_v34 = vld [vmem:[%s12062_s18 + $0x368] sm:$0xff]  }
 0xc39   :  { %7986 = vmatprep.subr.bf16.mxu1 %v8818_v47  ;;  %v8654_v33 = vld [vmem:[%s12062_s18 + $0x320] sm:$0xff]  }
 0xc3a   :  { %7784 = vmatprep.mubr.msk.f32.mxu1 %vm153_vm0, %v1873_v45  ;;  %v9462_v38 = vsub.s32 %v2180_v36, %v9459_v37  ;;  %v8661_v36 = vld [vmem:[%s12062_s18 + $0x370] sm:$0xff]  }
 0xc3b   :  { %7785 = vmatmul.mubr.msk.f32.gmra.mrb[54].mxu1 %vm153_vm0, %v1874_v46  ;;  %v8572_v46 = vld [vmem:[%s12062_s18 + $0x100] sm:$0xff]  }
 0xc3c   :  { %7806 = vmatprep.mubr.msk.f32.mxu1 %vm8819_vm2, %v8817_v3  ;;  %7988 = vmatpush3.bf16.msra.mxu1 %v7987_v52  ;;  %v2184_v40 = vrot.slane %v9467_v39, %v9462_v38  ;;  %v8587_v52 = vld [vmem:[%s12062_s18 + $0x160] sm:$0xff]  }
 0xc3d   :  { %7204 = vmatprep.subr.bf16.mxu1 %v8569_v41  ;;  %v9629_v41 = vld [vmem:[%s12065_s17 + $0x18] sm:$0xff] }
 0xc3e   :  { %v2192_v42 = vcombine.high %v2184_v40, %v2184_v40  ;;  %v2345_v45 = vpack.c.bf16 %v2184_v40, %v2184_v40  ;;  %v8662_v40 = vld [vmem:[%s12062_s18 + $0x330] sm:$0xff]  }
 0xc40   :  { %v2346_v43 = vpack.c.bf16 %v2192_v42, %v2192_v42  ;;  %v2235_v42 = vrot.slane %v9629_v41, %v9462_v38 }
 0xd0a   :  { %v7783_v55 = vpop.f32.mrb[52].mxu1 }
 0xd0b   :  { %v1965_v56 = vadd.f32 %v7783_v55, %v6736_v53  ;;  %v1959_v57 = vpop.f32.mrb[53].mxu1  ;;  %v8592_v55 = vld [vmem:[%s12062_s18 + $0x128] sm:$0xff]  }
 0xd0c   :  { %v1960_v59 = vadd.f32 %v6736_v53, %v1959_v57  ;;  %v8596_v57 = vld [vmem:[%s12062_s18 + $0x130] sm:$0xff]  }
 0xd0d   :  { %v1979_v60 = vmax.f32 %v1965_v56, 0.0  ;;  %v8595_v56 = vld [vmem:[%s12062_s18 + $0x170] sm:$0xff]  }
 0xd0e   :  { %v1978_v61 = vmax.f32 %v1960_v59, 0.0  ;;  %v7786_v62 = vpop.f32.mrb[54].mxu1 }
 0xd0f   :  { %v1989_v63 = vmul.f32 %v6741_v54, %v1979_v60  ;;  %v1975_v0 = vadd.f32 %v7786_v62, %v6736_v53  ;;  %v1969_v1 = vpop.f32.mrb[55].mxu1  ;;  %v8599_v60 = vld [vmem:[%s12062_s18 + $0x178] sm:$0xff]  }
 0xd10   :  { %v1988_v2 = vmul.f32 %v6741_v54, %v1978_v61  ;;  %v1970_v4 = vadd.f32 %v6736_v53, %v1969_v1  ;;  %v8588_v53 = vld [vmem:[%s12062_s18 + $0x120] sm:$0xff]   ;;  %v8601_v61 = vld [vmem:[%s12062_s18 + $0x138] sm:$0xff]  }
 0xd11   :  { %v1999_v5 = vadd.f32 %v6742_v58, %v1989_v63  ;;  %v1981_v6 = vmax.f32 %v1975_v0, 0.0  ;;  %v8604_v0 = vld [vmem:[%s12062_s18 + $0x240] sm:$0xff]  }
 0xd12   :  { %v1998_v7 = vadd.f32 %v6742_v58, %v1988_v2  ;;  %v1980_v8 = vmax.f32 %v1970_v4, 0.0  ;;  %v8605_v2 = vld [vmem:[%s12062_s18 + $0x200] sm:$0xff]   ;;  %v8608_v4 = vld [vmem:[%s12062_s18 + $0x248] sm:$0xff]  }
 0xd13   :  { %v1991_v9 = vmul.f32 %v6741_v54, %v1981_v6  ;;  %v8612_v6 = vld [vmem:[%s12062_s18 + $0x250] sm:$0xff]  }
 0xd14   :  { %v7978_v10 = vpack.c.bf16 %v1999_v5, %v1998_v7  ;;  %v1990_v11 = vmul.f32 %v6741_v54, %v1980_v8  ;;  %v8591_v54 = vld [vmem:[%s12062_s18 + $0x168] sm:$0xff]   ;;  %v8613_v7 = vld [vmem:[%s12062_s18 + $0x210] sm:$0xff]   ;;  %v8616_v8 = vld [vmem:[%s12062_s18 + $0x258] sm:$0xff]  }
 0xd15   :  { %v2001_v12 = vadd.f32 %v6742_v58, %v1991_v9  ;;  %v8609_v5 = vld [vmem:[%s12062_s18 + $0x208] sm:$0xff]   ;;  %v8617_v9 = vld [vmem:[%s12062_s18 + $0x218] sm:$0xff]  }
 0xd16   :  { %v2000_v14 = vadd.f32 %v6742_v58, %v1990_v11  ;;  %7979 = vmatpush3.bf16.msra.mxu0 %v7978_v10  ;;  %v9519_v58 = vld [vmem:[%s12065_s17 + $0x8] sm:$0xff]  ;;  %v8620_v10 = vld [vmem:[%s12062_s18 + $0x260] sm:$0xff]  }
 0xd17   :  { %7980 = vmatprep.subr.bf16.mxu0 %v8818_v47  ;;  %v8575_v47 = vld [vmem:[%s12062_s18 + $0x148] sm:$0xff]   ;;  %v2201_v59 = vrot.slane %v9519_v58, %v9462_v38  ;;  %v8621_v11 = vld [vmem:[%s12062_s18 + $0x220] sm:$0xff]  }
 0xd18   :  { %v7981_v15 = vpack.c.bf16 %v2001_v12, %v2000_v14  ;;  %v8624_v12 = vld [vmem:[%s12062_s18 + $0x268] sm:$0xff]   ;;  %v8628_v14 = vld [vmem:[%s12062_s18 + $0x270] sm:$0xff]  }
 0xd19   :  { %v2209_v62 = vcombine.high %v2201_v59, %v2201_v59  ;;  %v2349_v1 = vpack.c.bf16 %v2201_v59, %v2201_v59  ;;  %v8690_v59 = vld [vmem:[%s12062_s18 + $0x468] sm:$0xff]  }
 0xd1a   :  { %7982 = vmatpush3.bf16.msra.mxu0 %v7981_v15  ;;  %v8629_v15 = vld [vmem:[%s12062_s18 + $0x230] sm:$0xff]  }
 0xd1b   :  { %7182 = vmatprep.subr.bf16.mxu0 %v8553_v13  ;;  %v2350_v63 = vpack.c.bf16 %v2209_v62, %v2209_v62  ;;  %v8625_v13 = vld [vmem:[%s12062_s18 + $0x228] sm:$0xff]  }
 0xd1d   :  { %7796 = vmatmul.mubr.msk.f32.vlgmr.msra.gmra.mrb[20].mxu0 %vm153_vm0, %v2002_v16  ;;  %v9574_v16 = vld [vmem:[%s12065_s17 + $0x10] sm:$0xff] }
 0xd1e   :  { %7183 = vmatpush3.bf16.msra.mxu0 %v8554_v17  ;;  %4464 = vmatprep.mubr.bf16.mxu0 %v2346_v43  ;;  %v2218_v17 = vrot.slane %v9574_v16, %v9462_v38  ;;  %v8665_v43 = vld [vmem:[%s12062_s18 + $0x378] sm:$0xff]  }
 0xd1f   :  { %7184 = vmatprep.subr.bf16.mxu0 %v8555_v19  ;;  %v8632_v19 = vld [vmem:[%s12062_s18 + $0x278] sm:$0xff]  }
 0xd22   :  { %7185 = vmatpush3.bf16.msra.mxu0 %v8556_v20  ;;  %v8634_v20 = vld [vmem:[%s12062_s18 + $0x238] sm:$0xff]  }
 0xd23   :  { %7186 = vmatprep.subr.bf16.mxu0 %v8557_v21  ;;  %v2226_v21 = vcombine.high %v2218_v17, %v2218_v17 }
 0xd26   :  { %7187 = vmatpush3.bf16.msra.mxu0 %v8558_v23  ;;  %v2354_v23 = vpack.c.bf16 %v2226_v21, %v2226_v21  ;;  %v8708_v21 = vld [vmem:[%s12062_s18 + $0x508] sm:$0xff]  }
 0xd27   :  { %7188 = vmatprep.subr.bf16.mxu0 %v8559_v26  ;;  %v2353_v26 = vpack.c.bf16 %v2218_v17, %v2218_v17  ;;  %v8577_v17 = vld [vmem:[%s12062_s18 + $0xd0] sm:$0xff]  }
 0xd2a   :  { %7189 = vmatpush3.bf16.msra.mxu0 %v8560_v27  ;;  %v8637_v27 = vld [vmem:[%s12062_s18 + $0x340] sm:$0xff]  }
 0xd2b   :  { %7190 = vmatprep.subr.bf16.mxu0 %v8561_v28  ;;  %v8638_v28 = vld [vmem:[%s12062_s18 + $0x300] sm:$0xff]  }
 0xd2e   :  { %7191 = vmatpush3.bf16.msra.mxu0 %v8562_v29  ;;  %v8641_v29 = vld [vmem:[%s12062_s18 + $0x348] sm:$0xff]  }
 0xd2f   :  { %7192 = vmatprep.subr.bf16.mxu0 %v8563_v30  ;;  %v8642_v30 = vld [vmem:[%s12062_s18 + $0x308] sm:$0xff]  }
 0xd32   :  { %7193 = vmatpush3.bf16.msra.mxu0 %v8564_v31  ;;  %v8645_v31 = vld [vmem:[%s12062_s18 + $0x350] sm:$0xff]  }
 0xd33   :  { %7194 = vmatprep.subr.bf16.mxu0 %v8565_v22  ;;  %v8646_v22 = vld [vmem:[%s12062_s18 + $0x310] sm:$0xff]  }
 0xd36   :  { %7195 = vmatpush3.bf16.msra.mxu0 %v8566_v24  ;;  %v8649_v24 = vld [vmem:[%s12062_s18 + $0x358] sm:$0xff]  }
 0xd37   :  { %7196 = vmatprep.subr.bf16.mxu0 %v8567_v25  ;;  %v8650_v25 = vld [vmem:[%s12062_s18 + $0x318] sm:$0xff]  }
 0xd3a   :  { %7197 = vmatpush3.bf16.msra.mxu0 %v8568_v32  ;;  %v8653_v32 = vld [vmem:[%s12062_s18 + $0x360] sm:$0xff]  }
 0xd3b   :  { %7226 = vmatprep.subr.bf16.mxu0 %v8571_v44  ;;  %v8667_v44 = vld [vmem:[%s12062_s18 + $0x338] sm:$0xff]  }
 0xd3d   :  { %4465 = vmatmul.mubr.bf16.vlgmr.msra.gmra.mrb[24].mxu0 %v2345_v45  ;;  %v2243_v45 = vcombine.high %v2235_v42, %v2235_v42 }
 0xd3e   :  { %7227 = vmatpush3.bf16.msra.mxu0 %v8572_v46  ;;  %4544 = vmatprep.mubr.bf16.mxu0 %v2350_v63  ;;  %v8695_v63 = vld [vmem:[%s12062_s18 + $0x430] sm:$0xff]  }
 0xd3f   :  { %7228 = vmatprep.subr.bf16.mxu0 %v8575_v47  ;;  %v2358_v46 = vpack.c.bf16 %v2243_v45, %v2243_v45  ;;  %v2357_v47 = vpack.c.bf16 %v2235_v42, %v2235_v42  ;;  %v8724_v42 = vld [vmem:[%s12062_s18 + $0x528] sm:$0xff]   ;;  %v8598_v45 = vld [vmem:[%s12062_s18 + $0xb8] sm:$0xff]  }
 0xd42   :  { %7229 = vmatpush3.bf16.msra.mxu0 %v8576_v18  ;;  %v8670_v18 = vld [vmem:[%s12062_s18 + $0x440] sm:$0xff]  }
 0xd43   :  { %7230 = vmatprep.subr.bf16.mxu0 %v8579_v48  ;;  %v8671_v48 = vld [vmem:[%s12062_s18 + $0x400] sm:$0xff]  }
 0xd46   :  { %7231 = vmatpush3.bf16.msra.mxu0 %v8580_v49  ;;  %v8674_v49 = vld [vmem:[%s12062_s18 + $0x448] sm:$0xff]  }
 0xd47   :  { %7232 = vmatprep.subr.bf16.mxu0 %v8583_v50  ;;  %v8675_v50 = vld [vmem:[%s12062_s18 + $0x408] sm:$0xff]  }
 0xd4a   :  { %7233 = vmatpush3.bf16.msra.mxu0 %v8584_v51  ;;  %v8678_v51 = vld [vmem:[%s12062_s18 + $0x450] sm:$0xff]  }
 0xd4b   :  { %7234 = vmatprep.subr.bf16.mxu0 %v8587_v52  ;;  %v8679_v52 = vld [vmem:[%s12062_s18 + $0x410] sm:$0xff]  }
 0xd4e   :  { %7235 = vmatpush3.bf16.msra.mxu0 %v8588_v53  ;;  %v8682_v53 = vld [vmem:[%s12062_s18 + $0x458] sm:$0xff]  }
 0xd4f   :  { %7236 = vmatprep.subr.bf16.mxu0 %v8591_v54  ;;  %v8683_v54 = vld [vmem:[%s12062_s18 + $0x418] sm:$0xff]  }
 0xd52   :  { %7237 = vmatpush3.bf16.msra.mxu0 %v8592_v55  ;;  %v8686_v55 = vld [vmem:[%s12062_s18 + $0x460] sm:$0xff]  }
 0xd53   :  { %7238 = vmatprep.subr.bf16.mxu0 %v8595_v56  ;;  %v2177_v56 = vcombine.high %v9467_v39, %v9467_v39  ;;  %v8694_v39 = vld [vmem:[%s12062_s18 + $0x470] sm:$0xff]  }
 0xd56   :  { %7239 = vmatpush3.bf16.msra.mxu0 %v8596_v57  ;;  %v8687_v57 = vld [vmem:[%s12062_s18 + $0x420] sm:$0xff]  }
 0xd57   :  { %7240 = vmatprep.subr.bf16.mxu0 %v8599_v60  ;;  %v9675_v60 = vrot.slane %v2177_v56, %v9462_v38  ;;  %v8606_v56 = vld [vmem:[%s12062_s18 + $0x1c8] sm:$0xff]  }
 0xd59   :  { %v2193_v62 = vcombine.high %v9675_v60, %v9675_v60 }
 0xd5a   :  { %7241 = vmatpush3.bf16.msra.mxu0 %v8601_v61  ;;  %v8691_v61 = vld [vmem:[%s12062_s18 + $0x428] sm:$0xff]  }
 0xd5b   :  { %7270 = vmatprep.subr.bf16.mxu0 %v8604_v0  ;;  %v9691_v0 = vld [vmem:[%s12065_s17 + $0x20] sm:$0xff] }
 0xd5d   :  { %4545 = vmatmul.mubr.bf16.vlgmr.msra.gmra.mrb[28].mxu0 %v2349_v1  ;;  %v2252_v1 = vrot.slane %v9691_v0, %v9462_v38 }
 0xd5e   :  { %7271 = vmatpush3.bf16.msra.mxu0 %v8605_v2  ;;  %4624 = vmatprep.mubr.bf16.mxu0 %v2354_v23  ;;  %v8698_v2 = vld [vmem:[%s12062_s18 + $0x478] sm:$0xff]  }
 0xd5f   :  { %7272 = vmatprep.subr.bf16.mxu0 %v8608_v4  ;;  %v8570_v4 = vld [vmem:[%s12062_s18 + $0x80] sm:$0xff]   ;;  %v8581_v23 = vld [vmem:[%s12062_s18 + $0xd8] sm:$0xff]  }
 0xd62   :  { %7273 = vmatpush3.bf16.msra.mxu0 %v8609_v5  ;;  %v2348_v5 = vpack.c.bf16 %v2193_v62, %v2193_v62  ;;  %v8610_v62 = vld [vmem:[%s12062_s18 + $0x1d0] sm:$0xff]  }
 0xd63   :  { %7274 = vmatprep.subr.bf16.mxu0 %v8612_v6  ;;  %v8700_v6 = vld [vmem:[%s12062_s18 + $0x438] sm:$0xff]  }
 0xd66   :  { %7275 = vmatpush3.bf16.msra.mxu0 %v8613_v7  ;;  %v2260_v7 = vcombine.high %v2252_v1, %v2252_v1 }
 0xd67   :  { %7276 = vmatprep.subr.bf16.mxu0 %v8616_v8  ;;  %v8573_v8 = vld [vmem:[%s12062_s18 + $0xc8] sm:$0xff]  }
 0xd6a   :  { %7277 = vmatpush3.bf16.msra.mxu0 %v8617_v9 }
 0xd6b   :  { %7278 = vmatprep.subr.bf16.mxu0 %v8620_v10  ;;  %v2362_v10 = vpack.c.bf16 %v2260_v7, %v2260_v7  ;;  %v8745_v7 = vld [vmem:[%s12062_s18 + $0x610] sm:$0xff]  }
 0xd6e   :  { %7279 = vmatpush3.bf16.msra.mxu0 %v8621_v11 }
 0xd6f   :  { %7280 = vmatprep.subr.bf16.mxu0 %v8624_v12  ;;  %v2361_v12 = vpack.c.bf16 %v2252_v1, %v2252_v1  ;;  %v8611_v1 = vld [vmem:[%s12062_s18 + $0x190] sm:$0xff]  }
 0xd72   :  { %7281 = vmatpush3.bf16.msra.mxu0 %v8625_v13  ;;  %v8703_v13 = vld [vmem:[%s12062_s18 + $0x540] sm:$0xff]  }
 0xd73   :  { %7282 = vmatprep.subr.bf16.mxu0 %v8628_v14  ;;  %v8574_v14 = vld [vmem:[%s12062_s18 + $0x88] sm:$0xff]  }
 0xd76   :  { %7283 = vmatpush3.bf16.msra.mxu0 %v8629_v15  ;;  %v8704_v15 = vld [vmem:[%s12062_s18 + $0x500] sm:$0xff]  }
 0xd77   :  { %7284 = vmatprep.subr.bf16.mxu0 %v8632_v19  ;;  %v8707_v19 = vld [vmem:[%s12062_s18 + $0x548] sm:$0xff]  }
 0xd7a   :  { %7285 = vmatpush3.bf16.msra.mxu0 %v8634_v20  ;;  %v8578_v20 = vld [vmem:[%s12062_s18 + $0x90] sm:$0xff]  }
 0xd7b   :  { %7314 = vmatprep.subr.bf16.mxu0 %v8637_v27  ;;  %v8582_v27 = vld [vmem:[%s12062_s18 + $0x98] sm:$0xff]  }
 0xd7d   :  { %4625 = vmatmul.mubr.bf16.vlgmr.msra.gmra.mrb[32].mxu0 %v2353_v26  ;;  %v8711_v26 = vld [vmem:[%s12062_s18 + $0x550] sm:$0xff]  }
 0xd7e   :  { %7315 = vmatpush3.bf16.msra.mxu0 %v8638_v28  ;;  %4704 = vmatprep.mubr.bf16.mxu0 %v2358_v46  ;;  %v8712_v28 = vld [vmem:[%s12062_s18 + $0x510] sm:$0xff]  }
 0xd7f   :  { %7316 = vmatprep.subr.bf16.mxu0 %v8641_v29  ;;  %v8585_v29 = vld [vmem:[%s12062_s18 + $0xe0] sm:$0xff]  }
 0xd82   :  { %7317 = vmatpush3.bf16.msra.mxu0 %v8642_v30  ;;  %v8715_v30 = vld [vmem:[%s12062_s18 + $0x558] sm:$0xff]  }
 0xd83   :  { %7318 = vmatprep.subr.bf16.mxu0 %v8645_v31  ;;  %v8586_v31 = vld [vmem:[%s12062_s18 + $0xa0] sm:$0xff]  }
 0xd86   :  { %7319 = vmatpush3.bf16.msra.mxu0 %v8646_v22  ;;  %v8716_v22 = vld [vmem:[%s12062_s18 + $0x518] sm:$0xff]  }
 0xd87   :  { %7320 = vmatprep.subr.bf16.mxu0 %v8649_v24  ;;  %v8589_v24 = vld [vmem:[%s12062_s18 + $0xe8] sm:$0xff]  }
 0xd8a   :  { %7321 = vmatpush3.bf16.msra.mxu0 %v8650_v25  ;;  %v8719_v25 = vld [vmem:[%s12062_s18 + $0x560] sm:$0xff]  }
 0xd8b   :  { %7322 = vmatprep.subr.bf16.mxu0 %v8653_v32  ;;  %v8590_v32 = vld [vmem:[%s12062_s18 + $0xa8] sm:$0xff]  }
 0xd8e   :  { %7323 = vmatpush3.bf16.msra.mxu0 %v8654_v33  ;;  %v2194_v33 = vcombine.high %v9519_v58, %v9519_v58  ;;  %v8594_v58 = vld [vmem:[%s12062_s18 + $0xb0] sm:$0xff]  }
 0xd8f   :  { %7324 = vmatprep.subr.bf16.mxu0 %v8657_v34  ;;  %v8720_v34 = vld [vmem:[%s12062_s18 + $0x520] sm:$0xff]  }
 0xd92   :  { %7325 = vmatpush3.bf16.msra.mxu0 %v8658_v35  ;;  %v8593_v35 = vld [vmem:[%s12062_s18 + $0xf0] sm:$0xff]  }
 0xd93   :  { %7326 = vmatprep.subr.bf16.mxu0 %v8661_v36  ;;  %v8723_v36 = vld [vmem:[%s12062_s18 + $0x568] sm:$0xff]  }
 0xd96   :  { %7327 = vmatpush3.bf16.msra.mxu0 %v8662_v40  ;;  %v9777_v40 = vrot.slane %v2194_v33, %v9462_v38  ;;  %v8636_v33 = vld [vmem:[%s12062_s18 + $0x280] sm:$0xff]  }
 0xd97   :  { %7328 = vmatprep.subr.bf16.mxu0 %v8665_v43  ;;  %v8597_v43 = vld [vmem:[%s12062_s18 + $0xf8] sm:$0xff]  }
 0xd98   :  { %v2210_v46 = vcombine.high %v9777_v40, %v9777_v40 }
 0xd9a   :  { %7329 = vmatpush3.bf16.msra.mxu0 %v8667_v44  ;;  %v8727_v44 = vld [vmem:[%s12062_s18 + $0x570] sm:$0xff]  }
 0xd9b   :  { %7358 = vmatprep.subr.bf16.mxu0 %v8670_v18  ;;  %v8602_v18 = vld [vmem:[%s12062_s18 + $0x1c0] sm:$0xff]  }
 0xd9d   :  { %4705 = vmatmul.mubr.bf16.vlgmr.msra.gmra.mrb[36].mxu0 %v2357_v47  ;;  %v8728_v47 = vld [vmem:[%s12062_s18 + $0x530] sm:$0xff]  }
 0xd9e   :  { %7359 = vmatpush3.bf16.msra.mxu0 %v8671_v48  ;;  %4784 = vmatprep.mubr.bf16.mxu0 %v2362_v10  ;;  %v9802_v48 = vld [vmem:[%s12065_s17 + $0x28] sm:$0xff]  ;;  %v8619_v10 = vld [vmem:[%s12062_s18 + $0x1a0] sm:$0xff]  }
 0xd9f   :  { %7360 = vmatprep.subr.bf16.mxu0 %v8674_v49  ;;  %v2269_v49 = vrot.slane %v9802_v48, %v9462_v38 }
 0xda2   :  { %7361 = vmatpush3.bf16.msra.mxu0 %v8675_v50  ;;  %v2347_v50 = vpack.c.bf16 %v9675_v60, %v9675_v60  ;;  %v8736_v60 = vld [vmem:[%s12062_s18 + $0x640] sm:$0xff]  }
 0xda3   :  { %7362 = vmatprep.subr.bf16.mxu0 %v8678_v51  ;;  %v8731_v51 = vld [vmem:[%s12062_s18 + $0x578] sm:$0xff]  }
 0xda6   :  { %7363 = vmatpush3.bf16.msra.mxu0 %v8679_v52  ;;  %v8603_v52 = vld [vmem:[%s12062_s18 + $0x180] sm:$0xff]  }
 0xda7   :  { %7364 = vmatprep.subr.bf16.mxu0 %v8682_v53  ;;  %v2352_v53 = vpack.c.bf16 %v2210_v46, %v2210_v46  ;;  %v8643_v46 = vld [vmem:[%s12062_s18 + $0x2d0] sm:$0xff]  }
 0xdaa   :  { %7365 = vmatpush3.bf16.msra.mxu0 %v8683_v54  ;;  %v8733_v54 = vld [vmem:[%s12062_s18 + $0x538] sm:$0xff]  }
 0xdab   :  { %7366 = vmatprep.subr.bf16.mxu0 %v8686_v55  ;;  %v2277_v55 = vcombine.high %v2269_v49, %v2269_v49 }
 0xdae   :  { %7367 = vmatpush3.bf16.msra.mxu0 %v8687_v57  ;;  %v2366_v57 = vpack.c.bf16 %v2277_v55, %v2277_v55  ;;  %v8781_v55 = vld [vmem:[%s12062_s18 + $0x758] sm:$0xff]  }
 0xdaf   :  { %7368 = vmatprep.subr.bf16.mxu0 %v8690_v59  ;;  %v2365_v59 = vpack.c.bf16 %v2269_v49, %v2269_v49  ;;  %v8774_v49 = vld [vmem:[%s12062_s18 + $0x708] sm:$0xff]  }
 0xdb2   :  { %7369 = vmatpush3.bf16.msra.mxu0 %v8691_v61  ;;  %v8607_v61 = vld [vmem:[%s12062_s18 + $0x188] sm:$0xff]  }
 0xdb3   :  { %7370 = vmatprep.subr.bf16.mxu0 %v8694_v39  ;;  %v8737_v39 = vld [vmem:[%s12062_s18 + $0x600] sm:$0xff]  }
 0xdb6   :  { %7371 = vmatpush3.bf16.msra.mxu0 %v8695_v63  ;;  %v8740_v63 = vld [vmem:[%s12062_s18 + $0x648] sm:$0xff]  }
 0xdb7   :  { %7372 = vmatprep.subr.bf16.mxu0 %v8698_v2  ;;  %v8741_v2 = vld [vmem:[%s12062_s18 + $0x608] sm:$0xff]  }
 0xdba   :  { %7373 = vmatpush3.bf16.msra.mxu0 %v8700_v6  ;;  %v8615_v6 = vld [vmem:[%s12062_s18 + $0x198] sm:$0xff]  }
 0xdbb   :  { %7402 = vmatprep.subr.bf16.mxu0 %v8703_v13  ;;  %v8752_v13 = vld [vmem:[%s12062_s18 + $0x660] sm:$0xff]  }
 0xdbd   :  { %4785 = vmatmul.mubr.bf16.vlgmr.msra.gmra.mrb[40].mxu0 %v2361_v12  ;;  %v8622_v12 = vld [vmem:[%s12062_s18 + $0x1e8] sm:$0xff]  }
 0xdbe   :  { %7403 = vmatpush3.bf16.msra.mxu0 %v8704_v15  ;;  %4864 = vmatprep.mubr.bf16.mxu0 %v2366_v57  ;;  %v2211_v15 = vcombine.high %v9574_v16, %v9574_v16  ;;  %v8627_v16 = vld [vmem:[%s12062_s18 + $0x1b0] sm:$0xff]   ;;  %v8782_v57 = vld [vmem:[%s12062_s18 + $0x718] sm:$0xff]  }
 0xdbf   :  { %7404 = vmatprep.subr.bf16.mxu0 %v8707_v19  ;;  %v8626_v19 = vld [vmem:[%s12062_s18 + $0x1f0] sm:$0xff]  }
 0xdc2   :  { %7405 = vmatpush3.bf16.msra.mxu0 %v8708_v21  ;;  %v9889_v21 = vrot.slane %v2211_v15, %v9462_v38  ;;  %v8669_v15 = vld [vmem:[%s12062_s18 + $0x380] sm:$0xff]  }
 0xdc3   :  { %7406 = vmatprep.subr.bf16.mxu0 %v8711_v26  ;;  %v8630_v26 = vld [vmem:[%s12062_s18 + $0x1f8] sm:$0xff]  }
 0xdc6   :  { %7407 = vmatpush3.bf16.msra.mxu0 %v8712_v28  ;;  %v8631_v28 = vld [vmem:[%s12062_s18 + $0x1b8] sm:$0xff]  }
 0xdc7   :  { %7408 = vmatprep.subr.bf16.mxu0 %v8715_v30  ;;  %v8761_v30 = vld [vmem:[%s12062_s18 + $0x630] sm:$0xff]  }
 0xdca   :  { %7409 = vmatpush3.bf16.msra.mxu0 %v8716_v22  ;;  %v9914_v22 = vld [vmem:[%s12065_s17 + $0x30] sm:$0xff] }
 0xdcb   :  { %7410 = vmatprep.subr.bf16.mxu0 %v8719_v25  ;;  %v2351_v25 = vpack.c.bf16 %v9777_v40, %v9777_v40 }
 0xdce   :  { %7411 = vmatpush3.bf16.msra.mxu0 %v8720_v34 }
 0xdcf   :  { %7412 = vmatprep.subr.bf16.mxu0 %v8723_v36 }
 0xdd2   :  { %7413 = vmatpush3.bf16.msra.mxu0 %v8724_v42 }
 0xdd3   :  { %7414 = vmatprep.subr.bf16.mxu0 %v8727_v44  ;;  %v8640_v44 = vld [vmem:[%s12062_s18 + $0x288] sm:$0xff]  }
 0xdd6   :  { %7415 = vmatpush3.bf16.msra.mxu0 %v8728_v47  ;;  %v8773_v47 = vld [vmem:[%s12062_s18 + $0x748] sm:$0xff]  }
 0xdd7   :  { %7416 = vmatprep.subr.bf16.mxu0 %v8731_v51  ;;  %v8777_v51 = vld [vmem:[%s12062_s18 + $0x750] sm:$0xff]  }
 0xdda   :  { %7417 = vmatpush3.bf16.msra.mxu0 %v8733_v54  ;;  %v8651_v54 = vld [vmem:[%s12062_s18 + $0x2e0] sm:$0xff]  }
 0xddb   :  { %7446 = vmatprep.subr.bf16.mxu0 %v8736_v60  ;;  %v8785_v60 = vld [vmem:[%s12062_s18 + $0x760] sm:$0xff]  }
 0xddd   :  { %4865 = vmatmul.mubr.bf16.vlgmr.msra.gmra.mrb[44].mxu0 %v2365_v59  ;;  %v8655_v59 = vld [vmem:[%s12062_s18 + $0x2e8] sm:$0xff]  }
 0xdde   :  { %7447 = vmatpush3.bf16.msra.mxu0 %v8737_v39  ;;  %v2228_v39 = vcombine.high %v9629_v41, %v9629_v41  ;;  %v8660_v41 = vld [vmem:[%s12062_s18 + $0x2b0] sm:$0xff]  }
 0xddf   :  { %7448 = vmatprep.subr.bf16.mxu0 %v8740_v63  ;;  %v8659_v63 = vld [vmem:[%s12062_s18 + $0x2f0] sm:$0xff]  }
 0xde2   :  { %7449 = vmatpush3.bf16.msra.mxu0 %v8741_v2  ;;  %v10001_v2 = vrot.slane %v2228_v39, %v9462_v38  ;;  %v8714_v39 = vld [vmem:[%s12062_s18 + $0x498] sm:$0xff]  }
 0xdf0   :  { %v2072_v9 = vpop.f32.mrb[20].mxu0 }
 0xdf1   :  { %v7797_v11 = vpop.f32.mrb[21].mxu0  ;;  %7807 = vmatmul.mubr.msk.f32.vlgmr.msra.gmra.mrb[56].mxu1 %vm153_vm0, %v2072_v9  ;;  %v8748_v9 = vld [vmem:[%s12062_s18 + $0x658] sm:$0xff]  }
 0xdf2   :  { %7205 = vmatpush3.bf16.msra.mxu1 %v8570_v4  ;;  %4504 = vmatprep.mubr.bf16.mxu1 %v2348_v5  ;;  %v8614_v4 = vld [vmem:[%s12062_s18 + $0x1d8] sm:$0xff]   ;;  %v8744_v5 = vld [vmem:[%s12062_s18 + $0x650] sm:$0xff]  }
 0xdf3   :  { %7206 = vmatprep.subr.bf16.mxu1 %v8573_v8  ;;  %v8618_v8 = vld [vmem:[%s12062_s18 + $0x1e0] sm:$0xff]   ;;  %7450 = vmatprep.subr.bf16.mxu0 %v8744_v5  ;;  %v8749_v11 = vld [vmem:[%s12062_s18 + $0x618] sm:$0xff]  }
 0xdf4   :  { %7451 = vmatpush3.bf16.msra.mxu0 %v8745_v7  ;;  %v8663_v5 = vld [vmem:[%s12062_s18 + $0x2f8] sm:$0xff]  }
 0xdf5   :  { %7452 = vmatprep.subr.bf16.mxu0 %v8748_v9  ;;  %v8664_v7 = vld [vmem:[%s12062_s18 + $0x2b8] sm:$0xff]   ;;  %v8794_v9 = vld [vmem:[%s12062_s18 + $0x730] sm:$0xff]  }
 0xdf6   :  { %7207 = vmatpush3.bf16.msra.mxu1 %v8574_v14  ;;  %v8623_v14 = vld [vmem:[%s12062_s18 + $0x1a8] sm:$0xff]  }
 0xdf7   :  { %7208 = vmatprep.subr.bf16.mxu1 %v8577_v17  ;;  %v8753_v17 = vld [vmem:[%s12062_s18 + $0x620] sm:$0xff]  }
 0xdf8   :  { %7453 = vmatpush3.bf16.msra.mxu0 %v8749_v11  ;;  %v10026_v11 = vld [vmem:[%s12065_s17 + $0x38] sm:$0xff] }
 0xdf9   :  { %7454 = vmatprep.subr.bf16.mxu0 %v8752_v13  ;;  %v2355_v13 = vpack.c.bf16 %v9889_v21, %v9889_v21 }
 0xdfa   :  { %7209 = vmatpush3.bf16.msra.mxu1 %v8578_v20  ;;  %v8756_v20 = vld [vmem:[%s12062_s18 + $0x668] sm:$0xff]  }
 0xdfb   :  { %7210 = vmatprep.subr.bf16.mxu1 %v8581_v23  ;;  %v8757_v23 = vld [vmem:[%s12062_s18 + $0x628] sm:$0xff]  }
 0xdfc   :  { %7455 = vmatpush3.bf16.msra.mxu0 %v8753_v17 }
 0xdfd   :  { %7456 = vmatprep.subr.bf16.mxu0 %v8756_v20 }
 0xdfe   :  { %7211 = vmatpush3.bf16.msra.mxu1 %v8582_v27  ;;  %v8760_v27 = vld [vmem:[%s12062_s18 + $0x670] sm:$0xff]  }
 0xdff   :  { %7212 = vmatprep.subr.bf16.mxu1 %v8585_v29  ;;  %v2227_v29 = vcombine.high %v9889_v21, %v9889_v21 }
 0xe00   :  { %7457 = vmatpush3.bf16.msra.mxu0 %v8757_v23 }
 0xe01   :  { %7458 = vmatprep.subr.bf16.mxu0 %v8760_v27  ;;  %v2356_v34 = vpack.c.bf16 %v2227_v29, %v2227_v29  ;;  %v8676_v27 = vld [vmem:[%s12062_s18 + $0x3d0] sm:$0xff]   ;;  %v8680_v29 = vld [vmem:[%s12062_s18 + $0x3d8] sm:$0xff]  }
 0xe02   :  { %7213 = vmatpush3.bf16.msra.mxu1 %v8586_v31  ;;  %v8635_v31 = vld [vmem:[%s12062_s18 + $0x2c0] sm:$0xff]  }
 0xe03   :  { %7214 = vmatprep.subr.bf16.mxu1 %v8589_v24  ;;  %v2286_v24 = vrot.slane %v9914_v22, %v9462_v38 }
 0xe04   :  { %7459 = vmatpush3.bf16.msra.mxu0 %v8761_v30  ;;  %v8681_v30 = vld [vmem:[%s12062_s18 + $0x398] sm:$0xff]  }
 0xe05   :  { %v2294_v36 = vcombine.high %v2286_v24, %v2286_v24  ;;  %v2369_v42 = vpack.c.bf16 %v2286_v24, %v2286_v24  ;;  %v8685_v24 = vld [vmem:[%s12062_s18 + $0x3a0] sm:$0xff]  }
 0xe06   :  { %7215 = vmatpush3.bf16.msra.mxu1 %v8590_v32  ;;  %v8764_v32 = vld [vmem:[%s12062_s18 + $0x678] sm:$0xff]  }
 0xe07   :  { %7216 = vmatprep.subr.bf16.mxu1 %v8593_v35  ;;  %v8766_v35 = vld [vmem:[%s12062_s18 + $0x638] sm:$0xff]   ;;  %7460 = vmatprep.subr.bf16.mxu0 %v8764_v32  ;;  %v2370_v40 = vpack.c.bf16 %v2294_v36, %v2294_v36  ;;  %v8688_v32 = vld [vmem:[%s12062_s18 + $0x3e8] sm:$0xff]  }
 0xe08   :  { %7461 = vmatpush3.bf16.msra.mxu0 %v8766_v35 }
 0xe09   :  { %4944 = vmatprep.mubr.bf16.mxu0 %v2370_v40  ;;  %v2245_v40 = vcombine.high %v9691_v0, %v9691_v0 }
 0xe0a   :  { %7217 = vmatpush3.bf16.msra.mxu1 %v8594_v58  ;;  %v8639_v58 = vld [vmem:[%s12062_s18 + $0x2c8] sm:$0xff]  }
 0xe0b   :  { %7218 = vmatprep.subr.bf16.mxu1 %v8597_v43  ;;  %v8769_v43 = vld [vmem:[%s12062_s18 + $0x740] sm:$0xff]   ;;  %4945 = vmatmul.mubr.bf16.vlgmr.msra.gmra.mrb[48].mxu0 %v2369_v42  ;;  %v8692_v42 = vld [vmem:[%s12062_s18 + $0x3f0] sm:$0xff]  }
 0xe0c   :  { %7490 = vmatprep.subr.bf16.mxu0 %v8769_v43  ;;  %v8693_v43 = vld [vmem:[%s12062_s18 + $0x3b0] sm:$0xff]  }
 0xe0e   :  { %7219 = vmatpush3.bf16.msra.mxu1 %v8598_v45  ;;  %v8770_v45 = vld [vmem:[%s12062_s18 + $0x700] sm:$0xff]  }
 0xe0f   :  { %7248 = vmatprep.subr.bf16.mxu1 %v8602_v18  ;;  %7491 = vmatpush3.bf16.msra.mxu0 %v8770_v45  ;;  %v8644_v18 = vld [vmem:[%s12062_s18 + $0x290] sm:$0xff]   ;;  %v8696_v45 = vld [vmem:[%s12062_s18 + $0x3f8] sm:$0xff]  }
 0xe10   :  { %7492 = vmatprep.subr.bf16.mxu0 %v8773_v47 }
 0xe11   :  { %4505 = vmatmul.mubr.bf16.vlgmr.msra.gmra.mrb[60].mxu1 %v2347_v50  ;;  %v8647_v50 = vld [vmem:[%s12062_s18 + $0x2d8] sm:$0xff]  }
 0xe12   :  { %7249 = vmatpush3.bf16.msra.mxu1 %v8603_v52  ;;  %4584 = vmatprep.mubr.bf16.mxu1 %v2352_v53  ;;  %v8648_v52 = vld [vmem:[%s12062_s18 + $0x298] sm:$0xff]   ;;  %v8778_v53 = vld [vmem:[%s12062_s18 + $0x710] sm:$0xff]  }
 0xe13   :  { %7250 = vmatprep.subr.bf16.mxu1 %v8606_v56  ;;  %7493 = vmatpush3.bf16.msra.mxu0 %v8774_v49  ;;  %v8652_v56 = vld [vmem:[%s12062_s18 + $0x2a0] sm:$0xff]   ;;  %v8697_v49 = vld [vmem:[%s12062_s18 + $0x3b8] sm:$0xff]  }
 0xe14   :  { %7494 = vmatprep.subr.bf16.mxu0 %v8777_v51 }
 0xe16   :  { %7251 = vmatpush3.bf16.msra.mxu1 %v8607_v61  ;;  %v8656_v61 = vld [vmem:[%s12062_s18 + $0x2a8] sm:$0xff]  }
 0xe17   :  { %7252 = vmatprep.subr.bf16.mxu1 %v8610_v62  ;;  %7495 = vmatpush3.bf16.msra.mxu0 %v8778_v53  ;;  %v8786_v62 = vld [vmem:[%s12062_s18 + $0x720] sm:$0xff]   ;;  %v2359_v53 = vpack.c.bf16 %v10001_v2, %v10001_v2 }
 0xe18   :  { %7496 = vmatprep.subr.bf16.mxu0 %v8781_v55 }
 0xe1a   :  { %7253 = vmatpush3.bf16.msra.mxu1 %v8611_v1  ;;  %v8789_v1 = vld [vmem:[%s12062_s18 + $0x768] sm:$0xff]  }
 0xe1b   :  { %7254 = vmatprep.subr.bf16.mxu1 %v8614_v4  ;;  %7497 = vmatpush3.bf16.msra.mxu0 %v8782_v57  ;;  %v8790_v4 = vld [vmem:[%s12062_s18 + $0x728] sm:$0xff]  }
 0xe1c   :  { %7498 = vmatprep.subr.bf16.mxu0 %v8785_v60  ;;  %v8706_v57 = vld [vmem:[%s12062_s18 + $0x488] sm:$0xff]   ;;  %v8710_v60 = vld [vmem:[%s12062_s18 + $0x490] sm:$0xff]  }
 0xe1e   :  { %7255 = vmatpush3.bf16.msra.mxu1 %v8615_v6  ;;  %v8793_v6 = vld [vmem:[%s12062_s18 + $0x770] sm:$0xff]  }
 0xe1f   :  { %7256 = vmatprep.subr.bf16.mxu1 %v8618_v8  ;;  %7499 = vmatpush3.bf16.msra.mxu0 %v8786_v62  ;;  %v2244_v8 = vcombine.high %v10001_v2, %v10001_v2  ;;  %v8717_v62 = vld [vmem:[%s12062_s18 + $0x4e0] sm:$0xff]   ;;  %v2262_v2 = vcombine.high %v9802_v48, %v9802_v48 }
 0xe20   :  { %7500 = vmatprep.subr.bf16.mxu0 %v8789_v1  ;;  %v8721_v1 = vld [vmem:[%s12062_s18 + $0x4e8] sm:$0xff]  }
 0xe21   :  { %v2360_v17 = vpack.c.bf16 %v2244_v8, %v2244_v8 }
 0xe22   :  { %7257 = vmatpush3.bf16.msra.mxu1 %v8619_v10  ;;  %v8668_v10 = vld [vmem:[%s12062_s18 + $0x3c0] sm:$0xff]  }
 0xe23   :  { %7258 = vmatprep.subr.bf16.mxu1 %v8622_v12  ;;  %7501 = vmatpush3.bf16.msra.mxu0 %v8790_v4  ;;  %v2303_v12 = vrot.slane %v10026_v11, %v9462_v38  ;;  %v8725_v4 = vld [vmem:[%s12062_s18 + $0x4f0] sm:$0xff]  }
 0xe24   :  { %7502 = vmatprep.subr.bf16.mxu0 %v8793_v6  ;;  %v10142_v6 = vrot.slane %v2262_v2, %v9462_v38 }
 0xe25   :  { %v2311_v20 = vcombine.high %v2303_v12, %v2303_v12  ;;  %v2373_v23 = vpack.c.bf16 %v2303_v12, %v2303_v12  ;;  %v8730_v12 = vld [vmem:[%s12062_s18 + $0x4b8] sm:$0xff]  }
 0xe26   :  { %7259 = vmatpush3.bf16.msra.mxu1 %v8623_v14  ;;  %v8797_v14 = vld [vmem:[%s12062_s18 + $0x778] sm:$0xff]  }
 0xe27   :  { %7260 = vmatprep.subr.bf16.mxu1 %v8626_v19  ;;  %7503 = vmatpush3.bf16.msra.mxu0 %v8794_v9  ;;  %v8799_v19 = vld [vmem:[%s12062_s18 + $0x738] sm:$0xff]   ;;  %v2374_v21 = vpack.c.bf16 %v2311_v20, %v2311_v20 }
 0xe28   :  { %7504 = vmatprep.subr.bf16.mxu0 %v8797_v14 }
 0xe29   :  { %5024 = vmatprep.mubr.bf16.mxu0 %v2374_v21  ;;  %v8739_v21 = vld [vmem:[%s12062_s18 + $0x588] sm:$0xff]  }
 0xe2a   :  { %7261 = vmatpush3.bf16.msra.mxu1 %v8627_v16  ;;  %v8672_v16 = vld [vmem:[%s12062_s18 + $0x3c8] sm:$0xff]  }
 0xe2b   :  { %7262 = vmatprep.subr.bf16.mxu1 %v8630_v26  ;;  %7505 = vmatpush3.bf16.msra.mxu0 %v8799_v19  ;;  %v8673_v26 = vld [vmem:[%s12062_s18 + $0x388] sm:$0xff]   ;;  %v8735_v19 = vld [vmem:[%s12062_s18 + $0x580] sm:$0xff]  }
 0xe2e   :  { %7263 = vmatpush3.bf16.msra.mxu1 %v8631_v28  ;;  %5025 = vmatmul.mubr.bf16.vlgmr.msra.gmra.mrb[52].mxu0 %v2373_v23  ;;  %v8677_v28 = vld [vmem:[%s12062_s18 + $0x390] sm:$0xff]  }
 0xe2f   :  { %7292 = vmatprep.subr.bf16.mxu1 %v8635_v31  ;;  %5392 = vmatprep.mubr.f32.mxu0 %v8817_v3  ;;  %v8684_v31 = vld [vmem:[%s12062_s18 + $0x3e0] sm:$0xff]   ;;  %v8742_v23 = vld [vmem:[%s12062_s18 + $0x5d0] sm:$0xff]  }
 0xe31   :  { %4585 = vmatmul.mubr.bf16.vlgmr.msra.gmra.mrb[64].mxu1 %v2351_v25  ;;  %v7198_v25 = vpop.f32.mrb[24].mxu0 }
 0xe32   :  { %7293 = vmatpush3.bf16.msra.mxu1 %v8636_v33  ;;  %4664 = vmatprep.mubr.bf16.mxu1 %v2356_v34  ;;  %v7199_v33 = vpop.f32.mrb[25].mxu0 }
 0xe33   :  { %7294 = vmatprep.subr.bf16.mxu1 %v8639_v58  ;;  %v10069_v34 = vadd.f32 %v7199_v33, %v7198_v25  ;;  %v7201_v35 = vpop.f32.mrb[26].mxu0  ;;  %v8689_v58 = vld [vmem:[%s12062_s18 + $0x3a8] sm:$0xff]   ;;  %v2279_v25 = vcombine.high %v9914_v22, %v9914_v22  ;;  %v8759_v33 = vld [vmem:[%s12062_s18 + $0x5b0] sm:$0xff]  }
 0xe34   :  { %v7202_v36 = vpop.f32.mrb[27].mxu0 }
 0xe35   :  { %v10201_v35 = vrot.slane %v2279_v25, %v9462_v38  ;;  %v8762_v36 = vld [vmem:[%s12062_s18 + $0x5f8] sm:$0xff]  }
 0xe36   :  { %7295 = vmatpush3.bf16.msra.mxu1 %v8640_v44  ;;  %v10083_v44 = vrot.slane %v2245_v40, %v9462_v38 }
 0xe37   :  { %7296 = vmatprep.subr.bf16.mxu1 %v8643_v46  ;;  %v7242_v46 = vpop.f32.mrb[28].mxu0 }
 0xe38   :  { %v7243_v0 = vpop.f32.mrb[29].mxu0 }
 0xe39   :  { %v10088_v47 = vadd.f32 %v7243_v0, %v7242_v46  ;;  %v8767_v46 = vld [vmem:[%s12062_s18 + $0x6c0] sm:$0xff]   ;;  %v2367_v0 = vpack.c.bf16 %v10142_v6, %v10142_v6 }
 0xe3a   :  { %7297 = vmatpush3.bf16.msra.mxu1 %v8644_v18  ;;  %v7245_v18 = vpop.f32.mrb[30].mxu0 }
 0xe3b   :  { %7298 = vmatprep.subr.bf16.mxu1 %v8647_v50  ;;  %v2261_v50 = vcombine.high %v10083_v44, %v10083_v44  ;;  %v7246_v51 = vpop.f32.mrb[31].mxu0  ;;  %v8768_v18 = vld [vmem:[%s12062_s18 + $0x680] sm:$0xff]  }
 0xe3c   :  { %v8772_v51 = vld [vmem:[%s12062_s18 + $0x688] sm:$0xff]  }
 0xe3d   :  { %v2364_v55 = vpack.c.bf16 %v2261_v50, %v2261_v50  ;;  %v8771_v50 = vld [vmem:[%s12062_s18 + $0x6c8] sm:$0xff]  }
 0xe3e   :  { %7299 = vmatpush3.bf16.msra.mxu1 %v8648_v52  ;;  %v8701_v52 = vld [vmem:[%s12062_s18 + $0x4c0] sm:$0xff]  }
 0xe3f   :  { %7300 = vmatprep.subr.bf16.mxu1 %v8651_v54  ;;  %v8702_v54 = vld [vmem:[%s12062_s18 + $0x480] sm:$0xff]  }
 0xe42   :  { %7301 = vmatpush3.bf16.msra.mxu1 %v8652_v56  ;;  %v8705_v56 = vld [vmem:[%s12062_s18 + $0x4c8] sm:$0xff]  }
 0xe43   :  { %7302 = vmatprep.subr.bf16.mxu1 %v8655_v59  ;;  %v8709_v59 = vld [vmem:[%s12062_s18 + $0x4d0] sm:$0xff]  }
 0xe46   :  { %7303 = vmatpush3.bf16.msra.mxu1 %v8656_v61  ;;  %v8713_v61 = vld [vmem:[%s12062_s18 + $0x4d8] sm:$0xff]  }
 0xe47   :  { %7304 = vmatprep.subr.bf16.mxu1 %v8659_v63  ;;  %v8718_v63 = vld [vmem:[%s12062_s18 + $0x4a0] sm:$0xff]  }
 0xe4a   :  { %7305 = vmatpush3.bf16.msra.mxu1 %v8660_v41  ;;  %v8722_v41 = vld [vmem:[%s12062_s18 + $0x4a8] sm:$0xff]  }
 0xe4b   :  { %7306 = vmatprep.subr.bf16.mxu1 %v8663_v5  ;;  %v8726_v5 = vld [vmem:[%s12062_s18 + $0x4b0] sm:$0xff]  }
 0xe4e   :  { %7307 = vmatpush3.bf16.msra.mxu1 %v8664_v7  ;;  %v8729_v7 = vld [vmem:[%s12062_s18 + $0x4f8] sm:$0xff]  }
 0xe4f   :  { %7336 = vmatprep.subr.bf16.mxu1 %v8668_v10 }
 0xe50   :  { %v7286_v8 = vpop.f32.mrb[32].mxu0 }
 0xe51   :  { %4665 = vmatmul.mubr.bf16.vlgmr.msra.gmra.mrb[68].mxu1 %v2355_v13  ;;  %v7287_v48 = vpop.f32.mrb[33].mxu0  ;;  %v2278_v13 = vcombine.high %v10142_v6, %v10142_v6 }
 0xe52   :  { %7337 = vmatpush3.bf16.msra.mxu1 %v8669_v15  ;;  %4744 = vmatprep.mubr.bf16.mxu1 %v2360_v17  ;;  %v10147_v9 = vadd.f32 %v7287_v48, %v7286_v8  ;;  %v7289_v10 = vpop.f32.mrb[34].mxu0  ;;  %v8734_v15 = vld [vmem:[%s12062_s18 + $0x5c0] sm:$0xff]   ;;  %v2363_v17 = vpack.c.bf16 %v10083_v44, %v10083_v44  ;;  %v2295_v44 = vcombine.high %v10201_v35, %v10201_v35 }
 0xe53   :  { %7338 = vmatprep.subr.bf16.mxu1 %v8672_v16  ;;  %v7290_v14 = vpop.f32.mrb[35].mxu0  ;;  %v2368_v20 = vpack.c.bf16 %v2278_v13, %v2278_v13  ;;  %v8738_v16 = vld [vmem:[%s12062_s18 + $0x5c8] sm:$0xff]   ;;  %v8800_v48 = vld [vmem:[%s12062_s18 + $0x7c0] sm:$0xff]   ;;  %v2371_v10 = vpack.c.bf16 %v10201_v35, %v10201_v35 }
 0xe54   :  { %v8802_v14 = vld [vmem:[%s12062_s18 + $0x7c8] sm:$0xff]  }
 0xe56   :  { %7339 = vmatpush3.bf16.msra.mxu1 %v8673_v26  ;;  %v8743_v26 = vld [vmem:[%s12062_s18 + $0x590] sm:$0xff]  }
 0xe57   :  { %7340 = vmatprep.subr.bf16.mxu1 %v8676_v27  ;;  %v8746_v27 = vld [vmem:[%s12062_s18 + $0x5d8] sm:$0xff]  }
 0xe5a   :  { %7341 = vmatpush3.bf16.msra.mxu1 %v8677_v28  ;;  %v8747_v28 = vld [vmem:[%s12062_s18 + $0x598] sm:$0xff]  }
 0xe5b   :  { %7342 = vmatprep.subr.bf16.mxu1 %v8680_v29  ;;  %v8750_v29 = vld [vmem:[%s12062_s18 + $0x5e0] sm:$0xff]  }
 0xe5e   :  { %7343 = vmatpush3.bf16.msra.mxu1 %v8681_v30  ;;  %v8751_v30 = vld [vmem:[%s12062_s18 + $0x5a0] sm:$0xff]  }
 0xe5f   :  { %7344 = vmatprep.subr.bf16.mxu1 %v8684_v31  ;;  %v8754_v31 = vld [vmem:[%s12062_s18 + $0x5e8] sm:$0xff]  }
 0xe62   :  { %7345 = vmatpush3.bf16.msra.mxu1 %v8685_v24  ;;  %v8755_v24 = vld [vmem:[%s12062_s18 + $0x5a8] sm:$0xff]  }
 0xe63   :  { %7346 = vmatprep.subr.bf16.mxu1 %v8688_v32  ;;  %v8758_v32 = vld [vmem:[%s12062_s18 + $0x5f0] sm:$0xff]  }
 0xe66   :  { %7347 = vmatpush3.bf16.msra.mxu1 %v8689_v58 }
 0xe67   :  { %7348 = vmatprep.subr.bf16.mxu1 %v8692_v42 }
 0xe6a   :  { %7349 = vmatpush3.bf16.msra.mxu1 %v8693_v43  ;;  %v8763_v43 = vld [vmem:[%s12062_s18 + $0x5b8] sm:$0xff]  }
 0xe6b   :  { %7350 = vmatprep.subr.bf16.mxu1 %v8696_v45 }
 0xe6e   :  { %7351 = vmatpush3.bf16.msra.mxu1 %v8697_v49  ;;  %v2372_v49 = vpack.c.bf16 %v2295_v44, %v2295_v44 }
 0xe6f   :  { %7380 = vmatprep.subr.bf16.mxu1 %v8701_v52  ;;  %v8775_v52 = vld [vmem:[%s12062_s18 + $0x6d0] sm:$0xff]  }
 0xe70   :  { %v7330_v58 = vpop.f32.mrb[36].mxu0 }
 0xe71   :  { %4745 = vmatmul.mubr.bf16.vlgmr.msra.gmra.mrb[72].mxu1 %v2359_v53  ;;  %v7331_v22 = vpop.f32.mrb[37].mxu0  ;;  %v8776_v53 = vld [vmem:[%s12062_s18 + $0x690] sm:$0xff]  }
 0xe72   :  { %7381 = vmatpush3.bf16.msra.mxu1 %v8702_v54  ;;  %4824 = vmatprep.mubr.bf16.mxu1 %v2364_v55  ;;  %v10206_v40 = vadd.f32 %v7331_v22, %v7330_v58  ;;  %v7333_v42 = vpop.f32.mrb[38].mxu0  ;;  %v8779_v54 = vld [vmem:[%s12062_s18 + $0x6d8] sm:$0xff]  }
 0xe73   :  { %7382 = vmatprep.subr.bf16.mxu1 %v8705_v56  ;;  %v7334_v45 = vpop.f32.mrb[39].mxu0  ;;  %v8780_v55 = vld [vmem:[%s12062_s18 + $0x698] sm:$0xff]   ;;  %v8783_v56 = vld [vmem:[%s12062_s18 + $0x6e0] sm:$0xff]  }
 0xe74   :  { %v8815_v45 = vld [vmem:[%s12062_s18 + $0x7b8] sm:$0xff]  }
 0xe76   :  { %7383 = vmatpush3.bf16.msra.mxu1 %v8706_v57  ;;  %v8784_v57 = vld [vmem:[%s12062_s18 + $0x6a0] sm:$0xff]  }
 0xe77   :  { %7384 = vmatprep.subr.bf16.mxu1 %v8709_v59  ;;  %v8787_v59 = vld [vmem:[%s12062_s18 + $0x6e8] sm:$0xff]  }
 0xe7a   :  { %7385 = vmatpush3.bf16.msra.mxu1 %v8710_v60  ;;  %v8788_v60 = vld [vmem:[%s12062_s18 + $0x6a8] sm:$0xff]  }
 0xe7b   :  { %7386 = vmatprep.subr.bf16.mxu1 %v8713_v61  ;;  %v2296_v61 = vcombine.high %v10026_v11, %v10026_v11  ;;  %v8795_v11 = vld [vmem:[%s12062_s18 + $0x6f8] sm:$0xff]  }
 0xe7e   :  { %7387 = vmatpush3.bf16.msra.mxu1 %v8714_v39  ;;  %v8791_v39 = vld [vmem:[%s12062_s18 + $0x6f0] sm:$0xff]  }
 0xe7f   :  { %7388 = vmatprep.subr.bf16.mxu1 %v8717_v62 }
 0xe82   :  { %7389 = vmatpush3.bf16.msra.mxu1 %v8718_v63 }
 0xe83   :  { %7390 = vmatprep.subr.bf16.mxu1 %v8721_v1  ;;  %v8792_v1 = vld [vmem:[%s12062_s18 + $0x6b0] sm:$0xff]  }
 0xe86   :  { %7391 = vmatpush3.bf16.msra.mxu1 %v8722_v41  ;;  %v10262_v41 = vrot.slane %v2296_v61, %v9462_v38 }
 0xe87   :  { %7392 = vmatprep.subr.bf16.mxu1 %v8725_v4 }
 0xe88   :  { %v2312_v8 = vcombine.high %v10262_v41, %v10262_v41 }
 0xe8a   :  { %7393 = vmatpush3.bf16.msra.mxu1 %v8726_v5  ;;  %v2376_v13 = vpack.c.bf16 %v2312_v8, %v2312_v8  ;;  %v5208_v8 = vld [vmem:[%s12067_s21 + $0x40] sm:$0xff] }
 0xe8b   :  { %7394 = vmatprep.subr.bf16.mxu1 %v8729_v7  ;;  %v8796_v7 = vld [vmem:[%s12062_s18 + $0x6b8] sm:$0xff]  }
 0xe8e   :  { %7395 = vmatpush3.bf16.msra.mxu1 %v8730_v12  ;;  %v8801_v12 = vld [vmem:[%s12062_s18 + $0x780] sm:$0xff]  }
 0xe8f   :  { %7424 = vmatprep.subr.bf16.mxu1 %v8734_v15  ;;  %v8803_v15 = vld [vmem:[%s12062_s18 + $0x788] sm:$0xff]  }
 0xe90   :  { %v7374_v2 = vpop.f32.mrb[40].mxu0 }
 0xe91   :  { %4825 = vmatmul.mubr.bf16.vlgmr.msra.gmra.mrb[76].mxu1 %v2363_v17  ;;  %v7375_v4 = vpop.f32.mrb[41].mxu0  ;;  %v8804_v17 = vld [vmem:[%s12062_s18 + $0x7d0] sm:$0xff]  }
 0xe92   :  { %7425 = vmatpush3.bf16.msra.mxu1 %v8735_v19  ;;  %4904 = vmatprep.mubr.bf16.mxu1 %v2368_v20  ;;  %v10267_v5 = vadd.f32 %v7375_v4, %v7374_v2  ;;  %v7377_v6 = vpop.f32.mrb[42].mxu0  ;;  %v8805_v19 = vld [vmem:[%s12062_s18 + $0x790] sm:$0xff]   ;;  %v8806_v20 = vld [vmem:[%s12062_s18 + $0x7d8] sm:$0xff]  }
 0xe93   :  { %7426 = vmatprep.subr.bf16.mxu1 %v8738_v16  ;;  %v7378_v38 = vpop.f32.mrb[43].mxu0  ;;  %v8807_v16 = vld [vmem:[%s12062_s18 + $0x798] sm:$0xff]  }
 0xe94   :  { %v5211_v6 = vld [vmem:[%s12067_s21 + $0x58] sm:$0xff] }
 0xe96   :  { %7427 = vmatpush3.bf16.msra.mxu1 %v8739_v21  ;;  %v8808_v21 = vld [vmem:[%s12062_s18 + $0x7e0] sm:$0xff]  }
 0xe97   :  { %7428 = vmatprep.subr.bf16.mxu1 %v8742_v23  ;;  %v8809_v23 = vld [vmem:[%s12062_s18 + $0x7a0] sm:$0xff]  }
 0xe9a   :  { %7429 = vmatpush3.bf16.msra.mxu1 %v8743_v26  ;;  %v8810_v26 = vld [vmem:[%s12062_s18 + $0x7e8] sm:$0xff]  }
 0xe9b   :  { %7430 = vmatprep.subr.bf16.mxu1 %v8746_v27  ;;  %v6746_v27 = vld [vmem:[%s12066_s19] ss:$0 sm:$0xff] }
 0xe9e   :  { %7431 = vmatpush3.bf16.msra.mxu1 %v8747_v28  ;;  %v8811_v28 = vld [vmem:[%s12062_s18 + $0x7a8] sm:$0xff]  }
 0xe9f   :  { %7432 = vmatprep.subr.bf16.mxu1 %v8750_v29  ;;  %v8812_v29 = vld [vmem:[%s12062_s18 + $0x7f0] sm:$0xff]  }
 0xea2   :  { %7433 = vmatpush3.bf16.msra.mxu1 %v8751_v30  ;;  %v4467_v30 = vadd.f32 %v10069_v34, %v6746_v27 }
 0xea3   :  { %7434 = vmatprep.subr.bf16.mxu1 %v8754_v31 }
 0xea6   :  { %7435 = vmatpush3.bf16.msra.mxu1 %v8755_v24 }
 0xea7   :  { %7436 = vmatprep.subr.bf16.mxu1 %v8758_v32 }
 0xeaa   :  { %7437 = vmatpush3.bf16.msra.mxu1 %v8759_v33  ;;  %v8813_v33 = vld [vmem:[%s12062_s18 + $0x7b0] sm:$0xff]  }
 0xeab   :  { %7438 = vmatprep.subr.bf16.mxu1 %v8762_v36  ;;  %v8814_v36 = vld [vmem:[%s12062_s18 + $0x7f8] sm:$0xff]  }
 0xeae   :  { %7439 = vmatpush3.bf16.msra.mxu1 %v8763_v43 }
 0xeaf   :  { %7468 = vmatprep.subr.bf16.mxu1 %v8767_v46 }
 0xeb0   :  { %v7418_v58 = vpop.f32.mrb[44].mxu0 }
 0xeb1   :  { %4905 = vmatmul.mubr.bf16.vlgmr.msra.gmra.mrb[80].mxu1 %v2367_v0  ;;  %v7419_v42 = vpop.f32.mrb[45].mxu0  ;;  %v2375_v0 = vpack.c.bf16 %v10262_v41, %v10262_v41  ;;  %v5209_v41 = vld [vmem:[%s12067_s21 + $0x48] sm:$0xff] }
 0xeb2   :  { %7469 = vmatpush3.bf16.msra.mxu1 %v8768_v18  ;;  %4984 = vmatprep.mubr.bf16.mxu1 %v2372_v49  ;;  %v10325_v43 = vadd.f32 %v7419_v42, %v7418_v58  ;;  %v7421_v34 = vpop.f32.mrb[46].mxu0  ;;  %v5243_v58 = vld [vmem:[%s12067_s21 + $0x158] sm:$0xff] }
 0xeb3   :  { %7470 = vmatprep.subr.bf16.mxu1 %v8771_v50  ;;  %v7422_v46 = vpop.f32.mrb[47].mxu0  ;;  %v5232_v34 = vld [vmem:[%s12067_s21 + $0x100] sm:$0xff] }
 0xeb6   :  { %7471 = vmatpush3.bf16.msra.mxu1 %v8772_v51 }
 0xeb7   :  { %7472 = vmatprep.subr.bf16.mxu1 %v8775_v52 }
 0xeba   :  { %7473 = vmatpush3.bf16.msra.mxu1 %v8776_v53 }
 0xebb   :  { %7474 = vmatprep.subr.bf16.mxu1 %v8779_v54 }
 0xebe   :  { %7475 = vmatpush3.bf16.msra.mxu1 %v8780_v55 }
 0xebf   :  { %7476 = vmatprep.subr.bf16.mxu1 %v8783_v56 }
 0xec2   :  { %7477 = vmatpush3.bf16.msra.mxu1 %v8784_v57 }
 0xec3   :  { %7478 = vmatprep.subr.bf16.mxu1 %v8787_v59 }
 0xec4   :  { %v10256_v62 = vpop.f32.mrb[56].mxu1 }
 0xec5   :  { %v7808_v63 = vpop.f32.mrb[57].mxu1 }
 0xec6   :  { %7479 = vmatpush3.bf16.msra.mxu1 %v8788_v60 }
 0xec7   :  { %7480 = vmatprep.subr.bf16.mxu1 %v8791_v39 }
 0xeca   :  { %7481 = vmatpush3.bf16.msra.mxu1 %v8792_v1  ;;  %v5201_v1 = vld [vmem:[%s12067_s21 + $0x8] sm:$0xff] }
 0xecb   :  { %7482 = vmatprep.subr.bf16.mxu1 %v8795_v11  ;;  %v5203_v11 = vld [vmem:[%s12067_s21 + $0x18] sm:$0xff] }
 0xece   :  { %7483 = vmatpush3.bf16.msra.mxu1 %v8796_v7  ;;  %v5200_v7 = vld [vmem:[%s12067_s21] sm:$0xff] }
 0xecf   :  { %7512 = vmatprep.subr.bf16.mxu1 %v8800_v48 }
 0xed1   :  { %4985 = vmatmul.mubr.bf16.vlgmr.msra.gmra.mrb[84].mxu1 %v2371_v10  ;;  %v8021_v10 = vpack.c.bf16 %v5211_v6, %v5203_v11  ;;  %v5275_v11 = vld [vmem:[%s12067_s21 + $0x258] sm:$0xff]  ;;  %v5266_v6 = vld [vmem:[%s12067_s21 + $0x210] sm:$0xff] }
 0xed2   :  { %7513 = vmatpush3.bf16.msra.mxu1 %v8801_v12  ;;  %5064 = vmatprep.mubr.bf16.mxu1 %v2376_v13  ;;  %v7991_v12 = vpack.c.bf16 %v5208_v8, %v5200_v7  ;;  %v5202_v13 = vld [vmem:[%s12067_s21 + $0x10] sm:$0xff]  ;;  %v5281_v8 = vld [vmem:[%s12067_s21 + $0x288] sm:$0xff] }
 0xed3   :  { %7514 = vmatprep.subr.bf16.mxu1 %v8802_v14  ;;  %v5210_v14 = vld [vmem:[%s12067_s21 + $0x50] sm:$0xff] }
 0xed4   :  { %v5274_v7 = vld [vmem:[%s12067_s21 + $0x250] sm:$0xff] }
 0xed6   :  { %7515 = vmatpush3.bf16.msra.mxu1 %v8803_v15 }
 0xed7   :  { %7516 = vmatprep.subr.bf16.mxu1 %v8804_v17  ;;  %v8023_v17 = vpack.c.bf16 %v5210_v14, %v5202_v13  ;;  %v8039_v13 = vpack.c.bf16 %v5274_v7, %v5266_v6 }
 0xeda   :  { %7517 = vmatpush3.bf16.msra.mxu1 %v8805_v19 }
 0xedb   :  { %7518 = vmatprep.subr.bf16.mxu1 %v8806_v20 }
 0xede   :  { %7519 = vmatpush3.bf16.msra.mxu1 %v8807_v16  ;;  %v5217_v16 = vld [vmem:[%s12067_s21 + $0x88] sm:$0xff] }
 0xedf   :  { %7520 = vmatprep.subr.bf16.mxu1 %v8808_v21  ;;  %v5225_v21 = vld [vmem:[%s12067_s21 + $0xc8] sm:$0xff] }
 0xee0   :  { %v7993_v27 = vpack.c.bf16 %v5225_v21, %v5217_v16  ;;  %v5282_v16 = vld [vmem:[%s12067_s21 + $0x290] sm:$0xff] }
 0xee2   :  { %7521 = vmatpush3.bf16.msra.mxu1 %v8809_v23  ;;  %v5219_v23 = vld [vmem:[%s12067_s21 + $0x98] sm:$0xff] }
 0xee3   :  { %7522 = vmatprep.subr.bf16.mxu1 %v8810_v26 }
 0xee4   :  { %v7220_v31 = vpop.f32.mrb[60].mxu1 }
 0xee5   :  { %v7221_v24 = vpop.f32.mrb[61].mxu1 }
 0xee6   :  { %v7222_v25 = vadd.f32 %v7221_v24, %v7220_v31  ;;  %v7223_v32 = vpop.f32.mrb[62].mxu1  ;;  %7523 = vmatpush3.bf16.msra.mxu1 %v8811_v28  ;;  %v5216_v28 = vld [vmem:[%s12067_s21 + $0x80] sm:$0xff]  ;;  %v5218_v24 = vld [vmem:[%s12067_s21 + $0x90] sm:$0xff] }
 0xee7   :  { %v7224_v35 = vpop.f32.mrb[63].mxu1  ;;  %7524 = vmatprep.subr.bf16.mxu1 %v8812_v29  ;;  %v5224_v29 = vld [vmem:[%s12067_s21 + $0xc0] sm:$0xff]  ;;  %v5233_v32 = vld [vmem:[%s12067_s21 + $0x108] sm:$0xff] }
 0xee8   :  { %v4507_v22 = vadd.f32 %v7222_v25, %v4467_v30  ;;  %v7995_v31 = vpack.c.bf16 %v5224_v29, %v5216_v28  ;;  %v5226_v25 = vld [vmem:[%s12067_s21 + $0xd0] sm:$0xff]  ;;  %v5241_v35 = vld [vmem:[%s12067_s21 + $0x148] sm:$0xff]  ;;  %v5307_v28 = vld [vmem:[%s12067_s21 + $0x358] sm:$0xff] }
 0xeea   :  { %v4547_v44 = vadd.f32 %v10088_v47, %v4507_v22  ;;  %7525 = vmatpush3.bf16.msra.mxu1 %v8813_v33  ;;  %v7462_v47 = vpop.f32.mrb[48].mxu0  ;;  %v8027_v33 = vpack.c.bf16 %v5226_v25, %v5218_v24  ;;  %v7997_v22 = vpack.c.bf16 %v5241_v35, %v5233_v32  ;;  %v5296_v24 = vld [vmem:[%s12067_s21 + $0x300] sm:$0xff]  ;;  %v5306_v35 = vld [vmem:[%s12067_s21 + $0x350] sm:$0xff] }
 0xeeb   :  { %7526 = vmatprep.subr.bf16.mxu1 %v8814_v36  ;;  %v7463_v54 = vpop.f32.mrb[49].mxu0  ;;  %v5235_v36 = vld [vmem:[%s12067_s21 + $0x118] sm:$0xff]  ;;  %v5304_v25 = vld [vmem:[%s12067_s21 + $0x340] sm:$0xff] }
 0xeec   :  { %v10334_v55 = vadd.f32 %v7463_v54, %v7462_v47  ;;  %v7465_v56 = vpop.f32.mrb[50].mxu0  ;;  %v8029_v42 = vpack.c.bf16 %v5243_v58, %v5235_v36  ;;  %v5259_v47 = vld [vmem:[%s12067_s21 + $0x1d8] sm:$0xff]  ;;  %v8015_v36 = vpack.c.bf16 %v5304_v25, %v5296_v24 }
 0xeed   :  { %v7466_v59 = vpop.f32.mrb[51].mxu0  ;;  %v5256_v56 = vld [vmem:[%s12067_s21 + $0x1c0] sm:$0xff]  ;;  %v5223_v24 = vld [vmem:[%s12067_s21 + $0xb8] sm:$0xff] }
 0xeee   :  { %7527 = vmatpush3.bf16.msra.mxu1 %v8815_v45  ;;  %v5234_v45 = vld [vmem:[%s12067_s21 + $0x110] sm:$0xff]  ;;  %v5231_v25 = vld [vmem:[%s12067_s21 + $0xf8] sm:$0xff] }
 0xeef   :  { %8022 = vmatprep.subr.bf16.mxu1 %v8021_v10  ;;  %v5258_v59 = vld [vmem:[%s12067_s21 + $0x1d0] sm:$0xff]  ;;  %v5291_v10 = vld [vmem:[%s12067_s21 + $0x2d8] sm:$0xff] }
 0xef1   :  { %5065 = vmatmul.mubr.bf16.vlgmr.msra.gmra.mrb[88].mxu1 %v2375_v0  ;;  %v5242_v0 = vld [vmem:[%s12067_s21 + $0x150] sm:$0xff] }
 0xef2   :  { %5463 = vmatprep.mubr.f32.mxu1 %v8817_v3  ;;  %8024 = vmatpush1.bf16.msra.mxu1 %v8023_v17  ;;  %v5280_v17 = vld [vmem:[%s12067_s21 + $0x280] sm:$0xff] }
 0xf01   :  { %v7506_v4 = vpop.f32.mrb[52].mxu0 }
 0xf02   :  { %v7507_v48 = vpop.f32.mrb[53].mxu0 }
 0xf03   :  { %v10361_v15 = vadd.f32 %v7507_v48, %v7506_v4  ;;  %v7509_v19 = vpop.f32.mrb[54].mxu0  ;;  %v5272_v4 = vld [vmem:[%s12067_s21 + $0x240] sm:$0xff]  ;;  %v5283_v48 = vld [vmem:[%s12067_s21 + $0x298] sm:$0xff] }
 0xf04   :  { %v7264_v18 = vpop.f32.mrb[64].mxu1  ;;  %v7510_v26 = vpop.f32.mrb[55].mxu0  ;;  %v5288_v19 = vld [vmem:[%s12067_s21 + $0x2c0] sm:$0xff]  ;;  %v8041_v21 = vpack.c.bf16 %v5291_v10, %v5283_v48 }
 0xf05   :  { %v7265_v49 = vpop.f32.mrb[65].mxu1  ;;  %v5297_v26 = vld [vmem:[%s12067_s21 + $0x308] sm:$0xff]  ;;  %v8011_v29 = vpack.c.bf16 %v5288_v19, %v5280_v17 }
 0xf06   :  { %v7266_v50 = vadd.f32 %v7265_v49, %v7264_v18  ;;  %v7267_v51 = vpop.f32.mrb[66].mxu1  ;;  %v5249_v18 = vld [vmem:[%s12067_s21 + $0x188] sm:$0xff] }
 0xf07   :  { %v7268_v52 = vpop.f32.mrb[67].mxu1  ;;  %v5257_v49 = vld [vmem:[%s12067_s21 + $0x1c8] sm:$0xff] }
 0xf08   :  { %v4587_v53 = vadd.f32 %v7266_v50, %v4547_v44  ;;  %v5240_v44 = vld [vmem:[%s12067_s21 + $0x140] sm:$0xff]  ;;  %v8031_v50 = vpack.c.bf16 %v5242_v0, %v5234_v45  ;;  %v8001_v51 = vpack.c.bf16 %v5257_v49, %v5249_v18  ;;  %v5251_v52 = vld [vmem:[%s12067_s21 + $0x198] sm:$0xff] }
 0xf09   :  { %v7999_v46 = vpack.c.bf16 %v5240_v44, %v5232_v34  ;;  %v8033_v54 = vpack.c.bf16 %v5259_v47, %v5251_v52  ;;  %v5315_v34 = vld [vmem:[%s12067_s21 + $0x398] sm:$0xff]  ;;  %v5320_v0 = vld [vmem:[%s12067_s21 + $0x3c0] sm:$0xff]  ;;  %v5322_v52 = vld [vmem:[%s12067_s21 + $0x3d0] sm:$0xff] }
 0xf0a   :  { %v4627_v57 = vadd.f32 %v10147_v9, %v4587_v53  ;;  %v7989_v9 = vpack.c.bf16 %v5209_v41, %v5201_v1  ;;  %v5248_v53 = vld [vmem:[%s12067_s21 + $0x180] sm:$0xff]  ;;  %v5323_v45 = vld [vmem:[%s12067_s21 + $0x3d8] sm:$0xff] }
 0xf0b   :  { %v8049_v49 = vpack.c.bf16 %v5323_v45, %v5315_v34  ;;  %v8089_v45 = vpack.c.bf16 %v5231_v25, %v5223_v24  ;;  %v5294_v24 = vld [vmem:[%s12067_s21 + $0x2f0] sm:$0xff]  ;;  %v5301_v25 = vld [vmem:[%s12067_s21 + $0x328] sm:$0xff] }
 0xf0c   :  { %7990 = vmatprep.subr.bf16.mxu0 %v7989_v9 }
 0xf0d   :  { %7992 = vmatpush1.bf16.msra.mxu0 %v7991_v12 }
 0xf0e   :  { %7994 = vmatprep.subr.bf16.mxu0 %v7993_v27  ;;  %v5305_v27 = vld [vmem:[%s12067_s21 + $0x348] sm:$0xff] }
 0xf11   :  { %7996 = vmatpush1.bf16.msra.mxu0 %v7995_v31  ;;  %v8013_v31 = vpack.c.bf16 %v5305_v27, %v5297_v26 }
 0xf12   :  { %7998 = vmatprep.subr.bf16.mxu0 %v7997_v22  ;;  %v5313_v22 = vld [vmem:[%s12067_s21 + $0x388] sm:$0xff] }
 0xf15   :  { %8000 = vmatpush1.bf16.msra.mxu0 %v7999_v46  ;;  %v5312_v46 = vld [vmem:[%s12067_s21 + $0x380] sm:$0xff] }
 0xf16   :  { %8002 = vmatprep.subr.bf16.mxu0 %v8001_v51  ;;  %v5314_v51 = vld [vmem:[%s12067_s21 + $0x390] sm:$0xff] }
 0xf24   :  { %v7308_v60 = vpop.f32.mrb[68].mxu1 }
 0xf25   :  { %v7309_v61 = vpop.f32.mrb[69].mxu1 }
 0xf26   :  { %v7310_v39 = vadd.f32 %v7309_v61, %v7308_v60  ;;  %v7311_v63 = vpop.f32.mrb[70].mxu1  ;;  %v8003_v60 = vpack.c.bf16 %v5256_v56, %v5248_v53  ;;  %v5265_v61 = vld [vmem:[%s12067_s21 + $0x208] sm:$0xff]  ;;  %v8051_v53 = vpack.c.bf16 %v5322_v52, %v5314_v51  ;;  %v5247_v51 = vld [vmem:[%s12067_s21 + $0x178] sm:$0xff] }
 0xf27   :  { %v7312_v2 = vpop.f32.mrb[71].mxu1  ;;  %v5267_v63 = vld [vmem:[%s12067_s21 + $0x218] sm:$0xff] }
 0xf28   :  { %v4667_v38 = vadd.f32 %v7310_v39, %v4627_v57  ;;  %v5250_v57 = vld [vmem:[%s12067_s21 + $0x190] sm:$0xff]  ;;  %v5273_v39 = vld [vmem:[%s12067_s21 + $0x248] sm:$0xff]  ;;  %v5264_v2 = vld [vmem:[%s12067_s21 + $0x200] sm:$0xff]  ;;  %v8037_v9 = vpack.c.bf16 %v5275_v11, %v5267_v63  ;;  %8004 = vmatpush1.bf16.msra.mxu0 %v8003_v60 }
 0xf29   :  { %v8035_v1 = vpack.c.bf16 %v5258_v59, %v5250_v57  ;;  %v8005_v41 = vpack.c.bf16 %v5273_v39, %v5265_v61  ;;  %v8007_v12 = vpack.c.bf16 %v5272_v4, %v5264_v2  ;;  %v5205_v57 = vld [vmem:[%s12067_s21 + $0x28] sm:$0xff]  ;;  %v5207_v60 = vld [vmem:[%s12067_s21 + $0x38] sm:$0xff] }
 0xf2a   :  { %v10364_v20 = vadd.f32 %v10206_v40, %v4667_v38  ;;  %v5227_v40 = vld [vmem:[%s12067_s21 + $0xd8] sm:$0xff]  ;;  %v5289_v38 = vld [vmem:[%s12067_s21 + $0x2c8] sm:$0xff] }
 0xf2b   :  { %v8025_v30 = vpack.c.bf16 %v5227_v40, %v5219_v23  ;;  %8006 = vmatprep.subr.bf16.mxu0 %v8005_v41  ;;  %v8009_v14 = vpack.c.bf16 %v5289_v38, %v5281_v8  ;;  %v5290_v23 = vld [vmem:[%s12067_s21 + $0x2d0] sm:$0xff]  ;;  %v5299_v40 = vld [vmem:[%s12067_s21 + $0x318] sm:$0xff]  ;;  %v5213_v59 = vld [vmem:[%s12067_s21 + $0x68] sm:$0xff] }
 0xf2c   :  { %8008 = vmatpush1.bf16.msra.mxu0 %v8007_v12  ;;  %v8045_v32 = vpack.c.bf16 %v5307_v28, %v5299_v40  ;;  %v8053_v39 = vpack.c.bf16 %v5213_v59, %v5205_v57  ;;  %v5215_v63 = vld [vmem:[%s12067_s21 + $0x78] sm:$0xff]  ;;  %v5212_v40 = vld [vmem:[%s12067_s21 + $0x60] sm:$0xff]  ;;  %v5238_v59 = vld [vmem:[%s12067_s21 + $0x130] sm:$0xff] }
 0xf2d   :  { %8026 = vmatprep.subr.bf16.mxu1 %v8025_v30  ;;  %8010 = vmatprep.subr.bf16.mxu0 %v8009_v14  ;;  %v8043_v30 = vpack.c.bf16 %v5290_v23, %v5282_v16  ;;  %v8085_v41 = vpack.c.bf16 %v5215_v63, %v5207_v60  ;;  %v5246_v60 = vld [vmem:[%s12067_s21 + $0x170] sm:$0xff]  ;;  %v5255_v63 = vld [vmem:[%s12067_s21 + $0x1b8] sm:$0xff] }
 0xf2e   :  { %8028 = vmatpush1.bf16.msra.mxu1 %v8027_v33  ;;  %v5298_v33 = vld [vmem:[%s12067_s21 + $0x310] sm:$0xff] }
 0xf2f   :  { %8030 = vmatprep.subr.bf16.mxu1 %v8029_v42  ;;  %v8047_v58 = vpack.c.bf16 %v5306_v35, %v5298_v33  ;;  %v5321_v42 = vld [vmem:[%s12067_s21 + $0x3c8] sm:$0xff] }
 0xf30   :  { %8012 = vmatpush1.bf16.msra.mxu0 %v8011_v29  ;;  %v8017_v44 = vpack.c.bf16 %v5321_v42, %v5313_v22  ;;  %v5214_v29 = vld [vmem:[%s12067_s21 + $0x70] sm:$0xff]  ;;  %v5220_v22 = vld [vmem:[%s12067_s21 + $0xa0] sm:$0xff] }
 0xf31   :  { %8014 = vmatprep.subr.bf16.mxu0 %v8013_v31  ;;  %v5229_v31 = vld [vmem:[%s12067_s21 + $0xe8] sm:$0xff]  ;;  %v5228_v42 = vld [vmem:[%s12067_s21 + $0xe0] sm:$0xff] }
 0xf32   :  { %8032 = vmatpush1.bf16.msra.mxu1 %v8031_v50  ;;  %v8019_v50 = vpack.c.bf16 %v5320_v0, %v5312_v46  ;;  %v5222_v46 = vld [vmem:[%s12067_s21 + $0xb0] sm:$0xff]  ;;  %v8059_v52 = vpack.c.bf16 %v5228_v42, %v5220_v22  ;;  %v5300_v22 = vld [vmem:[%s12067_s21 + $0x320] sm:$0xff] }
 0xf33   :  { %8034 = vmatprep.subr.bf16.mxu1 %v8033_v54  ;;  %v5230_v0 = vld [vmem:[%s12067_s21 + $0xf0] sm:$0xff]  ;;  %v5308_v42 = vld [vmem:[%s12067_s21 + $0x360] sm:$0xff] }
 0xf34   :  { %8016 = vmatpush1.bf16.msra.mxu0 %v8015_v36 }
 0xf35   :  { %8018 = vmatprep.subr.bf16.mxu0 %v8017_v44 }
 0xf36   :  { %8036 = vmatpush1.bf16.msra.mxu1 %v8035_v1 }
 0xf37   :  { %8038 = vmatprep.subr.bf16.mxu1 %v8037_v9 }
 0xf38   :  { %8020 = vmatpush1.bf16.msra.mxu0 %v8019_v50  ;;  %v5239_v50 = vld [vmem:[%s12067_s21 + $0x138] sm:$0xff] }
 0xf39   :  { %8054 = vmatprep.subr.bf16.mxu0 %v8053_v39  ;;  %v8093_v57 = vpack.c.bf16 %v5247_v51, %v5239_v50  ;;  %v5261_v39 = vld [vmem:[%s12067_s21 + $0x1e8] sm:$0xff]  ;;  %v5319_v50 = vld [vmem:[%s12067_s21 + $0x3b8] sm:$0xff] }
 0xf3a   :  { %8040 = vmatpush1.bf16.msra.mxu1 %v8039_v13  ;;  %v5327_v51 = vld [vmem:[%s12067_s21 + $0x3f8] sm:$0xff] }
 0xf3b   :  { %8042 = vmatprep.subr.bf16.mxu1 %v8041_v21 }
 0xf3e   :  { %8044 = vmatpush1.bf16.msra.mxu1 %v8043_v30 }
 0xf3f   :  { %8046 = vmatprep.subr.bf16.mxu1 %v8045_v32 }
 0xf42   :  { %8048 = vmatpush1.bf16.msra.mxu1 %v8047_v58 }
 0xf43   :  { %8050 = vmatprep.subr.bf16.mxu1 %v8049_v49  ;;  %v5245_v49 = vld [vmem:[%s12067_s21 + $0x168] sm:$0xff] }
 0xf44   :  { %v7352_v18 = vpop.f32.mrb[72].mxu1 }
 0xf45   :  { %v7353_v47 = vpop.f32.mrb[73].mxu1 }
 0xf46   :  { %v7354_v54 = vadd.f32 %v7353_v47, %v7352_v18  ;;  %v7355_v56 = vpop.f32.mrb[74].mxu1  ;;  %8052 = vmatpush1.bf16.msra.mxu1 %v8051_v53  ;;  %v5237_v18 = vld [vmem:[%s12067_s21 + $0x128] sm:$0xff]  ;;  %v8091_v47 = vpack.c.bf16 %v5230_v0, %v5222_v46  ;;  %v5236_v53 = vld [vmem:[%s12067_s21 + $0x120] sm:$0xff]  ;;  %v5302_v46 = vld [vmem:[%s12067_s21 + $0x330] sm:$0xff] }
 0xf47   :  { %v7356_v61 = vpop.f32.mrb[75].mxu1  ;;  %8086 = vmatprep.subr.bf16.mxu1 %v8085_v41  ;;  %v8061_v56 = vpack.c.bf16 %v5245_v49, %v5237_v18  ;;  %v5310_v0 = vld [vmem:[%s12067_s21 + $0x370] sm:$0xff]  ;;  %v5317_v18 = vld [vmem:[%s12067_s21 + $0x3a8] sm:$0xff] }
 0xf48   :  { %v4747_v1 = vadd.f32 %v7354_v54, %v10364_v20  ;;  %v5244_v54 = vld [vmem:[%s12067_s21 + $0x160] sm:$0xff]  ;;  %v5253_v61 = vld [vmem:[%s12067_s21 + $0x1a8] sm:$0xff] }
 0xf49   :  { %v8063_v41 = vpack.c.bf16 %v5244_v54, %v5236_v53  ;;  %v5325_v49 = vld [vmem:[%s12067_s21 + $0x3e8] sm:$0xff]  ;;  %v5316_v53 = vld [vmem:[%s12067_s21 + $0x3a0] sm:$0xff] }
 0xf4a   :  { %v4787_v11 = vadd.f32 %v10267_v5, %v4747_v1  ;;  %v5263_v1 = vld [vmem:[%s12067_s21 + $0x1f8] sm:$0xff]  ;;  %v5324_v54 = vld [vmem:[%s12067_s21 + $0x3e0] sm:$0xff] }
 0xf64   :  { %v7396_v2 = vpop.f32.mrb[76].mxu1 }
 0xf65   :  { %v7397_v4 = vpop.f32.mrb[77].mxu1 }
 0xf66   :  { %v7398_v9 = vadd.f32 %v7397_v4, %v7396_v2  ;;  %v7399_v6 = vpop.f32.mrb[78].mxu1  ;;  %v5252_v2 = vld [vmem:[%s12067_s21 + $0x1a0] sm:$0xff] }
 0xf67   :  { %v7400_v7 = vpop.f32.mrb[79].mxu1  ;;  %v5260_v4 = vld [vmem:[%s12067_s21 + $0x1e0] sm:$0xff]  ;;  %v8097_v6 = vpack.c.bf16 %v5263_v1, %v5255_v63  ;;  %v5075_v63 = vld [vmem:[%s12068_s20 + $0x18] sm:$0xff] }
 0xf68   :  { %v4827_v8 = vadd.f32 %v7398_v9, %v4787_v11  ;;  %v8095_v11 = vpack.c.bf16 %v5246_v60, %v5238_v59  ;;  %v8065_v9 = vpack.c.bf16 %v5261_v39, %v5253_v61  ;;  %v5254_v7 = vld [vmem:[%s12067_s21 + $0x1b0] sm:$0xff]  ;;  %v5073_v61 = vld [vmem:[%s12068_s20 + $0x8] sm:$0xff]  ;;  %v5083_v1 = vld [vmem:[%s12068_s20 + $0x58] sm:$0xff] }
 0xf69   :  { %v5318_v59 = vld [vmem:[%s12067_s21 + $0x3b0] sm:$0xff]  ;;  %v5081_v39 = vld [vmem:[%s12068_s20 + $0x48] sm:$0xff] }
 0xf6a   :  { %v4867_v38 = vadd.f32 %v10325_v43, %v4827_v8  ;;  %v5204_v43 = vld [vmem:[%s12067_s21 + $0x20] sm:$0xff]  ;;  %v5262_v8 = vld [vmem:[%s12067_s21 + $0x1f0] sm:$0xff] }
 0xf6b   :  { %v8055_v36 = vpack.c.bf16 %v5212_v40, %v5204_v43  ;;  %v5295_v43 = vld [vmem:[%s12067_s21 + $0x2f8] sm:$0xff]  ;;  %v5326_v60 = vld [vmem:[%s12067_s21 + $0x3f0] sm:$0xff] }
 0xf84   :  { %v7440_v48 = vpop.f32.mrb[80].mxu1 }
 0xf85   :  { %v7441_v10 = vpop.f32.mrb[81].mxu1 }
 0xf86   :  { %v7442_v12 = vadd.f32 %v7441_v10, %v7440_v48  ;;  %v7443_v13 = vpop.f32.mrb[82].mxu1  ;;  %v5277_v48 = vld [vmem:[%s12067_s21 + $0x268] sm:$0xff]  ;;  %v5271_v10 = vld [vmem:[%s12067_s21 + $0x238] sm:$0xff] }
 0xf87   :  { %v7444_v14 = vpop.f32.mrb[83].mxu1  ;;  %v8067_v13 = vpack.c.bf16 %v5260_v4, %v5252_v2  ;;  %v5072_v2 = vld [vmem:[%s12068_s20] sm:$0xff] }
 0xf88   :  { %v4907_v17 = vadd.f32 %v7442_v12, %v4867_v38  ;;  %v5269_v38 = vld [vmem:[%s12067_s21 + $0x228] sm:$0xff]  ;;  %v5279_v12 = vld [vmem:[%s12067_s21 + $0x278] sm:$0xff]  ;;  %v8099_v14 = vpack.c.bf16 %v5262_v8, %v5254_v7  ;;  %v5080_v4 = vld [vmem:[%s12068_s20 + $0x40] sm:$0xff] }
 0xf89   :  { %v5074_v7 = vld [vmem:[%s12068_s20 + $0x10] sm:$0xff] }
 0xf8a   :  { %v4947_v20 = vadd.f32 %v10334_v55, %v4907_v17  ;;  %v5206_v55 = vld [vmem:[%s12067_s21 + $0x30] sm:$0xff]  ;;  %v5268_v17 = vld [vmem:[%s12067_s21 + $0x220] sm:$0xff] }
 0xf8b   :  { %v8087_v58 = vpack.c.bf16 %v5214_v29, %v5206_v55  ;;  %v5284_v55 = vld [vmem:[%s12067_s21 + $0x2a0] sm:$0xff]  ;;  %v5082_v8 = vld [vmem:[%s12068_s20 + $0x50] sm:$0xff] }
 0xf8c   :  { %v5292_v29 = vld [vmem:[%s12067_s21 + $0x2e0] sm:$0xff] }
 0xfa4   :  { %v7484_v19 = vpop.f32.mrb[84].mxu1 }
 0xfa5   :  { %v7485_v16 = vpop.f32.mrb[85].mxu1 }
 0xfa6   :  { %v7486_v5 = vadd.f32 %v7485_v16, %v7484_v19  ;;  %v7487_v21 = vpop.f32.mrb[86].mxu1  ;;  %v8069_v19 = vpack.c.bf16 %v5277_v48, %v5269_v38  ;;  %v8101_v16 = vpack.c.bf16 %v5279_v12, %v5271_v10  ;;  %v5089_v38 = vld [vmem:[%s12068_s20 + $0x88] sm:$0xff]  ;;  %v5091_v10 = vld [vmem:[%s12068_s20 + $0x98] sm:$0xff] }
 0xfa7   :  { %v7488_v23 = vpop.f32.mrb[87].mxu1  ;;  %v5278_v21 = vld [vmem:[%s12067_s21 + $0x270] sm:$0xff]  ;;  %v5097_v48 = vld [vmem:[%s12068_s20 + $0xc8] sm:$0xff]  ;;  %v5099_v12 = vld [vmem:[%s12068_s20 + $0xd8] sm:$0xff] }
 0xfa8   :  { %v4987_v26 = vadd.f32 %v7486_v5, %v4947_v20  ;;  %v5276_v20 = vld [vmem:[%s12067_s21 + $0x260] sm:$0xff]  ;;  %v5270_v5 = vld [vmem:[%s12067_s21 + $0x230] sm:$0xff]  ;;  %v5285_v23 = vld [vmem:[%s12067_s21 + $0x2a8] sm:$0xff] }
 0xfa9   :  { %v8071_v40 = vpack.c.bf16 %v5276_v20, %v5268_v17  ;;  %v5088_v17 = vld [vmem:[%s12068_s20 + $0x80] sm:$0xff] }
 0xfaa   :  { %v5027_v27 = vadd.f32 %v10361_v15, %v4987_v26  ;;  %v5221_v15 = vld [vmem:[%s12067_s21 + $0xa8] sm:$0xff]  ;;  %v5096_v20 = vld [vmem:[%s12068_s20 + $0xc0] sm:$0xff] }
 0xfab   :  { %v8057_v44 = vpack.c.bf16 %v5229_v31, %v5221_v15  ;;  %v5293_v26 = vld [vmem:[%s12067_s21 + $0x2e8] sm:$0xff]  ;;  %v5286_v31 = vld [vmem:[%s12067_s21 + $0x2b0] sm:$0xff] }
 0xfac   :  { %v8073_v15 = vpack.c.bf16 %v5293_v26, %v5285_v23  ;;  %v5105_v23 = vld [vmem:[%s12068_s20 + $0x108] sm:$0xff] }
 0xfad   :  { %v5113_v26 = vld [vmem:[%s12068_s20 + $0x148] sm:$0xff] }
 0xfc4   :  { %v7528_v28 = vpop.f32.mrb[88].mxu1 }
 0xfc5   :  { %v7529_v30 = vpop.f32.mrb[89].mxu1 }
 0xfc6   :  { %v7530_v32 = vadd.f32 %v7529_v30, %v7528_v28  ;;  %v7531_v33 = vpop.f32.mrb[90].mxu1  ;;  %v8103_v28 = vpack.c.bf16 %v5278_v21, %v5270_v5  ;;  %v5090_v5 = vld [vmem:[%s12068_s20 + $0x90] sm:$0xff] }
 0xfc7   :  { %v7532_v35 = vpop.f32.mrb[91].mxu1  ;;  %v5303_v33 = vld [vmem:[%s12067_s21 + $0x338] sm:$0xff]  ;;  %v5098_v21 = vld [vmem:[%s12068_s20 + $0xd0] sm:$0xff] }
 0xfc8   :  { %v10581_v34 = vadd.f32 %v7530_v32, %v5027_v27  ;;  %v5287_v27 = vld [vmem:[%s12067_s21 + $0x2b8] sm:$0xff]  ;;  %v5309_v32 = vld [vmem:[%s12067_s21 + $0x368] sm:$0xff] }
 0xfc9   :  { %v8105_v30 = vpack.c.bf16 %v5295_v43, %v5287_v27  ;;  %v5311_v35 = vld [vmem:[%s12067_s21 + $0x378] sm:$0xff] }
 0xfca   :  { %5393 = vmatmul.mubr.f32.vlgmr.msra.gmra.mrb[22].mxu0 %v10581_v34  ;;  %5464 = vmatmul.mubr.f32.vlgmr.msra.gmra.mrb[58].mxu1 %v10581_v34  ;;  %v5107_v27 = vld [vmem:[%s12068_s20 + $0x118] sm:$0xff] }
 0xfcb   :  { %8056 = vmatpush1.bf16.msra.mxu0 %v8055_v36  ;;  %8088 = vmatpush1.bf16.msra.mxu1 %v8087_v58  ;;  %v8075_v36 = vpack.c.bf16 %v5292_v29, %v5284_v55  ;;  %v8107_v58 = vpack.c.bf16 %v5294_v24, %v5286_v31  ;;  %v5115_v43 = vld [vmem:[%s12068_s20 + $0x158] sm:$0xff]  ;;  %v5104_v55 = vld [vmem:[%s12068_s20 + $0x100] sm:$0xff]  ;;  %v5114_v31 = vld [vmem:[%s12068_s20 + $0x150] sm:$0xff] }
 0xfcc   :  { %8058 = vmatprep.subr.bf16.mxu0 %v8057_v44  ;;  %8090 = vmatprep.subr.bf16.mxu1 %v8089_v45  ;;  %v8077_v44 = vpack.c.bf16 %v5309_v32, %v5301_v25  ;;  %v8109_v45 = vpack.c.bf16 %v5311_v35, %v5303_v33  ;;  %v5112_v29 = vld [vmem:[%s12068_s20 + $0x140] sm:$0xff]  ;;  %v5121_v24 = vld [vmem:[%s12068_s20 + $0x188] sm:$0xff]  ;;  %v5123_v32 = vld [vmem:[%s12068_s20 + $0x198] sm:$0xff] }
 0xfcd   :  { %5534 = vmatprep.mubr.f32.mxu0 %v8817_v3  ;;  %5605 = vmatprep.mubr.f32.mxu1 %v8817_v3  ;;  %v5129_v25 = vld [vmem:[%s12068_s20 + $0x1c8] sm:$0xff]  ;;  %v5131_v33 = vld [vmem:[%s12068_s20 + $0x1d8] sm:$0xff]  ;;  %v8127_v35 = vpack.c.bf16 %v5112_v29, %v5104_v55  ;;  %v5184_v55 = vld [vmem:[%s12068_s20 + $0x380] sm:$0xff] }
 0xfce   :  { %v5192_v29 = vld [vmem:[%s12068_s20 + $0x3c0] sm:$0xff] }
 0xfcf   :  { %8060 = vmatpush1.bf16.msra.mxu0 %v8059_v52  ;;  %8092 = vmatpush1.bf16.msra.mxu1 %v8091_v47  ;;  %v8079_v52 = vpack.c.bf16 %v5308_v42, %v5300_v22  ;;  %v8111_v47 = vpack.c.bf16 %v5310_v0, %v5302_v46  ;;  %v5128_v22 = vld [vmem:[%s12068_s20 + $0x1c0] sm:$0xff]  ;;  %v8129_v42 = vpack.c.bf16 %v5129_v25, %v5121_v24  ;;  %v5130_v46 = vld [vmem:[%s12068_s20 + $0x1d0] sm:$0xff]  ;;  %v5137_v0 = vld [vmem:[%s12068_s20 + $0x208] sm:$0xff] }
 0xfd0   :  { %8062 = vmatprep.subr.bf16.mxu0 %v8061_v56  ;;  %8094 = vmatprep.subr.bf16.mxu1 %v8093_v57  ;;  %v8081_v56 = vpack.c.bf16 %v5325_v49, %v5317_v18  ;;  %v8113_v57 = vpack.c.bf16 %v5327_v51, %v5319_v50  ;;  %v5145_v18 = vld [vmem:[%s12068_s20 + $0x248] sm:$0xff]  ;;  %v5139_v49 = vld [vmem:[%s12068_s20 + $0x218] sm:$0xff] }
 0xfd1   :  { %v5147_v50 = vld [vmem:[%s12068_s20 + $0x258] sm:$0xff]  ;;  %v5077_v24 = vld [vmem:[%s12068_s20 + $0x28] sm:$0xff] }
 0xfd2   :  { %v5085_v25 = vld [vmem:[%s12068_s20 + $0x68] sm:$0xff] }
 0xfd3   :  { %8064 = vmatpush1.bf16.msra.mxu0 %v8063_v41  ;;  %8096 = vmatpush1.bf16.msra.mxu1 %v8095_v11  ;;  %v8083_v41 = vpack.c.bf16 %v5324_v54, %v5316_v53  ;;  %v8115_v11 = vpack.c.bf16 %v5326_v60, %v5318_v59  ;;  %v5144_v53 = vld [vmem:[%s12068_s20 + $0x240] sm:$0xff]  ;;  %v8133_v54 = vpack.c.bf16 %v5145_v18, %v5137_v0  ;;  %v5146_v59 = vld [vmem:[%s12068_s20 + $0x250] sm:$0xff]  ;;  %v5153_v60 = vld [vmem:[%s12068_s20 + $0x288] sm:$0xff] }
 0xfd4   :  { %8066 = vmatprep.subr.bf16.mxu0 %v8065_v9  ;;  %8098 = vmatprep.subr.bf16.mxu1 %v8097_v6  ;;  %v8117_v9 = vpack.c.bf16 %v5081_v39, %v5073_v61  ;;  %v8149_v6 = vpack.c.bf16 %v5083_v1, %v5075_v63  ;;  %v5161_v61 = vld [vmem:[%s12068_s20 + $0x2c8] sm:$0xff]  ;;  %v5155_v39 = vld [vmem:[%s12068_s20 + $0x298] sm:$0xff]  ;;  %v5086_v0 = vld [vmem:[%s12068_s20 + $0x70] sm:$0xff] }
 0xfd5   :  { %v5163_v63 = vld [vmem:[%s12068_s20 + $0x2d8] sm:$0xff]  ;;  %v5093_v18 = vld [vmem:[%s12068_s20 + $0xa8] sm:$0xff] }
 0xfd7   :  { %8068 = vmatpush1.bf16.msra.mxu0 %v8067_v13  ;;  %8100 = vmatpush1.bf16.msra.mxu1 %v8099_v14  ;;  %v8119_v13 = vpack.c.bf16 %v5080_v4, %v5072_v2  ;;  %v8151_v14 = vpack.c.bf16 %v5082_v8, %v5074_v7  ;;  %v5160_v2 = vld [vmem:[%s12068_s20 + $0x2c0] sm:$0xff]  ;;  %v8137_v4 = vpack.c.bf16 %v5161_v61, %v5153_v60  ;;  %v5162_v7 = vld [vmem:[%s12068_s20 + $0x2d0] sm:$0xff]  ;;  %v5169_v8 = vld [vmem:[%s12068_s20 + $0x308] sm:$0xff] }
 0xfd8   :  { %8070 = vmatprep.subr.bf16.mxu0 %v8069_v19  ;;  %8102 = vmatprep.subr.bf16.mxu1 %v8101_v16  ;;  %v8121_v19 = vpack.c.bf16 %v5097_v48, %v5089_v38  ;;  %v8153_v16 = vpack.c.bf16 %v5099_v12, %v5091_v10  ;;  %v5177_v38 = vld [vmem:[%s12068_s20 + $0x348] sm:$0xff]  ;;  %v5171_v48 = vld [vmem:[%s12068_s20 + $0x318] sm:$0xff]  ;;  %v5102_v60 = vld [vmem:[%s12068_s20 + $0xf0] sm:$0xff] }
 0xfd9   :  { %v5179_v10 = vld [vmem:[%s12068_s20 + $0x358] sm:$0xff]  ;;  %v5109_v61 = vld [vmem:[%s12068_s20 + $0x128] sm:$0xff] }
 0xfdb   :  { %8072 = vmatpush1.bf16.msra.mxu0 %v8071_v40  ;;  %8104 = vmatpush1.bf16.msra.mxu1 %v8103_v28  ;;  %v8123_v40 = vpack.c.bf16 %v5096_v20, %v5088_v17  ;;  %v8155_v28 = vpack.c.bf16 %v5098_v21, %v5090_v5  ;;  %v5176_v17 = vld [vmem:[%s12068_s20 + $0x340] sm:$0xff]  ;;  %v8141_v20 = vpack.c.bf16 %v5177_v38, %v5169_v8  ;;  %v5178_v5 = vld [vmem:[%s12068_s20 + $0x350] sm:$0xff]  ;;  %v5185_v21 = vld [vmem:[%s12068_s20 + $0x388] sm:$0xff] }
 0xfdc   :  { %8074 = vmatprep.subr.bf16.mxu0 %v8073_v15  ;;  %8106 = vmatprep.subr.bf16.mxu1 %v8105_v30  ;;  %v8125_v15 = vpack.c.bf16 %v5113_v26, %v5105_v23  ;;  %v8157_v30 = vpack.c.bf16 %v5115_v43, %v5107_v27  ;;  %v5193_v23 = vld [vmem:[%s12068_s20 + $0x3c8] sm:$0xff]  ;;  %v5187_v26 = vld [vmem:[%s12068_s20 + $0x398] sm:$0xff]  ;;  %v6744_v43 = vld [vmem:[%s12069_s16] ss:$0 sm:$0xff] }
 0xfdd   :  { %v5195_v27 = vld [vmem:[%s12068_s20 + $0x3d8] sm:$0xff]  ;;  %v5118_v8 = vld [vmem:[%s12068_s20 + $0x170] sm:$0xff]  ;;  %v5125_v38 = vld [vmem:[%s12068_s20 + $0x1a8] sm:$0xff] }
 0xfdf   :  { %8076 = vmatpush1.bf16.msra.mxu0 %v8075_v36  ;;  %8108 = vmatpush1.bf16.msra.mxu1 %v8107_v58  ;;  %v5120_v58 = vld [vmem:[%s12068_s20 + $0x180] sm:$0xff] }
 0xfe0   :  { %8078 = vmatprep.subr.bf16.mxu0 %v8077_v44  ;;  %8110 = vmatprep.subr.bf16.mxu1 %v8109_v45  ;;  %v8161_v44 = vpack.c.bf16 %v5131_v33, %v5123_v32  ;;  %v5122_v45 = vld [vmem:[%s12068_s20 + $0x190] sm:$0xff]  ;;  %v8131_v51 = vpack.c.bf16 %v5128_v22, %v5120_v58  ;;  %v5079_v32 = vld [vmem:[%s12068_s20 + $0x38] sm:$0xff]  ;;  %v5076_v58 = vld [vmem:[%s12068_s20 + $0x20] sm:$0xff] }
 0xfe1   :  { %v5087_v33 = vld [vmem:[%s12068_s20 + $0x78] sm:$0xff]  ;;  %v5084_v22 = vld [vmem:[%s12068_s20 + $0x60] sm:$0xff] }
 0xfe3   :  { %8080 = vmatpush1.bf16.msra.mxu0 %v8079_v52  ;;  %8112 = vmatpush1.bf16.msra.mxu1 %v8111_v47  ;;  %v8163_v52 = vpack.c.bf16 %v5130_v46, %v5122_v45  ;;  %v5136_v47 = vld [vmem:[%s12068_s20 + $0x200] sm:$0xff]  ;;  %v8213_v45 = vpack.c.bf16 %v5087_v33, %v5079_v32  ;;  %v5078_v46 = vld [vmem:[%s12068_s20 + $0x30] sm:$0xff]  ;;  %v5167_v32 = vld [vmem:[%s12068_s20 + $0x2f8] sm:$0xff] }
 0xfe4   :  { %8082 = vmatprep.subr.bf16.mxu0 %v8081_v56  ;;  %8114 = vmatprep.subr.bf16.mxu1 %v8113_v57  ;;  %v8165_v56 = vpack.c.bf16 %v5147_v50, %v5139_v49  ;;  %v5138_v57 = vld [vmem:[%s12068_s20 + $0x210] sm:$0xff]  ;;  %v8135_v1 = vpack.c.bf16 %v5144_v53, %v5136_v47  ;;  %v5095_v49 = vld [vmem:[%s12068_s20 + $0xb8] sm:$0xff]  ;;  %v5092_v47 = vld [vmem:[%s12068_s20 + $0xa0] sm:$0xff] }
 0xfe5   :  { %v5103_v50 = vld [vmem:[%s12068_s20 + $0xf8] sm:$0xff]  ;;  %v5100_v53 = vld [vmem:[%s12068_s20 + $0xe0] sm:$0xff] }
 0xfe7   :  { %8084 = vmatpush1.bf16.msra.mxu0 %v8083_v41  ;;  %8116 = vmatpush1.bf16.msra.mxu1 %v8115_v11  ;;  %v8167_v41 = vpack.c.bf16 %v5146_v59, %v5138_v57  ;;  %v5152_v11 = vld [vmem:[%s12068_s20 + $0x280] sm:$0xff]  ;;  %v8217_v57 = vpack.c.bf16 %v5103_v50, %v5095_v49  ;;  %v5094_v59 = vld [vmem:[%s12068_s20 + $0xb0] sm:$0xff] }
 0xfe8   :  { %8118 = vmatprep.subr.bf16.mxu0 %v8117_v9  ;;  %8150 = vmatprep.subr.bf16.mxu1 %v8149_v6  ;;  %v8169_v9 = vpack.c.bf16 %v5163_v63, %v5155_v39  ;;  %v5154_v6 = vld [vmem:[%s12068_s20 + $0x290] sm:$0xff]  ;;  %v8139_v12 = vpack.c.bf16 %v5160_v2, %v5152_v11  ;;  %v5117_v39 = vld [vmem:[%s12068_s20 + $0x168] sm:$0xff]  ;;  %v5111_v63 = vld [vmem:[%s12068_s20 + $0x138] sm:$0xff]  ;;  %v8219_v11 = vpack.c.bf16 %v5102_v60, %v5094_v59 }
 0xfe9   :  { %v5108_v2 = vld [vmem:[%s12068_s20 + $0x120] sm:$0xff]  ;;  %v5189_v59 = vld [vmem:[%s12068_s20 + $0x3a8] sm:$0xff] }
 0xfea   :  { %5535 = vmatmul.mubr.f32.vlgmr.msra.gmra.mrb[56].mxu0 %v10581_v34  ;;  %5606 = vmatmul.mubr.f32.vlgmr.msra.gmra.mrb[92].mxu1 %v10581_v34  ;;  %v5106_v34 = vld [vmem:[%s12068_s20 + $0x110] sm:$0xff]  ;;  %v5197_v60 = vld [vmem:[%s12068_s20 + $0x3e8] sm:$0xff] }
 0xfeb   :  { %8120 = vmatpush1.bf16.msra.mxu0 %v8119_v13  ;;  %8152 = vmatpush1.bf16.msra.mxu1 %v8151_v14  ;;  %v8159_v36 = vpack.c.bf16 %v5114_v31, %v5106_v34  ;;  %v8171_v13 = vpack.c.bf16 %v5162_v7, %v5154_v6  ;;  %v5168_v14 = vld [vmem:[%s12068_s20 + $0x300] sm:$0xff]  ;;  %v5186_v34 = vld [vmem:[%s12068_s20 + $0x390] sm:$0xff] }
 0xfec   :  { %8122 = vmatprep.subr.bf16.mxu0 %v8121_v19  ;;  %8154 = vmatprep.subr.bf16.mxu1 %v8153_v16  ;;  %v8173_v19 = vpack.c.bf16 %v5179_v10, %v5171_v48  ;;  %v5170_v16 = vld [vmem:[%s12068_s20 + $0x310] sm:$0xff]  ;;  %v5133_v48 = vld [vmem:[%s12068_s20 + $0x1e8] sm:$0xff]  ;;  %v5127_v10 = vld [vmem:[%s12068_s20 + $0x1b8] sm:$0xff] }
 0xfed   :  { %5676 = vmatprep.mubr.f32.mxu0 %v8817_v3  ;;  %5747 = vmatprep.mubr.f32.mxu1 %v8817_v3  ;;  %v5194_v31 = vld [vmem:[%s12068_s20 + $0x3d0] sm:$0xff] }
 0xfee   :  { %v5110_v7 = vld [vmem:[%s12068_s20 + $0x130] sm:$0xff] }
 0xfef   :  { %8124 = vmatpush1.bf16.msra.mxu0 %v8123_v40  ;;  %8156 = vmatpush1.bf16.msra.mxu1 %v8155_v28  ;;  %v8143_v40 = vpack.c.bf16 %v5176_v17, %v5168_v14  ;;  %v8175_v28 = vpack.c.bf16 %v5178_v5, %v5170_v16  ;;  %v8223_v14 = vpack.c.bf16 %v5118_v8, %v5110_v7  ;;  %v5124_v17 = vld [vmem:[%s12068_s20 + $0x1a0] sm:$0xff]  ;;  %v5134_v5 = vld [vmem:[%s12068_s20 + $0x1f0] sm:$0xff]  ;;  %v6019_v7 = vld [vmem:[%s12070_s23 + $0x208] sm:$0xff] }
 0xff0   :  { %8126 = vmatprep.subr.bf16.mxu0 %v8125_v15  ;;  %8158 = vmatprep.subr.bf16.mxu1 %v8157_v30  ;;  %v8145_v15 = vpack.c.bf16 %v5193_v23, %v5185_v21  ;;  %v8177_v30 = vpack.c.bf16 %v5195_v27, %v5187_v26  ;;  %v5141_v21 = vld [vmem:[%s12068_s20 + $0x228] sm:$0xff]  ;;  %v5143_v26 = vld [vmem:[%s12068_s20 + $0x238] sm:$0xff] }
 0xff1   :  { %v5149_v23 = vld [vmem:[%s12068_s20 + $0x268] sm:$0xff]  ;;  %v5151_v27 = vld [vmem:[%s12068_s20 + $0x278] sm:$0xff] }
 0xff2   :  { %v6021_v8 = vld [vmem:[%s12070_s23 + $0x218] sm:$0xff] }
 0xff3   :  { %8128 = vmatpush1.bf16.msra.mxu0 %v8127_v35  ;;  %8160 = vmatpush1.bf16.msra.mxu1 %v8159_v36  ;;  %v8147_v35 = vpack.c.bf16 %v5192_v29, %v5184_v55  ;;  %v8179_v36 = vpack.c.bf16 %v5194_v31, %v5186_v34  ;;  %v5148_v55 = vld [vmem:[%s12068_s20 + $0x260] sm:$0xff]  ;;  %v8197_v29 = vpack.c.bf16 %v5149_v23, %v5141_v21  ;;  %v5150_v34 = vld [vmem:[%s12068_s20 + $0x270] sm:$0xff]  ;;  %v5157_v31 = vld [vmem:[%s12068_s20 + $0x2a8] sm:$0xff] }
 0xff4   :  { %8130 = vmatprep.subr.bf16.mxu0 %v8129_v42  ;;  %8162 = vmatprep.subr.bf16.mxu1 %v8161_v44  ;;  %v2157_v42 = vadd.f32 %v6744_v43, %v10256_v62  ;;  %v8181_v44 = vpack.c.bf16 %v5085_v25, %v5077_v24  ;;  %v5101_v62 = vld [vmem:[%s12068_s20 + $0xe8] sm:$0xff]  ;;  %v5159_v25 = vld [vmem:[%s12068_s20 + $0x2b8] sm:$0xff] }
 0xff5   :  { %v5165_v24 = vld [vmem:[%s12068_s20 + $0x2e8] sm:$0xff]  ;;  %v5961_v23 = vld [vmem:[%s12070_s23 + $0x38] sm:$0xff] }
 0xff6   :  { %v5959_v21 = vld [vmem:[%s12070_s23 + $0x28] sm:$0xff] }
 0xff7   :  { %8132 = vmatpush1.bf16.msra.mxu0 %v8131_v51  ;;  %8164 = vmatpush1.bf16.msra.mxu1 %v8163_v52  ;;  %v8183_v51 = vpack.c.bf16 %v5084_v22, %v5076_v58  ;;  %v8215_v52 = vpack.c.bf16 %v5086_v0, %v5078_v46  ;;  %v5164_v58 = vld [vmem:[%s12068_s20 + $0x2e0] sm:$0xff]  ;;  %v8201_v22 = vpack.c.bf16 %v5165_v24, %v5157_v31  ;;  %v5173_v46 = vld [vmem:[%s12068_s20 + $0x328] sm:$0xff]  ;;  %v5965_v24 = vld [vmem:[%s12070_s23 + $0x58] sm:$0xff] }
 0xff8   :  { %8134 = vmatprep.subr.bf16.mxu0 %v8133_v54  ;;  %8166 = vmatprep.subr.bf16.mxu1 %v8165_v56  ;;  %v10979_v54 = vmax.f32 %v2157_v42, 0.0  ;;  %v8185_v56 = vpack.c.bf16 %v5101_v62, %v5093_v18  ;;  %v8233_v42 = vpack.c.bf16 %v5167_v32, %v5159_v25  ;;  %v5181_v0 = vld [vmem:[%s12068_s20 + $0x368] sm:$0xff]  ;;  %v5175_v18 = vld [vmem:[%s12068_s20 + $0x338] sm:$0xff] }
 0xff9   :  { %v5183_v62 = vld [vmem:[%s12068_s20 + $0x378] sm:$0xff]  ;;  %v5963_v31 = vld [vmem:[%s12070_s23 + $0x48] sm:$0xff] }
 0xffb   :  { %8136 = vmatpush1.bf16.msra.mxu0 %v8135_v1  ;;  %8168 = vmatpush1.bf16.msra.mxu1 %v8167_v41  ;;  %v5119_v1 = vld [vmem:[%s12068_s20 + $0x178] sm:$0xff]  ;;  %v8187_v41 = vpack.c.bf16 %v5100_v53, %v5092_v47  ;;  %v8205_v47 = vpack.c.bf16 %v5181_v0, %v5173_v46  ;;  %v8237_v53 = vpack.c.bf16 %v5183_v62, %v5175_v18  ;;  %v6030_v62 = vld [vmem:[%s12070_s23 + $0x260] sm:$0xff] }
 0xffc   :  { %8138 = vmatprep.subr.bf16.mxu0 %v8137_v4  ;;  %8170 = vmatprep.subr.bf16.mxu1 %v8169_v9  ;;  %v5116_v4 = vld [vmem:[%s12068_s20 + $0x160] sm:$0xff]  ;;  %v8189_v9 = vpack.c.bf16 %v5117_v39, %v5109_v61  ;;  %v8221_v6 = vpack.c.bf16 %v5119_v1, %v5111_v63  ;;  %v5191_v61 = vld [vmem:[%s12068_s20 + $0x3b8] sm:$0xff] }
 0xffd   :  { %v5199_v39 = vld [vmem:[%s12068_s20 + $0x3f8] sm:$0xff] }
 0xffe   :  { %v5969_v46 = vld [vmem:[%s12070_s23 + $0x78] sm:$0xff] }
 0xfff   :  { %8140 = vmatpush1.bf16.msra.mxu0 %v8139_v12  ;;  %8172 = vmatpush1.bf16.msra.mxu1 %v8171_v13  ;;  %v5135_v12 = vld [vmem:[%s12068_s20 + $0x1f8] sm:$0xff]  ;;  %v8191_v13 = vpack.c.bf16 %v5116_v4, %v5108_v2  ;;  %v8209_v2 = vpack.c.bf16 %v5197_v60, %v5189_v59  ;;  %v8241_v4 = vpack.c.bf16 %v5199_v39, %v5191_v61  ;;  %v6034_v39 = vld [vmem:[%s12070_s23 + $0x280] sm:$0xff] }
0x1000   :  { %8142 = vmatprep.subr.bf16.mxu0 %v8141_v20  ;;  %8174 = vmatprep.subr.bf16.mxu1 %v8173_v19  ;;  %v5132_v20 = vld [vmem:[%s12068_s20 + $0x1e0] sm:$0xff]  ;;  %v8193_v19 = vpack.c.bf16 %v5133_v48, %v5125_v38  ;;  %v8225_v16 = vpack.c.bf16 %v5135_v12, %v5127_v10  ;;  %v5955_v38 = vld [vmem:[%s12070_s23 + $0x8] sm:$0xff]  ;;  %v5957_v48 = vld [vmem:[%s12070_s23 + $0x18] sm:$0xff] }
0x1001   :  { %v8195_v43 = vpack.c.bf16 %v5132_v20, %v5124_v17  ;;  %v8309_v17 = vpack.c.bf16 %v6021_v8, %v6019_v7  ;;  %v8245_v20 = vpack.c.bf16 %v5957_v48, %v5955_v38  ;;  %v5973_v59 = vld [vmem:[%s12070_s23 + $0x98] sm:$0xff]  ;;  %v6038_v48 = vld [vmem:[%s12070_s23 + $0x2a0] sm:$0xff] }
0x1002   :  { %v5977_v7 = vld [vmem:[%s12070_s23 + $0xb8] sm:$0xff] }
0x1003   :  { %8144 = vmatpush1.bf16.msra.mxu0 %v8143_v40  ;;  %8176 = vmatpush1.bf16.msra.mxu1 %v8175_v28  ;;  %v5140_v28 = vld [vmem:[%s12068_s20 + $0x220] sm:$0xff] }
0x1004   :  { %8146 = vmatprep.subr.bf16.mxu0 %v8145_v15  ;;  %8178 = vmatprep.subr.bf16.mxu1 %v8177_v30  ;;  %v8229_v15 = vpack.c.bf16 %v5151_v27, %v5143_v26  ;;  %v5142_v30 = vld [vmem:[%s12068_s20 + $0x230] sm:$0xff]  ;;  %v8199_v33 = vpack.c.bf16 %v5148_v55, %v5140_v28  ;;  %v8249_v55 = vpack.c.bf16 %v5961_v23, %v5959_v21  ;;  %v6042_v23 = vld [vmem:[%s12070_s23 + $0x2c0] sm:$0xff] }
0x1007   :  { %8148 = vmatpush1.bf16.msra.mxu0 %v8147_v35  ;;  %8180 = vmatpush1.bf16.msra.mxu1 %v8179_v36  ;;  %v8231_v35 = vpack.c.bf16 %v5150_v34, %v5142_v30  ;;  %v5156_v36 = vld [vmem:[%s12068_s20 + $0x2a0] sm:$0xff]  ;;  %v6027_v30 = vld [vmem:[%s12070_s23 + $0x248] sm:$0xff]  ;;  %v6029_v34 = vld [vmem:[%s12070_s23 + $0x258] sm:$0xff] }
0x1008   :  { %8182 = vmatprep.subr.bf16.mxu0 %v8181_v44  ;;  %8214 = vmatprep.subr.bf16.mxu1 %v8213_v45  ;;  %v5158_v44 = vld [vmem:[%s12068_s20 + $0x2b0] sm:$0xff]  ;;  %v8203_v49 = vpack.c.bf16 %v5164_v58, %v5156_v36  ;;  %v8317_v36 = vpack.c.bf16 %v6029_v34, %v6027_v30  ;;  %v8253_v58 = vpack.c.bf16 %v5965_v24, %v5963_v31  ;;  %v5985_v30 = vld [vmem:[%s12070_s23 + $0xf8] sm:$0xff]  ;;  %v6046_v24 = vld [vmem:[%s12070_s23 + $0x2e0] sm:$0xff] }
0x1009   :  { %v5166_v45 = vld [vmem:[%s12068_s20 + $0x2f0] sm:$0xff] }
0x100a   :  { %5677 = vmatmul.mubr.f32.vlgmr.msra.gmra.mrb[22].mxu0 %v10979_v54  ;;  %5748 = vmatmul.mubr.f32.vlgmr.msra.gmra.mrb[58].mxu1 %v10979_v54  ;;  %v8235_v50 = vpack.c.bf16 %v5166_v45, %v5158_v44  ;;  %v6033_v44 = vld [vmem:[%s12070_s23 + $0x278] sm:$0xff]  ;;  %v5967_v45 = vld [vmem:[%s12070_s23 + $0x68] sm:$0xff] }
0x100b   :  { %8184 = vmatpush1.bf16.msra.mxu0 %v8183_v51  ;;  %8216 = vmatpush1.bf16.msra.mxu1 %v8215_v52  ;;  %v5172_v51 = vld [vmem:[%s12068_s20 + $0x320] sm:$0xff] }
0x100c   :  { %8186 = vmatprep.subr.bf16.mxu0 %v8185_v56  ;;  %8218 = vmatprep.subr.bf16.mxu1 %v8217_v57  ;;  %v5180_v52 = vld [vmem:[%s12068_s20 + $0x360] sm:$0xff]  ;;  %v5174_v56 = vld [vmem:[%s12068_s20 + $0x330] sm:$0xff] }
0x100d   :  { %5818 = vmatprep.mubr.f32.mxu0 %v8817_v3  ;;  %5889 = vmatprep.mubr.f32.mxu1 %v8817_v3  ;;  %v5126_v3 = vld [vmem:[%s12068_s20 + $0x1b0] sm:$0xff]  ;;  %v8207_v63 = vpack.c.bf16 %v5180_v52, %v5172_v51  ;;  %v8257_v51 = vpack.c.bf16 %v5969_v46, %v5967_v45  ;;  %v5966_v52 = vld [vmem:[%s12070_s23 + $0x60] sm:$0xff] }
0x100e   :  { %v8227_v40 = vpack.c.bf16 %v5134_v5, %v5126_v3  ;;  %v5182_v57 = vld [vmem:[%s12068_s20 + $0x370] sm:$0xff]  ;;  %v6023_v3 = vld [vmem:[%s12070_s23 + $0x228] sm:$0xff]  ;;  %v6025_v5 = vld [vmem:[%s12070_s23 + $0x238] sm:$0xff] }
0x100f   :  { %8188 = vmatpush1.bf16.msra.mxu0 %v8187_v41  ;;  %8220 = vmatpush1.bf16.msra.mxu1 %v8219_v11  ;;  %v8239_v1 = vpack.c.bf16 %v5182_v57, %v5174_v56  ;;  %v5188_v41 = vld [vmem:[%s12068_s20 + $0x3a0] sm:$0xff]  ;;  %v8313_v28 = vpack.c.bf16 %v6025_v5, %v6023_v3  ;;  %v6037_v56 = vld [vmem:[%s12070_s23 + $0x298] sm:$0xff]  ;;  %v5971_v57 = vld [vmem:[%s12070_s23 + $0x88] sm:$0xff] }
0x1010   :  { %8190 = vmatprep.subr.bf16.mxu0 %v8189_v9  ;;  %8222 = vmatprep.subr.bf16.mxu1 %v8221_v6  ;;  %v5196_v11 = vld [vmem:[%s12068_s20 + $0x3e0] sm:$0xff]  ;;  %v5190_v9 = vld [vmem:[%s12068_s20 + $0x3b0] sm:$0xff]  ;;  %v5981_v3 = vld [vmem:[%s12070_s23 + $0xd8] sm:$0xff] }
0x1011   :  { %v5198_v6 = vld [vmem:[%s12068_s20 + $0x3f0] sm:$0xff]  ;;  %v8211_v10 = vpack.c.bf16 %v5196_v11, %v5188_v41  ;;  %v8261_v41 = vpack.c.bf16 %v5973_v59, %v5971_v57  ;;  %v5970_v11 = vld [vmem:[%s12070_s23 + $0x80] sm:$0xff] }
0x1012   :  { %v8243_v12 = vpack.c.bf16 %v5198_v6, %v5190_v9  ;;  %v6041_v9 = vld [vmem:[%s12070_s23 + $0x2b8] sm:$0xff]  ;;  %v5975_v6 = vld [vmem:[%s12070_s23 + $0xa8] sm:$0xff]  ;;  %v6050_v46 = vld [vmem:[%s12070_s23 + $0x300] sm:$0xff] }
0x1013   :  { %8192 = vmatpush1.bf16.msra.mxu0 %v8191_v13  ;;  %8224 = vmatpush1.bf16.msra.mxu1 %v8223_v14  ;;  %v6018_v13 = vld [vmem:[%s12070_s23 + $0x200] sm:$0xff]  ;;  %v6020_v14 = vld [vmem:[%s12070_s23 + $0x210] sm:$0xff] }
0x1014   :  { %8194 = vmatprep.subr.bf16.mxu0 %v8193_v19  ;;  %8226 = vmatprep.subr.bf16.mxu1 %v8225_v16  ;;  %v5954_v19 = vld [vmem:[%s12070_s23] sm:$0xff]  ;;  %v5956_v16 = vld [vmem:[%s12070_s23 + $0x10] sm:$0xff]  ;;  %v8311_v26 = vpack.c.bf16 %v6020_v14, %v6018_v13  ;;  %v8265_v13 = vpack.c.bf16 %v5977_v7, %v5975_v6 }
0x1015   :  { %v8247_v27 = vpack.c.bf16 %v5956_v16, %v5954_v19  ;;  %v5974_v14 = vld [vmem:[%s12070_s23 + $0xa0] sm:$0xff]  ;;  %v6045_v19 = vld [vmem:[%s12070_s23 + $0x2d8] sm:$0xff]  ;;  %v5979_v16 = vld [vmem:[%s12070_s23 + $0xc8] sm:$0xff] }
0x1016   :  { %v6054_v59 = vld [vmem:[%s12070_s23 + $0x320] sm:$0xff] }
0x1017   :  { %8196 = vmatpush1.bf16.msra.mxu0 %v8195_v43  ;;  %8228 = vmatpush1.bf16.msra.mxu1 %v8227_v40  ;;  %v6022_v43 = vld [vmem:[%s12070_s23 + $0x220] sm:$0xff]  ;;  %v6024_v40 = vld [vmem:[%s12070_s23 + $0x230] sm:$0xff] }
0x1018   :  { %8198 = vmatprep.subr.bf16.mxu0 %v8197_v29  ;;  %8230 = vmatprep.subr.bf16.mxu1 %v8229_v15  ;;  %v5958_v29 = vld [vmem:[%s12070_s23 + $0x20] sm:$0xff]  ;;  %v5960_v15 = vld [vmem:[%s12070_s23 + $0x30] sm:$0xff]  ;;  %v8315_v25 = vpack.c.bf16 %v6024_v40, %v6022_v43  ;;  %v8269_v43 = vpack.c.bf16 %v5981_v3, %v5979_v16 }
0x1019   :  { %v8251_v32 = vpack.c.bf16 %v5960_v15, %v5958_v29  ;;  %v5978_v40 = vld [vmem:[%s12070_s23 + $0xc0] sm:$0xff]  ;;  %v6049_v29 = vld [vmem:[%s12070_s23 + $0x2f8] sm:$0xff]  ;;  %v5983_v15 = vld [vmem:[%s12070_s23 + $0xe8] sm:$0xff] }
0x101a   :  { %v6058_v7 = vld [vmem:[%s12070_s23 + $0x340] sm:$0xff] }
0x101b   :  { %8200 = vmatpush1.bf16.msra.mxu0 %v8199_v33  ;;  %8232 = vmatpush1.bf16.msra.mxu1 %v8231_v35  ;;  %v6026_v33 = vld [vmem:[%s12070_s23 + $0x240] sm:$0xff]  ;;  %v6028_v35 = vld [vmem:[%s12070_s23 + $0x250] sm:$0xff] }
0x101c   :  { %8202 = vmatprep.subr.bf16.mxu0 %v8201_v22  ;;  %8234 = vmatprep.subr.bf16.mxu1 %v8233_v42  ;;  %v5964_v22 = vld [vmem:[%s12070_s23 + $0x50] sm:$0xff]  ;;  %v6031_v42 = vld [vmem:[%s12070_s23 + $0x268] sm:$0xff]  ;;  %v8319_v0 = vpack.c.bf16 %v6028_v35, %v6026_v33  ;;  %v8273_v33 = vpack.c.bf16 %v5985_v30, %v5983_v15  ;;  %v5982_v35 = vld [vmem:[%s12070_s23 + $0xe0] sm:$0xff] }
0x101d   :  { %v6062_v3 = vld [vmem:[%s12070_s23 + $0x360] sm:$0xff] }
0x101e   :  { %v6066_v30 = vld [vmem:[%s12070_s23 + $0x380] sm:$0xff] }
0x101f   :  { %8204 = vmatpush1.bf16.msra.mxu0 %v8203_v49  ;;  %8236 = vmatpush1.bf16.msra.mxu1 %v8235_v50  ;;  %v6032_v49 = vld [vmem:[%s12070_s23 + $0x270] sm:$0xff]  ;;  %v8321_v50 = vpack.c.bf16 %v6033_v44, %v6031_v42  ;;  %v5989_v42 = vld [vmem:[%s12070_s23 + $0x118] sm:$0xff] }
0x1020   :  { %8206 = vmatprep.subr.bf16.mxu0 %v8205_v47  ;;  %8238 = vmatprep.subr.bf16.mxu1 %v8237_v53  ;;  %v5968_v47 = vld [vmem:[%s12070_s23 + $0x70] sm:$0xff]  ;;  %v6035_v53 = vld [vmem:[%s12070_s23 + $0x288] sm:$0xff]  ;;  %v8323_v60 = vpack.c.bf16 %v6032_v49, %v6030_v62  ;;  %v5986_v49 = vld [vmem:[%s12070_s23 + $0x100] sm:$0xff] }
0x1021   :  { %v8259_v61 = vpack.c.bf16 %v5968_v47, %v5966_v52  ;;  %v6057_v52 = vld [vmem:[%s12070_s23 + $0x338] sm:$0xff]  ;;  %v5991_v47 = vld [vmem:[%s12070_s23 + $0x128] sm:$0xff] }
0x1023   :  { %8208 = vmatpush1.bf16.msra.mxu0 %v8207_v63  ;;  %8240 = vmatpush1.bf16.msra.mxu1 %v8239_v1  ;;  %v6036_v63 = vld [vmem:[%s12070_s23 + $0x290] sm:$0xff]  ;;  %v8325_v1 = vpack.c.bf16 %v6037_v56, %v6035_v53  ;;  %v5993_v53 = vld [vmem:[%s12070_s23 + $0x138] sm:$0xff] }
0x1024   :  { %8210 = vmatprep.subr.bf16.mxu0 %v8209_v2  ;;  %8242 = vmatprep.subr.bf16.mxu1 %v8241_v4  ;;  %v5972_v2 = vld [vmem:[%s12070_s23 + $0x90] sm:$0xff]  ;;  %v6039_v4 = vld [vmem:[%s12070_s23 + $0x2a8] sm:$0xff]  ;;  %v8327_v8 = vpack.c.bf16 %v6036_v63, %v6034_v39  ;;  %v8281_v39 = vpack.c.bf16 %v5993_v53, %v5991_v47  ;;  %v5990_v63 = vld [vmem:[%s12070_s23 + $0x120] sm:$0xff] }
0x1025   :  { %v8263_v38 = vpack.c.bf16 %v5972_v2, %v5970_v11  ;;  %v6061_v11 = vld [vmem:[%s12070_s23 + $0x358] sm:$0xff]  ;;  %v5995_v2 = vld [vmem:[%s12070_s23 + $0x148] sm:$0xff]  ;;  %v6074_v53 = vld [vmem:[%s12070_s23 + $0x3c0] sm:$0xff] }
0x1027   :  { %8212 = vmatpush1.bf16.msra.mxu0 %v8211_v10  ;;  %8244 = vmatpush1.bf16.msra.mxu1 %v8243_v12  ;;  %v6040_v10 = vld [vmem:[%s12070_s23 + $0x2b0] sm:$0xff]  ;;  %v8329_v12 = vpack.c.bf16 %v6041_v9, %v6039_v4  ;;  %v5997_v4 = vld [vmem:[%s12070_s23 + $0x158] sm:$0xff] }
0x1028   :  { %8310 = vmatprep.subr.bf16.mxu0 %v8309_v17  ;;  %8246 = vmatprep.subr.bf16.mxu1 %v8245_v20  ;;  %v5976_v17 = vld [vmem:[%s12070_s23 + $0xb0] sm:$0xff]  ;;  %v6043_v20 = vld [vmem:[%s12070_s23 + $0x2c8] sm:$0xff]  ;;  %v8331_v5 = vpack.c.bf16 %v6040_v10, %v6038_v48  ;;  %v8285_v48 = vpack.c.bf16 %v5997_v4, %v5995_v2  ;;  %v5994_v10 = vld [vmem:[%s12070_s23 + $0x140] sm:$0xff] }
0x1029   :  { %v8267_v21 = vpack.c.bf16 %v5976_v17, %v5974_v14  ;;  %v6065_v14 = vld [vmem:[%s12070_s23 + $0x378] sm:$0xff]  ;;  %v5999_v17 = vld [vmem:[%s12070_s23 + $0x168] sm:$0xff]  ;;  %v6078_v4 = vld [vmem:[%s12070_s23 + $0x3e0] sm:$0xff] }
0x102a   :  { %5819 = vmatmul.mubr.f32.vlgmr.msra.gmra.mrb[56].mxu0 %v10979_v54  ;;  %5890 = vmatmul.mubr.f32.vlgmr.msra.gmra.mrb[92].mxu1 %v10979_v54  ;;  %v5962_v54 = vld [vmem:[%s12070_s23 + $0x40] sm:$0xff] }
0x102b   :  { %8312 = vmatpush1.bf16.msra.mxu0 %v8311_v26  ;;  %8248 = vmatpush1.bf16.msra.mxu1 %v8247_v27  ;;  %v8255_v18 = vpack.c.bf16 %v5964_v22, %v5962_v54  ;;  %v6044_v26 = vld [vmem:[%s12070_s23 + $0x2d0] sm:$0xff]  ;;  %v8333_v27 = vpack.c.bf16 %v6045_v19, %v6043_v20  ;;  %v6053_v54 = vld [vmem:[%s12070_s23 + $0x318] sm:$0xff]  ;;  %v5987_v22 = vld [vmem:[%s12070_s23 + $0x108] sm:$0xff] }
0x102c   :  { %8314 = vmatprep.subr.bf16.mxu0 %v8313_v28  ;;  %8250 = vmatprep.subr.bf16.mxu1 %v8249_v55  ;;  %v5980_v28 = vld [vmem:[%s12070_s23 + $0xd0] sm:$0xff]  ;;  %v6047_v55 = vld [vmem:[%s12070_s23 + $0x2e8] sm:$0xff]  ;;  %v8335_v34 = vpack.c.bf16 %v6044_v26, %v6042_v23  ;;  %v8277_v62 = vpack.c.bf16 %v5989_v42, %v5987_v22  ;;  %v6001_v20 = vld [vmem:[%s12070_s23 + $0x178] sm:$0xff] }
0x102d   :  { %v8271_v31 = vpack.c.bf16 %v5980_v28, %v5978_v40  ;;  %v8289_v23 = vpack.c.bf16 %v6001_v20, %v5999_v17  ;;  %v5998_v26 = vld [vmem:[%s12070_s23 + $0x160] sm:$0xff]  ;;  %v6069_v40 = vld [vmem:[%s12070_s23 + $0x398] sm:$0xff]  ;;  %v6003_v28 = vld [vmem:[%s12070_s23 + $0x188] sm:$0xff]  ;;  %v5900_v17 = vsub.s32 0, %v9459_v37  ;;  %v5908_v20 = vsub.s32 2, %v9459_v37 }
0x102e   :  { %v6070_v42 = vld [vmem:[%s12070_s23 + $0x3a0] sm:$0xff] }
0x102f   :  { %8316 = vmatpush1.bf16.msra.mxu0 %v8315_v25  ;;  %8252 = vmatpush1.bf16.msra.mxu1 %v8251_v32  ;;  %v6048_v25 = vld [vmem:[%s12070_s23 + $0x2f0] sm:$0xff]  ;;  %v8337_v32 = vpack.c.bf16 %v6049_v29, %v6047_v55  ;;  %v6005_v55 = vld [vmem:[%s12070_s23 + $0x198] sm:$0xff] }
0x1030   :  { %8318 = vmatprep.subr.bf16.mxu0 %v8317_v36  ;;  %8254 = vmatprep.subr.bf16.mxu1 %v8253_v58  ;;  %v5984_v36 = vld [vmem:[%s12070_s23 + $0xf0] sm:$0xff]  ;;  %v6051_v58 = vld [vmem:[%s12070_s23 + $0x308] sm:$0xff]  ;;  %v8339_v44 = vpack.c.bf16 %v6048_v25, %v6046_v24  ;;  %v8293_v24 = vpack.c.bf16 %v6005_v55, %v6003_v28  ;;  %v6002_v25 = vld [vmem:[%s12070_s23 + $0x180] sm:$0xff] }
0x1031   :  { %v8275_v45 = vpack.c.bf16 %v5984_v36, %v5982_v35  ;;  %v6073_v35 = vld [vmem:[%s12070_s23 + $0x3b8] sm:$0xff]  ;;  %v6007_v36 = vld [vmem:[%s12070_s23 + $0x1a8] sm:$0xff] }
0x1033   :  { %8320 = vmatpush1.bf16.msra.mxu0 %v8319_v0  ;;  %8256 = vmatpush1.bf16.msra.mxu1 %v8255_v18  ;;  %v6052_v0 = vld [vmem:[%s12070_s23 + $0x310] sm:$0xff]  ;;  %v8341_v18 = vpack.c.bf16 %v6053_v54, %v6051_v58  ;;  %v6009_v58 = vld [vmem:[%s12070_s23 + $0x1b8] sm:$0xff] }
0x1034   :  { %8322 = vmatprep.subr.bf16.mxu0 %v8321_v50  ;;  %8258 = vmatprep.subr.bf16.mxu1 %v8257_v51  ;;  %v5988_v50 = vld [vmem:[%s12070_s23 + $0x110] sm:$0xff]  ;;  %v6055_v51 = vld [vmem:[%s12070_s23 + $0x328] sm:$0xff]  ;;  %v8343_v56 = vpack.c.bf16 %v6052_v0, %v6050_v46  ;;  %v8297_v46 = vpack.c.bf16 %v6009_v58, %v6007_v36  ;;  %v6006_v0 = vld [vmem:[%s12070_s23 + $0x1a0] sm:$0xff] }
0x1035   :  { %v8279_v57 = vpack.c.bf16 %v5988_v50, %v5986_v49  ;;  %v6077_v49 = vld [vmem:[%s12070_s23 + $0x3d8] sm:$0xff]  ;;  %v6011_v50 = vld [vmem:[%s12070_s23 + $0x1c8] sm:$0xff] }
0x1037   :  { %8324 = vmatpush1.bf16.msra.mxu0 %v8323_v60  ;;  %8260 = vmatpush1.bf16.msra.mxu1 %v8259_v61  ;;  %v6056_v60 = vld [vmem:[%s12070_s23 + $0x330] sm:$0xff]  ;;  %v8345_v61 = vpack.c.bf16 %v6057_v52, %v6055_v51  ;;  %v6013_v51 = vld [vmem:[%s12070_s23 + $0x1d8] sm:$0xff] }
0x1038   :  { %8326 = vmatprep.subr.bf16.mxu0 %v8325_v1  ;;  %8262 = vmatprep.subr.bf16.mxu1 %v8261_v41  ;;  %v5992_v1 = vld [vmem:[%s12070_s23 + $0x130] sm:$0xff]  ;;  %v6059_v41 = vld [vmem:[%s12070_s23 + $0x348] sm:$0xff]  ;;  %v8347_v9 = vpack.c.bf16 %v6056_v60, %v6054_v59  ;;  %v8301_v59 = vpack.c.bf16 %v6013_v51, %v6011_v50  ;;  %v6010_v60 = vld [vmem:[%s12070_s23 + $0x1c0] sm:$0xff] }
0x1039   :  { %v8283_v6 = vpack.c.bf16 %v5992_v1, %v5990_v63  ;;  %v6081_v63 = vld [vmem:[%s12070_s23 + $0x3f8] sm:$0xff]  ;;  %v6015_v1 = vld [vmem:[%s12070_s23 + $0x1e8] sm:$0xff] }
0x103a   :  { %v6097_v50 = vld [vmem:[%s12070_s23 + $0x478] sm:$0xff] }
0x103b   :  { %8328 = vmatpush1.bf16.msra.mxu0 %v8327_v8  ;;  %8264 = vmatpush1.bf16.msra.mxu1 %v8263_v38  ;;  %v6060_v8 = vld [vmem:[%s12070_s23 + $0x350] sm:$0xff]  ;;  %v8349_v38 = vpack.c.bf16 %v6061_v11, %v6059_v41  ;;  %v6017_v41 = vld [vmem:[%s12070_s23 + $0x1f8] sm:$0xff] }
0x103c   :  { %8330 = vmatprep.subr.bf16.mxu0 %v8329_v12  ;;  %8266 = vmatprep.subr.bf16.mxu1 %v8265_v13  ;;  %v5996_v12 = vld [vmem:[%s12070_s23 + $0x150] sm:$0xff]  ;;  %v6063_v13 = vld [vmem:[%s12070_s23 + $0x368] sm:$0xff]  ;;  %v8351_v19 = vpack.c.bf16 %v6060_v8, %v6058_v7  ;;  %v6014_v8 = vld [vmem:[%s12070_s23 + $0x1e0] sm:$0xff] }
0x103d   :  { %v8287_v16 = vpack.c.bf16 %v5996_v12, %v5994_v10  ;;  %v6080_v7 = vld [vmem:[%s12070_s23 + $0x3f0] sm:$0xff]  ;;  %v6085_v10 = vld [vmem:[%s12070_s23 + $0x418] sm:$0xff] }
0x103e   :  { %v8371_v12 = vpack.c.bf16 %v6080_v7, %v6078_v4  ;;  %v6104_v4 = vld [vmem:[%s12070_s23 + $0x4b0] sm:$0xff] }
0x103f   :  { %8332 = vmatpush1.bf16.msra.mxu0 %v8331_v5  ;;  %8268 = vmatpush1.bf16.msra.mxu1 %v8267_v21  ;;  %v6064_v5 = vld [vmem:[%s12070_s23 + $0x370] sm:$0xff]  ;;  %v8353_v21 = vpack.c.bf16 %v6065_v14, %v6063_v13 }
0x1040   :  { %8334 = vmatprep.subr.bf16.mxu0 %v8333_v27  ;;  %8270 = vmatprep.subr.bf16.mxu1 %v8269_v43  ;;  %v6000_v27 = vld [vmem:[%s12070_s23 + $0x170] sm:$0xff]  ;;  %v6067_v43 = vld [vmem:[%s12070_s23 + $0x388] sm:$0xff]  ;;  %v8355_v29 = vpack.c.bf16 %v6064_v5, %v6062_v3  ;;  %v5912_v3 = vsub.s32 3, %v9459_v37 }
0x1041   :  { %v8291_v15 = vpack.c.bf16 %v6000_v27, %v5998_v26 }
0x1043   :  { %8336 = vmatpush1.bf16.msra.mxu0 %v8335_v34  ;;  %8272 = vmatpush1.bf16.msra.mxu1 %v8271_v31  ;;  %v6068_v34 = vld [vmem:[%s12070_s23 + $0x390] sm:$0xff]  ;;  %v8357_v31 = vpack.c.bf16 %v6069_v40, %v6067_v43 }
0x1044   :  { %8338 = vmatprep.subr.bf16.mxu0 %v8337_v32  ;;  %8274 = vmatprep.subr.bf16.mxu1 %v8273_v33  ;;  %v6004_v32 = vld [vmem:[%s12070_s23 + $0x190] sm:$0xff]  ;;  %v6071_v33 = vld [vmem:[%s12070_s23 + $0x3a8] sm:$0xff]  ;;  %v8359_v54 = vpack.c.bf16 %v6068_v34, %v6066_v30 }
0x1045   :  { %v8295_v22 = vpack.c.bf16 %v6004_v32, %v6002_v25  ;;  %v6084_v30 = vld [vmem:[%s12070_s23 + $0x410] sm:$0xff]  ;;  %v6089_v25 = vld [vmem:[%s12070_s23 + $0x438] sm:$0xff] }
0x1047   :  { %8340 = vmatpush1.bf16.msra.mxu0 %v8339_v44  ;;  %8276 = vmatpush1.bf16.msra.mxu1 %v8275_v45  ;;  %v6072_v44 = vld [vmem:[%s12070_s23 + $0x3b0] sm:$0xff]  ;;  %v8361_v45 = vpack.c.bf16 %v6073_v35, %v6071_v33 }
0x1048   :  { %8342 = vmatprep.subr.bf16.mxu0 %v8341_v18  ;;  %8278 = vmatprep.subr.bf16.mxu1 %v8277_v62  ;;  %v6008_v18 = vld [vmem:[%s12070_s23 + $0x1b0] sm:$0xff]  ;;  %v6075_v62 = vld [vmem:[%s12070_s23 + $0x3c8] sm:$0xff]  ;;  %v8363_v52 = vpack.c.bf16 %v6072_v44, %v6070_v42 }
0x1049   :  { %v8299_v47 = vpack.c.bf16 %v6008_v18, %v6006_v0  ;;  %v6088_v42 = vld [vmem:[%s12070_s23 + $0x430] sm:$0xff]  ;;  %v6091_v44 = vld [vmem:[%s12070_s23 + $0x448] sm:$0xff]  ;;  %v6090_v18 = vld [vmem:[%s12070_s23 + $0x440] sm:$0xff] }
0x104b   :  { %8344 = vmatpush1.bf16.msra.mxu0 %v8343_v56  ;;  %8280 = vmatpush1.bf16.msra.mxu1 %v8279_v57  ;;  %v6076_v56 = vld [vmem:[%s12070_s23 + $0x3d0] sm:$0xff]  ;;  %v8365_v57 = vpack.c.bf16 %v6077_v49, %v6075_v62  ;;  %v6095_v49 = vld [vmem:[%s12070_s23 + $0x468] sm:$0xff] }
0x104c   :  { %8346 = vmatprep.subr.bf16.mxu0 %v8345_v61  ;;  %8282 = vmatprep.subr.bf16.mxu1 %v8281_v39  ;;  %v6012_v61 = vld [vmem:[%s12070_s23 + $0x1d0] sm:$0xff]  ;;  %v6079_v39 = vld [vmem:[%s12070_s23 + $0x3e8] sm:$0xff]  ;;  %v8367_v11 = vpack.c.bf16 %v6076_v56, %v6074_v53 }
0x104d   :  { %v8303_v2 = vpack.c.bf16 %v6012_v61, %v6010_v60  ;;  %v6092_v62 = vld [vmem:[%s12070_s23 + $0x450] sm:$0xff]  ;;  %v6099_v56 = vld [vmem:[%s12070_s23 + $0x488] sm:$0xff]  ;;  %v6098_v61 = vld [vmem:[%s12070_s23 + $0x480] sm:$0xff] }
0x104e   :  { %v8383_v51 = vpack.c.bf16 %v6092_v62, %v6090_v18  ;;  %v6096_v53 = vld [vmem:[%s12070_s23 + $0x470] sm:$0xff]  ;;  %v6123_v18 = vld [vmem:[%s12070_s23 + $0x548] sm:$0xff]  ;;  %v6125_v62 = vld [vmem:[%s12070_s23 + $0x558] sm:$0xff] }
0x104f   :  { %8348 = vmatpush1.bf16.msra.mxu0 %v8347_v9  ;;  %8284 = vmatpush1.bf16.msra.mxu1 %v8283_v6  ;;  %v8369_v9 = vpack.c.bf16 %v6081_v63, %v6079_v39  ;;  %v8305_v6 = vpack.c.bf16 %v6017_v41, %v6015_v1  ;;  %v6100_v39 = vld [vmem:[%s12070_s23 + $0x490] sm:$0xff]  ;;  %v6103_v63 = vld [vmem:[%s12070_s23 + $0x4a8] sm:$0xff]  ;;  %v6105_v1 = vld [vmem:[%s12070_s23 + $0x4b8] sm:$0xff] }
0x1050   :  { %8350 = vmatprep.subr.bf16.mxu0 %v8349_v38  ;;  %8286 = vmatprep.subr.bf16.mxu1 %v8285_v48  ;;  %v6016_v38 = vld [vmem:[%s12070_s23 + $0x1f0] sm:$0xff]  ;;  %v6083_v48 = vld [vmem:[%s12070_s23 + $0x408] sm:$0xff]  ;;  %v8391_v41 = vpack.c.bf16 %v6100_v39, %v6098_v61  ;;  %v6133_v39 = vld [vmem:[%s12070_s23 + $0x598] sm:$0xff] }
0x1051   :  { %v8307_v13 = vpack.c.bf16 %v6016_v38, %v6014_v8  ;;  %v8373_v14 = vpack.c.bf16 %v6085_v10, %v6083_v48  ;;  %v6106_v38 = vld [vmem:[%s12070_s23 + $0x4c0] sm:$0xff]  ;;  %v6108_v48 = vld [vmem:[%s12070_s23 + $0x4d0] sm:$0xff]  ;;  %v5916_v10 = vsub.s32 4, %v9459_v37  ;;  %v6131_v61 = vld [vmem:[%s12070_s23 + $0x588] sm:$0xff] }
0x1053   :  { %8352 = vmatpush1.bf16.msra.mxu0 %v8351_v19  ;;  %8288 = vmatpush1.bf16.msra.mxu1 %v8287_v16  ;;  %v11532_v19 = vld [vmem:[%s12071_s22] sm:$0xff]  ;;  %v5904_v16 = vsub.s32 1, %v9459_v37 }
0x1054   :  { %8354 = vmatprep.subr.bf16.mxu0 %v8353_v21  ;;  %8290 = vmatprep.subr.bf16.mxu1 %v8289_v23  ;;  %v5901_v5 = vrot.slane %v11532_v19, %v5900_v17  ;;  %v5909_v21 = vrot.slane %v11532_v19, %v5908_v20  ;;  %v5913_v26 = vrot.slane %v11532_v19, %v5912_v3  ;;  %v6111_v20 = vld [vmem:[%s12070_s23 + $0x4e8] sm:$0xff]  ;;  %v6113_v3 = vld [vmem:[%s12070_s23 + $0x4f8] sm:$0xff] }
0x1055   :  { %v5905_v23 = vrot.slane %v11532_v19, %v5904_v16 }
0x1057   :  { %8356 = vmatpush1.bf16.msra.mxu0 %v8355_v29  ;;  %8292 = vmatpush1.bf16.msra.mxu1 %v8291_v15  ;;  %v6082_v15 = vld [vmem:[%s12070_s23 + $0x400] sm:$0xff] }
0x1058   :  { %8358 = vmatprep.subr.bf16.mxu0 %v8357_v31  ;;  %8294 = vmatprep.subr.bf16.mxu1 %v8293_v24  ;;  %v6087_v24 = vld [vmem:[%s12070_s23 + $0x428] sm:$0xff]  ;;  %v8375_v35 = vpack.c.bf16 %v6084_v30, %v6082_v15 }
0x105b   :  { %8360 = vmatpush1.bf16.msra.mxu0 %v8359_v54  ;;  %8296 = vmatpush1.bf16.msra.mxu1 %v8295_v22  ;;  %v8377_v54 = vpack.c.bf16 %v6089_v25, %v6087_v24  ;;  %v6086_v22 = vld [vmem:[%s12070_s23 + $0x420] sm:$0xff] }
0x105c   :  { %8362 = vmatprep.subr.bf16.mxu0 %v8361_v45  ;;  %8298 = vmatprep.subr.bf16.mxu1 %v8297_v46  ;;  %v6093_v45 = vld [vmem:[%s12070_s23 + $0x458] sm:$0xff]  ;;  %v8379_v46 = vpack.c.bf16 %v6088_v42, %v6086_v22 }
0x105d   :  { %v8381_v0 = vpack.c.bf16 %v6093_v45, %v6091_v44  ;;  %v6121_v22 = vld [vmem:[%s12070_s23 + $0x538] sm:$0xff] }
0x105f   :  { %8364 = vmatpush1.bf16.msra.mxu0 %v8363_v52  ;;  %8300 = vmatpush1.bf16.msra.mxu1 %v8299_v47  ;;  %v8385_v52 = vpack.c.bf16 %v6097_v50, %v6095_v49  ;;  %v6094_v47 = vld [vmem:[%s12070_s23 + $0x460] sm:$0xff]  ;;  %v8413_v50 = vpack.c.bf16 %v6125_v62, %v6123_v18  ;;  %v6160_v62 = vld [vmem:[%s12070_s23 + $0x670] sm:$0xff] }
0x1060   :  { %8366 = vmatprep.subr.bf16.mxu0 %v8365_v57  ;;  %8302 = vmatprep.subr.bf16.mxu1 %v8301_v59  ;;  %v6101_v57 = vld [vmem:[%s12070_s23 + $0x498] sm:$0xff]  ;;  %v8387_v59 = vpack.c.bf16 %v6096_v53, %v6094_v47  ;;  %v6127_v47 = vld [vmem:[%s12070_s23 + $0x568] sm:$0xff]  ;;  %v6158_v18 = vld [vmem:[%s12070_s23 + $0x660] sm:$0xff] }
0x1061   :  { %v8389_v60 = vpack.c.bf16 %v6101_v57, %v6099_v56  ;;  %v6129_v53 = vld [vmem:[%s12070_s23 + $0x578] sm:$0xff] }
0x1062   :  { %v8417_v57 = vpack.c.bf16 %v6129_v53, %v6127_v47  ;;  %v6162_v47 = vld [vmem:[%s12070_s23 + $0x680] sm:$0xff]  ;;  %v6164_v53 = vld [vmem:[%s12070_s23 + $0x690] sm:$0xff] }
0x1063   :  { %8368 = vmatpush1.bf16.msra.mxu0 %v8367_v11  ;;  %8304 = vmatpush1.bf16.msra.mxu1 %v8303_v2  ;;  %v8393_v11 = vpack.c.bf16 %v6105_v1, %v6103_v63  ;;  %v6102_v2 = vld [vmem:[%s12070_s23 + $0x4a0] sm:$0xff]  ;;  %v8421_v1 = vpack.c.bf16 %v6133_v39, %v6131_v61  ;;  %v6168_v39 = vld [vmem:[%s12070_s23 + $0x6b0] sm:$0xff] }
0x1064   :  { %8370 = vmatprep.subr.bf16.mxu0 %v8369_v9  ;;  %8306 = vmatprep.subr.bf16.mxu1 %v8305_v6  ;;  %v6107_v9 = vld [vmem:[%s12070_s23 + $0x4c8] sm:$0xff]  ;;  %v6109_v6 = vld [vmem:[%s12070_s23 + $0x4d8] sm:$0xff]  ;;  %v8395_v7 = vpack.c.bf16 %v6104_v4, %v6102_v2  ;;  %v6166_v61 = vld [vmem:[%s12070_s23 + $0x6a0] sm:$0xff] }
0x1065   :  { %v8397_v8 = vpack.c.bf16 %v6109_v6, %v6107_v9  ;;  %v6135_v2 = vld [vmem:[%s12070_s23 + $0x5a8] sm:$0xff]  ;;  %v6137_v4 = vld [vmem:[%s12070_s23 + $0x5b8] sm:$0xff] }
0x1066   :  { %v8425_v6 = vpack.c.bf16 %v6137_v4, %v6135_v2  ;;  %v6170_v2 = vld [vmem:[%s12070_s23 + $0x6c0] sm:$0xff]  ;;  %v6172_v4 = vld [vmem:[%s12070_s23 + $0x6d0] sm:$0xff] }
0x1067   :  { %8372 = vmatpush1.bf16.msra.mxu0 %v8371_v12  ;;  %8308 = vmatpush1.bf16.msra.mxu1 %v8307_v13  ;;  %v5924_v12 = vsub.s32 6, %v9459_v37  ;;  %v5920_v13 = vsub.s32 5, %v9459_v37 }
0x1068   :  { %8374 = vmatprep.subr.bf16.mxu0 %v8373_v14  ;;  %v5928_v14 = vsub.s32 7, %v9459_v37 }
0x10dd   :  { %v5678_v27 = vpop.f32.mrb[22].mxu0  ;;  %v5749_v43 = vpop.f32.mrb[58].mxu1 }
0x10de   :  { %v5938_v40 = vadd.f32 %v5901_v5, %v5678_v27  ;;  %v5940_v28 = vadd.f32 %v5909_v21, %v5749_v43  ;;  %v5680_v55 = vpop.f32.mrb[23].mxu0  ;;  %v5751_v29 = vpop.f32.mrb[59].mxu1  ;;  %v8399_v5 = vpack.c.bf16 %v6108_v48, %v6106_v38  ;;  %v5917_v21 = vrot.slane %v11532_v19, %v5916_v10  ;;  %v6110_v27 = vld [vmem:[%s12070_s23 + $0x4e0] sm:$0xff]  ;;  %v6112_v43 = vld [vmem:[%s12070_s23 + $0x4f0] sm:$0xff]  ;;  %v6139_v38 = vld [vmem:[%s12070_s23 + $0x5c8] sm:$0xff] }
0x10df   :  { %v5939_v34 = vadd.f32 %v5905_v23, %v5680_v55  ;;  %v5941_v31 = vadd.f32 %v5913_v26, %v5751_v29  ;;  %v5925_v23 = vrot.slane %v11532_v19, %v5924_v12  ;;  %v8401_v26 = vpack.c.bf16 %v6113_v3, %v6111_v20  ;;  %v6115_v55 = vld [vmem:[%s12070_s23 + $0x508] sm:$0xff]  ;;  %v6117_v29 = vld [vmem:[%s12070_s23 + $0x518] sm:$0xff] }
0x10e0   :  { %v5946_v36 = vmax.f32 %v5938_v40, 0.0  ;;  %v5948_v58 = vmax.f32 %v5940_v28, 0.0  ;;  %v5921_v40 = vrot.slane %v11532_v19, %v5920_v13  ;;  %v5929_v28 = vrot.slane %v11532_v19, %v5928_v14  ;;  %v6141_v48 = vld [vmem:[%s12070_s23 + $0x5d8] sm:$0xff]  ;;  %v6138_v13 = vld [vmem:[%s12070_s23 + $0x5c0] sm:$0xff]  ;;  %v6140_v14 = vld [vmem:[%s12070_s23 + $0x5d0] sm:$0xff] }
0x10e1   :  { %v5947_v32 = vmax.f32 %v5939_v34, 0.0  ;;  %v5949_v33 = vmax.f32 %v5941_v31, 0.0  ;;  %v8403_v34 = vpack.c.bf16 %v6112_v43, %v6110_v27  ;;  %v8405_v19 = vpack.c.bf16 %v6117_v29, %v6115_v55  ;;  %v6143_v20 = vld [vmem:[%s12070_s23 + $0x5e8] sm:$0xff]  ;;  %v6145_v3 = vld [vmem:[%s12070_s23 + $0x5f8] sm:$0xff]  ;;  %v6146_v55 = vld [vmem:[%s12070_s23 + $0x600] sm:$0xff] }
0x10e2   :  { %v8429_v12 = vpack.c.bf16 %v6141_v48, %v6139_v38  ;;  %v6147_v27 = vld [vmem:[%s12070_s23 + $0x608] sm:$0xff]  ;;  %v6149_v43 = vld [vmem:[%s12070_s23 + $0x618] sm:$0xff]  ;;  %v6148_v29 = vld [vmem:[%s12070_s23 + $0x610] sm:$0xff] }
0x10e3   :  { %6286 = vmatprep.mubr.f32.mxu1 %v5947_v32  ;;  %6357 = vmatprep.mubr.f32.mxu0 %v5949_v33  ;;  %v6114_v33 = vld [vmem:[%s12070_s23 + $0x500] sm:$0xff]  ;;  %v6176_v38 = vld [vmem:[%s12070_s23 + $0x6f0] sm:$0xff]  ;;  %v6179_v48 = vld [vmem:[%s12070_s23 + $0x708] sm:$0xff] }
0x10e4   :  { %6287 = vmatmul.mubr.f32.vlgmr.msra.gmra.mrb[94].mxu1 %v5946_v36  ;;  %6358 = vmatmul.mubr.f32.vlgmr.msra.gmra.mrb[58].mxu0 %v5948_v58 }
0x10e5   :  { %8376 = vmatpush1.bf16.msra.mxu0 %v8375_v35  ;;  %v6116_v35 = vld [vmem:[%s12070_s23 + $0x510] sm:$0xff] }
0x10e6   :  { %8378 = vmatprep.subr.bf16.mxu0 %v8377_v54  ;;  %v6119_v54 = vld [vmem:[%s12070_s23 + $0x528] sm:$0xff]  ;;  %v8407_v44 = vpack.c.bf16 %v6116_v35, %v6114_v33  ;;  %v6152_v33 = vld [vmem:[%s12070_s23 + $0x630] sm:$0xff] }
0x10e7   :  { %v8409_v45 = vpack.c.bf16 %v6121_v22, %v6119_v54 }
0x10e9   :  { %8380 = vmatpush1.bf16.msra.mxu0 %v8379_v46  ;;  %v6118_v46 = vld [vmem:[%s12070_s23 + $0x520] sm:$0xff] }
0x10ea   :  { %8382 = vmatprep.subr.bf16.mxu0 %v8381_v0  ;;  %v6120_v0 = vld [vmem:[%s12070_s23 + $0x530] sm:$0xff] }
0x10eb   :  { %v8411_v49 = vpack.c.bf16 %v6120_v0, %v6118_v46 }
0x10ed   :  { %8384 = vmatpush1.bf16.msra.mxu0 %v8383_v51  ;;  %v6122_v51 = vld [vmem:[%s12070_s23 + $0x540] sm:$0xff] }
0x10ee   :  { %8386 = vmatprep.subr.bf16.mxu0 %v8385_v52  ;;  %v6124_v52 = vld [vmem:[%s12070_s23 + $0x550] sm:$0xff] }
0x10ef   :  { %v8415_v56 = vpack.c.bf16 %v6124_v52, %v6122_v51  ;;  %v8451_v51 = vpack.c.bf16 %v6160_v62, %v6158_v18  ;;  %v6514_v62 = vld [vmem:[%s12072_s25 + $0x30] sm:$0xff] }
0x10f1   :  { %8388 = vmatpush1.bf16.msra.mxu0 %v8387_v59  ;;  %v6126_v59 = vld [vmem:[%s12070_s23 + $0x560] sm:$0xff] }
0x10f2   :  { %8390 = vmatprep.subr.bf16.mxu0 %v8389_v60  ;;  %v6128_v60 = vld [vmem:[%s12070_s23 + $0x570] sm:$0xff] }
0x10f3   :  { %v8419_v63 = vpack.c.bf16 %v6128_v60, %v6126_v59  ;;  %v8455_v59 = vpack.c.bf16 %v6164_v53, %v6162_v47  ;;  %v6186_v53 = vld [vmem:[%s12070_s23 + $0x740] sm:$0xff] }
0x10f5   :  { %8392 = vmatpush1.bf16.msra.mxu0 %v8391_v41  ;;  %v6130_v41 = vld [vmem:[%s12070_s23 + $0x580] sm:$0xff] }
0x10f6   :  { %8394 = vmatprep.subr.bf16.mxu0 %v8393_v11  ;;  %v6132_v11 = vld [vmem:[%s12070_s23 + $0x590] sm:$0xff] }
0x10f7   :  { %v8423_v9 = vpack.c.bf16 %v6132_v11, %v6130_v41  ;;  %v8459_v41 = vpack.c.bf16 %v6168_v39, %v6166_v61  ;;  %v6516_v39 = vld [vmem:[%s12072_s25 + $0x40] sm:$0xff] }
0x10f9   :  { %8396 = vmatpush1.bf16.msra.mxu0 %v8395_v7  ;;  %v6134_v7 = vld [vmem:[%s12070_s23 + $0x5a0] sm:$0xff] }
0x10fa   :  { %8398 = vmatprep.subr.bf16.mxu0 %v8397_v8  ;;  %v6136_v8 = vld [vmem:[%s12070_s23 + $0x5b0] sm:$0xff] }
0x10fb   :  { %v8427_v10 = vpack.c.bf16 %v6136_v8, %v6134_v7  ;;  %v6174_v7 = vld [vmem:[%s12070_s23 + $0x6e0] sm:$0xff]  ;;  %v8463_v8 = vpack.c.bf16 %v6172_v4, %v6170_v2 }
0x10fc   :  { %v6190_v4 = vld [vmem:[%s12070_s23 + $0x760] sm:$0xff] }
0x10fd   :  { %8400 = vmatpush1.bf16.msra.mxu0 %v8399_v5  ;;  %v5820_v15 = vpop.f32.mrb[56].mxu0  ;;  %v5891_v30 = vpop.f32.mrb[92].mxu1  ;;  %v8431_v5 = vpack.c.bf16 %v6140_v14, %v6138_v13  ;;  %v6524_v13 = vld [vmem:[%s12072_s25 + $0x80] sm:$0xff]  ;;  %v6525_v14 = vld [vmem:[%s12072_s25 + $0x88] sm:$0xff] }
0x10fe   :  { %v11648_v31 = vadd.f32 %v5917_v21, %v5820_v15  ;;  %v11650_v24 = vadd.f32 %v5925_v23, %v5891_v30  ;;  %v5822_v25 = vpop.f32.mrb[57].mxu0  ;;  %v5893_v32 = vpop.f32.mrb[93].mxu1  ;;  %8402 = vmatprep.subr.bf16.mxu0 %v8401_v26  ;;  %v8433_v21 = vpack.c.bf16 %v6145_v3, %v6143_v20  ;;  %v6142_v23 = vld [vmem:[%s12070_s23 + $0x5e0] sm:$0xff]  ;;  %v6144_v26 = vld [vmem:[%s12070_s23 + $0x5f0] sm:$0xff]  ;;  %v6151_v15 = vld [vmem:[%s12070_s23 + $0x628] sm:$0xff]  ;;  %v8501_v3 = vpack.c.bf16 %v6525_v14, %v6524_v13 }
0x10ff   :  { %v5943_v36 = vadd.f32 %v5921_v40, %v5822_v25  ;;  %v11658_v58 = vadd.f32 %v5929_v28, %v5893_v32  ;;  %v8435_v40 = vpack.c.bf16 %v6144_v26, %v6142_v23  ;;  %v8437_v28 = vpack.c.bf16 %v6149_v43, %v6147_v27  ;;  %v6153_v30 = vld [vmem:[%s12070_s23 + $0x638] sm:$0xff]  ;;  %v6508_v20 = vld [vmem:[%s12072_s25] sm:$0xff]  ;;  %v6510_v43 = vld [vmem:[%s12072_s25 + $0x10] sm:$0xff] }
0x1100   :  { %v5950_v25 = vmax.f32 %v11648_v31, 0.0  ;;  %v8441_v32 = vpack.c.bf16 %v6153_v30, %v6151_v15  ;;  %v6157_v31 = vld [vmem:[%s12070_s23 + $0x658] sm:$0xff]  ;;  %8502 = vmatprep.subr.bf16.mxu1 %v8501_v3  ;;  %v6178_v30 = vld [vmem:[%s12070_s23 + $0x700] sm:$0xff]  ;;  %v6537_v13 = vld [vmem:[%s12072_s25 + $0xe8] sm:$0xff] }
0x1101   :  { %v5951_v42 = vmax.f32 %v5943_v36, 0.0  ;;  %8404 = vmatpush1.bf16.msra.mxu0 %v8403_v34  ;;  %v8439_v34 = vpack.c.bf16 %v6148_v29, %v6146_v55  ;;  %v5953_v35 = vmax.f32 %v11658_v58, 0.0  ;;  %v6155_v36 = vld [vmem:[%s12070_s23 + $0x648] sm:$0xff]  ;;  %v6156_v58 = vld [vmem:[%s12070_s23 + $0x650] sm:$0xff]  ;;  %v6527_v23 = vld [vmem:[%s12072_s25 + $0x98] sm:$0xff]  ;;  %v8467_v55 = vpack.c.bf16 %v6176_v38, %v6174_v7 }
0x1102   :  { %8406 = vmatprep.subr.bf16.mxu0 %v8405_v19  ;;  %v6150_v19 = vld [vmem:[%s12070_s23 + $0x620] sm:$0xff]  ;;  %v8445_v22 = vpack.c.bf16 %v6157_v31, %v6155_v36  ;;  %v6529_v29 = vld [vmem:[%s12072_s25 + $0xa8] sm:$0xff]  ;;  %v6530_v31 = vld [vmem:[%s12072_s25 + $0xb0] sm:$0xff] }
0x1103   :  { %6428 = vmatprep.mubr.f32.mxu0 %v5951_v42  ;;  %v8443_v54 = vpack.c.bf16 %v6152_v33, %v6150_v19  ;;  %v6154_v42 = vld [vmem:[%s12070_s23 + $0x640] sm:$0xff]  ;;  %v6185_v19 = vld [vmem:[%s12070_s23 + $0x738] sm:$0xff]  ;;  %v6513_v36 = vld [vmem:[%s12072_s25 + $0x28] sm:$0xff] }
0x1104   :  { %v8447_v46 = vpack.c.bf16 %v6156_v58, %v6154_v42  ;;  %v6182_v58 = vld [vmem:[%s12070_s23 + $0x720] sm:$0xff] }
0x1105   :  { %8408 = vmatpush1.bf16.msra.mxu0 %v8407_v44  ;;  %v6159_v44 = vld [vmem:[%s12070_s23 + $0x668] sm:$0xff]  ;;  %v6194_v3 = vld [vmem:[%s12070_s23 + $0x780] sm:$0xff] }
0x1106   :  { %8410 = vmatprep.subr.bf16.mxu0 %v8409_v45  ;;  %v6161_v45 = vld [vmem:[%s12070_s23 + $0x678] sm:$0xff] }
0x1107   :  { %v8449_v0 = vpack.c.bf16 %v6161_v45, %v6159_v44  ;;  %v6184_v44 = vld [vmem:[%s12070_s23 + $0x730] sm:$0xff]  ;;  %v6187_v45 = vld [vmem:[%s12070_s23 + $0x748] sm:$0xff] }
0x1109   :  { %8412 = vmatpush1.bf16.msra.mxu0 %v8411_v49  ;;  %v6163_v49 = vld [vmem:[%s12070_s23 + $0x688] sm:$0xff] }
0x110a   :  { %8414 = vmatprep.subr.bf16.mxu0 %v8413_v50  ;;  %v6165_v50 = vld [vmem:[%s12070_s23 + $0x698] sm:$0xff] }
0x110b   :  { %v8453_v52 = vpack.c.bf16 %v6165_v50, %v6163_v49  ;;  %v6515_v49 = vld [vmem:[%s12072_s25 + $0x38] sm:$0xff]  ;;  %v6532_v50 = vld [vmem:[%s12072_s25 + $0xc0] sm:$0xff] }
0x110d   :  { %8416 = vmatpush1.bf16.msra.mxu0 %v8415_v56  ;;  %v6167_v56 = vld [vmem:[%s12070_s23 + $0x6a8] sm:$0xff] }
0x110e   :  { %8418 = vmatprep.subr.bf16.mxu0 %v8417_v57  ;;  %v6169_v57 = vld [vmem:[%s12070_s23 + $0x6b8] sm:$0xff] }
0x110f   :  { %v8457_v60 = vpack.c.bf16 %v6169_v57, %v6167_v56  ;;  %v6188_v56 = vld [vmem:[%s12070_s23 + $0x750] sm:$0xff]  ;;  %v6191_v57 = vld [vmem:[%s12070_s23 + $0x768] sm:$0xff] }
0x1111   :  { %8420 = vmatpush1.bf16.msra.mxu0 %v8419_v63  ;;  %v6171_v63 = vld [vmem:[%s12070_s23 + $0x6c8] sm:$0xff] }
0x1112   :  { %8422 = vmatprep.subr.bf16.mxu0 %v8421_v1  ;;  %v6173_v1 = vld [vmem:[%s12070_s23 + $0x6d8] sm:$0xff] }
0x1113   :  { %v8461_v11 = vpack.c.bf16 %v6173_v1, %v6171_v63  ;;  %v6517_v63 = vld [vmem:[%s12072_s25 + $0x48] sm:$0xff]  ;;  %v6534_v1 = vld [vmem:[%s12072_s25 + $0xd0] sm:$0xff] }
0x1114   :  { %v8519_v7 = vpack.c.bf16 %v6517_v63, %v6516_v39 }
0x1115   :  { %8424 = vmatpush1.bf16.msra.mxu0 %v8423_v9  ;;  %v6175_v9 = vld [vmem:[%s12070_s23 + $0x6e8] sm:$0xff] }
0x1116   :  { %8426 = vmatprep.subr.bf16.mxu0 %v8425_v6  ;;  %v6177_v6 = vld [vmem:[%s12070_s23 + $0x6f8] sm:$0xff] }
0x1119   :  { %8428 = vmatpush1.bf16.msra.mxu0 %v8427_v10  ;;  %v6181_v10 = vld [vmem:[%s12070_s23 + $0x718] sm:$0xff] }
0x111a   :  { %8430 = vmatprep.subr.bf16.mxu0 %v8429_v12  ;;  %v8465_v12 = vpack.c.bf16 %v6177_v6, %v6175_v9  ;;  %v8469_v15 = vpack.c.bf16 %v6181_v10, %v6179_v48  ;;  %v6192_v9 = vld [vmem:[%s12070_s23 + $0x770] sm:$0xff]  ;;  %v6195_v6 = vld [vmem:[%s12070_s23 + $0x788] sm:$0xff]  ;;  %v6519_v10 = vld [vmem:[%s12072_s25 + $0x58] sm:$0xff] }
0x111b   :  { %v6518_v48 = vld [vmem:[%s12072_s25 + $0x50] sm:$0xff]  ;;  %v8483_v14 = vpack.c.bf16 %v6192_v9, %v6190_v4 }
0x111d   :  { %8432 = vmatpush1.bf16.msra.mxu0 %v8431_v5  ;;  %v6509_v5 = vld [vmem:[%s12072_s25 + $0x8] sm:$0xff] }
0x111e   :  { %8434 = vmatprep.subr.bf16.mxu0 %v8433_v21  ;;  %v6526_v21 = vld [vmem:[%s12072_s25 + $0x90] sm:$0xff]  ;;  %v8503_v26 = vpack.c.bf16 %v6509_v5, %v6508_v20 }
0x111f   :  { %v8505_v27 = vpack.c.bf16 %v6527_v23, %v6526_v21  ;;  %v6196_v5 = vld [vmem:[%s12070_s23 + $0x790] sm:$0xff]  ;;  %v8523_v21 = vpack.c.bf16 %v6519_v10, %v6518_v48  ;;  %v6199_v23 = vld [vmem:[%s12070_s23 + $0x7a8] sm:$0xff] }
0x1120   :  { %8504 = vmatpush3.bf16.msra.mxu1 %v8503_v26  ;;  %v6201_v26 = vld [vmem:[%s12070_s23 + $0x7b8] sm:$0xff] }
0x1121   :  { %8436 = vmatpush1.bf16.msra.mxu0 %v8435_v40  ;;  %v6511_v40 = vld [vmem:[%s12072_s25 + $0x18] sm:$0xff]  ;;  %8506 = vmatprep.subr.bf16.mxu1 %v8505_v27 }
0x1122   :  { %8438 = vmatprep.subr.bf16.mxu0 %v8437_v28  ;;  %v6528_v28 = vld [vmem:[%s12072_s25 + $0xa0] sm:$0xff] }
0x1123   :  { %v8509_v33 = vpack.c.bf16 %v6529_v29, %v6528_v28  ;;  %v6198_v28 = vld [vmem:[%s12070_s23 + $0x7a0] sm:$0xff]  ;;  %v6203_v29 = vld [vmem:[%s12070_s23 + $0x7c8] sm:$0xff] }
0x1124   :  { %6429 = vmatmul.mubr.f32.vlgmr.msra.gmra.mrb[58].mxu0 %v5950_v25  ;;  %v6183_v25 = vld [vmem:[%s12070_s23 + $0x728] sm:$0xff] }
0x1125   :  { %8440 = vmatpush1.bf16.msra.mxu0 %v8439_v34  ;;  %6499 = vmatprep.mubr.f32.mxu0 %v5953_v35  ;;  %v6180_v34 = vld [vmem:[%s12070_s23 + $0x710] sm:$0xff]  ;;  %v6512_v35 = vld [vmem:[%s12072_s25 + $0x20] sm:$0xff]  ;;  %v8473_v42 = vpack.c.bf16 %v6185_v19, %v6183_v25  ;;  %v6207_v19 = vld [vmem:[%s12070_s23 + $0x7e8] sm:$0xff] }
0x1126   :  { %8442 = vmatprep.subr.bf16.mxu0 %v8441_v32  ;;  %v8507_v32 = vpack.c.bf16 %v6511_v40, %v6510_v43  ;;  %v8487_v43 = vpack.c.bf16 %v6196_v5, %v6194_v3  ;;  %v8489_v40 = vpack.c.bf16 %v6201_v26, %v6199_v23  ;;  %v6202_v25 = vld [vmem:[%s12070_s23 + $0x7c0] sm:$0xff] }
0x1128   :  { %8508 = vmatpush3.bf16.msra.mxu1 %v8507_v32  ;;  %v6204_v32 = vld [vmem:[%s12070_s23 + $0x7d0] sm:$0xff] }
0x1129   :  { %8444 = vmatpush1.bf16.msra.mxu0 %v8443_v54  ;;  %v6531_v54 = vld [vmem:[%s12072_s25 + $0xb8] sm:$0xff]  ;;  %8510 = vmatprep.subr.bf16.mxu1 %v8509_v33 }
0x112a   :  { %8446 = vmatprep.subr.bf16.mxu0 %v8445_v22  ;;  %v8471_v22 = vpack.c.bf16 %v6180_v34, %v6178_v30  ;;  %v8513_v18 = vpack.c.bf16 %v6531_v54, %v6530_v31  ;;  %v6209_v33 = vld [vmem:[%s12070_s23 + $0x7f8] sm:$0xff]  ;;  %v6206_v31 = vld [vmem:[%s12070_s23 + $0x7e0] sm:$0xff]  ;;  %v6208_v54 = vld [vmem:[%s12070_s23 + $0x7f0] sm:$0xff] }
0x112d   :  { %8448 = vmatpush1.bf16.msra.mxu0 %v8447_v46  ;;  %v8511_v46 = vpack.c.bf16 %v6513_v36, %v6512_v35  ;;  %v8495_v35 = vpack.c.bf16 %v6204_v32, %v6202_v25  ;;  %v8497_v36 = vpack.c.bf16 %v6209_v33, %v6207_v19 }
0x112e   :  { %8450 = vmatprep.subr.bf16.mxu0 %v8449_v0  ;;  %v6189_v0 = vld [vmem:[%s12070_s23 + $0x758] sm:$0xff] }
0x112f   :  { %v8477_v47 = vpack.c.bf16 %v6189_v0, %v6187_v45  ;;  %8512 = vmatpush3.bf16.msra.mxu1 %v8511_v46  ;;  %v6538_v0 = vld [vmem:[%s12072_s25 + $0xf0] sm:$0xff] }
0x1130   :  { %8514 = vmatprep.subr.bf16.mxu1 %v8513_v18 }
0x1131   :  { %8452 = vmatpush1.bf16.msra.mxu0 %v8451_v51  ;;  %v6533_v51 = vld [vmem:[%s12072_s25 + $0xc8] sm:$0xff] }
0x1132   :  { %8454 = vmatprep.subr.bf16.mxu0 %v8453_v52  ;;  %v8475_v52 = vpack.c.bf16 %v6184_v44, %v6182_v58  ;;  %v8517_v61 = vpack.c.bf16 %v6533_v51, %v6532_v50  ;;  %v6520_v58 = vld [vmem:[%s12072_s25 + $0x60] sm:$0xff]  ;;  %v6521_v44 = vld [vmem:[%s12072_s25 + $0x68] sm:$0xff]  ;;  %v6523_v50 = vld [vmem:[%s12072_s25 + $0x78] sm:$0xff] }
0x1133   :  { %v8527_v45 = vpack.c.bf16 %v6521_v44, %v6520_v58 }
0x1135   :  { %8456 = vmatpush1.bf16.msra.mxu0 %v8455_v59  ;;  %v8515_v59 = vpack.c.bf16 %v6515_v49, %v6514_v62  ;;  %v6522_v49 = vld [vmem:[%s12072_s25 + $0x70] sm:$0xff] }
0x1136   :  { %8458 = vmatprep.subr.bf16.mxu0 %v8457_v60  ;;  %v6193_v60 = vld [vmem:[%s12070_s23 + $0x778] sm:$0xff]  ;;  %v8531_v51 = vpack.c.bf16 %v6523_v50, %v6522_v49 }
0x1137   :  { %v8481_v2 = vpack.c.bf16 %v6193_v60, %v6191_v57  ;;  %8516 = vmatpush3.bf16.msra.mxu1 %v8515_v59 }
0x1138   :  { %8518 = vmatprep.subr.bf16.mxu1 %v8517_v61 }
0x1139   :  { %8460 = vmatpush1.bf16.msra.mxu0 %v8459_v41  ;;  %v6535_v41 = vld [vmem:[%s12072_s25 + $0xd8] sm:$0xff] }
0x113a   :  { %8462 = vmatprep.subr.bf16.mxu0 %v8461_v11  ;;  %v8479_v11 = vpack.c.bf16 %v6188_v56, %v6186_v53  ;;  %v8521_v38 = vpack.c.bf16 %v6535_v41, %v6534_v1  ;;  %v32_v41 = vstv %s12074_s26 }
0x113b   :  { %8520 = vmatpush3.bf16.msra.mxu1 %v8519_v7  ;;  %33 = vst [vmem:[#allocation2] sm:$0x1] %v32_v41 }
0x113c   :  { %8522 = vmatprep.subr.bf16.mxu1 %v8521_v38 }
0x113d   :  { %8464 = vmatpush1.bf16.msra.mxu0 %v8463_v8  ;;  %v6197_v8 = vld [vmem:[%s12070_s23 + $0x798] sm:$0xff] }
0x113e   :  { %8466 = vmatprep.subr.bf16.mxu0 %v8465_v12  ;;  %v6536_v12 = vld [vmem:[%s12072_s25 + $0xe0] sm:$0xff]  ;;  %v8485_v20 = vpack.c.bf16 %v6197_v8, %v6195_v6 }
0x113f   :  { %v8525_v27 = vpack.c.bf16 %v6537_v13, %v6536_v12  ;;  %8524 = vmatpush3.bf16.msra.mxu1 %v8523_v21 }
0x1141   :  { %8468 = vmatpush1.bf16.msra.mxu0 %v8467_v55  ;;  %v6200_v55 = vld [vmem:[%s12070_s23 + $0x7b0] sm:$0xff]  ;;  %8526 = vmatprep.subr.bf16.mxu1 %v8525_v27 }
0x1142   :  { %8470 = vmatprep.subr.bf16.mxu0 %v8469_v15  ;;  %v6205_v15 = vld [vmem:[%s12070_s23 + $0x7d8] sm:$0xff]  ;;  %v8491_v30 = vpack.c.bf16 %v6200_v55, %v6198_v28 }
0x1143   :  { %v8493_v34 = vpack.c.bf16 %v6205_v15, %v6203_v29  ;;  %8528 = vmatpush3.bf16.msra.mxu1 %v8527_v45 }
0x1145   :  { %8472 = vmatpush1.bf16.msra.mxu0 %v8471_v22  ;;  %v8499_v22 = vpack.c.bf16 %v6208_v54, %v6206_v31 }
0x1146   :  { %8474 = vmatprep.subr.bf16.mxu0 %v8473_v42  ;;  %v5952_v42 = vmax.f32 %v11650_v24, 0.0  ;;  %v6539_v24 = vld [vmem:[%s12072_s25 + $0xf8] sm:$0xff] }
0x1147   :  { %v8529_v62 = vpack.c.bf16 %v6539_v24, %v6538_v0 }
0x1149   :  { %8476 = vmatpush1.bf16.msra.mxu0 %v8475_v52  ;;  %8530 = vmatprep.subr.bf16.mxu1 %v8529_v62  ;;  %v6210_v52 = vld [vmem:[%s12073_s24] sm:$0x3] }
0x114a   :  { %8478 = vmatprep.subr.bf16.mxu0 %v8477_v47  ;;  %8532 = vmatpush3.bf16.msra.mxu1 %v8531_v51  ;;  %v6215_v47 = vrot.slane %v6210_v52, %v5900_v17  ;;  %v6219_v53 = vrot.slane %v6210_v52, %v5904_v16  ;;  %v7003_v17 = vld [vmem:[#allocation2] ss:$0 sm:$0xff] }
0x114d   :  { %8480 = vmatpush1.bf16.msra.mxu0 %v8479_v11 }
0x114e   :  { %8482 = vmatprep.subr.bf16.mxu0 %v8481_v2 }
0x1151   :  { %8484 = vmatpush1.bf16.msra.mxu0 %v8483_v14 }
0x1152   :  { %8486 = vmatprep.subr.bf16.mxu0 %v8485_v20 }
0x1155   :  { %8488 = vmatpush1.bf16.msra.mxu0 %v8487_v43 }
0x1156   :  { %8490 = vmatprep.subr.bf16.mxu0 %v8489_v40 }
0x1159   :  { %8492 = vmatpush1.bf16.msra.mxu0 %v8491_v30 }
0x115a   :  { %8494 = vmatprep.subr.bf16.mxu0 %v8493_v34 }
0x115d   :  { %8496 = vmatpush1.bf16.msra.mxu0 %v8495_v35 }
0x115e   :  { %8498 = vmatprep.subr.bf16.mxu0 %v8497_v36 }
0x1161   :  { %8500 = vmatpush1.bf16.msra.mxu0 %v8499_v22 }
0x1164   :  { %6500 = vmatmul.mubr.f32.vlgmr.msra.gmra.mrb[58].mxu0 %v5952_v42 }
0x11b7   :  { %v6288_v46 = vpop.f32.mrb[94].mxu1 }
0x11b8   :  { %v6290_v18 = vpop.f32.mrb[95].mxu1  ;;  %v6289_v56 = vadd.f32 %v6288_v46, %v6215_v47 }
0x11b9   :  { %v6291_v57 = vadd.f32 %v6290_v18, %v6219_v53 }
0x1237   :  { %v6501_v59 = vpop.f32.mrb[58].mxu0 }
0x1238   :  { %v8534_v60 = vadd.f32 %v6501_v59, %v6289_v56  ;;  %v6503_v61 = vpop.f32.mrb[59].mxu0 }
0x1239   :  { %v8536_v39 = vadd.f32 %v6503_v61, %v6291_v57 }
0x123a   :  { %v6506_v1 = vmax.f32 %v8534_v60, 0.0 }
0x123b   :  { %v6507_v63 = vmax.f32 %v8536_v39, 0.0 }
0x123d   :  { %6611 = vmatprep.mubr.f32.mxu1 %v6507_v63 }
0x123e   :  { %6612 = vmatmul.mubr.f32.vlgmr.msra.gmra.mrb[96].mxu1 %v6506_v1 }
0x1311   :  { %v7566_v11 = vpop.f32.mrb[96].mxu1 }
0x1312   :  { %v7567_v2 = vpop.f32.mrb[97].mxu1 }
0x1313   :  { %v7568_v37 = vadd.f32 %v7567_v2, %v7566_v11 }
0x1315   :  { %v6614_v16 = vadd.f32 %v7568_v37, %v7003_v17 }
0x1317   :  { %6618 = vst.msk [vmem:[%s12075_s27] sm:$0x3] %vm6617_vm3, %v6614_v16 }

</bundles_post_ra>
